<compile_context>
chip_gen: v5e
topology: v5e:2x2
jax: 0.10.0
libtpu: 0.0.40
codegen_flags: <defaults>
</compile_context>

<pallas_src>
import numpy as np
import jax
import jax.numpy as jnp
from jax import lax
from jax.experimental import pallas as pl
from jax.experimental.pallas import tpu as pltpu

# ------------------------------------------------------------ geometry -----
IN_HW = 32                      # input spatial size implied by fc1 (16*5*5=400)
S = IN_HW * IN_HW               # 1024 lanes per sample plane
K = 5                           # conv kernel size
C1_OUT, C2_OUT = 6, 16
FC1_IN, FC1_OUT, FC2_OUT = 400, 340, 19
FC1_PAD = 384                   # pad 340 -> 3*128 lanes (zero-padded weights)

# max valid "destination" spatial lane per stage (within one 1024-lane plane)
_D_CONV1 = 32 * 27 + 27         # conv1 out (28x28), stride-1 grid
_D_CONV2 = 64 * 9 + 2 * 9       # conv2 out (10x10), stride-2 dilated grid
_D_POOL2 = 128 * 4 + 4 * 4      # pool2 out (5x5),  stride-4 dilated grid


def _lengths(batch):
    l1 = (batch - 1) * S + _D_CONV1 + 1     # conv1 accumulator width
    l2 = (batch - 1) * S + _D_CONV2 + 1     # conv2 accumulator width
    l3 = (batch - 1) * S + _D_POOL2 + 1     # pool2 width
    return l1, l2, l3


def _selection_matrix(batch):
    """0/1 matrix gathering the 5x5 valid pool2 lanes per sample (MXU gather)."""
    _, _, l3 = _lengths(batch)
    sel = np.zeros((l3, batch * 25), np.float32)
    for n in range(batch):
        for a in range(5):
            for b in range(5):
                sel[n * S + 128 * a + 4 * b, n * 25 + 5 * a + b] = 1.0
    return jnp.asarray(sel)


# ------------------------------------------------------------- kernel ------
def _net_kernel(x_ref, w1_ref, b1_ref, w2_ref, b2_ref,
                wf1_ref, bf1_ref, wf2_ref, bf2_ref, sel_ref,
                o_ref, patch1_ref, patch2_ref, xflat_ref):
    n = o_ref.shape[0]
    l1 = patch1_ref.shape[1]
    l1p = l1 - 33                    # pool1 width
    l2 = patch2_ref.shape[1]
    l3 = l2 - 66                     # pool2 width

    # ---- conv1: im2col patch matrix in VMEM scratch, one MXU matmul --------
    for ki in range(K):
        for kj in range(K):
            t = ki * K + kj
            off = 32 * ki + kj
            patch1_ref[t:t + 1, :] = x_ref[:, off:off + l1]
    acc1 = jnp.dot(w1_ref[...], patch1_ref[...],
                   preferred_element_type=jnp.float32) + b1_ref[...]   # (6, l1)

    # ---- fused relu(maxpool 2x2): 4-way shifted-slice max (stays in VMEM) --
    pool1 = jnp.maximum(
        jnp.maximum(acc1[:, 0:l1p], acc1[:, 1:1 + l1p]),
        jnp.maximum(acc1[:, 32:32 + l1p], acc1[:, 33:33 + l1p]))
    pool1 = jnp.maximum(pool1, 0.0)          # (6, l1p), stride-2 dilated grid

    # ---- conv2: (150, l2) patch matrix in VMEM scratch, one MXU matmul -----
    for ki in range(K):
        for kj in range(K):
            t = ki * K + kj
            off = 64 * ki + 2 * kj           # tap offsets on the dilated grid
            patch2_ref[6 * t:6 * (t + 1), :] = pool1[:, off:off + l2]
    acc2 = jnp.dot(w2_ref[...], patch2_ref[...],
                   preferred_element_type=jnp.float32) + b2_ref[...]   # (16, l2)

    # ---- fused relu(maxpool 2x2) on the stride-2 grid ----------------------
    pool2 = jnp.maximum(
        jnp.maximum(acc2[:, 0:l3], acc2[:, 2:2 + l3]),
        jnp.maximum(acc2[:, 64:64 + l3], acc2[:, 66:66 + l3]))
    pool2 = jnp.maximum(pool2, 0.0)          # (16, l3), stride-4 dilated grid

    # ---- compact the 25 valid lanes per sample via selection matmul --------
    comp = jnp.dot(pool2, sel_ref[...],
                   preferred_element_type=jnp.float32)                 # (16, n*25)

    # ---- flatten exactly like torch's x.view(-1, 400): (c, h, w) order -----
    for bi in range(n):
        for c in range(C2_OUT):
            xflat_ref[bi:bi + 1, c * 25:(c + 1) * 25] = \
                comp[c:c + 1, bi * 25:(bi + 1) * 25]
    xflat = xflat_ref[...]                                             # (n, 400)

    # ---- fc1 + relu + (dropout = identity) + fc2 + log_softmax(dim=0) ------
    # TODO(synk): nn.Dropout(0.3) is identity at inference time; no RNG applied.
    h = jnp.dot(xflat, wf1_ref[...],
                preferred_element_type=jnp.float32) + bf1_ref[...]     # (n, 384)
    h = jnp.maximum(h, 0.0)
    logits = jnp.dot(h, wf2_ref[...],
                     preferred_element_type=jnp.float32) + bf2_ref[...]  # (n, 19)
    m = jnp.max(logits, axis=0, keepdims=True)       # softmax over the batch axis
    sft = logits - m
    lse = jnp.log(jnp.sum(jnp.exp(sft), axis=0, keepdims=True))
    o_ref[...] = sft - lse


# ------------------------------------------------------------- wrapper -----
def init_params(key):
    """PyTorch-style shapes: conv (Cout,Cin,KH,KW), linear (out,in)."""
    ks = jax.random.split(key, 8)

    def u(k, shape, fan_in):
        bound = 1.0 / jnp.sqrt(jnp.float32(fan_in))
        return jax.random.uniform(k, shape, jnp.float32, -bound, bound)

    return {
        "w_conv1": u(ks[0], (6, 1, 5, 5), 25),
        "b_conv1": u(ks[1], (6,), 25),
        "w_conv2": u(ks[2], (16, 6, 5, 5), 150),
        "b_conv2": u(ks[3], (16,), 150),
        "w_fc1": u(ks[4], (340, 400), 400),
        "b_fc1": u(ks[5], (340,), 400),
        "w_fc2": u(ks[6], (19, 340), 340),
        "b_fc2": u(ks[7], (19,), 340),
    }


@jax.jit
def net_forward(params, x_nchw):
    n = x_nchw.shape[0]
    l1, l2, l3 = _lengths(n)

    # input: lane index = n*1024 + 32*h + w, single (Cin=1) row
    x_lanes = x_nchw.reshape(1, n * S)

    # conv weights, column order matching the in-kernel patch matrices
    w1 = params["w_conv1"].reshape(C1_OUT, 25)                    # col = 5*ki+kj
    b1 = params["b_conv1"].reshape(C1_OUT, 1)
    w2 = jnp.transpose(params["w_conv2"], (0, 2, 3, 1)).reshape(C2_OUT, 150)
    b2 = params["b_conv2"].reshape(C2_OUT, 1)                     # col=(5ki+kj)*6+cin

    # fc weights, zero-padded to a lane-friendly hidden width (340 -> 384)
    wf1 = jnp.zeros((FC1_IN, FC1_PAD), jnp.float32).at[:, :FC1_OUT].set(
        params["w_fc1"].T)
    bf1 = jnp.zeros((1, FC1_PAD), jnp.float32).at[:, :FC1_OUT].set(
        params["b_fc1"])
    wf2 = jnp.zeros((FC1_PAD, FC2_OUT), jnp.float32).at[:FC1_OUT, :].set(
        params["w_fc2"].T)
    bf2 = params["b_fc2"].reshape(1, FC2_OUT)

    sel = _selection_matrix(n)      # numpy-built constant (trace time)

    in_specs = [pl.BlockSpec(memory_space=pltpu.MemorySpace.VMEM)
                for _ in range(10)]
    return pl.pallas_call(
        _net_kernel,
        out_shape=jax.ShapeDtypeStruct((n, FC2_OUT), jnp.float32),
        in_specs=in_specs,
        out_specs=pl.BlockSpec(memory_space=pltpu.MemorySpace.VMEM),
        scratch_shapes=[
            pltpu.VMEM((25, l1), jnp.float32),     # conv1 im2col patches
            pltpu.VMEM((150, l2), jnp.float32),    # conv2 im2col patches
            pltpu.VMEM((n, FC1_IN), jnp.float32),  # flattened (N, 400)
        ],
    )(x_lanes, w1, b1, w2, b2, wf1, bf1, wf2, bf2, sel)


# -------------------------------------------------------- pure-JAX reference
def reference_forward(params, x_nchw):
    y = lax.conv_general_dilated(
        x_nchw, params["w_conv1"], (1, 1), "VALID",
        dimension_numbers=("NCHW", "OIHW", "NCHW"))
    y = y + params["b_conv1"][None, :, None, None]
    y = lax.reduce_window(y, -jnp.inf, lax.max, (1, 1, 2, 2), (1, 1, 2, 2), "VALID")
    y = jnp.maximum(y, 0.0)
    y = lax.conv_general_dilated(
        y, params["w_conv2"], (1, 1), "VALID",
        dimension_numbers=("NCHW", "OIHW", "NCHW"))
    y = y + params["b_conv2"][None, :, None, None]
    y = lax.reduce_window(y, -jnp.inf, lax.max, (1, 1, 2, 2), (1, 1, 2, 2), "VALID")
    y = jnp.maximum(y, 0.0)
    y = y.reshape(y.shape[0], -1)
    y = jnp.maximum(y @ params["w_fc1"].T + params["b_fc1"], 0.0)
    y = y @ params["w_fc2"].T + params["b_fc2"]
    return jax.nn.log_softmax(y, axis=0)


if __name__ == "__main__":
    key = jax.random.PRNGKey(0)
    pkey, xkey = jax.random.split(key)
    params = init_params(pkey)

    # input implied by fc1 (400 = 16*5*5): (batch, 1, 32, 32); batch kept small
    x = jax.random.normal(xkey, (2, 1, 32, 32), jnp.float32)

    out = jax.block_until_ready(net_forward(params, x))
    assert out.shape == (2, 19), out.shape

    ref = reference_forward(params, x)
    if not bool(jnp.allclose(out, ref, atol=2e-2, rtol=2e-2)):
        raise AssertionError("Pallas output mismatch vs pure-JAX reference")

    print("KERNEL_OK")
</pallas_src>

<mosaic_0001>
module attributes {stable_mosaic.version = 11 : i64} {
  func.func @_net_kernel(%arg0: memref<1x2048xf32, #tpu.memory_space<vmem>>, %arg1: memref<6x25xf32, #tpu.memory_space<vmem>>, %arg2: memref<6x1xf32, #tpu.memory_space<vmem>>, %arg3: memref<16x150xf32, #tpu.memory_space<vmem>>, %arg4: memref<16x1xf32, #tpu.memory_space<vmem>>, %arg5: memref<400x384xf32, #tpu.memory_space<vmem>>, %arg6: memref<1x384xf32, #tpu.memory_space<vmem>>, %arg7: memref<384x19xf32, #tpu.memory_space<vmem>>, %arg8: memref<1x19xf32, #tpu.memory_space<vmem>>, %arg9: memref<1553x50xf32, #tpu.memory_space<vmem>>, %arg10: memref<2x19xf32, #tpu.memory_space<vmem>>, %arg11: memref<25x1916xf32, #tpu.memory_space<vmem>>, %arg12: memref<150x1619xf32, #tpu.memory_space<vmem>>, %arg13: memref<2x400xf32, #tpu.memory_space<vmem>>) attributes {dimension_semantics = [], scalar_prefetch = 0 : i64, scratch_operands = 3 : i64, tpu.core_type = #tpu.core_type<tc>} {
    %c0 = arith.constant 0 : index
    %c0_0 = arith.constant 0 : index
    %0 = vector.load %arg0[%c0, %c0_0] : memref<1x2048xf32, #tpu.memory_space<vmem>>, vector<1x1916xf32>
    %c0_1 = arith.constant 0 : index
    %c0_2 = arith.constant 0 : index
    %1 = vector.load %arg11[%c0_1, %c0_2] : memref<25x1916xf32, #tpu.memory_space<vmem>>, vector<1x1916xf32>
    tpu.vector_store %arg11[%c0_1, %c0_2], %0 {strides = array<i32>} : memref<25x1916xf32, #tpu.memory_space<vmem>>, vector<1x1916xf32>,
    %c0_3 = arith.constant 0 : index
    %c1 = arith.constant 1 : index
    %2 = vector.load %arg0[%c0_3, %c1] : memref<1x2048xf32, #tpu.memory_space<vmem>>, vector<1x1916xf32>
    %c1_4 = arith.constant 1 : index
    %c0_5 = arith.constant 0 : index
    %3 = vector.load %arg11[%c1_4, %c0_5] : memref<25x1916xf32, #tpu.memory_space<vmem>>, vector<1x1916xf32>
    tpu.vector_store %arg11[%c1_4, %c0_5], %2 {strides = array<i32>} : memref<25x1916xf32, #tpu.memory_space<vmem>>, vector<1x1916xf32>,
    %c0_6 = arith.constant 0 : index
    %c2 = arith.constant 2 : index
    %4 = vector.load %arg0[%c0_6, %c2] : memref<1x2048xf32, #tpu.memory_space<vmem>>, vector<1x1916xf32>
    %c2_7 = arith.constant 2 : index
    %c0_8 = arith.constant 0 : index
    %5 = vector.load %arg11[%c2_7, %c0_8] : memref<25x1916xf32, #tpu.memory_space<vmem>>, vector<1x1916xf32>
    tpu.vector_store %arg11[%c2_7, %c0_8], %4 {strides = array<i32>} : memref<25x1916xf32, #tpu.memory_space<vmem>>, vector<1x1916xf32>,
    %c0_9 = arith.constant 0 : index
    %c3 = arith.constant 3 : index
    %6 = vector.load %arg0[%c0_9, %c3] : memref<1x2048xf32, #tpu.memory_space<vmem>>, vector<1x1916xf32>
    %c3_10 = arith.constant 3 : index
    %c0_11 = arith.constant 0 : index
    %7 = vector.load %arg11[%c3_10, %c0_11] : memref<25x1916xf32, #tpu.memory_space<vmem>>, vector<1x1916xf32>
    tpu.vector_store %arg11[%c3_10, %c0_11], %6 {strides = array<i32>} : memref<25x1916xf32, #tpu.memory_space<vmem>>, vector<1x1916xf32>,
    %c0_12 = arith.constant 0 : index
    %c4 = arith.constant 4 : index
    %8 = vector.load %arg0[%c0_12, %c4] : memref<1x2048xf32, #tpu.memory_space<vmem>>, vector<1x1916xf32>
    %c4_13 = arith.constant 4 : index
    %c0_14 = arith.constant 0 : index
    %9 = vector.load %arg11[%c4_13, %c0_14] : memref<25x1916xf32, #tpu.memory_space<vmem>>, vector<1x1916xf32>
    tpu.vector_store %arg11[%c4_13, %c0_14], %8 {strides = array<i32>} : memref<25x1916xf32, #tpu.memory_space<vmem>>, vector<1x1916xf32>,
    %c0_15 = arith.constant 0 : index
    %c32 = arith.constant 32 : index
    %10 = vector.load %arg0[%c0_15, %c32] : memref<1x2048xf32, #tpu.memory_space<vmem>>, vector<1x1916xf32>
    %c5 = arith.constant 5 : index
    %c0_16 = arith.constant 0 : index
    %11 = vector.load %arg11[%c5, %c0_16] : memref<25x1916xf32, #tpu.memory_space<vmem>>, vector<1x1916xf32>
    tpu.vector_store %arg11[%c5, %c0_16], %10 {strides = array<i32>} : memref<25x1916xf32, #tpu.memory_space<vmem>>, vector<1x1916xf32>,
    %c0_17 = arith.constant 0 : index
    %c33 = arith.constant 33 : index
    %12 = vector.load %arg0[%c0_17, %c33] : memref<1x2048xf32, #tpu.memory_space<vmem>>, vector<1x1916xf32>
    %c6 = arith.constant 6 : index
    %c0_18 = arith.constant 0 : index
    %13 = vector.load %arg11[%c6, %c0_18] : memref<25x1916xf32, #tpu.memory_space<vmem>>, vector<1x1916xf32>
    tpu.vector_store %arg11[%c6, %c0_18], %12 {strides = array<i32>} : memref<25x1916xf32, #tpu.memory_space<vmem>>, vector<1x1916xf32>,
    %c0_19 = arith.constant 0 : index
    %c34 = arith.constant 34 : index
    %14 = vector.load %arg0[%c0_19, %c34] : memref<1x2048xf32, #tpu.memory_space<vmem>>, vector<1x1916xf32>
    %c7 = arith.constant 7 : index
    %c0_20 = arith.constant 0 : index
    %15 = vector.load %arg11[%c7, %c0_20] : memref<25x1916xf32, #tpu.memory_space<vmem>>, vector<1x1916xf32>
    tpu.vector_store %arg11[%c7, %c0_20], %14 {strides = array<i32>} : memref<25x1916xf32, #tpu.memory_space<vmem>>, vector<1x1916xf32>,
    %c0_21 = arith.constant 0 : index
    %c35 = arith.constant 35 : index
    %16 = vector.load %arg0[%c0_21, %c35] : memref<1x2048xf32, #tpu.memory_space<vmem>>, vector<1x1916xf32>
    %c8 = arith.constant 8 : index
    %c0_22 = arith.constant 0 : index
    %17 = vector.load %arg11[%c8, %c0_22] : memref<25x1916xf32, #tpu.memory_space<vmem>>, vector<1x1916xf32>
    tpu.vector_store %arg11[%c8, %c0_22], %16 {strides = array<i32>} : memref<25x1916xf32, #tpu.memory_space<vmem>>, vector<1x1916xf32>,
    %c0_23 = arith.constant 0 : index
    %c36 = arith.constant 36 : index
    %18 = vector.load %arg0[%c0_23, %c36] : memref<1x2048xf32, #tpu.memory_space<vmem>>, vector<1x1916xf32>
    %c9 = arith.constant 9 : index
    %c0_24 = arith.constant 0 : index
    %19 = vector.load %arg11[%c9, %c0_24] : memref<25x1916xf32, #tpu.memory_space<vmem>>, vector<1x1916xf32>
    tpu.vector_store %arg11[%c9, %c0_24], %18 {strides = array<i32>} : memref<25x1916xf32, #tpu.memory_space<vmem>>, vector<1x1916xf32>,
    %c0_25 = arith.constant 0 : index
    %c64 = arith.constant 64 : index
    %20 = vector.load %arg0[%c0_25, %c64] : memref<1x2048xf32, #tpu.memory_space<vmem>>, vector<1x1916xf32>
    %c10 = arith.constant 10 : index
    %c0_26 = arith.constant 0 : index
    %21 = vector.load %arg11[%c10, %c0_26] : memref<25x1916xf32, #tpu.memory_space<vmem>>, vector<1x1916xf32>
    tpu.vector_store %arg11[%c10, %c0_26], %20 {strides = array<i32>} : memref<25x1916xf32, #tpu.memory_space<vmem>>, vector<1x1916xf32>,
    %c0_27 = arith.constant 0 : index
    %c65 = arith.constant 65 : index
    %22 = vector.load %arg0[%c0_27, %c65] : memref<1x2048xf32, #tpu.memory_space<vmem>>, vector<1x1916xf32>
    %c11 = arith.constant 11 : index
    %c0_28 = arith.constant 0 : index
    %23 = vector.load %arg11[%c11, %c0_28] : memref<25x1916xf32, #tpu.memory_space<vmem>>, vector<1x1916xf32>
    tpu.vector_store %arg11[%c11, %c0_28], %22 {strides = array<i32>} : memref<25x1916xf32, #tpu.memory_space<vmem>>, vector<1x1916xf32>,
    %c0_29 = arith.constant 0 : index
    %c66 = arith.constant 66 : index
    %24 = vector.load %arg0[%c0_29, %c66] : memref<1x2048xf32, #tpu.memory_space<vmem>>, vector<1x1916xf32>
    %c12 = arith.constant 12 : index
    %c0_30 = arith.constant 0 : index
    %25 = vector.load %arg11[%c12, %c0_30] : memref<25x1916xf32, #tpu.memory_space<vmem>>, vector<1x1916xf32>
    tpu.vector_store %arg11[%c12, %c0_30], %24 {strides = array<i32>} : memref<25x1916xf32, #tpu.memory_space<vmem>>, vector<1x1916xf32>,
    %c0_31 = arith.constant 0 : index
    %c67 = arith.constant 67 : index
    %26 = vector.load %arg0[%c0_31, %c67] : memref<1x2048xf32, #tpu.memory_space<vmem>>, vector<1x1916xf32>
    %c13 = arith.constant 13 : index
    %c0_32 = arith.constant 0 : index
    %27 = vector.load %arg11[%c13, %c0_32] : memref<25x1916xf32, #tpu.memory_space<vmem>>, vector<1x1916xf32>
    tpu.vector_store %arg11[%c13, %c0_32], %26 {strides = array<i32>} : memref<25x1916xf32, #tpu.memory_space<vmem>>, vector<1x1916xf32>,
    %c0_33 = arith.constant 0 : index
    %c68 = arith.constant 68 : index
    %28 = vector.load %arg0[%c0_33, %c68] : memref<1x2048xf32, #tpu.memory_space<vmem>>, vector<1x1916xf32>
    %c14 = arith.constant 14 : index
    %c0_34 = arith.constant 0 : index
    %29 = vector.load %arg11[%c14, %c0_34] : memref<25x1916xf32, #tpu.memory_space<vmem>>, vector<1x1916xf32>
    tpu.vector_store %arg11[%c14, %c0_34], %28 {strides = array<i32>} : memref<25x1916xf32, #tpu.memory_space<vmem>>, vector<1x1916xf32>,
    %c0_35 = arith.constant 0 : index
    %c96 = arith.constant 96 : index
    %30 = vector.load %arg0[%c0_35, %c96] : memref<1x2048xf32, #tpu.memory_space<vmem>>, vector<1x1916xf32>
    %c15 = arith.constant 15 : index
    %c0_36 = arith.constant 0 : index
    %31 = vector.load %arg11[%c15, %c0_36] : memref<25x1916xf32, #tpu.memory_space<vmem>>, vector<1x1916xf32>
    tpu.vector_store %arg11[%c15, %c0_36], %30 {strides = array<i32>} : memref<25x1916xf32, #tpu.memory_space<vmem>>, vector<1x1916xf32>,
    %c0_37 = arith.constant 0 : index
    %c97 = arith.constant 97 : index
    %32 = vector.load %arg0[%c0_37, %c97] : memref<1x2048xf32, #tpu.memory_space<vmem>>, vector<1x1916xf32>
    %c16 = arith.constant 16 : index
    %c0_38 = arith.constant 0 : index
    %33 = vector.load %arg11[%c16, %c0_38] : memref<25x1916xf32, #tpu.memory_space<vmem>>, vector<1x1916xf32>
    tpu.vector_store %arg11[%c16, %c0_38], %32 {strides = array<i32>} : memref<25x1916xf32, #tpu.memory_space<vmem>>, vector<1x1916xf32>,
    %c0_39 = arith.constant 0 : index
    %c98 = arith.constant 98 : index
    %34 = vector.load %arg0[%c0_39, %c98] : memref<1x2048xf32, #tpu.memory_space<vmem>>, vector<1x1916xf32>
    %c17 = arith.constant 17 : index
    %c0_40 = arith.constant 0 : index
    %35 = vector.load %arg11[%c17, %c0_40] : memref<25x1916xf32, #tpu.memory_space<vmem>>, vector<1x1916xf32>
    tpu.vector_store %arg11[%c17, %c0_40], %34 {strides = array<i32>} : memref<25x1916xf32, #tpu.memory_space<vmem>>, vector<1x1916xf32>,
    %c0_41 = arith.constant 0 : index
    %c99 = arith.constant 99 : index
    %36 = vector.load %arg0[%c0_41, %c99] : memref<1x2048xf32, #tpu.memory_space<vmem>>, vector<1x1916xf32>
    %c18 = arith.constant 18 : index
    %c0_42 = arith.constant 0 : index
    %37 = vector.load %arg11[%c18, %c0_42] : memref<25x1916xf32, #tpu.memory_space<vmem>>, vector<1x1916xf32>
    tpu.vector_store %arg11[%c18, %c0_42], %36 {strides = array<i32>} : memref<25x1916xf32, #tpu.memory_space<vmem>>, vector<1x1916xf32>,
    %c0_43 = arith.constant 0 : index
    %c100 = arith.constant 100 : index
    %38 = vector.load %arg0[%c0_43, %c100] : memref<1x2048xf32, #tpu.memory_space<vmem>>, vector<1x1916xf32>
    %c19 = arith.constant 19 : index
    %c0_44 = arith.constant 0 : index
    %39 = vector.load %arg11[%c19, %c0_44] : memref<25x1916xf32, #tpu.memory_space<vmem>>, vector<1x1916xf32>
    tpu.vector_store %arg11[%c19, %c0_44], %38 {strides = array<i32>} : memref<25x1916xf32, #tpu.memory_space<vmem>>, vector<1x1916xf32>,
    %c0_45 = arith.constant 0 : index
    %c128 = arith.constant 128 : index
    %40 = vector.load %arg0[%c0_45, %c128] : memref<1x2048xf32, #tpu.memory_space<vmem>>, vector<1x1916xf32>
    %c20 = arith.constant 20 : index
    %c0_46 = arith.constant 0 : index
    %41 = vector.load %arg11[%c20, %c0_46] : memref<25x1916xf32, #tpu.memory_space<vmem>>, vector<1x1916xf32>
    tpu.vector_store %arg11[%c20, %c0_46], %40 {strides = array<i32>} : memref<25x1916xf32, #tpu.memory_space<vmem>>, vector<1x1916xf32>,
    %c0_47 = arith.constant 0 : index
    %c129 = arith.constant 129 : index
    %42 = vector.load %arg0[%c0_47, %c129] : memref<1x2048xf32, #tpu.memory_space<vmem>>, vector<1x1916xf32>
    %c21 = arith.constant 21 : index
    %c0_48 = arith.constant 0 : index
    %43 = vector.load %arg11[%c21, %c0_48] : memref<25x1916xf32, #tpu.memory_space<vmem>>, vector<1x1916xf32>
    tpu.vector_store %arg11[%c21, %c0_48], %42 {strides = array<i32>} : memref<25x1916xf32, #tpu.memory_space<vmem>>, vector<1x1916xf32>,
    %c0_49 = arith.constant 0 : index
    %c130 = arith.constant 130 : index
    %44 = vector.load %arg0[%c0_49, %c130] : memref<1x2048xf32, #tpu.memory_space<vmem>>, vector<1x1916xf32>
    %c22 = arith.constant 22 : index
    %c0_50 = arith.constant 0 : index
    %45 = vector.load %arg11[%c22, %c0_50] : memref<25x1916xf32, #tpu.memory_space<vmem>>, vector<1x1916xf32>
    tpu.vector_store %arg11[%c22, %c0_50], %44 {strides = array<i32>} : memref<25x1916xf32, #tpu.memory_space<vmem>>, vector<1x1916xf32>,
    %c0_51 = arith.constant 0 : index
    %c131 = arith.constant 131 : index
    %46 = vector.load %arg0[%c0_51, %c131] : memref<1x2048xf32, #tpu.memory_space<vmem>>, vector<1x1916xf32>
    %c23 = arith.constant 23 : index
    %c0_52 = arith.constant 0 : index
    %47 = vector.load %arg11[%c23, %c0_52] : memref<25x1916xf32, #tpu.memory_space<vmem>>, vector<1x1916xf32>
    tpu.vector_store %arg11[%c23, %c0_52], %46 {strides = array<i32>} : memref<25x1916xf32, #tpu.memory_space<vmem>>, vector<1x1916xf32>,
    %c0_53 = arith.constant 0 : index
    %c132 = arith.constant 132 : index
    %48 = vector.load %arg0[%c0_53, %c132] : memref<1x2048xf32, #tpu.memory_space<vmem>>, vector<1x1916xf32>
    %c24 = arith.constant 24 : index
    %c0_54 = arith.constant 0 : index
    %49 = vector.load %arg11[%c24, %c0_54] : memref<25x1916xf32, #tpu.memory_space<vmem>>, vector<1x1916xf32>
    tpu.vector_store %arg11[%c24, %c0_54], %48 {strides = array<i32>} : memref<25x1916xf32, #tpu.memory_space<vmem>>, vector<1x1916xf32>,
    %c0_55 = arith.constant 0 : index
    %c0_56 = arith.constant 0 : index
    %50 = vector.load %arg1[%c0_55, %c0_56] : memref<6x25xf32, #tpu.memory_space<vmem>>, vector<6x25xf32>
    %c0_57 = arith.constant 0 : index
    %c0_58 = arith.constant 0 : index
    %51 = vector.load %arg11[%c0_57, %c0_58] : memref<25x1916xf32, #tpu.memory_space<vmem>>, vector<25x1916xf32>
    %cst = arith.constant dense<0.000000e+00> : vector<6x1916xf32>
    %52 = tpu.matmul %50, %51, %cst {dimension_numbers = #tpu.dot_dimension_numbers<[1], [0], [0], [1], [0, 0, 1, 1], [], []>} : vector<6x25xf32>, vector<25x1916xf32>, vector<6x1916xf32> -> vector<6x1916xf32>
    %c0_59 = arith.constant 0 : index
    %c0_60 = arith.constant 0 : index
    %53 = vector.load %arg2[%c0_59, %c0_60] : memref<6x1xf32, #tpu.memory_space<vmem>>, vector<6x1xf32>
    %54 = vector.broadcast %53 : vector<6x1xf32> to vector<6x1916xf32>
    %55 = arith.addf %52, %54 : vector<6x1916xf32>
    %56 = vector.extract_strided_slice %55 {offsets = [0, 0], sizes = [6, 1883], strides = [1, 1]} : vector<6x1916xf32> to vector<6x1883xf32>
    %57 = vector.extract_strided_slice %55 {offsets = [0, 1], sizes = [6, 1883], strides = [1, 1]} : vector<6x1916xf32> to vector<6x1883xf32>
    %58 = arith.maximumf %56, %57 : vector<6x1883xf32>
    %59 = vector.extract_strided_slice %55 {offsets = [0, 32], sizes = [6, 1883], strides = [1, 1]} : vector<6x1916xf32> to vector<6x1883xf32>
    %60 = vector.extract_strided_slice %55 {offsets = [0, 33], sizes = [6, 1883], strides = [1, 1]} : vector<6x1916xf32> to vector<6x1883xf32>
    %61 = arith.maximumf %59, %60 : vector<6x1883xf32>
    %62 = arith.maximumf %58, %61 : vector<6x1883xf32>
    %cst_61 = arith.constant 0.000000e+00 : f32
    %63 = vector.broadcast %cst_61 : f32 to vector<6x1883xf32>
    %64 = arith.maximumf %62, %63 : vector<6x1883xf32>
    %65 = vector.extract_strided_slice %64 {offsets = [0, 0], sizes = [6, 1619], strides = [1, 1]} : vector<6x1883xf32> to vector<6x1619xf32>
    %c0_62 = arith.constant 0 : index
    %c0_63 = arith.constant 0 : index
    %66 = vector.load %arg12[%c0_62, %c0_63] : memref<150x1619xf32, #tpu.memory_space<vmem>>, vector<6x1619xf32>
    tpu.vector_store %arg12[%c0_62, %c0_63], %65 {strides = array<i32>} : memref<150x1619xf32, #tpu.memory_space<vmem>>, vector<6x1619xf32>,
    %67 = vector.extract_strided_slice %64 {offsets = [0, 2], sizes = [6, 1619], strides = [1, 1]} : vector<6x1883xf32> to vector<6x1619xf32>
    %c6_64 = arith.constant 6 : index
    %c0_65 = arith.constant 0 : index
    %68 = vector.load %arg12[%c6_64, %c0_65] : memref<150x1619xf32, #tpu.memory_space<vmem>>, vector<6x1619xf32>
    tpu.vector_store %arg12[%c6_64, %c0_65], %67 {strides = array<i32>} : memref<150x1619xf32, #tpu.memory_space<vmem>>, vector<6x1619xf32>,
    %69 = vector.extract_strided_slice %64 {offsets = [0, 4], sizes = [6, 1619], strides = [1, 1]} : vector<6x1883xf32> to vector<6x1619xf32>
    %c12_66 = arith.constant 12 : index
    %c0_67 = arith.constant 0 : index
    %70 = vector.load %arg12[%c12_66, %c0_67] : memref<150x1619xf32, #tpu.memory_space<vmem>>, vector<6x1619xf32>
    tpu.vector_store %arg12[%c12_66, %c0_67], %69 {strides = array<i32>} : memref<150x1619xf32, #tpu.memory_space<vmem>>, vector<6x1619xf32>,
    %71 = vector.extract_strided_slice %64 {offsets = [0, 6], sizes = [6, 1619], strides = [1, 1]} : vector<6x1883xf32> to vector<6x1619xf32>
    %c18_68 = arith.constant 18 : index
    %c0_69 = arith.constant 0 : index
    %72 = vector.load %arg12[%c18_68, %c0_69] : memref<150x1619xf32, #tpu.memory_space<vmem>>, vector<6x1619xf32>
    tpu.vector_store %arg12[%c18_68, %c0_69], %71 {strides = array<i32>} : memref<150x1619xf32, #tpu.memory_space<vmem>>, vector<6x1619xf32>,
    %73 = vector.extract_strided_slice %64 {offsets = [0, 8], sizes = [6, 1619], strides = [1, 1]} : vector<6x1883xf32> to vector<6x1619xf32>
    %c24_70 = arith.constant 24 : index
    %c0_71 = arith.constant 0 : index
    %74 = vector.load %arg12[%c24_70, %c0_71] : memref<150x1619xf32, #tpu.memory_space<vmem>>, vector<6x1619xf32>
    tpu.vector_store %arg12[%c24_70, %c0_71], %73 {strides = array<i32>} : memref<150x1619xf32, #tpu.memory_space<vmem>>, vector<6x1619xf32>,
    %75 = vector.extract_strided_slice %64 {offsets = [0, 64], sizes = [6, 1619], strides = [1, 1]} : vector<6x1883xf32> to vector<6x1619xf32>
    %c30 = arith.constant 30 : index
    %c0_72 = arith.constant 0 : index
    %76 = vector.load %arg12[%c30, %c0_72] : memref<150x1619xf32, #tpu.memory_space<vmem>>, vector<6x1619xf32>
    tpu.vector_store %arg12[%c30, %c0_72], %75 {strides = array<i32>} : memref<150x1619xf32, #tpu.memory_space<vmem>>, vector<6x1619xf32>,
    %77 = vector.extract_strided_slice %64 {offsets = [0, 66], sizes = [6, 1619], strides = [1, 1]} : vector<6x1883xf32> to vector<6x1619xf32>
    %c36_73 = arith.constant 36 : index
    %c0_74 = arith.constant 0 : index
    %78 = vector.load %arg12[%c36_73, %c0_74] : memref<150x1619xf32, #tpu.memory_space<vmem>>, vector<6x1619xf32>
    tpu.vector_store %arg12[%c36_73, %c0_74], %77 {strides = array<i32>} : memref<150x1619xf32, #tpu.memory_space<vmem>>, vector<6x1619xf32>,
    %79 = vector.extract_strided_slice %64 {offsets = [0, 68], sizes = [6, 1619], strides = [1, 1]} : vector<6x1883xf32> to vector<6x1619xf32>
    %c42 = arith.constant 42 : index
    %c0_75 = arith.constant 0 : index
    %80 = vector.load %arg12[%c42, %c0_75] : memref<150x1619xf32, #tpu.memory_space<vmem>>, vector<6x1619xf32>
    tpu.vector_store %arg12[%c42, %c0_75], %79 {strides = array<i32>} : memref<150x1619xf32, #tpu.memory_space<vmem>>, vector<6x1619xf32>,
    %81 = vector.extract_strided_slice %64 {offsets = [0, 70], sizes = [6, 1619], strides = [1, 1]} : vector<6x1883xf32> to vector<6x1619xf32>
    %c48 = arith.constant 48 : index
    %c0_76 = arith.constant 0 : index
    %82 = vector.load %arg12[%c48, %c0_76] : memref<150x1619xf32, #tpu.memory_space<vmem>>, vector<6x1619xf32>
    tpu.vector_store %arg12[%c48, %c0_76], %81 {strides = array<i32>} : memref<150x1619xf32, #tpu.memory_space<vmem>>, vector<6x1619xf32>,
    %83 = vector.extract_strided_slice %64 {offsets = [0, 72], sizes = [6, 1619], strides = [1, 1]} : vector<6x1883xf32> to vector<6x1619xf32>
    %c54 = arith.constant 54 : index
    %c0_77 = arith.constant 0 : index
    %84 = vector.load %arg12[%c54, %c0_77] : memref<150x1619xf32, #tpu.memory_space<vmem>>, vector<6x1619xf32>
    tpu.vector_store %arg12[%c54, %c0_77], %83 {strides = array<i32>} : memref<150x1619xf32, #tpu.memory_space<vmem>>, vector<6x1619xf32>,
    %85 = vector.extract_strided_slice %64 {offsets = [0, 128], sizes = [6, 1619], strides = [1, 1]} : vector<6x1883xf32> to vector<6x1619xf32>
    %c60 = arith.constant 60 : index
    %c0_78 = arith.constant 0 : index
    %86 = vector.load %arg12[%c60, %c0_78] : memref<150x1619xf32, #tpu.memory_space<vmem>>, vector<6x1619xf32>
    tpu.vector_store %arg12[%c60, %c0_78], %85 {strides = array<i32>} : memref<150x1619xf32, #tpu.memory_space<vmem>>, vector<6x1619xf32>,
    %87 = vector.extract_strided_slice %64 {offsets = [0, 130], sizes = [6, 1619], strides = [1, 1]} : vector<6x1883xf32> to vector<6x1619xf32>
    %c66_79 = arith.constant 66 : index
    %c0_80 = arith.constant 0 : index
    %88 = vector.load %arg12[%c66_79, %c0_80] : memref<150x1619xf32, #tpu.memory_space<vmem>>, vector<6x1619xf32>
    tpu.vector_store %arg12[%c66_79, %c0_80], %87 {strides = array<i32>} : memref<150x1619xf32, #tpu.memory_space<vmem>>, vector<6x1619xf32>,
    %89 = vector.extract_strided_slice %64 {offsets = [0, 132], sizes = [6, 1619], strides = [1, 1]} : vector<6x1883xf32> to vector<6x1619xf32>
    %c72 = arith.constant 72 : index
    %c0_81 = arith.constant 0 : index
    %90 = vector.load %arg12[%c72, %c0_81] : memref<150x1619xf32, #tpu.memory_space<vmem>>, vector<6x1619xf32>
    tpu.vector_store %arg12[%c72, %c0_81], %89 {strides = array<i32>} : memref<150x1619xf32, #tpu.memory_space<vmem>>, vector<6x1619xf32>,
    %91 = vector.extract_strided_slice %64 {offsets = [0, 134], sizes = [6, 1619], strides = [1, 1]} : vector<6x1883xf32> to vector<6x1619xf32>
    %c78 = arith.constant 78 : index
    %c0_82 = arith.constant 0 : index
    %92 = vector.load %arg12[%c78, %c0_82] : memref<150x1619xf32, #tpu.memory_space<vmem>>, vector<6x1619xf32>
    tpu.vector_store %arg12[%c78, %c0_82], %91 {strides = array<i32>} : memref<150x1619xf32, #tpu.memory_space<vmem>>, vector<6x1619xf32>,
    %93 = vector.extract_strided_slice %64 {offsets = [0, 136], sizes = [6, 1619], strides = [1, 1]} : vector<6x1883xf32> to vector<6x1619xf32>
    %c84 = arith.constant 84 : index
    %c0_83 = arith.constant 0 : index
    %94 = vector.load %arg12[%c84, %c0_83] : memref<150x1619xf32, #tpu.memory_space<vmem>>, vector<6x1619xf32>
    tpu.vector_store %arg12[%c84, %c0_83], %93 {strides = array<i32>} : memref<150x1619xf32, #tpu.memory_space<vmem>>, vector<6x1619xf32>,
    %95 = vector.extract_strided_slice %64 {offsets = [0, 192], sizes = [6, 1619], strides = [1, 1]} : vector<6x1883xf32> to vector<6x1619xf32>
    %c90 = arith.constant 90 : index
    %c0_84 = arith.constant 0 : index
    %96 = vector.load %arg12[%c90, %c0_84] : memref<150x1619xf32, #tpu.memory_space<vmem>>, vector<6x1619xf32>
    tpu.vector_store %arg12[%c90, %c0_84], %95 {strides = array<i32>} : memref<150x1619xf32, #tpu.memory_space<vmem>>, vector<6x1619xf32>,
    %97 = vector.extract_strided_slice %64 {offsets = [0, 194], sizes = [6, 1619], strides = [1, 1]} : vector<6x1883xf32> to vector<6x1619xf32>
    %c96_85 = arith.constant 96 : index
    %c0_86 = arith.constant 0 : index
    %98 = vector.load %arg12[%c96_85, %c0_86] : memref<150x1619xf32, #tpu.memory_space<vmem>>, vector<6x1619xf32>
    tpu.vector_store %arg12[%c96_85, %c0_86], %97 {strides = array<i32>} : memref<150x1619xf32, #tpu.memory_space<vmem>>, vector<6x1619xf32>,
    %99 = vector.extract_strided_slice %64 {offsets = [0, 196], sizes = [6, 1619], strides = [1, 1]} : vector<6x1883xf32> to vector<6x1619xf32>
    %c102 = arith.constant 102 : index
    %c0_87 = arith.constant 0 : index
    %100 = vector.load %arg12[%c102, %c0_87] : memref<150x1619xf32, #tpu.memory_space<vmem>>, vector<6x1619xf32>
    tpu.vector_store %arg12[%c102, %c0_87], %99 {strides = array<i32>} : memref<150x1619xf32, #tpu.memory_space<vmem>>, vector<6x1619xf32>,
    %101 = vector.extract_strided_slice %64 {offsets = [0, 198], sizes = [6, 1619], strides = [1, 1]} : vector<6x1883xf32> to vector<6x1619xf32>
    %c108 = arith.constant 108 : index
    %c0_88 = arith.constant 0 : index
    %102 = vector.load %arg12[%c108, %c0_88] : memref<150x1619xf32, #tpu.memory_space<vmem>>, vector<6x1619xf32>
    tpu.vector_store %arg12[%c108, %c0_88], %101 {strides = array<i32>} : memref<150x1619xf32, #tpu.memory_space<vmem>>, vector<6x1619xf32>,
    %103 = vector.extract_strided_slice %64 {offsets = [0, 200], sizes = [6, 1619], strides = [1, 1]} : vector<6x1883xf32> to vector<6x1619xf32>
    %c114 = arith.constant 114 : index
    %c0_89 = arith.constant 0 : index
    %104 = vector.load %arg12[%c114, %c0_89] : memref<150x1619xf32, #tpu.memory_space<vmem>>, vector<6x1619xf32>
    tpu.vector_store %arg12[%c114, %c0_89], %103 {strides = array<i32>} : memref<150x1619xf32, #tpu.memory_space<vmem>>, vector<6x1619xf32>,
    %105 = vector.extract_strided_slice %64 {offsets = [0, 256], sizes = [6, 1619], strides = [1, 1]} : vector<6x1883xf32> to vector<6x1619xf32>
    %c120 = arith.constant 120 : index
    %c0_90 = arith.constant 0 : index
    %106 = vector.load %arg12[%c120, %c0_90] : memref<150x1619xf32, #tpu.memory_space<vmem>>, vector<6x1619xf32>
    tpu.vector_store %arg12[%c120, %c0_90], %105 {strides = array<i32>} : memref<150x1619xf32, #tpu.memory_space<vmem>>, vector<6x1619xf32>,
    %107 = vector.extract_strided_slice %64 {offsets = [0, 258], sizes = [6, 1619], strides = [1, 1]} : vector<6x1883xf32> to vector<6x1619xf32>
    %c126 = arith.constant 126 : index
    %c0_91 = arith.constant 0 : index
    %108 = vector.load %arg12[%c126, %c0_91] : memref<150x1619xf32, #tpu.memory_space<vmem>>, vector<6x1619xf32>
    tpu.vector_store %arg12[%c126, %c0_91], %107 {strides = array<i32>} : memref<150x1619xf32, #tpu.memory_space<vmem>>, vector<6x1619xf32>,
    %109 = vector.extract_strided_slice %64 {offsets = [0, 260], sizes = [6, 1619], strides = [1, 1]} : vector<6x1883xf32> to vector<6x1619xf32>
    %c132_92 = arith.constant 132 : index
    %c0_93 = arith.constant 0 : index
    %110 = vector.load %arg12[%c132_92, %c0_93] : memref<150x1619xf32, #tpu.memory_space<vmem>>, vector<6x1619xf32>
    tpu.vector_store %arg12[%c132_92, %c0_93], %109 {strides = array<i32>} : memref<150x1619xf32, #tpu.memory_space<vmem>>, vector<6x1619xf32>,
    %111 = vector.extract_strided_slice %64 {offsets = [0, 262], sizes = [6, 1619], strides = [1, 1]} : vector<6x1883xf32> to vector<6x1619xf32>
    %c138 = arith.constant 138 : index
    %c0_94 = arith.constant 0 : index
    %112 = vector.load %arg12[%c138, %c0_94] : memref<150x1619xf32, #tpu.memory_space<vmem>>, vector<6x1619xf32>
    tpu.vector_store %arg12[%c138, %c0_94], %111 {strides = array<i32>} : memref<150x1619xf32, #tpu.memory_space<vmem>>, vector<6x1619xf32>,
    %113 = vector.extract_strided_slice %64 {offsets = [0, 264], sizes = [6, 1619], strides = [1, 1]} : vector<6x1883xf32> to vector<6x1619xf32>
    %c144 = arith.constant 144 : index
    %c0_95 = arith.constant 0 : index
    %114 = vector.load %arg12[%c144, %c0_95] : memref<150x1619xf32, #tpu.memory_space<vmem>>, vector<6x1619xf32>
    tpu.vector_store %arg12[%c144, %c0_95], %113 {strides = array<i32>} : memref<150x1619xf32, #tpu.memory_space<vmem>>, vector<6x1619xf32>,
    %c0_96 = arith.constant 0 : index
    %c0_97 = arith.constant 0 : index
    %115 = vector.load %arg3[%c0_96, %c0_97] : memref<16x150xf32, #tpu.memory_space<vmem>>, vector<16x150xf32>
    %c0_98 = arith.constant 0 : index
    %c0_99 = arith.constant 0 : index
    %116 = vector.load %arg12[%c0_98, %c0_99] : memref<150x1619xf32, #tpu.memory_space<vmem>>, vector<150x1619xf32>
    %cst_100 = arith.constant dense<0.000000e+00> : vector<16x1619xf32>
    %117 = tpu.matmul %115, %116, %cst_100 {dimension_numbers = #tpu.dot_dimension_numbers<[1], [0], [0], [1], [0, 0, 1, 1], [], []>} : vector<16x150xf32>, vector<150x1619xf32>, vector<16x1619xf32> -> vector<16x1619xf32>
    %c0_101 = arith.constant 0 : index
    %c0_102 = arith.constant 0 : index
    %118 = vector.load %arg4[%c0_101, %c0_102] : memref<16x1xf32, #tpu.memory_space<vmem>>, vector<16x1xf32>
    %119 = vector.broadcast %118 : vector<16x1xf32> to vector<16x1619xf32>
    %120 = arith.addf %117, %119 : vector<16x1619xf32>
    %121 = vector.extract_strided_slice %120 {offsets = [0, 0], sizes = [16, 1553], strides = [1, 1]} : vector<16x1619xf32> to vector<16x1553xf32>
    %122 = vector.extract_strided_slice %120 {offsets = [0, 2], sizes = [16, 1553], strides = [1, 1]} : vector<16x1619xf32> to vector<16x1553xf32>
    %123 = arith.maximumf %121, %122 : vector<16x1553xf32>
    %124 = vector.extract_strided_slice %120 {offsets = [0, 64], sizes = [16, 1553], strides = [1, 1]} : vector<16x1619xf32> to vector<16x1553xf32>
    %125 = vector.extract_strided_slice %120 {offsets = [0, 66], sizes = [16, 1553], strides = [1, 1]} : vector<16x1619xf32> to vector<16x1553xf32>
    %126 = arith.maximumf %124, %125 : vector<16x1553xf32>
    %127 = arith.maximumf %123, %126 : vector<16x1553xf32>
    %cst_103 = arith.constant 0.000000e+00 : f32
    %128 = vector.broadcast %cst_103 : f32 to vector<16x1553xf32>
    %129 = arith.maximumf %127, %128 : vector<16x1553xf32>
    %c0_104 = arith.constant 0 : index
    %c0_105 = arith.constant 0 : index
    %130 = vector.load %arg9[%c0_104, %c0_105] : memref<1553x50xf32, #tpu.memory_space<vmem>>, vector<1553x50xf32>
    %cst_106 = arith.constant dense<0.000000e+00> : vector<16x50xf32>
    %131 = tpu.matmul %129, %130, %cst_106 {dimension_numbers = #tpu.dot_dimension_numbers<[1], [0], [0], [1], [0, 0, 1, 1], [], []>} : vector<16x1553xf32>, vector<1553x50xf32>, vector<16x50xf32> -> vector<16x50xf32>
    %132 = vector.extract_strided_slice %131 {offsets = [0, 0], sizes = [1, 25], strides = [1, 1]} : vector<16x50xf32> to vector<1x25xf32>
    %c0_107 = arith.constant 0 : index
    %c0_108 = arith.constant 0 : index
    %133 = vector.load %arg13[%c0_107, %c0_108] : memref<2x400xf32, #tpu.memory_space<vmem>>, vector<1x25xf32>
    tpu.vector_store %arg13[%c0_107, %c0_108], %132 {strides = array<i32>} : memref<2x400xf32, #tpu.memory_space<vmem>>, vector<1x25xf32>,
    %134 = vector.extract_strided_slice %131 {offsets = [1, 0], sizes = [1, 25], strides = [1, 1]} : vector<16x50xf32> to vector<1x25xf32>
    %c0_109 = arith.constant 0 : index
    %c25 = arith.constant 25 : index
    %135 = vector.load %arg13[%c0_109, %c25] : memref<2x400xf32, #tpu.memory_space<vmem>>, vector<1x25xf32>
    tpu.vector_store %arg13[%c0_109, %c25], %134 {strides = array<i32>} : memref<2x400xf32, #tpu.memory_space<vmem>>, vector<1x25xf32>,
    %136 = vector.extract_strided_slice %131 {offsets = [2, 0], sizes = [1, 25], strides = [1, 1]} : vector<16x50xf32> to vector<1x25xf32>
    %c0_110 = arith.constant 0 : index
    %c50 = arith.constant 50 : index
    %137 = vector.load %arg13[%c0_110, %c50] : memref<2x400xf32, #tpu.memory_space<vmem>>, vector<1x25xf32>
    tpu.vector_store %arg13[%c0_110, %c50], %136 {strides = array<i32>} : memref<2x400xf32, #tpu.memory_space<vmem>>, vector<1x25xf32>,
    %138 = vector.extract_strided_slice %131 {offsets = [3, 0], sizes = [1, 25], strides = [1, 1]} : vector<16x50xf32> to vector<1x25xf32>
    %c0_111 = arith.constant 0 : index
    %c75 = arith.constant 75 : index
    %139 = vector.load %arg13[%c0_111, %c75] : memref<2x400xf32, #tpu.memory_space<vmem>>, vector<1x25xf32>
    tpu.vector_store %arg13[%c0_111, %c75], %138 {strides = array<i32>} : memref<2x400xf32, #tpu.memory_space<vmem>>, vector<1x25xf32>,
    %140 = vector.extract_strided_slice %131 {offsets = [4, 0], sizes = [1, 25], strides = [1, 1]} : vector<16x50xf32> to vector<1x25xf32>
    %c0_112 = arith.constant 0 : index
    %c100_113 = arith.constant 100 : index
    %141 = vector.load %arg13[%c0_112, %c100_113] : memref<2x400xf32, #tpu.memory_space<vmem>>, vector<1x25xf32>
    tpu.vector_store %arg13[%c0_112, %c100_113], %140 {strides = array<i32>} : memref<2x400xf32, #tpu.memory_space<vmem>>, vector<1x25xf32>,
    %142 = vector.extract_strided_slice %131 {offsets = [5, 0], sizes = [1, 25], strides = [1, 1]} : vector<16x50xf32> to vector<1x25xf32>
    %c0_114 = arith.constant 0 : index
    %c125 = arith.constant 125 : index
    %143 = vector.load %arg13[%c0_114, %c125] : memref<2x400xf32, #tpu.memory_space<vmem>>, vector<1x25xf32>
    tpu.vector_store %arg13[%c0_114, %c125], %142 {strides = array<i32>} : memref<2x400xf32, #tpu.memory_space<vmem>>, vector<1x25xf32>,
    %144 = vector.extract_strided_slice %131 {offsets = [6, 0], sizes = [1, 25], strides = [1, 1]} : vector<16x50xf32> to vector<1x25xf32>
    %c0_115 = arith.constant 0 : index
    %c150 = arith.constant 150 : index
    %145 = vector.load %arg13[%c0_115, %c150] : memref<2x400xf32, #tpu.memory_space<vmem>>, vector<1x25xf32>
    tpu.vector_store %arg13[%c0_115, %c150], %144 {strides = array<i32>} : memref<2x400xf32, #tpu.memory_space<vmem>>, vector<1x25xf32>,
    %146 = vector.extract_strided_slice %131 {offsets = [7, 0], sizes = [1, 25], strides = [1, 1]} : vector<16x50xf32> to vector<1x25xf32>
    %c0_116 = arith.constant 0 : index
    %c175 = arith.constant 175 : index
    %147 = vector.load %arg13[%c0_116, %c175] : memref<2x400xf32, #tpu.memory_space<vmem>>, vector<1x25xf32>
    tpu.vector_store %arg13[%c0_116, %c175], %146 {strides = array<i32>} : memref<2x400xf32, #tpu.memory_space<vmem>>, vector<1x25xf32>,
    %148 = vector.extract_strided_slice %131 {offsets = [8, 0], sizes = [1, 25], strides = [1, 1]} : vector<16x50xf32> to vector<1x25xf32>
    %c0_117 = arith.constant 0 : index
    %c200 = arith.constant 200 : index
    %149 = vector.load %arg13[%c0_117, %c200] : memref<2x400xf32, #tpu.memory_space<vmem>>, vector<1x25xf32>
    tpu.vector_store %arg13[%c0_117, %c200], %148 {strides = array<i32>} : memref<2x400xf32, #tpu.memory_space<vmem>>, vector<1x25xf32>,
    %150 = vector.extract_strided_slice %131 {offsets = [9, 0], sizes = [1, 25], strides = [1, 1]} : vector<16x50xf32> to vector<1x25xf32>
    %c0_118 = arith.constant 0 : index
    %c225 = arith.constant 225 : index
    %151 = vector.load %arg13[%c0_118, %c225] : memref<2x400xf32, #tpu.memory_space<vmem>>, vector<1x25xf32>
    tpu.vector_store %arg13[%c0_118, %c225], %150 {strides = array<i32>} : memref<2x400xf32, #tpu.memory_space<vmem>>, vector<1x25xf32>,
    %152 = vector.extract_strided_slice %131 {offsets = [10, 0], sizes = [1, 25], strides = [1, 1]} : vector<16x50xf32> to vector<1x25xf32>
    %c0_119 = arith.constant 0 : index
    %c250 = arith.constant 250 : index
    %153 = vector.load %arg13[%c0_119, %c250] : memref<2x400xf32, #tpu.memory_space<vmem>>, vector<1x25xf32>
    tpu.vector_store %arg13[%c0_119, %c250], %152 {strides = array<i32>} : memref<2x400xf32, #tpu.memory_space<vmem>>, vector<1x25xf32>,
    %154 = vector.extract_strided_slice %131 {offsets = [11, 0], sizes = [1, 25], strides = [1, 1]} : vector<16x50xf32> to vector<1x25xf32>
    %c0_120 = arith.constant 0 : index
    %c275 = arith.constant 275 : index
    %155 = vector.load %arg13[%c0_120, %c275] : memref<2x400xf32, #tpu.memory_space<vmem>>, vector<1x25xf32>
    tpu.vector_store %arg13[%c0_120, %c275], %154 {strides = array<i32>} : memref<2x400xf32, #tpu.memory_space<vmem>>, vector<1x25xf32>,
    %156 = vector.extract_strided_slice %131 {offsets = [12, 0], sizes = [1, 25], strides = [1, 1]} : vector<16x50xf32> to vector<1x25xf32>
    %c0_121 = arith.constant 0 : index
    %c300 = arith.constant 300 : index
    %157 = vector.load %arg13[%c0_121, %c300] : memref<2x400xf32, #tpu.memory_space<vmem>>, vector<1x25xf32>
    tpu.vector_store %arg13[%c0_121, %c300], %156 {strides = array<i32>} : memref<2x400xf32, #tpu.memory_space<vmem>>, vector<1x25xf32>,
    %158 = vector.extract_strided_slice %131 {offsets = [13, 0], sizes = [1, 25], strides = [1, 1]} : vector<16x50xf32> to vector<1x25xf32>
    %c0_122 = arith.constant 0 : index
    %c325 = arith.constant 325 : index
    %159 = vector.load %arg13[%c0_122, %c325] : memref<2x400xf32, #tpu.memory_space<vmem>>, vector<1x25xf32>
    tpu.vector_store %arg13[%c0_122, %c325], %158 {strides = array<i32>} : memref<2x400xf32, #tpu.memory_space<vmem>>, vector<1x25xf32>,
    %160 = vector.extract_strided_slice %131 {offsets = [14, 0], sizes = [1, 25], strides = [1, 1]} : vector<16x50xf32> to vector<1x25xf32>
    %c0_123 = arith.constant 0 : index
    %c350 = arith.constant 350 : index
    %161 = vector.load %arg13[%c0_123, %c350] : memref<2x400xf32, #tpu.memory_space<vmem>>, vector<1x25xf32>
    tpu.vector_store %arg13[%c0_123, %c350], %160 {strides = array<i32>} : memref<2x400xf32, #tpu.memory_space<vmem>>, vector<1x25xf32>,
    %162 = vector.extract_strided_slice %131 {offsets = [15, 0], sizes = [1, 25], strides = [1, 1]} : vector<16x50xf32> to vector<1x25xf32>
    %c0_124 = arith.constant 0 : index
    %c375 = arith.constant 375 : index
    %163 = vector.load %arg13[%c0_124, %c375] : memref<2x400xf32, #tpu.memory_space<vmem>>, vector<1x25xf32>
    tpu.vector_store %arg13[%c0_124, %c375], %162 {strides = array<i32>} : memref<2x400xf32, #tpu.memory_space<vmem>>, vector<1x25xf32>,
    %164 = vector.extract_strided_slice %131 {offsets = [0, 25], sizes = [1, 25], strides = [1, 1]} : vector<16x50xf32> to vector<1x25xf32>
    %c1_125 = arith.constant 1 : index
    %c0_126 = arith.constant 0 : index
    %165 = vector.load %arg13[%c1_125, %c0_126] : memref<2x400xf32, #tpu.memory_space<vmem>>, vector<1x25xf32>
    tpu.vector_store %arg13[%c1_125, %c0_126], %164 {strides = array<i32>} : memref<2x400xf32, #tpu.memory_space<vmem>>, vector<1x25xf32>,
    %166 = vector.extract_strided_slice %131 {offsets = [1, 25], sizes = [1, 25], strides = [1, 1]} : vector<16x50xf32> to vector<1x25xf32>
    %c1_127 = arith.constant 1 : index
    %c25_128 = arith.constant 25 : index
    %167 = vector.load %arg13[%c1_127, %c25_128] : memref<2x400xf32, #tpu.memory_space<vmem>>, vector<1x25xf32>
    tpu.vector_store %arg13[%c1_127, %c25_128], %166 {strides = array<i32>} : memref<2x400xf32, #tpu.memory_space<vmem>>, vector<1x25xf32>,
    %168 = vector.extract_strided_slice %131 {offsets = [2, 25], sizes = [1, 25], strides = [1, 1]} : vector<16x50xf32> to vector<1x25xf32>
    %c1_129 = arith.constant 1 : index
    %c50_130 = arith.constant 50 : index
    %169 = vector.load %arg13[%c1_129, %c50_130] : memref<2x400xf32, #tpu.memory_space<vmem>>, vector<1x25xf32>
    tpu.vector_store %arg13[%c1_129, %c50_130], %168 {strides = array<i32>} : memref<2x400xf32, #tpu.memory_space<vmem>>, vector<1x25xf32>,
    %170 = vector.extract_strided_slice %131 {offsets = [3, 25], sizes = [1, 25], strides = [1, 1]} : vector<16x50xf32> to vector<1x25xf32>
    %c1_131 = arith.constant 1 : index
    %c75_132 = arith.constant 75 : index
    %171 = vector.load %arg13[%c1_131, %c75_132] : memref<2x400xf32, #tpu.memory_space<vmem>>, vector<1x25xf32>
    tpu.vector_store %arg13[%c1_131, %c75_132], %170 {strides = array<i32>} : memref<2x400xf32, #tpu.memory_space<vmem>>, vector<1x25xf32>,
    %172 = vector.extract_strided_slice %131 {offsets = [4, 25], sizes = [1, 25], strides = [1, 1]} : vector<16x50xf32> to vector<1x25xf32>
    %c1_133 = arith.constant 1 : index
    %c100_134 = arith.constant 100 : index
    %173 = vector.load %arg13[%c1_133, %c100_134] : memref<2x400xf32, #tpu.memory_space<vmem>>, vector<1x25xf32>
    tpu.vector_store %arg13[%c1_133, %c100_134], %172 {strides = array<i32>} : memref<2x400xf32, #tpu.memory_space<vmem>>, vector<1x25xf32>,
    %174 = vector.extract_strided_slice %131 {offsets = [5, 25], sizes = [1, 25], strides = [1, 1]} : vector<16x50xf32> to vector<1x25xf32>
    %c1_135 = arith.constant 1 : index
    %c125_136 = arith.constant 125 : index
    %175 = vector.load %arg13[%c1_135, %c125_136] : memref<2x400xf32, #tpu.memory_space<vmem>>, vector<1x25xf32>
    tpu.vector_store %arg13[%c1_135, %c125_136], %174 {strides = array<i32>} : memref<2x400xf32, #tpu.memory_space<vmem>>, vector<1x25xf32>,
    %176 = vector.extract_strided_slice %131 {offsets = [6, 25], sizes = [1, 25], strides = [1, 1]} : vector<16x50xf32> to vector<1x25xf32>
    %c1_137 = arith.constant 1 : index
    %c150_138 = arith.constant 150 : index
    %177 = vector.load %arg13[%c1_137, %c150_138] : memref<2x400xf32, #tpu.memory_space<vmem>>, vector<1x25xf32>
    tpu.vector_store %arg13[%c1_137, %c150_138], %176 {strides = array<i32>} : memref<2x400xf32, #tpu.memory_space<vmem>>, vector<1x25xf32>,
    %178 = vector.extract_strided_slice %131 {offsets = [7, 25], sizes = [1, 25], strides = [1, 1]} : vector<16x50xf32> to vector<1x25xf32>
    %c1_139 = arith.constant 1 : index
    %c175_140 = arith.constant 175 : index
    %179 = vector.load %arg13[%c1_139, %c175_140] : memref<2x400xf32, #tpu.memory_space<vmem>>, vector<1x25xf32>
    tpu.vector_store %arg13[%c1_139, %c175_140], %178 {strides = array<i32>} : memref<2x400xf32, #tpu.memory_space<vmem>>, vector<1x25xf32>,
    %180 = vector.extract_strided_slice %131 {offsets = [8, 25], sizes = [1, 25], strides = [1, 1]} : vector<16x50xf32> to vector<1x25xf32>
    %c1_141 = arith.constant 1 : index
    %c200_142 = arith.constant 200 : index
    %181 = vector.load %arg13[%c1_141, %c200_142] : memref<2x400xf32, #tpu.memory_space<vmem>>, vector<1x25xf32>
    tpu.vector_store %arg13[%c1_141, %c200_142], %180 {strides = array<i32>} : memref<2x400xf32, #tpu.memory_space<vmem>>, vector<1x25xf32>,
    %182 = vector.extract_strided_slice %131 {offsets = [9, 25], sizes = [1, 25], strides = [1, 1]} : vector<16x50xf32> to vector<1x25xf32>
    %c1_143 = arith.constant 1 : index
    %c225_144 = arith.constant 225 : index
    %183 = vector.load %arg13[%c1_143, %c225_144] : memref<2x400xf32, #tpu.memory_space<vmem>>, vector<1x25xf32>
    tpu.vector_store %arg13[%c1_143, %c225_144], %182 {strides = array<i32>} : memref<2x400xf32, #tpu.memory_space<vmem>>, vector<1x25xf32>,
    %184 = vector.extract_strided_slice %131 {offsets = [10, 25], sizes = [1, 25], strides = [1, 1]} : vector<16x50xf32> to vector<1x25xf32>
    %c1_145 = arith.constant 1 : index
    %c250_146 = arith.constant 250 : index
    %185 = vector.load %arg13[%c1_145, %c250_146] : memref<2x400xf32, #tpu.memory_space<vmem>>, vector<1x25xf32>
    tpu.vector_store %arg13[%c1_145, %c250_146], %184 {strides = array<i32>} : memref<2x400xf32, #tpu.memory_space<vmem>>, vector<1x25xf32>,
    %186 = vector.extract_strided_slice %131 {offsets = [11, 25], sizes = [1, 25], strides = [1, 1]} : vector<16x50xf32> to vector<1x25xf32>
    %c1_147 = arith.constant 1 : index
    %c275_148 = arith.constant 275 : index
    %187 = vector.load %arg13[%c1_147, %c275_148] : memref<2x400xf32, #tpu.memory_space<vmem>>, vector<1x25xf32>
    tpu.vector_store %arg13[%c1_147, %c275_148], %186 {strides = array<i32>} : memref<2x400xf32, #tpu.memory_space<vmem>>, vector<1x25xf32>,
    %188 = vector.extract_strided_slice %131 {offsets = [12, 25], sizes = [1, 25], strides = [1, 1]} : vector<16x50xf32> to vector<1x25xf32>
    %c1_149 = arith.constant 1 : index
    %c300_150 = arith.constant 300 : index
    %189 = vector.load %arg13[%c1_149, %c300_150] : memref<2x400xf32, #tpu.memory_space<vmem>>, vector<1x25xf32>
    tpu.vector_store %arg13[%c1_149, %c300_150], %188 {strides = array<i32>} : memref<2x400xf32, #tpu.memory_space<vmem>>, vector<1x25xf32>,
    %190 = vector.extract_strided_slice %131 {offsets = [13, 25], sizes = [1, 25], strides = [1, 1]} : vector<16x50xf32> to vector<1x25xf32>
    %c1_151 = arith.constant 1 : index
    %c325_152 = arith.constant 325 : index
    %191 = vector.load %arg13[%c1_151, %c325_152] : memref<2x400xf32, #tpu.memory_space<vmem>>, vector<1x25xf32>
    tpu.vector_store %arg13[%c1_151, %c325_152], %190 {strides = array<i32>} : memref<2x400xf32, #tpu.memory_space<vmem>>, vector<1x25xf32>,
    %192 = vector.extract_strided_slice %131 {offsets = [14, 25], sizes = [1, 25], strides = [1, 1]} : vector<16x50xf32> to vector<1x25xf32>
    %c1_153 = arith.constant 1 : index
    %c350_154 = arith.constant 350 : index
    %193 = vector.load %arg13[%c1_153, %c350_154] : memref<2x400xf32, #tpu.memory_space<vmem>>, vector<1x25xf32>
    tpu.vector_store %arg13[%c1_153, %c350_154], %192 {strides = array<i32>} : memref<2x400xf32, #tpu.memory_space<vmem>>, vector<1x25xf32>,
    %194 = vector.extract_strided_slice %131 {offsets = [15, 25], sizes = [1, 25], strides = [1, 1]} : vector<16x50xf32> to vector<1x25xf32>
    %c1_155 = arith.constant 1 : index
    %c375_156 = arith.constant 375 : index
    %195 = vector.load %arg13[%c1_155, %c375_156] : memref<2x400xf32, #tpu.memory_space<vmem>>, vector<1x25xf32>
    tpu.vector_store %arg13[%c1_155, %c375_156], %194 {strides = array<i32>} : memref<2x400xf32, #tpu.memory_space<vmem>>, vector<1x25xf32>,
    %c0_157 = arith.constant 0 : index
    %c0_158 = arith.constant 0 : index
    %196 = vector.load %arg13[%c0_157, %c0_158] : memref<2x400xf32, #tpu.memory_space<vmem>>, vector<2x400xf32>
    %c0_159 = arith.constant 0 : index
    %c0_160 = arith.constant 0 : index
    %197 = vector.load %arg5[%c0_159, %c0_160] : memref<400x384xf32, #tpu.memory_space<vmem>>, vector<400x384xf32>
    %cst_161 = arith.constant dense<0.000000e+00> : vector<2x384xf32>
    %198 = tpu.matmul %196, %197, %cst_161 {dimension_numbers = #tpu.dot_dimension_numbers<[1], [0], [0], [1], [0, 0, 1, 1], [], []>} : vector<2x400xf32>, vector<400x384xf32>, vector<2x384xf32> -> vector<2x384xf32>
    %c0_162 = arith.constant 0 : index
    %c0_163 = arith.constant 0 : index
    %199 = vector.load %arg6[%c0_162, %c0_163] : memref<1x384xf32, #tpu.memory_space<vmem>>, vector<1x384xf32>
    %200 = vector.broadcast %199 : vector<1x384xf32> to vector<2x384xf32>
    %201 = arith.addf %198, %200 : vector<2x384xf32>
    %cst_164 = arith.constant 0.000000e+00 : f32
    %202 = vector.broadcast %cst_164 : f32 to vector<2x384xf32>
    %203 = arith.maximumf %201, %202 : vector<2x384xf32>
    %c0_165 = arith.constant 0 : index
    %c0_166 = arith.constant 0 : index
    %204 = vector.load %arg7[%c0_165, %c0_166] : memref<384x19xf32, #tpu.memory_space<vmem>>, vector<384x19xf32>
    %cst_167 = arith.constant dense<0.000000e+00> : vector<2x19xf32>
    %205 = tpu.matmul %203, %204, %cst_167 {dimension_numbers = #tpu.dot_dimension_numbers<[1], [0], [0], [1], [0, 0, 1, 1], [], []>} : vector<2x384xf32>, vector<384x19xf32>, vector<2x19xf32> -> vector<2x19xf32>
    %c0_168 = arith.constant 0 : index
    %c0_169 = arith.constant 0 : index
    %206 = vector.load %arg8[%c0_168, %c0_169] : memref<1x19xf32, #tpu.memory_space<vmem>>, vector<1x19xf32>
    %207 = vector.broadcast %206 : vector<1x19xf32> to vector<2x19xf32>
    %208 = arith.addf %205, %207 : vector<2x19xf32>
    %cst_170 = arith.constant dense<0xFF800000> : vector<19xf32>
    %209 = vector.multi_reduction <maximumf>, %208, %cst_170 [0] : vector<2x19xf32> to vector<19xf32>
    %210 = vector.shape_cast %209 : vector<19xf32> to vector<1x19xf32>
    %211 = vector.broadcast %210 : vector<1x19xf32> to vector<2x19xf32>
    %212 = arith.subf %208, %211 : vector<2x19xf32>
    %213 = math.exp %212 : vector<2x19xf32>
    %cst_171 = arith.constant dense<0.000000e+00> : vector<19xf32>
    %214 = vector.multi_reduction <add>, %213, %cst_171 [0] : vector<2x19xf32> to vector<19xf32>
    %215 = vector.shape_cast %214 : vector<19xf32> to vector<1x19xf32>
    %216 = math.log %215 : vector<1x19xf32>
    %217 = vector.broadcast %216 : vector<1x19xf32> to vector<2x19xf32>
    %218 = arith.subf %212, %217 : vector<2x19xf32>
    %c0_172 = arith.constant 0 : index
    %c0_173 = arith.constant 0 : index
    %219 = vector.load %arg10[%c0_172, %c0_173] : memref<2x19xf32, #tpu.memory_space<vmem>>, vector<2x19xf32>
    tpu.vector_store %arg10[%c0_172, %c0_173], %218 {strides = array<i32>} : memref<2x19xf32, #tpu.memory_space<vmem>>, vector<2x19xf32>,
    return
  }
}

</mosaic_0001>

<bundles_post_ra>
// kernel: net_forward.1
= control target key start
LH: loop header
LB: loop body
LE: loop exit
PB: predicated region body
PF: predicated region fallthrough
CT: control target
= control target key end

     0   :  { %s5568_s17 = smov 31   ;;  %s5569_s18 = smov 124   ;;  %s9714_s0 = inlined_call_operand.vmem [shape: f32[1,2048], index: 0, kind: input, shape index: {}]   ;;  %s9715_s1 = inlined_call_operand.vmem [shape: f32[6,25], index: 1, kind: input, shape index: {}]   ;;  %s9716_s2 = inlined_call_operand.vmem [shape: f32[6,1], index: 2, kind: input, shape index: {}]   ;;  %s9717_s3 = inlined_call_operand.vmem [shape: f32[16,150], index: 3, kind: input, shape index: {}]   ;;  %s9718_s4 = inlined_call_operand.vmem [shape: f32[16,1], index: 4, kind: input, shape index: {}]   ;;  %s9719_s5 = inlined_call_operand.vmem [shape: f32[400,384], index: 5, kind: input, shape index: {}]   ;;  %s9720_s6 = inlined_call_operand.vmem [shape: f32[1,384], index: 6, kind: input, shape index: {}]   ;;  %s9721_s7 = inlined_call_operand.vmem [shape: f32[384,19], index: 7, kind: input, shape index: {}]   ;;  %s9722_s8 = inlined_call_operand.vmem [shape: f32[1,19], index: 8, kind: input, shape index: {}]   ;;  %s9723_s9 = inlined_call_operand.vmem [shape: f32[1553,50], index: 9, kind: input, shape index: {}]   ;;  %s9724_s10 = inlined_call_operand.hbm [shape: f32[2,19], index: 10, kind: output, shape index: {}]  }
   0x1   :  { %v5664_v0 = vld [vmem:[%s9714_s0] sm:$0xff]  ;;  %s5570_s19 = smov 30   ;;  %v5676_v2 = vld [vmem:[%s9714_s0 + $0x8] sm:$0xff] }
   0x2   :  { %v537_v1 = vld [vmem:[%s9714_s0 + $0x1] sm:$0xff]  ;;  %382 = vrot.lane.b32.xlu1 %v5664_v0, %s5568_s17  ;;  %404 = vrot.lane.b32.xlu2 %v5664_v0, %s5570_s19  ;;  %38 = vst [vmem:[#allocation2] ss:$8 sm:$0xf] %v5664_v0  ;;  %v538_v3 = vld [vmem:[%s9714_s0 + $0x9] sm:$0xff] }
   0x3   :  { %541 = vrot.lane.b32.xlu0 %v537_v1, %s5569_s18  ;;  %469 = vst [vmem:[#allocation2 + $0xf4] ss:$8 sm:$0xf] %v537_v1 }
   0x4   :  { %470 = vst [vmem:[#allocation2 + $0xf4] ss:$8 sm:$0xf0] %v537_v1 }
   0x5   :  { %39 = vst [vmem:[#allocation2] ss:$8 sm:$0xf0] %v5664_v0 }
   0x6   :  { %15 = vsyncpa [#allocation6], 0  ;;  %s5571_s24 = smov 29   ;;  %s5572_s25 = smov 28   ;;  %v475_v4 = vld [vmem:[%s9714_s0 + $0x9] sm:$0x7f]  ;;  %v40_v12 = vlaneseq }
   0x7   :  { %s5573_s28 = smov 127   ;;  %v496_v5 = vld [vmem:[%s9714_s0 + $0x9] sm:$0x7f]  ;;  %s5574_s11 = smov 126   ;;  %vm57_vm0 = vcmask 1046528   ;;  %vm411_vm1 = vcmask 244736  }
   0x8   :  { %s5575_s12 = smov 125   ;;  %v517_v6 = vld [vmem:[%s9714_s0 + $0x9] sm:$0x7f]  ;;  %s5576_s15 = smov 93   ;;  %vm5746_vm2 = vcmp.lt.s32.totalorder %v40_v12, 892  ;;  %vm59_vm3 = vcmask 1039360  }
   0x9   :  { %s5577_s16 = smov 92   ;;  %s5580_s20 = smov 62   ;;  %v48_v7 = vld [vmem:[%s9714_s0 + $0x8] sm:$0x7f]  ;;  %vm389_vm4 = vcmask 252928   ;;  %vm125_vm5 = vcmask 1014784  }
   0xa   :  { %384 = vrot.lane.b32.xlu1 %v5676_v2, %s5568_s17  ;;  %406 = vrot.lane.b32.xlu2 %v5676_v2, %s5570_s19  ;;  %s5578_s17 = smov 64   ;;  %s5579_s19 = smov 63   ;;  %v71_v8 = vld [vmem:[%s9714_s0 + $0x8] sm:$0x7f]  ;;  %vm433_vm6 = vcmask 236544   ;;  %vm213_vm7 = vcmask 760832  }
   0xb   :  { %543 = vrot.lane.b32.xlu0 %v538_v3, %s5569_s18  ;;  %s5581_s21 = smov 61   ;;  %s5582_s22 = smov 60   ;;  %v93_v10 = vld [vmem:[%s9714_s0 + $0x8] sm:$0x7f]  ;;  %vm9727_vm8 = vcmask 1040384   ;;  %vm455_vm9 = vcmask 228352  }
   0xc   :  { %s5583_s23 = smov 32   ;;  %s5584_s13 = smov 96   ;;  %vm81_vm10 = vcmask 1031168   ;;  %vm279_vm11 = vcmask 515072   ;;  %vm9726_vm12 = vcmask 1022976   ;;  %vm235_vm13 = vcmask 752640  }
   0xd   :  { %s5585_s14 = smov 95   ;;  %vm345_vm14 = vcmask 490496   ;;  %vm257_vm15 = vcmask 523264   ;;  %s5590_s26 = smov 56  }
   0xe   :  { %s5591_s27 = smov 122   ;;  %s5600_s29 = smov 22  }
  0x12   :  { %428 = vrot.lane.b32.xlu1 %v5676_v2, %s5571_s24  ;;  %448 = vrot.lane.b32.xlu2 %v5664_v0, %s5572_s25 }
  0x13   :  { %426 = vrot.lane.b32.xlu0 %v5664_v0, %s5571_s24  ;;  %s5596_s24 = smov 72  }
  0x1a   :  { %478 = vrot.lane.b32.xlu1 %v537_v1, %s5573_s28  ;;  %480 = vrot.lane.b32.xlu2 %v475_v4, %s5573_s28 }
  0x1b   :  { %450 = vrot.lane.b32.xlu0 %v5676_v2, %s5572_s25  ;;  %s5598_s25 = smov 100  }
  0x22   :  { %501 = vrot.lane.b32.xlu1 %v496_v5, %s5574_s11  ;;  %520 = vrot.lane.b32.xlu2 %v537_v1, %s5575_s12 }
  0x23   :  { %499 = vrot.lane.b32.xlu0 %v537_v1, %s5574_s11  ;;  %v467_v1 = vld [vmem:[%s9714_s0 + $0x9] sm:$0x7f] }
  0x24   :  { %472 = vst.msk [vmem:[#allocation2 + $0x134] ss:$8 sm:$0xf] %vm5746_vm2, %v467_v1 }
  0x25   :  { %473 = vst.msk [vmem:[#allocation2 + $0x134] ss:$8 sm:$0x70] %vm5746_vm2, %v467_v1 }
  0x2a   :  { %206 = vrot.lane.b32.xlu1 %v5664_v0, %s5576_s15  ;;  %208 = vrot.lane.b32.xlu2 %v5676_v2, %s5576_s15  ;;  %s5586_s15 = smov 94  }
  0x2b   :  { %522 = vrot.lane.b32.xlu0 %v517_v6, %s5575_s12 }
  0x32   :  { %230 = vrot.lane.b32.xlu1 %v5676_v2, %s5577_s16  ;;  %250 = vrot.lane.b32.xlu2 %v5664_v0, %s5578_s17 }
  0x33   :  { %228 = vrot.lane.b32.xlu0 %v5664_v0, %s5577_s16 }
  0x3a   :  { %272 = vrot.lane.b32.xlu1 %v5664_v0, %s5579_s19  ;;  %274 = vrot.lane.b32.xlu2 %v5676_v2, %s5579_s19 }
  0x3b   :  { %252 = vrot.lane.b32.xlu0 %v5676_v2, %s5578_s17 }
  0x42   :  { %296 = vrot.lane.b32.xlu1 %v5676_v2, %s5580_s20  ;;  %316 = vrot.lane.b32.xlu2 %v5664_v0, %s5581_s21 }
  0x43   :  { %294 = vrot.lane.b32.xlu0 %v5664_v0, %s5580_s20 }
  0x4a   :  { %338 = vrot.lane.b32.xlu1 %v5664_v0, %s5582_s22  ;;  %340 = vrot.lane.b32.xlu2 %v5676_v2, %s5582_s22 }
  0x4b   :  { %318 = vrot.lane.b32.xlu0 %v5676_v2, %s5581_s21 }
  0x52   :  { %362 = vrot.lane.b32.xlu1 %v5676_v2, %s5583_s23  ;;  %51 = vrot.lane.b32.xlu2 %v5664_v0, %s5573_s28 }
  0x53   :  { %360 = vrot.lane.b32.xlu0 %v5664_v0, %s5583_s23  ;;  %s5594_s23 = smov 50  }
  0x5a   :  { %74 = vrot.lane.b32.xlu1 %v5664_v0, %s5574_s11  ;;  %76 = vrot.lane.b32.xlu2 %v71_v8, %s5574_s11 }
  0x5b   :  { %53 = vrot.lane.b32.xlu0 %v48_v7, %s5573_s28 }
  0x5c   :  { %v405_v9 = vpop.permute.xlu2 %404 }
  0x5d   :  { %v408_v11 = vrot.slane %v405_v9, 1 }
  0x62   :  { %98 = vrot.lane.b32.xlu1 %v93_v10, %s5575_s12  ;;  %118 = vrot.lane.b32.xlu2 %v5664_v0, %s5569_s18 }
  0x63   :  { %96 = vrot.lane.b32.xlu0 %v5664_v0, %s5575_s12 }
  0x64   :  { %v407_v13 = vpop.permute.xlu2 %406 }
  0x65   :  { %v409_v14 = vrot.slane %v407_v13, 1 }
  0x67   :  { %v410_v16 = vsel %vm57_vm0, %v408_v11, %v409_v14  ;;  %v413_v17 = vsel %vm411_vm1, %v407_v13, %v409_v14 }
  0x68   :  { %v412_v18 = vsel %vm411_vm1, %v405_v9, %v410_v16  ;;  %420 = vst.msk [vmem:[#allocation2 + $0x131] ss:$8 sm:$0xf] %vm5746_vm2, %v413_v17  ;;  %vm301_vm1 = vcmask 506880  }
  0x69   :  { %417 = vst [vmem:[#allocation2 + $0xf1] ss:$8 sm:$0xf] %v412_v18 }
  0x6a   :  { %140 = vrot.lane.b32.xlu1 %v5664_v0, %s5584_s13  ;;  %418 = vst [vmem:[#allocation2 + $0xf1] ss:$8 sm:$0xf0] %v412_v18  ;;  %142 = vrot.lane.b32.xlu2 %v5676_v2, %s5584_s13 }
  0x6b   :  { %120 = vrot.lane.b32.xlu0 %v5676_v2, %s5569_s18  ;;  %421 = vst.msk [vmem:[#allocation2 + $0x131] ss:$8 sm:$0x70] %vm5746_vm2, %v413_v17 }
  0x6c   :  { %v5761_v19 = vpop.permute.xlu2 %448 }
  0x6d   :  { %v452_v47 = vrot.slane %v5761_v19, 1 }
  0x72   :  { %164 = vrot.lane.b32.xlu1 %v5676_v2, %s5585_s14  ;;  %184 = vrot.lane.b32.xlu2 %v5664_v0, %s5586_s15 }
  0x73   :  { %162 = vrot.lane.b32.xlu0 %v5664_v0, %s5585_s14  ;;  %s5279_s14 = sshll.u32 %s9724_s10, 4  ;;  %s5280_s14 = int_to_ptr.hbm [resolvable:$true] %s5279_s14 }
  0x74   :  { %v383_v20 = vpop.permute.xlu1 %382  ;;  %v5767_v22 = vpop.permute.xlu2 %480 }
  0x75   :  { %v542_v21 = vpop.permute.xlu0 %541  ;;  %v483_v23 = vrot.slane %v5767_v22, 1  ;;  %v386_v25 = vrot.slane %v383_v20, 1 }
  0x76   :  { %v545_v28 = vrot.slane %v542_v21, 1 }
  0x77   :  { %v486_v24 = vsel %vm59_vm3, %v5767_v22, %v483_v23 }
  0x78   :  { %493 = vst.msk [vmem:[#allocation2 + $0x135] ss:$8 sm:$0xf] %vm5746_vm2, %v486_v24 }
  0x79   :  { %494 = vst.msk [vmem:[#allocation2 + $0x135] ss:$8 sm:$0x70] %vm5746_vm2, %v486_v24 }
  0x7b   :  { %186 = vrot.lane.b32.xlu0 %v5676_v2, %s5586_s15 }
  0x7c   :  { %v385_v26 = vpop.permute.xlu1 %384  ;;  %v5780_v31 = vpop.permute.xlu2 %520 }
  0x7d   :  { %v544_v27 = vpop.permute.xlu0 %543  ;;  %v387_v29 = vrot.slane %v385_v26, 1  ;;  %v524_v10 = vrot.slane %v5780_v31, 1 }
  0x7e   :  { %v546_v30 = vrot.slane %v544_v27, 1 }
  0x7f   :  { %v388_v32 = vsel %vm57_vm0, %v386_v25, %v387_v29  ;;  %v391_v33 = vsel %vm389_vm4, %v385_v26, %v387_v29 }
  0x80   :  { %v547_v34 = vsel %vm57_vm0, %v545_v28, %v546_v30  ;;  %v390_v35 = vsel %vm389_vm4, %v383_v20, %v388_v32  ;;  %398 = vst.msk [vmem:[#allocation2 + $0x130] ss:$8 sm:$0xf] %vm5746_vm2, %v391_v33  ;;  %v549_v37 = vsel %vm125_vm5, %v544_v27, %v546_v30  ;;  %vm323_vm4 = vcmask 498688  }
  0x81   :  { %395 = vst [vmem:[#allocation2 + $0xf0] ss:$8 sm:$0xf] %v390_v35  ;;  %v548_v36 = vsel %vm125_vm5, %v542_v21, %v547_v34 }
  0x82   :  { %396 = vst [vmem:[#allocation2 + $0xf0] ss:$8 sm:$0xf0] %v390_v35 }
  0x83   :  { %399 = vst.msk [vmem:[#allocation2 + $0x130] ss:$8 sm:$0x70] %vm5746_vm2, %v391_v33 }
  0x84   :  { %553 = vst [vmem:[#allocation2 + $0x168] ss:$8 sm:$0xf] %v548_v36  ;;  %v429_v38 = vpop.permute.xlu1 %428  ;;  %v5790_v42 = vpop.permute.xlu2 %208 }
  0x85   :  { %v427_v39 = vpop.permute.xlu0 %426  ;;  %554 = vst [vmem:[#allocation2 + $0x168] ss:$8 sm:$0xf0] %v548_v36  ;;  %v431_v40 = vrot.slane %v429_v38, 1  ;;  %v211_v43 = vrot.slane %v5790_v42, 1 }
  0x86   :  { %v430_v41 = vrot.slane %v427_v39, 1  ;;  %556 = vst.msk [vmem:[#allocation2 + $0x1a8] ss:$8 sm:$0xf] %vm5746_vm2, %v549_v37 }
  0x87   :  { %557 = vst.msk [vmem:[#allocation2 + $0x1a8] ss:$8 sm:$0x70] %vm5746_vm2, %v549_v37  ;;  %v435_v44 = vsel %vm433_vm6, %v429_v38, %v431_v40  ;;  %v215_v48 = vsel %vm213_vm7, %v5790_v42, %v211_v43 }
  0x88   :  { %v432_v45 = vsel %vm57_vm0, %v430_v41, %v431_v40  ;;  %442 = vst.msk [vmem:[#allocation2 + $0x132] ss:$8 sm:$0xf] %vm5746_vm2, %v435_v44 }
  0x89   :  { %v434_v46 = vsel %vm433_vm6, %v427_v39, %v432_v45  ;;  %443 = vst.msk [vmem:[#allocation2 + $0x132] ss:$8 sm:$0x70] %vm5746_vm2, %v435_v44  ;;  %vm367_vm6 = vcmask 261120  }
  0x8a   :  { %439 = vst [vmem:[#allocation2 + $0xf2] ss:$8 sm:$0xf] %v434_v46 }
  0x8b   :  { %440 = vst [vmem:[#allocation2 + $0xf2] ss:$8 sm:$0xf0] %v434_v46  ;;  %v604_v49 = vld [vmem:[#allocation2 + $0x168] sm:$0x1] }
  0x8c   :  { %5288 = vmatpush.msk.msra.mxu0 %vm9727_vm8, %v604_v49  ;;  %v605_v50 = vld [vmem:[#allocation2 + $0x170] sm:$0x1]  ;;  %v606_v51 = vld [vmem:[#allocation2 + $0x178] sm:$0x1]  ;;  %v607_v52 = vld [vmem:[#allocation2 + $0x180] sm:$0x1]  ;;  %v479_v54 = vpop.permute.xlu1 %478  ;;  %v5812_v57 = vpop.permute.xlu2 %250 }
  0x8d   :  { %v451_v53 = vpop.permute.xlu0 %450  ;;  %5290 = vmatpush.msk.msra.mxu1 %vm9727_vm8, %v605_v50  ;;  %5292 = vmatpush.msk.msra.mxu2 %vm9727_vm8, %v606_v51  ;;  %v482_v56 = vrot.slane %v479_v54, 1  ;;  %222 = vst.msk [vmem:[#allocation2 + $0xb8] ss:$8 sm:$0xf] %vm5746_vm2, %v215_v48  ;;  %v254_v36 = vrot.slane %v5812_v57, 1 }
  0x8e   :  { %v453_v55 = vrot.slane %v451_v53, 1  ;;  %5294 = vmatpush.msk.msra.mxu3 %vm9727_vm8, %v607_v52  ;;  %223 = vst.msk [vmem:[#allocation2 + $0xb8] ss:$8 sm:$0x70] %vm5746_vm2, %v215_v48  ;;  %v608_v15 = vld [vmem:[#allocation2 + $0x188] sm:$0x1] }
  0x8f   :  { %v484_v60 = vsel %vm57_vm0, %v482_v56, %v483_v23 }
  0x90   :  { %v454_v58 = vsel %vm57_vm0, %v452_v47, %v453_v55  ;;  %v457_v59 = vsel %vm455_vm9, %v451_v53, %v453_v55  ;;  %v485_v62 = vsel %vm59_vm3, %v479_v54, %v484_v60 }
  0x91   :  { %v456_v61 = vsel %vm455_vm9, %v5761_v19, %v454_v58  ;;  %464 = vst.msk [vmem:[#allocation2 + $0x133] ss:$8 sm:$0xf] %vm5746_vm2, %v457_v59  ;;  %vm169_vm9 = vcmask 777216  }
  0x92   :  { %461 = vst [vmem:[#allocation2 + $0xf3] ss:$8 sm:$0xf] %v456_v61 }
  0x93   :  { %462 = vst [vmem:[#allocation2 + $0xf3] ss:$8 sm:$0xf0] %v456_v61 }
  0x94   :  { %465 = vst.msk [vmem:[#allocation2 + $0x133] ss:$8 sm:$0x70] %vm5746_vm2, %v457_v59  ;;  %v502_v0 = vpop.permute.xlu1 %501  ;;  %v5832_v4 = vpop.permute.xlu2 %274 }
  0x95   :  { %490 = vst [vmem:[#allocation2 + $0xf5] ss:$8 sm:$0xf] %v485_v62  ;;  %v500_v63 = vpop.permute.xlu0 %499  ;;  %v504_v3 = vrot.slane %v502_v0, 1  ;;  %v277_v5 = vrot.slane %v5832_v4, 1 }
  0x96   :  { %491 = vst [vmem:[#allocation2 + $0xf5] ss:$8 sm:$0xf0] %v485_v62  ;;  %v503_v2 = vrot.slane %v500_v63, 1 }
  0x97   :  { %v507_v7 = vsel %vm81_vm10, %v502_v0, %v504_v3  ;;  %v281_v9 = vsel %vm279_vm11, %v5832_v4, %v277_v5 }
  0x98   :  { %v505_v6 = vsel %vm57_vm0, %v503_v2, %v504_v3  ;;  %514 = vst.msk [vmem:[#allocation2 + $0x136] ss:$8 sm:$0xf] %vm5746_vm2, %v507_v7 }
  0x99   :  { %v506_v8 = vsel %vm81_vm10, %v500_v63, %v505_v6  ;;  %515 = vst.msk [vmem:[#allocation2 + $0x136] ss:$8 sm:$0x70] %vm5746_vm2, %v507_v7 }
  0x9a   :  { %511 = vst [vmem:[#allocation2 + $0xf6] ss:$8 sm:$0xf] %v506_v8 }
  0x9b   :  { %512 = vst [vmem:[#allocation2 + $0xf6] ss:$8 sm:$0xf0] %v506_v8 }
  0x9c   :  { %v207_v12 = vpop.permute.xlu1 %206  ;;  %288 = vst.msk [vmem:[#allocation2 + $0xbb] ss:$8 sm:$0xf] %vm5746_vm2, %v281_v9  ;;  %v5855_v16 = vpop.permute.xlu2 %316 }
  0x9d   :  { %v523_v11 = vpop.permute.xlu0 %522  ;;  %v210_v14 = vrot.slane %v207_v12, 1  ;;  %289 = vst.msk [vmem:[#allocation2 + $0xbb] ss:$8 sm:$0x70] %vm5746_vm2, %v281_v9 }
  0x9e   :  { %v525_v13 = vrot.slane %v523_v11, 1 }
  0x9f   :  { %v212_v19 = vsel %vm57_vm0, %v210_v14, %v211_v43 }
  0xa0   :  { %v526_v17 = vsel %vm57_vm0, %v524_v10, %v525_v13  ;;  %v528_v18 = vsel %vm9726_vm12, %v523_v11, %v525_v13  ;;  %v214_v21 = vsel %vm213_vm7, %v207_v12, %v212_v19  ;;  %vm147_vm7 = vcmask 785408  }
  0xa1   :  { %v527_v20 = vsel %vm9726_vm12, %v5780_v31, %v526_v17  ;;  %535 = vst.msk [vmem:[#allocation2 + $0x137] ss:$8 sm:$0xf] %vm5746_vm2, %v528_v18 }
  0xa2   :  { %532 = vst [vmem:[#allocation2 + $0xf7] ss:$8 sm:$0xf] %v527_v20 }
  0xa3   :  { %533 = vst [vmem:[#allocation2 + $0xf7] ss:$8 sm:$0xf0] %v527_v20 }
  0xa4   :  { %536 = vst.msk [vmem:[#allocation2 + $0x137] ss:$8 sm:$0x70] %vm5746_vm2, %v528_v18  ;;  %v231_v23 = vpop.permute.xlu1 %230  ;;  %v5869_v26 = vpop.permute.xlu2 %340 }
  0xa5   :  { %219 = vst [vmem:[#allocation2 + $0x78] ss:$8 sm:$0xf] %v214_v21  ;;  %v229_v22 = vpop.permute.xlu0 %228  ;;  %v233_v25 = vrot.slane %v231_v23, 1  ;;  %v343_v27 = vrot.slane %v5869_v26, 1 }
  0xa6   :  { %220 = vst [vmem:[#allocation2 + $0x78] ss:$8 sm:$0xf0] %v214_v21  ;;  %v232_v24 = vrot.slane %v229_v22, 1 }
  0xa7   :  { %v237_v29 = vsel %vm235_vm13, %v231_v23, %v233_v25  ;;  %v347_v35 = vsel %vm345_vm14, %v5869_v26, %v343_v27 }
  0xa8   :  { %v234_v28 = vsel %vm57_vm0, %v232_v24, %v233_v25  ;;  %244 = vst.msk [vmem:[#allocation2 + $0xb9] ss:$8 sm:$0xf] %vm5746_vm2, %v237_v29 }
  0xa9   :  { %v236_v30 = vsel %vm235_vm13, %v229_v22, %v234_v28  ;;  %v589_v31 = vld [vmem:[#allocation2 + $0xf0] sm:$0xff]  ;;  %v590_v32 = vld [vmem:[#allocation2 + $0xf8] sm:$0xff]  ;;  %v591_v33 = vld [vmem:[#allocation2 + $0x100] sm:$0xff]  ;;  %245 = vst.msk [vmem:[#allocation2 + $0xb9] ss:$8 sm:$0x70] %vm5746_vm2, %v237_v29 }
  0xaa   :  { %241 = vst [vmem:[#allocation2 + $0x79] ss:$8 sm:$0xf] %v236_v30  ;;  %688 = vmatpush.msra.mxu0 %v589_v31  ;;  %708 = vmatpush.msra.mxu1 %v590_v32  ;;  %v592_v34 = vld [vmem:[#allocation2 + $0x108] sm:$0xff]  ;;  %vm625_vm13 = vcmask 203776  }
  0xab   :  { %242 = vst [vmem:[#allocation2 + $0x79] ss:$8 sm:$0xf0] %v236_v30  ;;  %728 = vmatpush.msra.mxu2 %v591_v33  ;;  %748 = vmatpush.msra.mxu3 %v592_v34 }
  0xac   :  { %v273_v38 = vpop.permute.xlu1 %272  ;;  %354 = vst.msk [vmem:[#allocation2 + $0xbe] ss:$8 sm:$0xf] %vm5746_vm2, %v347_v35  ;;  %v5886_v41 = vpop.permute.xlu2 %51 }
  0xad   :  { %v253_v37 = vpop.permute.xlu0 %252  ;;  %v276_v40 = vrot.slane %v273_v38, 1  ;;  %355 = vst.msk [vmem:[#allocation2 + $0xbe] ss:$8 sm:$0x70] %vm5746_vm2, %v347_v35  ;;  %v55_v14 = vrot.slane %v5886_v41, 1 }
  0xae   :  { %v255_v39 = vrot.slane %v253_v37, 1 }
  0xaf   :  { %v278_v44 = vsel %vm57_vm0, %v276_v40, %v277_v5 }
  0xb0   :  { %v256_v42 = vsel %vm57_vm0, %v254_v36, %v255_v39  ;;  %v259_v43 = vsel %vm257_vm15, %v253_v37, %v255_v39  ;;  %v280_v46 = vsel %vm279_vm11, %v273_v38, %v278_v44  ;;  %v37_v39 = vld [vmem:[%s9714_s0 + $0x8] sm:$0x7f]  ;;  %vm9725_vm11 = vcmask 769024   ;;  %s5595_s0 = smov 47  }
  0xb1   :  { %v258_v45 = vsel %vm257_vm15, %v5812_v57, %v256_v42  ;;  %266 = vst.msk [vmem:[#allocation2 + $0xba] ss:$8 sm:$0xf] %vm5746_vm2, %v259_v43  ;;  %v320_v57 = vrot.slane %v5855_v16, 1 }
  0xb2   :  { %263 = vst [vmem:[#allocation2 + $0x7a] ss:$8 sm:$0xf] %v258_v45 }
  0xb3   :  { %264 = vst [vmem:[#allocation2 + $0x7a] ss:$8 sm:$0xf0] %v258_v45 }
  0xb4   :  { %267 = vst.msk [vmem:[#allocation2 + $0xba] ss:$8 sm:$0x70] %vm5746_vm2, %v259_v43  ;;  %v297_v48 = vpop.permute.xlu1 %296  ;;  %v77_v51 = vpop.permute.xlu2 %76 }
  0xb5   :  { %285 = vst [vmem:[#allocation2 + $0x7b] ss:$8 sm:$0xf] %v280_v46  ;;  %v295_v47 = vpop.permute.xlu0 %294  ;;  %v299_v50 = vrot.slane %v297_v48, 1  ;;  %v79_v52 = vrot.slane %v77_v51, 1 }
  0xb6   :  { %286 = vst [vmem:[#allocation2 + $0x7b] ss:$8 sm:$0xf0] %v280_v46  ;;  %v298_v49 = vrot.slane %v295_v47, 1 }
  0xb7   :  { %v303_v54 = vsel %vm301_vm1, %v297_v48, %v299_v50  ;;  %v83_v56 = vsel %vm81_vm10, %v77_v51, %v79_v52  ;;  %45 = vst.msk [vmem:[#allocation2 + $0x40] ss:$8 sm:$0xf] %vm5746_vm2, %v37_v39 }
  0xb8   :  { %v300_v53 = vsel %vm57_vm0, %v298_v49, %v299_v50  ;;  %310 = vst.msk [vmem:[#allocation2 + $0xbc] ss:$8 sm:$0xf] %vm5746_vm2, %v303_v54 }
  0xb9   :  { %v302_v55 = vsel %vm301_vm1, %v295_v47, %v300_v53  ;;  %311 = vst.msk [vmem:[#allocation2 + $0xbc] ss:$8 sm:$0x70] %vm5746_vm2, %v303_v54 }
  0xba   :  { %307 = vst [vmem:[#allocation2 + $0x7c] ss:$8 sm:$0xf] %v302_v55 }
  0xbb   :  { %308 = vst [vmem:[#allocation2 + $0x7c] ss:$8 sm:$0xf0] %v302_v55 }
  0xbc   :  { %v339_v59 = vpop.permute.xlu1 %338  ;;  %90 = vst.msk [vmem:[#allocation2 + $0x42] ss:$8 sm:$0xf] %vm5746_vm2, %v83_v56  ;;  %v5913_v62 = vpop.permute.xlu2 %118 }
  0xbd   :  { %v319_v58 = vpop.permute.xlu0 %318  ;;  %v342_v61 = vrot.slane %v339_v59, 1  ;;  %91 = vst.msk [vmem:[#allocation2 + $0x42] ss:$8 sm:$0x70] %vm5746_vm2, %v83_v56  ;;  %v122_v36 = vrot.slane %v5913_v62, 1 }
  0xbe   :  { %v321_v60 = vrot.slane %v319_v58, 1  ;;  %46 = vst.msk [vmem:[#allocation2 + $0x40] ss:$8 sm:$0x70] %vm5746_vm2, %v37_v39  ;;  %v619_v56 = vld [vmem:[%s9716_s2] sm:$0x3f] }
  0xbf   :  { %v344_v1 = vsel %vm57_vm0, %v342_v61, %v343_v27  ;;  %v601_v39 = vld [vmem:[#allocation2 + $0x150] sm:$0xff]  ;;  %s5597_s2 = smov 97  }
  0xc0   :  { %v322_v63 = vsel %vm57_vm0, %v320_v57, %v321_v60  ;;  %v325_v0 = vsel %vm323_vm4, %v319_v58, %v321_v60  ;;  %v346_v3 = vsel %vm345_vm14, %v339_v59, %v344_v1  ;;  %v5587_v58 = vmov 0  }
  0xc1   :  { %v324_v2 = vsel %vm323_vm4, %v5855_v16, %v322_v63  ;;  %332 = vst.msk [vmem:[#allocation2 + $0xbd] ss:$8 sm:$0xf] %vm5746_vm2, %v325_v0  ;;  %5413 = vset.pattern.permute.xlu1 %v5587_v58  ;;  %5414 = vset.pattern.permute.xlu2 %v5587_v58  ;;  %v5989_v63 = vld [vmem:[%s9715_s1] sm:$0x3f]  ;;  %s5588_s1 = smov 58  }
  0xc2   :  { %329 = vst [vmem:[#allocation2 + $0x7d] ss:$8 sm:$0xf] %v324_v2  ;;  %622 = vperm.xlu1 %5413, %v619_v56   ;;  %5415 = vset.pattern.permute.xlu0 %v5587_v58  ;;  %vm1782_vm4 = vcmask 474112  }
  0xc3   :  { %330 = vst [vmem:[#allocation2 + $0x7d] ss:$8 sm:$0xf0] %v324_v2 }
  0xc4   :  { %333 = vst.msk [vmem:[#allocation2 + $0xbd] ss:$8 sm:$0x70] %vm5746_vm2, %v325_v0  ;;  %v363_v5 = vpop.permute.xlu1 %362  ;;  %v143_v8 = vpop.permute.xlu2 %142 }
  0xc5   :  { %351 = vst [vmem:[#allocation2 + $0x7e] ss:$8 sm:$0xf] %v346_v3  ;;  %v361_v4 = vpop.permute.xlu0 %360  ;;  %v365_v7 = vrot.slane %v363_v5, 1  ;;  %v145_v9 = vrot.slane %v143_v8, 1 }
  0xc6   :  { %352 = vst [vmem:[#allocation2 + $0x7e] ss:$8 sm:$0xf0] %v346_v3  ;;  %v364_v6 = vrot.slane %v361_v4, 1 }
  0xc7   :  { %v369_v11 = vsel %vm367_vm6, %v363_v5, %v365_v7  ;;  %v149_v13 = vsel %vm147_vm7, %v143_v8, %v145_v9  ;;  %v610_v5 = vld [vmem:[#allocation2 + $0x198] sm:$0x1] }
  0xc8   :  { %v366_v10 = vsel %vm57_vm0, %v364_v6, %v365_v7  ;;  %376 = vst.msk [vmem:[#allocation2 + $0xbf] ss:$8 sm:$0xf] %vm5746_vm2, %v369_v11  ;;  %v611_v6 = vld [vmem:[#allocation2 + $0x1a0] sm:$0x1]  ;;  %v593_v7 = vld [vmem:[#allocation2 + $0x110] sm:$0xff] }
  0xc9   :  { %v368_v12 = vsel %vm367_vm6, %v361_v4, %v366_v10  ;;  %377 = vst.msk [vmem:[#allocation2 + $0xbf] ss:$8 sm:$0x70] %vm5746_vm2, %v369_v11  ;;  %v609_v4 = vld [vmem:[#allocation2 + $0x190] sm:$0x1]  ;;  %v594_v8 = vld [vmem:[#allocation2 + $0x118] sm:$0xff] }
  0xca   :  { %373 = vst [vmem:[#allocation2 + $0x7f] ss:$8 sm:$0xf] %v368_v12  ;;  %v596_v10 = vld [vmem:[#allocation2 + $0x128] sm:$0xff]  ;;  %vm1484_vm6 = vcmask 982016  }
  0xcb   :  { %374 = vst [vmem:[#allocation2 + $0x7f] ss:$8 sm:$0xf0] %v368_v12 }
  0xcc   :  { %v75_v16 = vpop.permute.xlu1 %74  ;;  %156 = vst.msk [vmem:[#allocation2 + $0x45] ss:$8 sm:$0xf] %vm5746_vm2, %v149_v13  ;;  %v185_v53 = vpop.permute.xlu2 %184 }
  0xcd   :  { %v54_v17 = vpop.permute.xlu0 %53  ;;  %v78_v18 = vrot.slane %v75_v16, 1  ;;  %157 = vst.msk [vmem:[#allocation2 + $0x45] ss:$8 sm:$0x70] %vm5746_vm2, %v149_v13  ;;  %v188_v55 = vrot.slane %v185_v53, 1 }
  0xce   :  { %v56_v19 = vrot.slane %v54_v17, 1 }
  0xcf   :  { %v80_v22 = vsel %vm57_vm0, %v78_v18, %v79_v52 }
  0xd0   :  { %v58_v20 = vsel %vm57_vm0, %v55_v14, %v56_v19  ;;  %v61_v21 = vsel %vm59_vm3, %v54_v17, %v56_v19  ;;  %v82_v28 = vsel %vm81_vm10, %v75_v16, %v80_v22  ;;  %v614_v22 = vld [vmem:[#allocation2 + $0x1b8] sm:$0x1] }
  0xd1   :  { %v60_v23 = vsel %vm59_vm3, %v5886_v41, %v58_v20  ;;  %68 = vst.msk [vmem:[#allocation2 + $0x41] ss:$8 sm:$0xf] %vm5746_vm2, %v61_v21  ;;  %v574_v24 = vld [vmem:[#allocation2 + $0x78] sm:$0xff]  ;;  %v575_v25 = vld [vmem:[#allocation2 + $0x80] sm:$0xff]  ;;  %v576_v26 = vld [vmem:[#allocation2 + $0x88] sm:$0xff] }
  0xd2   :  { %65 = vst [vmem:[#allocation2 + $0x1] ss:$8 sm:$0xf] %v60_v23  ;;  %689 = vmatpush.msra.mxu0 %v574_v24  ;;  %709 = vmatpush.msra.mxu1 %v575_v25  ;;  %v577_v27 = vld [vmem:[#allocation2 + $0x90] sm:$0xff]  ;;  %v578_v11 = vld [vmem:[#allocation2 + $0x98] sm:$0xff]  ;;  %v579_v12 = vld [vmem:[#allocation2 + $0xa0] sm:$0xff] }
  0xd3   :  { %66 = vst [vmem:[#allocation2 + $0x1] ss:$8 sm:$0xf0] %v60_v23  ;;  %729 = vmatpush.msra.mxu2 %v576_v26  ;;  %749 = vmatpush.msra.mxu3 %v577_v27  ;;  %v580_v13 = vld [vmem:[#allocation2 + $0xa8] sm:$0xff]  ;;  %v581_v14 = vld [vmem:[#allocation2 + $0xb0] sm:$0xff]  ;;  %v598_v25 = vld [vmem:[#allocation2 + $0x138] sm:$0xff] }
  0xd4   :  { %69 = vst.msk [vmem:[#allocation2 + $0x41] ss:$8 sm:$0x70] %vm5746_vm2, %v61_v21  ;;  %v99_v29 = vpop.permute.xlu1 %98  ;;  %v612_v20 = vld [vmem:[#allocation2 + $0x1a8] sm:$0x1]  ;;  %v597_v24 = vld [vmem:[#allocation2 + $0x130] sm:$0xff] }
  0xd5   :  { %87 = vst [vmem:[#allocation2 + $0x2] ss:$8 sm:$0xf] %v82_v28  ;;  %v97_v30 = vpop.permute.xlu0 %96  ;;  %v101_v31 = vrot.slane %v99_v29, 1  ;;  %v613_v21 = vld [vmem:[#allocation2 + $0x1b0] sm:$0x1] }
  0xd6   :  { %88 = vst [vmem:[#allocation2 + $0x2] ss:$8 sm:$0xf0] %v82_v28  ;;  %v100_v32 = vrot.slane %v97_v30, 1  ;;  %v615_v23 = vld [vmem:[#allocation2 + $0x1c0] sm:$0x1] }
  0xd7   :  { %v105_v33 = vsel %vm9726_vm12, %v99_v29, %v101_v31  ;;  %v599_v26 = vld [vmem:[#allocation2 + $0x140] sm:$0xff]  ;;  %v600_v27 = vld [vmem:[#allocation2 + $0x148] sm:$0xff]  ;;  %v582_v28 = vld [vmem:[#allocation2 + $0xb8] sm:$0xff] }
  0xd8   :  { %v102_v34 = vsel %vm57_vm0, %v100_v32, %v101_v31  ;;  %112 = vst.msk [vmem:[#allocation2 + $0x43] ss:$8 sm:$0xf] %vm5746_vm2, %v105_v33  ;;  %v583_v29 = vld [vmem:[#allocation2 + $0xc0] sm:$0xff]  ;;  %v585_v31 = vld [vmem:[#allocation2 + $0xd0] sm:$0xff] }
  0xd9   :  { %v104_v35 = vsel %vm9726_vm12, %v97_v30, %v102_v34  ;;  %113 = vst.msk [vmem:[#allocation2 + $0x43] ss:$8 sm:$0x70] %vm5746_vm2, %v105_v33  ;;  %v584_v30 = vld [vmem:[#allocation2 + $0xc8] sm:$0xff]  ;;  %vm1271_vm12 = vcmask 678918  }
  0xda   :  { %109 = vst [vmem:[#allocation2 + $0x3] ss:$8 sm:$0xf] %v104_v35 }
  0xdb   :  { %110 = vst [vmem:[#allocation2 + $0x3] ss:$8 sm:$0xf0] %v104_v35 }
  0xdc   :  { %v141_v37 = vpop.permute.xlu1 %140 }
  0xdd   :  { %v121_v38 = vpop.permute.xlu0 %120  ;;  %v144_v40 = vrot.slane %v141_v37, 1 }
  0xde   :  { %v123_v41 = vrot.slane %v121_v38, 1 }
  0xdf   :  { %v146_v44 = vsel %vm57_vm0, %v144_v40, %v145_v9  ;;  %v595_v9 = vld [vmem:[#allocation2 + $0x120] sm:$0xff]  ;;  %v602_v40 = vld [vmem:[#allocation2 + $0x158] sm:$0xff] }
  0xe0   :  { %v124_v42 = vsel %vm57_vm0, %v122_v36, %v123_v41  ;;  %v127_v43 = vsel %vm125_vm5, %v121_v38, %v123_v41  ;;  %v148_v46 = vsel %vm147_vm7, %v141_v37, %v146_v44  ;;  %v616_v36 = vld [vmem:[#allocation2 + $0x1c8] sm:$0x1]  ;;  %v617_v37 = vld [vmem:[#allocation2 + $0x1d0] sm:$0x1]  ;;  %v618_v38 = vld [vmem:[#allocation2 + $0x1d8] sm:$0x1] }
  0xe1   :  { %v126_v45 = vsel %vm125_vm5, %v5913_v62, %v124_v42  ;;  %134 = vst.msk [vmem:[#allocation2 + $0x44] ss:$8 sm:$0xf] %vm5746_vm2, %v127_v43  ;;  %v603_v41 = vld [vmem:[#allocation2 + $0x160] sm:$0xff]  ;;  %v586_v42 = vld [vmem:[#allocation2 + $0xd8] sm:$0xff]  ;;  %v588_v44 = vld [vmem:[#allocation2 + $0xe8] sm:$0xff] }
  0xe2   :  { %131 = vst [vmem:[#allocation2 + $0x4] ss:$8 sm:$0xf] %v126_v45 }
  0xe3   :  { %132 = vst [vmem:[#allocation2 + $0x4] ss:$8 sm:$0xf0] %v126_v45 }
  0xe4   :  { %135 = vst.msk [vmem:[#allocation2 + $0x44] ss:$8 sm:$0x70] %vm5746_vm2, %v127_v43  ;;  %v165_v47 = vpop.permute.xlu1 %164  ;;  %v587_v43 = vld [vmem:[#allocation2 + $0xe0] sm:$0xff] }
  0xe5   :  { %153 = vst [vmem:[#allocation2 + $0x5] ss:$8 sm:$0xf] %v148_v46  ;;  %v163_v48 = vpop.permute.xlu0 %162  ;;  %v167_v49 = vrot.slane %v165_v47, 1 }
  0xe6   :  { %154 = vst [vmem:[#allocation2 + $0x5] ss:$8 sm:$0xf0] %v148_v46  ;;  %v166_v50 = vrot.slane %v163_v48, 1 }
  0xe7   :  { %v171_v51 = vsel %vm169_vm9, %v165_v47, %v167_v49 }
  0xe8   :  { %v168_v52 = vsel %vm57_vm0, %v166_v50, %v167_v49  ;;  %178 = vst.msk [vmem:[#allocation2 + $0x46] ss:$8 sm:$0xf] %vm5746_vm2, %v171_v51 }
  0xe9   :  { %v170_v54 = vsel %vm169_vm9, %v163_v48, %v168_v52  ;;  %179 = vst.msk [vmem:[#allocation2 + $0x46] ss:$8 sm:$0x70] %vm5746_vm2, %v171_v51  ;;  %vm2986_vm9 = vcmask 1045504  }
  0xea   :  { %175 = vst [vmem:[#allocation2 + $0x6] ss:$8 sm:$0xf] %v170_v54 }
  0xeb   :  { %176 = vst [vmem:[#allocation2 + $0x6] ss:$8 sm:$0xf0] %v170_v54 }
  0xed   :  { %v187_v57 = vpop.permute.xlu0 %186 }
  0xee   :  { %v189_v59 = vrot.slane %v187_v57, 1 }
  0xf0   :  { %v193_v60 = vsel %vm9725_vm11, %v187_v57, %v189_v59  ;;  %v190_v61 = vsel %vm57_vm0, %v188_v55, %v189_v59  ;;  %vm1363_vm0 = vcmask 678916  }
  0xf1   :  { %200 = vst.msk [vmem:[#allocation2 + $0x47] ss:$8 sm:$0xf] %vm5746_vm2, %v193_v60  ;;  %v192_v62 = vsel %vm9725_vm11, %v185_v53, %v190_v61  ;;  %vm9728_vm11 = vcmask 179200  }
  0xf2   :  { %201 = vst.msk [vmem:[#allocation2 + $0x47] ss:$8 sm:$0x70] %vm5746_vm2, %v193_v60  ;;  %vm1377_vm2 = vcmask 672768  }
  0xf3   :  { %197 = vst [vmem:[#allocation2 + $0x7] ss:$8 sm:$0xf] %v192_v62 }
  0xf4   :  { %198 = vst [vmem:[#allocation2 + $0x7] ss:$8 sm:$0xf0] %v192_v62 }
  0xf8   :  { %v567_v32 = vld [vmem:[#allocation2 + $0x40] sm:$0xff]  ;;  %v568_v33 = vld [vmem:[#allocation2 + $0x48] sm:$0xff]  ;;  %v569_v34 = vld [vmem:[#allocation2 + $0x50] sm:$0xff] }
  0xf9   :  { %v570_v35 = vld [vmem:[#allocation2 + $0x58] sm:$0xff]  ;;  %v571_v45 = vld [vmem:[#allocation2 + $0x60] sm:$0xff]  ;;  %v572_v46 = vld [vmem:[#allocation2 + $0x68] sm:$0xff] }
  0xfa   :  { %v559_v0 = vld [vmem:[#allocation2] sm:$0xff]  ;;  %v560_v1 = vld [vmem:[#allocation2 + $0x8] sm:$0xff]  ;;  %v561_v2 = vld [vmem:[#allocation2 + $0x10] sm:$0xff] }
  0xfb   :  { %690 = vmatpush.msra.mxu0 %v559_v0  ;;  %710 = vmatpush.msra.mxu1 %v560_v1  ;;  %v562_v3 = vld [vmem:[#allocation2 + $0x18] sm:$0xff]  ;;  %v563_v16 = vld [vmem:[#allocation2 + $0x20] sm:$0xff]  ;;  %v564_v17 = vld [vmem:[#allocation2 + $0x28] sm:$0xff] }
  0xfc   :  { %730 = vmatpush.msra.mxu2 %v561_v2  ;;  %750 = vmatpush.msra.mxu3 %v562_v3  ;;  %v565_v18 = vld [vmem:[#allocation2 + $0x30] sm:$0xff]  ;;  %v566_v19 = vld [vmem:[#allocation2 + $0x38] sm:$0xff] }
  0xfd   :  { %5289 = vmatmul.msk.f32.vlgmr.msra.gmra.mxu0 %vm625_vm13, %v5989_v63  ;;  %5291 = vmatmul.msk.f32.vlgmr.msra.gmra.mxu1 %vm625_vm13, %v5989_v63  ;;  %v573_v47 = vld [vmem:[#allocation2 + $0x70] sm:$0xff] }
  0xfe   :  { %5293 = vmatmul.msk.f32.vlgmr.msra.gmra.mxu2 %vm625_vm13, %v5989_v63  ;;  %5295 = vmatmul.msk.f32.vlgmr.msra.gmra.mxu3 %vm625_vm13, %v5989_v63 }
  0xff   :  { %5296 = vmatpush.msk.msrb.mxu0 %vm9727_vm8, %v608_v15  ;;  %5298 = vmatpush.msk.msrb.mxu1 %vm9727_vm8, %v609_v4 }
 0x100   :  { %5300 = vmatpush.msk.msrb.mxu2 %vm9727_vm8, %v610_v5  ;;  %5302 = vmatpush.msk.msrb.mxu3 %vm9727_vm8, %v611_v6 }
 0x101   :  { %768 = vmatpush.msrb.mxu0 %v593_v7  ;;  %788 = vmatpush.msrb.mxu1 %v594_v8 }
 0x102   :  { %808 = vmatpush.msrb.mxu2 %v595_v9  ;;  %828 = vmatpush.msrb.mxu3 %v596_v10 }
 0x103   :  { %769 = vmatpush.msrb.mxu0 %v578_v11  ;;  %789 = vmatpush.msrb.mxu1 %v579_v12 }
 0x104   :  { %809 = vmatpush.msrb.mxu2 %v580_v13  ;;  %829 = vmatpush.msrb.mxu3 %v581_v14 }
 0x105   :  { %770 = vmatpush.msrb.mxu0 %v563_v16  ;;  %790 = vmatpush.msrb.mxu1 %v564_v17 }
 0x106   :  { %810 = vmatpush.msrb.mxu2 %v565_v18  ;;  %830 = vmatpush.msrb.mxu3 %v566_v19 }
 0x107   :  { %5304 = vmatpush.msk.msra.mxu0 %vm9727_vm8, %v612_v20  ;;  %5306 = vmatpush.msk.msra.mxu1 %vm9727_vm8, %v613_v21 }
 0x108   :  { %5308 = vmatpush.msk.msra.mxu2 %vm9727_vm8, %v614_v22  ;;  %5310 = vmatpush.msk.msra.mxu3 %vm9727_vm8, %v615_v23 }
 0x109   :  { %5297 = vmatmul.msk.f32.vlgmr.msrb.gmra.mxu0 %vm625_vm13, %v5989_v63  ;;  %5299 = vmatmul.msk.f32.vlgmr.msrb.gmra.mxu1 %vm625_vm13, %v5989_v63 }
 0x10a   :  { %5301 = vmatmul.msk.f32.vlgmr.msrb.gmra.mxu2 %vm625_vm13, %v5989_v63  ;;  %5303 = vmatmul.msk.f32.vlgmr.msrb.gmra.mxu3 %vm625_vm13, %v5989_v63 }
 0x10b   :  { %848 = vmatpush.msra.mxu0 %v597_v24  ;;  %868 = vmatpush.msra.mxu1 %v598_v25 }
 0x10c   :  { %888 = vmatpush.msra.mxu2 %v599_v26  ;;  %908 = vmatpush.msra.mxu3 %v600_v27 }
 0x10d   :  { %849 = vmatpush.msra.mxu0 %v582_v28  ;;  %869 = vmatpush.msra.mxu1 %v583_v29 }
 0x10e   :  { %889 = vmatpush.msra.mxu2 %v584_v30  ;;  %909 = vmatpush.msra.mxu3 %v585_v31 }
 0x10f   :  { %850 = vmatpush.msra.mxu0 %v567_v32  ;;  %870 = vmatpush.msra.mxu1 %v568_v33 }
 0x110   :  { %890 = vmatpush.msra.mxu2 %v569_v34  ;;  %910 = vmatpush.msra.mxu3 %v570_v35 }
 0x111   :  { %5312 = vmatpush.msk.msrb.mxu0 %vm9727_vm8, %v616_v36  ;;  %5314 = vmatpush.msk.msrb.mxu1 %vm9727_vm8, %v617_v37 }
 0x112   :  { %5316 = vmatpush.msk.msrb.mxu2 %vm9727_vm8, %v618_v38  ;;  %5305 = vmatmul.msk.f32.vlgmr.msra.gmra.mxu0 %vm625_vm13, %v5989_v63  ;;  %vm1285_vm8 = vcmask 674816  }
 0x113   :  { %5307 = vmatmul.msk.f32.vlgmr.msra.gmra.mxu1 %vm625_vm13, %v5989_v63  ;;  %5309 = vmatmul.msk.f32.vlgmr.msra.gmra.mxu2 %vm625_vm13, %v5989_v63 }
 0x114   :  { %5311 = vmatmul.msk.f32.vlgmr.msra.gmra.mxu3 %vm625_vm13, %v5989_v63  ;;  %928 = vmatpush.msrb.mxu0 %v601_v39 }
 0x115   :  { %948 = vmatpush.msrb.mxu1 %v602_v40  ;;  %968 = vmatpush.msrb.mxu2 %v603_v41 }
 0x116   :  { %929 = vmatpush.msrb.mxu0 %v586_v42 }
 0x117   :  { %949 = vmatpush.msrb.mxu1 %v587_v43  ;;  %969 = vmatpush.msrb.mxu2 %v588_v44 }
 0x118   :  { %930 = vmatpush.msrb.mxu0 %v571_v45 }
 0x119   :  { %950 = vmatpush.msrb.mxu1 %v572_v46  ;;  %970 = vmatpush.msrb.mxu2 %v573_v47 }
 0x11a   :  { %5313 = vmatmul.msk.f32.vlgmr.msrb.gmra.mxu0 %vm625_vm13, %v5989_v63 }
 0x11b   :  { %5315 = vmatmul.msk.f32.vlgmr.msrb.gmra.mxu1 %vm625_vm13, %v5989_v63  ;;  %5317 = vmatmul.msk.f32.vlgmr.msrb.gmra.mxu2 %vm625_vm13, %v5989_v63  ;;  %vm1418_vm13 = vcmask 998400  }
 0x134   :  { %v623_v48 = vpop.permute.xlu1 %622 }
 0x17a   :  { %v712_v49 = vpop.f32.mrf.mxu1  ;;  %v692_v51 = vpop.f32.mrf.mxu0 }
 0x17b   :  { %v6032_v50 = vadd.f32 %v712_v49, %v623_v48  ;;  %v693_v54 = vadd.f32 %v692_v51, %v623_v48 }
 0x17d   :  { %992 = vrot.lane.b32.xlu0 %v6032_v50, %s5573_s28 }
 0x181   :  { %v732_v52 = vpop.f32.mrf.mxu2  ;;  %v752_v55 = vpop.f32.mrf.mxu3 }
 0x182   :  { %v733_v53 = vadd.f32 %v732_v52, %v623_v48  ;;  %v753_v60 = vadd.f32 %v752_v55, %v623_v48 }
 0x184   :  { %994 = vrot.lane.b32.xlu2 %v733_v53, %s5573_s28 }
 0x185   :  { %990 = vrot.lane.b32.xlu0 %v693_v54, %s5573_s28 }
 0x186   :  { %v772_v56 = vpop.f32.mrf.mxu0  ;;  %v792_v58 = vpop.f32.mrf.mxu1 }
 0x187   :  { %v773_v57 = vadd.f32 %v772_v56, %v623_v48  ;;  %v793_v59 = vadd.f32 %v792_v58, %v623_v48 }
 0x189   :  { %998 = vrot.lane.b32.xlu1 %v773_v57, %s5573_s28 }
 0x18c   :  { %1000 = vrot.lane.b32.xlu2 %v793_v59, %s5573_s28 }
 0x18d   :  { %v812_v61 = vpop.f32.mrf.mxu2  ;;  %996 = vrot.lane.b32.xlu0 %v753_v60, %s5573_s28  ;;  %v832_v63 = vpop.f32.mrf.mxu3 }
 0x18e   :  { %v813_v62 = vadd.f32 %v812_v61, %v623_v48  ;;  %v833_v0 = vadd.f32 %v832_v63, %v623_v48 }
 0x18f   :  { %v852_v2 = vpop.f32.mrf.mxu0 }
 0x190   :  { %v872_v1 = vpop.f32.mrf.mxu1  ;;  %v853_v15 = vadd.f32 %v852_v2, %v623_v48 }
 0x191   :  { %1002 = vrot.lane.b32.xlu1 %v813_v62, %s5573_s28  ;;  %v873_v5 = vadd.f32 %v872_v1, %v623_v48 }
 0x194   :  { %1004 = vrot.lane.b32.xlu2 %v833_v0, %s5573_s28 }
 0x196   :  { %v892_v3 = vpop.f32.mrf.mxu2 }
 0x197   :  { %v893_v4 = vadd.f32 %v892_v3, %v623_v48  ;;  %v912_v6 = vpop.f32.mrf.mxu3  ;;  %v932_v9 = vpop.f32.mrf.mxu0 }
 0x198   :  { %v952_v7 = vpop.f32.mrf.mxu1  ;;  %v913_v8 = vadd.f32 %v912_v6, %v623_v48  ;;  %v933_v11 = vadd.f32 %v932_v9, %v623_v48 }
 0x199   :  { %1006 = vrot.lane.b32.xlu1 %v853_v15, %s5573_s28  ;;  %1010 = vrot.lane.b32.xlu0 %v893_v4, %s5573_s28  ;;  %v6046_v10 = vadd.f32 %v952_v7, %v623_v48 }
 0x19c   :  { %1008 = vrot.lane.b32.xlu2 %v873_v5, %s5573_s28 }
 0x19e   :  { %v972_v12 = vpop.f32.mrf.mxu2 }
 0x19f   :  { %v973_v13 = vadd.f32 %v972_v12, %v623_v48 }
 0x1a1   :  { %1012 = vrot.lane.b32.xlu1 %v913_v8, %s5573_s28  ;;  %1016 = vrot.lane.b32.xlu0 %v6046_v10, %s5573_s28 }
 0x1a4   :  { %1014 = vrot.lane.b32.xlu2 %v933_v11, %s5573_s28 }
 0x1a9   :  { %1018 = vrot.lane.b32.xlu1 %v973_v13, %s5573_s28  ;;  %s5589_s28 = smov 120  }
 0x1de   :  { %v995_v14 = vpop.permute.xlu2 %994 }
 0x1e6   :  { %v1001_v19 = vpop.permute.xlu2 %1000 }
 0x1ee   :  { %v1005_v29 = vpop.permute.xlu2 %1004 }
 0x1ef   :  { %v993_v16 = vpop.permute.xlu0 %992 }
 0x1f0   :  { %v1021_v33 = vsel %vm59_vm3, %v993_v16, %v995_v14 }
 0x1f1   :  { %v1050_v36 = vmax.f32 %v6032_v50, %v1021_v33 }
 0x1f6   :  { %v1009_v38 = vpop.permute.xlu2 %1008 }
 0x1f7   :  { %v991_v17 = vpop.permute.xlu0 %990 }
 0x1f8   :  { %v1020_v18 = vsel %vm59_vm3, %v991_v17, %v993_v16 }
 0x1f9   :  { %v6054_v20 = vmax.f32 %v693_v54, %v1020_v18 }
 0x1fb   :  { %v999_v21 = vpop.permute.xlu1 %998  ;;  %1079 = vrot.lane.b32.xlu1 %v6054_v20, %s5584_s13 }
 0x1fc   :  { %v1024_v22 = vsel %vm59_vm3, %v999_v21, %v1001_v19 }
 0x1fd   :  { %v6061_v26 = vmax.f32 %v773_v57, %v1024_v22 }
 0x1fe   :  { %v1015_v50 = vpop.permute.xlu2 %1014 }
 0x1ff   :  { %v997_v23 = vpop.permute.xlu0 %996 }
 0x200   :  { %v1022_v24 = vsel %vm59_vm3, %v995_v14, %v997_v23  ;;  %v1023_v25 = vsel %vm59_vm3, %v997_v23, %v999_v21 }
 0x201   :  { %v6063_v27 = vmax.f32 %v753_v60, %v1023_v25  ;;  %v6065_v28 = vmax.f32 %v733_v53, %v1022_v24 }
 0x203   :  { %v1003_v30 = vpop.permute.xlu1 %1002  ;;  %1087 = vrot.lane.b32.xlu1 %v6061_v26, %s5584_s13  ;;  %1085 = vrot.lane.b32.xlu0 %v6063_v27, %s5584_s13 }
 0x204   :  { %1083 = vrot.lane.b32.xlu2 %v6065_v28, %s5584_s13  ;;  %v1025_v31 = vsel %vm59_vm3, %v1001_v19, %v1003_v30  ;;  %v1026_v32 = vsel %vm59_vm3, %v1003_v30, %v1005_v29 }
 0x205   :  { %v6076_v34 = vmax.f32 %v813_v62, %v1026_v32  ;;  %v6078_v35 = vmax.f32 %v793_v59, %v1025_v31 }
 0x20b   :  { %v1007_v37 = vpop.permute.xlu1 %1006  ;;  %1091 = vrot.lane.b32.xlu1 %v6076_v34, %s5584_s13  ;;  %1089 = vrot.lane.b32.xlu0 %v6078_v35, %s5584_s13  ;;  %v1011_v41 = vpop.permute.xlu0 %1010 }
 0x20c   :  { %1081 = vrot.lane.b32.xlu2 %v1050_v36, %s5584_s13  ;;  %v1028_v39 = vsel %vm59_vm3, %v1007_v37, %v1009_v38  ;;  %v1027_v40 = vsel %vm59_vm3, %v1005_v29, %v1007_v37  ;;  %v1029_v46 = vsel %vm59_vm3, %v1009_v38, %v1011_v41 }
 0x20d   :  { %v6088_v42 = vmax.f32 %v853_v15, %v1028_v39  ;;  %v6090_v43 = vmax.f32 %v833_v0, %v1027_v40  ;;  %v6100_v48 = vmax.f32 %v873_v5, %v1029_v46 }
 0x213   :  { %v1013_v44 = vpop.permute.xlu1 %1012  ;;  %1095 = vrot.lane.b32.xlu0 %v6088_v42, %s5584_s13  ;;  %v1017_v49 = vpop.permute.xlu0 %1016 }
 0x214   :  { %1093 = vrot.lane.b32.xlu2 %v6090_v43, %s5584_s13  ;;  %v1030_v45 = vsel %vm59_vm3, %v1011_v41, %v1013_v44  ;;  %v1032_v51 = vsel %vm59_vm3, %v1015_v50, %v1017_v49  ;;  %v1031_v52 = vsel %vm59_vm3, %v1013_v44, %v1015_v50 }
 0x215   :  { %v6098_v47 = vmax.f32 %v893_v4, %v1030_v45  ;;  %v6108_v53 = vmax.f32 %v933_v11, %v1032_v51  ;;  %v6110_v54 = vmax.f32 %v913_v8, %v1031_v52 }
 0x21b   :  { %1099 = vrot.lane.b32.xlu0 %v6098_v47, %s5584_s13  ;;  %v1019_v55 = vpop.permute.xlu1 %1018 }
 0x21c   :  { %1097 = vrot.lane.b32.xlu2 %v6100_v48, %s5584_s13  ;;  %v1033_v56 = vsel %vm59_vm3, %v1017_v49, %v1019_v55  ;;  %v6117_v57 = vmax.f32 %v973_v13, %v1019_v55  ;;  %vm1180_vm3 = vcmask 676864  }
 0x21d   :  { %v6120_v58 = vmax.f32 %v6046_v10, %v1033_v56 }
 0x223   :  { %1103 = vrot.lane.b32.xlu0 %v6108_v53, %s5584_s13 }
 0x224   :  { %1101 = vrot.lane.b32.xlu2 %v6110_v54, %s5584_s13 }
 0x22b   :  { %1107 = vrot.lane.b32.xlu0 %v6117_v57, %s5584_s13 }
 0x22c   :  { %1105 = vrot.lane.b32.xlu2 %v6120_v58, %s5584_s13 }
 0x25e   :  { %v1084_v59 = vpop.permute.xlu2 %1083 }
 0x266   :  { %v1082_v60 = vpop.permute.xlu2 %1081 }
 0x267   :  { %v1110_v61 = vsel %vm147_vm7, %v1082_v60, %v1084_v59 }
 0x268   :  { %v1139_v62 = vmax.f32 %v1050_v36, %v1110_v61 }
 0x26a   :  { %v1154_v63 = vmax.f32 %v1139_v62, 0.0 }
 0x26c   :  { %1169 = vst [vmem:[#allocation3 + $0x8] sm:$0x3f] %v1154_v63  ;;  %2293 = vrot.lane.b32.xlu1 %v1154_v63, %s5580_s20  ;;  %2006 = vrot.lane.b32.xlu2 %v1154_v63, %s5569_s18  ;;  %v6129_v0 = vrot.slane %v1154_v63, 4  ;;  %v6143_v4 = vrot.slane %v1154_v63, 2  ;;  %v6163_v16 = vrot.slane %v1154_v63, 6 }
 0x26d   :  { %v1080_v1 = vpop.permute.xlu1 %1079 }
 0x26e   :  { %v1109_v2 = vsel %vm147_vm7, %v1080_v1, %v1082_v60  ;;  %2442 = vrot.lane.b32.xlu0 %v6129_v0, %s5588_s1  ;;  %1916 = vst [vmem:[#allocation3 + $0x2d8] sm:$0xf0] %v6129_v0  ;;  %v1094_v9 = vpop.permute.xlu2 %1093 }
 0x26f   :  { %v1138_v3 = vmax.f32 %v6054_v20, %v1109_v2  ;;  %1929 = vst [vmem:[#allocation3 + $0x340] sm:$0x3] %v6129_v0 }
 0x271   :  { %v6137_v15 = vmax.f32 %v1138_v3, 0.0 }
 0x273   :  { %1168 = vst [vmem:[#allocation3] sm:$0x3f] %v6137_v15  ;;  %v6241_v50 = vrot.slane %v6137_v15, 2 }
 0x274   :  { %1754 = vrot.lane.b32.xlu1 %v6137_v15, %s5588_s1  ;;  %1756 = vrot.lane.b32.xlu2 %v1154_v63, %s5588_s1 }
 0x275   :  { %v1088_v5 = vpop.permute.xlu1 %1087  ;;  %v1086_v6 = vpop.permute.xlu0 %1085 }
 0x276   :  { %2361 = vrot.lane.b32.xlu0 %v6143_v4, %s5582_s22  ;;  %v1111_v7 = vsel %vm147_vm7, %v1084_v59, %v1086_v6  ;;  %v1112_v8 = vsel %vm147_vm7, %v1086_v6, %v1088_v5 }
 0x277   :  { %v1140_v10 = vmax.f32 %v6065_v28, %v1111_v7  ;;  %v1141_v11 = vmax.f32 %v6063_v27, %v1112_v8  ;;  %v1098_v27 = vpop.permute.xlu2 %1097 }
 0x279   :  { %v6151_v12 = vmax.f32 %v1140_v10, 0.0  ;;  %v6153_v13 = vmax.f32 %v1141_v11, 0.0 }
 0x27b   :  { %1170 = vst [vmem:[#allocation3 + $0x10] sm:$0x3f] %v6151_v12  ;;  %v6157_v14 = vrot.slane %v6151_v12, 4  ;;  %v6167_v19 = vrot.slane %v6153_v13, 4  ;;  %v1381_v10 = vrot.slane %v6151_v12, 6 }
 0x27c   :  { %1171 = vst [vmem:[#allocation3 + $0x18] sm:$0x3f] %v6153_v13  ;;  %1458 = vrot.lane.b32.xlu1 %v6137_v15, %s5589_s28  ;;  %1460 = vrot.lane.b32.xlu2 %v1154_v63, %s5589_s28  ;;  %v1379_v63 = vrot.slane %v6137_v15, 6 }
 0x27d   :  { %2589 = vst [vmem:[#allocation3 + $0x618] sm:$0x3f] %v6151_v12  ;;  %v1092_v17 = vpop.permute.xlu1 %1091  ;;  %v1090_v18 = vpop.permute.xlu0 %1089 }
 0x27e   :  { %2590 = vst [vmem:[#allocation3 + $0x620] sm:$0x3f] %v6153_v13  ;;  %v1115_v20 = vsel %vm147_vm7, %v1092_v17, %v1094_v9  ;;  %2226 = vrot.lane.b32.xlu0 %v6163_v16, %s5578_s17  ;;  %v1113_v21 = vsel %vm147_vm7, %v1088_v5, %v1090_v18  ;;  %v1114_v22 = vsel %vm147_vm7, %v1090_v18, %v1092_v17 }
 0x27f   :  { %v1144_v23 = vmax.f32 %v6076_v34, %v1115_v20  ;;  %v1142_v24 = vmax.f32 %v6061_v26, %v1113_v21  ;;  %v1143_v25 = vmax.f32 %v6078_v35, %v1114_v22  ;;  %1917 = vst [vmem:[#allocation3 + $0x2e0] sm:$0xf0] %v6157_v14  ;;  %v1102_v38 = vpop.permute.xlu2 %1101 }
 0x280   :  { %1930 = vst [vmem:[#allocation3 + $0x348] sm:$0x3] %v6157_v14 }
 0x281   :  { %v6180_v28 = vmax.f32 %v1144_v23, 0.0  ;;  %v6182_v29 = vmax.f32 %v1142_v24, 0.0  ;;  %1918 = vst [vmem:[#allocation3 + $0x2e8] sm:$0xf0] %v6167_v19  ;;  %v6185_v30 = vmax.f32 %v1143_v25, 0.0 }
 0x282   :  { %1931 = vst [vmem:[#allocation3 + $0x350] sm:$0x3] %v6167_v19 }
 0x283   :  { %1174 = vst [vmem:[#allocation3 + $0x30] sm:$0x3f] %v6180_v28  ;;  %v6196_v31 = vrot.slane %v6182_v29, 4  ;;  %v6215_v39 = vrot.slane %v6185_v30, 4  ;;  %v6224_v41 = vrot.slane %v6180_v28, 4 }
 0x284   :  { %2593 = vst [vmem:[#allocation3 + $0x638] sm:$0x3f] %v6180_v28  ;;  %2147 = vrot.lane.b32.xlu1 %v6129_v0, %s5589_s28  ;;  %2522 = vrot.lane.b32.xlu2 %v6163_v16, %s5590_s26 }
 0x285   :  { %1172 = vst [vmem:[#allocation3 + $0x20] sm:$0x3f] %v6182_v29  ;;  %v1096_v26 = vpop.permute.xlu0 %1095 }
 0x286   :  { %1173 = vst [vmem:[#allocation3 + $0x28] sm:$0x3f] %v6185_v30  ;;  %2070 = vrot.lane.b32.xlu0 %v6143_v4, %s5591_s27  ;;  %v1116_v32 = vsel %vm147_vm7, %v1094_v9, %v1096_v26  ;;  %v1117_v33 = vsel %vm147_vm7, %v1096_v26, %v1098_v27 }
 0x287   :  { %2591 = vst [vmem:[#allocation3 + $0x628] sm:$0x3f] %v6182_v29  ;;  %v1145_v34 = vmax.f32 %v6090_v43, %v1116_v32  ;;  %v1146_v35 = vmax.f32 %v6088_v42, %v1117_v33 }
 0x288   :  { %2592 = vst [vmem:[#allocation3 + $0x630] sm:$0x3f] %v6185_v30 }
 0x289   :  { %v6207_v36 = vmax.f32 %v1145_v34, 0.0  ;;  %v6209_v37 = vmax.f32 %v1146_v35, 0.0  ;;  %1919 = vst [vmem:[#allocation3 + $0x2f0] sm:$0xf0] %v6196_v31 }
 0x28a   :  { %1932 = vst [vmem:[#allocation3 + $0x358] sm:$0x3] %v6196_v31 }
 0x28b   :  { %1175 = vst [vmem:[#allocation3 + $0x38] sm:$0x3f] %v6207_v36  ;;  %v6255_v52 = vrot.slane %v6209_v37, 4 }
 0x28c   :  { %1176 = vst [vmem:[#allocation3 + $0x40] sm:$0x3f] %v6209_v37  ;;  %1464 = vrot.lane.b32.xlu1 %v6153_v13, %s5589_s28  ;;  %2295 = vrot.lane.b32.xlu2 %v6151_v12, %s5580_s20 }
 0x28d   :  { %2594 = vst [vmem:[#allocation3 + $0x640] sm:$0x3f] %v6207_v36  ;;  %v1100_v40 = vpop.permute.xlu0 %1099 }
 0x28e   :  { %2595 = vst [vmem:[#allocation3 + $0x648] sm:$0x3f] %v6209_v37  ;;  %2008 = vrot.lane.b32.xlu0 %v6151_v12, %s5569_s18  ;;  %v1118_v42 = vsel %vm147_vm7, %v1098_v27, %v1100_v40  ;;  %v1119_v43 = vsel %vm147_vm7, %v1100_v40, %v1102_v38 }
 0x28f   :  { %v1147_v44 = vmax.f32 %v6100_v48, %v1118_v42  ;;  %v1148_v45 = vmax.f32 %v6098_v47, %v1119_v43  ;;  %1920 = vst [vmem:[#allocation3 + $0x2f8] sm:$0xf0] %v6215_v39  ;;  %v6246_v48 = vrot.slane %v6207_v36, 4  ;;  %v1106_v47 = vpop.permute.xlu2 %1105 }
 0x290   :  { %1933 = vst [vmem:[#allocation3 + $0x360] sm:$0x3] %v6215_v39 }
 0x291   :  { %v6235_v46 = vmax.f32 %v1147_v44, 0.0  ;;  %v6237_v49 = vmax.f32 %v1148_v45, 0.0  ;;  %1921 = vst [vmem:[#allocation3 + $0x300] sm:$0xf0] %v6224_v41 }
 0x292   :  { %1934 = vst [vmem:[#allocation3 + $0x368] sm:$0x3] %v6224_v41 }
 0x293   :  { %1177 = vst [vmem:[#allocation3 + $0x48] sm:$0x3f] %v6235_v46  ;;  %v6274_v1 = vrot.slane %v6235_v46, 4 }
 0x294   :  { %1178 = vst [vmem:[#allocation3 + $0x50] sm:$0x3f] %v6237_v49  ;;  %1822 = vrot.lane.b32.xlu1 %v6241_v50, %s5590_s26  ;;  %2297 = vrot.lane.b32.xlu2 %v6153_v13, %s5580_s20 }
 0x295   :  { %2596 = vst [vmem:[#allocation3 + $0x650] sm:$0x3f] %v6235_v46  ;;  %v1104_v51 = vpop.permute.xlu0 %1103 }
 0x296   :  { %2597 = vst [vmem:[#allocation3 + $0x658] sm:$0x3f] %v6237_v49  ;;  %1942 = vrot.lane.b32.xlu0 %v6163_v16, %s5574_s11  ;;  %v1120_v55 = vsel %vm147_vm7, %v1102_v38, %v1104_v51  ;;  %v1121_v56 = vsel %vm147_vm7, %v1104_v51, %v1106_v47 }
 0x297   :  { %v1149_v59 = vmax.f32 %v6110_v54, %v1120_v55  ;;  %v1150_v60 = vmax.f32 %v6108_v53, %v1121_v56  ;;  %1922 = vst [vmem:[#allocation3 + $0x308] sm:$0xf0] %v6246_v48  ;;  %v6282_v53 = vrot.slane %v6237_v49, 4 }
 0x298   :  { %1935 = vst [vmem:[#allocation3 + $0x370] sm:$0x3] %v6246_v48 }
 0x299   :  { %v6266_v61 = vmax.f32 %v1149_v59, 0.0  ;;  %v6268_v62 = vmax.f32 %v1150_v60, 0.0  ;;  %1923 = vst [vmem:[#allocation3 + $0x310] sm:$0xf0] %v6255_v52 }
 0x29a   :  { %1936 = vst [vmem:[#allocation3 + $0x378] sm:$0x3] %v6255_v52 }
 0x29b   :  { %1179 = vst [vmem:[#allocation3 + $0x58] sm:$0x3f] %v6266_v61  ;;  %v6290_v3 = vrot.slane %v6266_v61, 4  ;;  %v6299_v7 = vrot.slane %v6268_v62, 4 }
 0x29c   :  { %2598 = vst [vmem:[#allocation3 + $0x660] sm:$0x3f] %v6266_v61  ;;  %1687 = vrot.lane.b32.xlu1 %v1379_v63, %s5582_s22  ;;  %1462 = vrot.lane.b32.xlu2 %v6151_v12, %s5589_s28 }
 0x29d   :  { %2599 = vst [vmem:[#allocation3 + $0x668] sm:$0x3f] %v6268_v62  ;;  %v1108_v54 = vpop.permute.xlu0 %1107 }
 0x29e   :  { %2010 = vrot.lane.b32.xlu0 %v6153_v13, %s5569_s18  ;;  %v1122_v2 = vsel %vm147_vm7, %v1106_v47, %v1108_v54  ;;  %1924 = vst [vmem:[#allocation3 + $0x318] sm:$0xf0] %v6274_v1  ;;  %v1152_v8 = vmax.f32 %v6117_v57, %v1108_v54  ;;  %vm1850_vm7 = vcmask 457728  }
 0x29f   :  { %v1151_v5 = vmax.f32 %v6120_v58, %v1122_v2  ;;  %1937 = vst [vmem:[#allocation3 + $0x380] sm:$0x3] %v6274_v1  ;;  %v1287_v58 = vrot.slane %v6137_v15, 4  ;;  %v6343_v15 = vrot.slane %v6151_v12, 2 }
 0x2a0   :  { %1925 = vst [vmem:[#allocation3 + $0x320] sm:$0xf0] %v6282_v53  ;;  %v6313_v57 = vmax.f32 %v1152_v8, 0.0 }
 0x2a1   :  { %v6295_v6 = vmax.f32 %v1151_v5, 0.0  ;;  %1938 = vst [vmem:[#allocation3 + $0x388] sm:$0x3] %v6282_v53 }
 0x2a2   :  { %1926 = vst [vmem:[#allocation3 + $0x328] sm:$0xf0] %v6290_v3 }
 0x2a3   :  { %2600 = vst [vmem:[#allocation3 + $0x670] sm:$0x3f] %v6295_v6  ;;  %v6305_v9 = vrot.slane %v6295_v6, 4 }
 0x2a4   :  { %1527 = vrot.lane.b32.xlu1 %v6143_v4, %s5578_s17  ;;  %1824 = vrot.lane.b32.xlu2 %v6143_v4, %s5590_s26  ;;  %1939 = vst [vmem:[#allocation3 + $0x390] sm:$0x3] %v6290_v3 }
 0x2a5   :  { %1927 = vst [vmem:[#allocation3 + $0x330] sm:$0xf0] %v6299_v7 }
 0x2a6   :  { %1608 = vrot.lane.b32.xlu0 %v6129_v0, %s5580_s20  ;;  %1940 = vst [vmem:[#allocation3 + $0x398] sm:$0x3] %v6299_v7 }
 0x2a7   :  { %1928 = vst.msk [vmem:[#allocation3 + $0x338] sm:$0xf0] %vm1363_vm0, %v6305_v9 }
 0x2a8   :  { %1941 = vst.msk [vmem:[#allocation3 + $0x3a0] sm:$0x3] %vm1377_vm2, %v6305_v9 }
 0x2a9   :  { %1181 = vst.msk [vmem:[#allocation3 + $0x60] sm:$0x3f] %vm1180_vm3, %v6268_v62 }
 0x2aa   :  { %2601 = vst.msk [vmem:[#allocation3 + $0x678] sm:$0x3f] %vm1180_vm3, %v6313_v57 }
 0x2ac   :  { %1300 = vrot.lane.b32.xlu1 %v1287_v58, %s5569_s18  ;;  %1606 = vrot.lane.b32.xlu2 %v1287_v58, %s5580_s20 }
 0x2ae   :  { %1525 = vrot.lane.b32.xlu0 %v6241_v50, %s5578_s17 }
 0x2b4   :  { %1394 = vrot.lane.b32.xlu1 %v6163_v16, %s5591_s27  ;;  %1689 = vrot.lane.b32.xlu2 %v6163_v16, %s5582_s22 }
 0x2b6   :  { %1760 = vrot.lane.b32.xlu0 %v6153_v13, %s5588_s1 }
 0x2bc   :  { %1208 = vrot.lane.b32.xlu1 %v6241_v50, %s5574_s11  ;;  %1758 = vrot.lane.b32.xlu2 %v6151_v12, %s5588_s1  ;;  %v1382_v12 = vrot.slane %v6153_v13, 6 }
 0x2be   :  { %1392 = vrot.lane.b32.xlu0 %v1379_v63, %s5591_s27 }
 0x2c4   :  { %1302 = vrot.lane.b32.xlu2 %v6129_v0, %s5569_s18  ;;  %1212 = vrot.lane.b32.xlu1 %v6343_v15, %s5574_s11  ;;  %v6360_v0 = vrot.slane %v6153_v13, 2 }
 0x2c6   :  { %v2007_v11 = vpop.permute.xlu2 %2006  ;;  %2524 = vrot.lane.b32.xlu0 %v1381_v10, %s5590_s26 }
 0x2cc   :  { %1210 = vrot.lane.b32.xlu2 %v6143_v4, %s5574_s11  ;;  %2444 = vrot.lane.b32.xlu1 %v6157_v14, %s5588_s1 }
 0x2ce   :  { %v6355_v16 = vpop.permute.xlu2 %1756  ;;  %2446 = vrot.lane.b32.xlu0 %v6167_v19, %s5588_s1 }
 0x2d4   :  { %1214 = vrot.lane.b32.xlu2 %v6360_v0, %s5574_s11  ;;  %2363 = vrot.lane.b32.xlu1 %v6343_v15, %s5582_s22 }
 0x2d6   :  { %v1461_v4 = vpop.permute.xlu2 %1460  ;;  %1398 = vrot.lane.b32.xlu0 %v1382_v12, %s5591_s27 }
 0x2dc   :  { %2526 = vrot.lane.b32.xlu2 %v1382_v12, %s5590_s26  ;;  %2228 = vrot.lane.b32.xlu1 %v1381_v10, %s5578_s17 }
 0x2de   :  { %v2294_v17 = vpop.permute.xlu1 %2293  ;;  %v6370_v18 = vpop.permute.xlu2 %2522  ;;  %2230 = vrot.lane.b32.xlu0 %v1382_v12, %s5578_s17 }
 0x2e0   :  { %v6373_v20 = vpop.permute.xlu0 %2442 }
 0x2e4   :  { %2149 = vrot.lane.b32.xlu2 %v6157_v14, %s5589_s28  ;;  %2072 = vrot.lane.b32.xlu1 %v6343_v15, %s5591_s27 }
 0x2e6   :  { %v1755_v13 = vpop.permute.xlu1 %1754  ;;  %v2296_v21 = vpop.permute.xlu2 %2295  ;;  %1396 = vrot.lane.b32.xlu0 %v1381_v10, %s5591_s27 }
 0x2e7   :  { %v1783_v22 = vsel %vm1782_vm4, %v1755_v13, %v6355_v16  ;;  %v2321_v23 = vsel %vm301_vm1, %v2294_v17, %v2296_v21  ;;  %v6477_v17 = vrot.slane %v6182_v29, 2 }
 0x2e8   :  { %1809 = vst [vmem:[#allocation3 + $0x270] sm:$0x3f] %v1783_v22  ;;  %v6383_v24 = vpop.permute.xlu0 %2361 }
 0x2e9   :  { %2347 = vst [vmem:[#allocation3 + $0x4e0] sm:$0x3f] %v2321_v23 }
 0x2ec   :  { %2365 = vrot.lane.b32.xlu2 %v6360_v0, %s5582_s22  ;;  %1306 = vrot.lane.b32.xlu1 %v6167_v19, %s5569_s18 }
 0x2ee   :  { %v1459_v25 = vpop.permute.xlu1 %1458  ;;  %v6389_v27 = vpop.permute.xlu2 %2297  ;;  %1946 = vrot.lane.b32.xlu0 %v1382_v12, %s5574_s11 }
 0x2ef   :  { %v1485_v26 = vsel %vm1484_vm6, %v1459_v25, %v1461_v4  ;;  %v2322_v32 = vsel %vm301_vm1, %v2296_v21, %v6389_v27 }
 0x2f0   :  { %1510 = vst [vmem:[#allocation3 + $0x138] sm:$0x3f] %v1485_v26  ;;  %v6395_v33 = vpop.permute.xlu0 %2226 }
 0x2f1   :  { %2348 = vst [vmem:[#allocation3 + $0x4e8] sm:$0x3f] %v2322_v32 }
 0x2f4   :  { %2074 = vrot.lane.b32.xlu2 %v6360_v0, %s5591_s27  ;;  %2151 = vrot.lane.b32.xlu1 %v6167_v19, %s5589_s28 }
 0x2f6   :  { %v6401_v34 = vpop.permute.xlu1 %2147  ;;  %v1463_v35 = vpop.permute.xlu2 %1462  ;;  %1826 = vrot.lane.b32.xlu0 %v6343_v15, %s5590_s26 }
 0x2f7   :  { %v1486_v38 = vsel %vm1484_vm6, %v1461_v4, %v1463_v35 }
 0x2f8   :  { %1511 = vst [vmem:[#allocation3 + $0x140] sm:$0x3f] %v1486_v38  ;;  %v6406_v40 = vpop.permute.xlu0 %2070  ;;  %v6499_v38 = vrot.slane %v6185_v30, 2 }
 0x2fc   :  { %1304 = vrot.lane.b32.xlu2 %v6157_v14, %s5569_s18  ;;  %1944 = vrot.lane.b32.xlu1 %v1381_v10, %s5574_s11 }
 0x2fe   :  { %v6411_v42 = vpop.permute.xlu1 %1464  ;;  %v6413_v43 = vpop.permute.xlu2 %1824  ;;  %1610 = vrot.lane.b32.xlu0 %v6157_v14, %s5580_s20 }
 0x2ff   :  { %v1487_v44 = vsel %vm1484_vm6, %v1463_v35, %v6411_v42 }
 0x300   :  { %1512 = vst [vmem:[#allocation3 + $0x148] sm:$0x3f] %v1487_v44  ;;  %v2009_v45 = vpop.permute.xlu0 %2008 }
 0x301   :  { %2703 = vst [vmem:[#allocation3 + $0x750] sm:$0x3f] %v1487_v44  ;;  %v2032_v50 = vsel %vm125_vm5, %v2007_v11, %v2009_v45  ;;  %v6506_v44 = vrot.slane %v6185_v30, 6 }
 0x302   :  { %2057 = vst [vmem:[#allocation3 + $0x3a8] sm:$0x3f] %v2032_v50 }
 0x304   :  { %1691 = vrot.lane.b32.xlu2 %v1381_v10, %s5582_s22  ;;  %1828 = vrot.lane.b32.xlu1 %v6360_v0, %s5590_s26  ;;  %v6462_v10 = vrot.slane %v6182_v29, 6 }
 0x306   :  { %v1823_v47 = vpop.permute.xlu1 %1822  ;;  %v1607_v51 = vpop.permute.xlu2 %1606  ;;  %1693 = vrot.lane.b32.xlu0 %v1382_v12, %s5582_s22 }
 0x307   :  { %v1851_v14 = vsel %vm1850_vm7, %v1823_v47, %v6413_v43 }
 0x308   :  { %1877 = vst [vmem:[#allocation3 + $0x270] sm:$0xc0] %v1851_v14  ;;  %v2954_v55 = vld [vmem:[#allocation3 + $0x750] sm:$0x3f]  ;;  %v6426_v56 = vpop.permute.xlu0 %1942 }
 0x309   :  { %1890 = vst [vmem:[#allocation3 + $0x2d8] sm:$0xf] %v1851_v14  ;;  %5318 = vmatpush.msk.msra.mxu0 %vm2986_vm9, %v2954_v55 }
 0x30c   :  { %1612 = vrot.lane.b32.xlu1 %v6167_v19, %s5580_s20  ;;  %1466 = vrot.lane.b32.xlu2 %v6182_v29, %s5589_s28 }
 0x30e   :  { %v1688_v59 = vpop.permute.xlu1 %1687  ;;  %v6433_v60 = vpop.permute.xlu2 %1689  ;;  %1529 = vrot.lane.b32.xlu0 %v6343_v15, %s5578_s17 }
 0x30f   :  { %v1715_v63 = vsel %vm345_vm14, %v1688_v59, %v6433_v60 }
 0x310   :  { %1741 = vst [vmem:[#allocation3 + $0x208] sm:$0xfc] %v1715_v63  ;;  %v6439_v54 = vpop.permute.xlu0 %2010 }
 0x311   :  { %v2033_v2 = vsel %vm125_vm5, %v2009_v45, %v6439_v54 }
 0x312   :  { %2058 = vst [vmem:[#allocation3 + $0x3b0] sm:$0x3f] %v2033_v2 }
 0x314   :  { %1531 = vrot.lane.b32.xlu1 %v6360_v0, %s5578_s17  ;;  %1468 = vrot.lane.b32.xlu2 %v6185_v30, %s5589_s28 }
 0x316   :  { %v6447_v19 = vpop.permute.xlu1 %1527  ;;  %v1759_v5 = vpop.permute.xlu2 %1758  ;;  %2299 = vrot.lane.b32.xlu0 %v6182_v29, %s5580_s20 }
 0x317   :  { %v1784_v8 = vsel %vm1782_vm4, %v6355_v16, %v1759_v5 }
 0x318   :  { %1810 = vst [vmem:[#allocation3 + $0x278] sm:$0x3f] %v1784_v8  ;;  %v6453_v58 = vpop.permute.xlu0 %1608 }
 0x319   :  { %v1634_v15 = vsel %vm301_vm1, %v1607_v51, %v6453_v58 }
 0x31a   :  { %1660 = vst [vmem:[#allocation3 + $0x1a0] sm:$0xf0] %v1634_v15 }
 0x31b   :  { %1673 = vst [vmem:[#allocation3 + $0x208] sm:$0x3] %v1634_v15 }
 0x31c   :  { %2012 = vrot.lane.b32.xlu1 %v6182_v29, %s5569_s18  ;;  %2014 = vrot.lane.b32.xlu2 %v6185_v30, %s5569_s18 }
 0x31e   :  { %v1301_v11 = vpop.permute.xlu1 %1300  ;;  %v6464_v0 = vpop.permute.xlu2 %1302  ;;  %2528 = vrot.lane.b32.xlu0 %v6462_v10, %s5590_s26 }
 0x31f   :  { %v1326_v16 = vsel %vm125_vm5, %v1301_v11, %v6464_v0 }
 0x320   :  { %1351 = vst [vmem:[#allocation3 + $0x68] sm:$0xf0] %v1326_v16  ;;  %v1526_v12 = vpop.permute.xlu0 %1525 }
 0x321   :  { %1365 = vst [vmem:[#allocation3 + $0xd0] sm:$0x3] %v1326_v16  ;;  %v1553_v4 = vsel %vm257_vm15, %v1526_v12, %v6447_v19 }
 0x322   :  { %1579 = vst [vmem:[#allocation3 + $0x138] sm:$0xc0] %v1553_v4 }
 0x323   :  { %1592 = vst [vmem:[#allocation3 + $0x1a0] sm:$0xf] %v1553_v4 }
 0x324   :  { %2301 = vrot.lane.b32.xlu1 %v6185_v30, %s5580_s20  ;;  %1762 = vrot.lane.b32.xlu2 %v6182_v29, %s5588_s1 }
 0x326   :  { %v6479_v13 = vpop.permute.xlu1 %1394  ;;  %v1211_v21 = vpop.permute.xlu2 %1210  ;;  %2367 = vrot.lane.b32.xlu0 %v6477_v17, %s5582_s22 }
 0x328   :  { %v6483_v22 = vpop.permute.xlu0 %1760 }
 0x329   :  { %v1785_v23 = vsel %vm1782_vm4, %v1759_v5, %v6483_v22 }
 0x32a   :  { %1811 = vst [vmem:[#allocation3 + $0x280] sm:$0x3f] %v1785_v23 }
 0x32c   :  { %1764 = vrot.lane.b32.xlu2 %v6185_v30, %s5588_s1  ;;  %1216 = vrot.lane.b32.xlu1 %v6477_v17, %s5574_s11 }
 0x32e   :  { %v1209_v29 = vpop.permute.xlu1 %1208  ;;  %v6491_v25 = vpop.permute.xlu2 %1214  ;;  %2076 = vrot.lane.b32.xlu0 %v6477_v17, %s5591_s27 }
 0x32f   :  { %v1234_v26 = vsel %vm81_vm10, %v1209_v29, %v1211_v21 }
 0x330   :  { %1259 = vst [vmem:[#allocation3] sm:$0xc0] %v1234_v26  ;;  %v1393_v32 = vpop.permute.xlu0 %1392 }
 0x331   :  { %1273 = vst [vmem:[#allocation3 + $0x68] sm:$0xf] %v1234_v26  ;;  %v1419_v35 = vsel %vm1418_vm13, %v1393_v32, %v6479_v13 }
 0x332   :  { %1444 = vst [vmem:[#allocation3 + $0xd0] sm:$0xfc] %v1419_v35 }
 0x334   :  { %1218 = vrot.lane.b32.xlu2 %v6499_v38, %s5574_s11  ;;  %2448 = vrot.lane.b32.xlu1 %v6196_v31, %s5588_s1 }
 0x336   :  { %v6508_v45 = vpop.permute.xlu2 %2526  ;;  %v1213_v50 = vpop.permute.xlu1 %1212  ;;  %2530 = vrot.lane.b32.xlu0 %v6506_v44, %s5590_s26 }
 0x337   :  { %v1235_v47 = vsel %vm81_vm10, %v1211_v21, %v1213_v50  ;;  %v1236_v51 = vsel %vm81_vm10, %v1213_v50, %v6491_v25 }
 0x338   :  { %1260 = vst [vmem:[#allocation3 + $0x8] sm:$0xc0] %v1235_v47  ;;  %v2525_v14 = vpop.permute.xlu0 %2524 }
 0x339   :  { %1261 = vst [vmem:[#allocation3 + $0x10] sm:$0xc0] %v1236_v51  ;;  %v2550_v30 = vsel %vm1850_vm7, %v6370_v18, %v2525_v14  ;;  %v2551_v55 = vsel %vm1850_vm7, %v2525_v14, %v6508_v45 }
 0x33a   :  { %1274 = vst [vmem:[#allocation3 + $0x70] sm:$0xf] %v1235_v47 }
 0x33b   :  { %1275 = vst [vmem:[#allocation3 + $0x78] sm:$0xf] %v1236_v51 }
 0x33c   :  { %2611 = vst [vmem:[#allocation3 + $0x618] sm:$0xc0] %v1236_v51  ;;  %1308 = vrot.lane.b32.xlu2 %v6196_v31, %s5569_s18  ;;  %1400 = vrot.lane.b32.xlu1 %v6462_v10, %s5591_s27 }
 0x33d   :  { %2624 = vst [vmem:[#allocation3 + $0x680] sm:$0xf] %v1236_v51 }
 0x33e   :  { %2576 = vst [vmem:[#allocation3 + $0x5b0] sm:$0xfc] %v2550_v30  ;;  %v6523_v59 = vpop.permute.xlu2 %2149  ;;  %v2445_v63 = vpop.permute.xlu1 %2444  ;;  %2303 = vrot.lane.b32.xlu0 %v6180_v28, %s5580_s20 }
 0x33f   :  { %2577 = vst [vmem:[#allocation3 + $0x5b8] sm:$0xfc] %v2551_v55  ;;  %v2173_v18 = vsel %vm1484_vm6, %v6401_v34, %v6523_v59  ;;  %v2470_v2 = vsel %vm1782_vm4, %v6373_v20, %v2445_v63 }
 0x340   :  { %2198 = vst [vmem:[#allocation3 + $0x410] sm:$0xf0] %v2173_v18  ;;  %v6532_v5 = vpop.permute.xlu0 %2446 }
 0x341   :  { %2211 = vst [vmem:[#allocation3 + $0x478] sm:$0x3] %v2173_v18  ;;  %v2471_v8 = vsel %vm1782_vm4, %v2445_v63, %v6532_v5 }
 0x342   :  { %2496 = vst [vmem:[#allocation3 + $0x548] sm:$0xf0] %v2470_v2 }
 0x343   :  { %2509 = vst [vmem:[#allocation3 + $0x5b0] sm:$0x3] %v2470_v2  ;;  %v2915_v15 = vld [vmem:[#allocation3 + $0x618] sm:$0xff] }
 0x344   :  { %3026 = vmatpush.msrb.mxu3 %v2915_v15  ;;  %2497 = vst [vmem:[#allocation3 + $0x550] sm:$0xf0] %v2471_v8  ;;  %2153 = vrot.lane.b32.xlu2 %v6196_v31, %s5589_s28 }
 0x345   :  { %2510 = vst [vmem:[#allocation3 + $0x5b8] sm:$0x3] %v2471_v8  ;;  %2232 = vrot.lane.b32.xlu1 %v6462_v10, %s5578_s17 }
 0x346   :  { %v6540_v20 = vpop.permute.xlu2 %2365  ;;  %v2364_v34 = vpop.permute.xlu1 %2363  ;;  %1310 = vrot.lane.b32.xlu0 %v6215_v39, %s5569_s18 }
 0x347   :  { %v2389_v11 = vsel %vm345_vm14, %v6383_v24, %v2364_v34  ;;  %v2390_v16 = vsel %vm345_vm14, %v2364_v34, %v6540_v20 }
 0x348   :  { %2415 = vst [vmem:[#allocation3 + $0x4e0] sm:$0xc0] %v2389_v11  ;;  %v6548_v12 = vpop.permute.xlu0 %1398 }
 0x349   :  { %2416 = vst [vmem:[#allocation3 + $0x4e8] sm:$0xc0] %v2390_v16 }
 0x34a   :  { %2428 = vst [vmem:[#allocation3 + $0x548] sm:$0xf] %v2389_v11  ;;  %v2902_v4 = vld [vmem:[#allocation3 + $0x5b0] sm:$0xff] }
 0x34b   :  { %2429 = vst [vmem:[#allocation3 + $0x550] sm:$0xf] %v2390_v16  ;;  %3027 = vmatpush.msrb.mxu3 %v2902_v4 }
 0x34c   :  { %2450 = vrot.lane.b32.xlu2 %v6215_v39, %s5588_s1 }
 0x34d   :  { %1948 = vrot.lane.b32.xlu1 %v6462_v10, %s5574_s11 }
 0x34e   :  { %v6554_v21 = vpop.permute.xlu2 %2074  ;;  %v2229_v24 = vpop.permute.xlu1 %2228  ;;  %1830 = vrot.lane.b32.xlu0 %v6477_v17, %s5590_s26 }
 0x34f   :  { %v2254_v23 = vsel %vm257_vm15, %v6395_v33, %v2229_v24  ;;  %v2876_v35 = vld [vmem:[#allocation3 + $0x4e0] sm:$0xff] }
 0x350   :  { %2280 = vst [vmem:[#allocation3 + $0x478] sm:$0xfc] %v2254_v23  ;;  %v6560_v29 = vpop.permute.xlu0 %2230 }
 0x351   :  { %v2889_v26 = vld [vmem:[#allocation3 + $0x548] sm:$0xff]  ;;  %v2255_v32 = vsel %vm257_vm15, %v2229_v24, %v6560_v29 }
 0x352   :  { %3028 = vmatpush.msrb.mxu3 %v2889_v26  ;;  %2281 = vst [vmem:[#allocation3 + $0x480] sm:$0xfc] %v2255_v32  ;;  %v6615_v26 = vrot.slane %v6180_v28, 6 }
 0x354   :  { %3029 = vmatpush.msrb.mxu3 %v2876_v35  ;;  %2369 = vrot.lane.b32.xlu2 %v6499_v38, %s5582_s22 }
 0x355   :  { %2155 = vrot.lane.b32.xlu1 %v6215_v39, %s5589_s28 }
 0x356   :  { %v1305_v50 = vpop.permute.xlu2 %1304  ;;  %v2073_v47 = vpop.permute.xlu1 %2072  ;;  %1695 = vrot.lane.b32.xlu0 %v6462_v10, %s5582_s22 }
 0x357   :  { %v1327_v33 = vsel %vm125_vm5, %v6464_v0, %v1305_v50  ;;  %v2096_v51 = vsel %vm1418_vm13, %v6406_v40, %v2073_v47  ;;  %v2863_v14 = vld [vmem:[#allocation3 + $0x478] sm:$0xff]  ;;  %v2097_v30 = vsel %vm1418_vm13, %v2073_v47, %v6554_v21 }
 0x358   :  { %1352 = vst [vmem:[#allocation3 + $0x70] sm:$0xf0] %v1327_v33  ;;  %3030 = vmatpush.msrb.mxu3 %v2863_v14  ;;  %v1397_v55 = vpop.permute.xlu0 %1396 }
 0x359   :  { %1366 = vst [vmem:[#allocation3 + $0xd8] sm:$0x3] %v1327_v33  ;;  %v1420_v63 = vsel %vm1418_vm13, %v6479_v13, %v1397_v55  ;;  %v1421_v10 = vsel %vm1418_vm13, %v1397_v55, %v6548_v12  ;;  %v2811_v55 = vld [vmem:[#allocation3 + $0x2d8] sm:$0xff] }
 0x35a   :  { %2121 = vst [vmem:[#allocation3 + $0x3a8] sm:$0xc0] %v2096_v51 }
 0x35b   :  { %2122 = vst [vmem:[#allocation3 + $0x3b0] sm:$0xc0] %v2097_v30 }
 0x35c   :  { %2134 = vst [vmem:[#allocation3 + $0x410] sm:$0xf] %v2096_v51  ;;  %2234 = vrot.lane.b32.xlu2 %v6506_v44, %s5578_s17 }
 0x35d   :  { %2135 = vst [vmem:[#allocation3 + $0x418] sm:$0xf] %v2097_v30  ;;  %1402 = vrot.lane.b32.xlu1 %v6506_v44, %s5591_s27 }
 0x35e   :  { %1445 = vst [vmem:[#allocation3 + $0xd8] sm:$0xfc] %v1420_v63  ;;  %v6584_v40 = vpop.permute.xlu2 %1691  ;;  %v6586_v0 = vpop.permute.xlu1 %1306  ;;  %2305 = vrot.lane.b32.xlu0 %v6207_v36, %s5580_s20  ;;  %v2798_v63 = vld [vmem:[#allocation3 + $0x270] sm:$0xff] }
 0x35f   :  { %1446 = vst [vmem:[#allocation3 + $0xe0] sm:$0xfc] %v1421_v10  ;;  %v1716_v13 = vsel %vm345_vm14, %v6433_v60, %v6584_v40  ;;  %v1328_v18 = vsel %vm125_vm5, %v1305_v50, %v6586_v0 }
 0x360   :  { %2681 = vst [vmem:[#allocation3 + $0x6e8] sm:$0xfc] %v1421_v10  ;;  %v6595_v2 = vpop.permute.xlu0 %1946  ;;  %v2785_v10 = vld [vmem:[#allocation3 + $0x208] sm:$0xff] }
 0x361   :  { %1742 = vst [vmem:[#allocation3 + $0x210] sm:$0xfc] %v1716_v13  ;;  %v2837_v15 = vld [vmem:[#allocation3 + $0x3a8] sm:$0xff] }
 0x362   :  { %1353 = vst [vmem:[#allocation3 + $0x78] sm:$0xf0] %v1328_v18 }
 0x363   :  { %1367 = vst [vmem:[#allocation3 + $0xe0] sm:$0x3] %v1328_v18  ;;  %v2850_v8 = vld [vmem:[#allocation3 + $0x410] sm:$0xff] }
 0x364   :  { %2646 = vst [vmem:[#allocation3 + $0x680] sm:$0xf0] %v1328_v18  ;;  %3031 = vmatpush.msrb.mxu3 %v2850_v8  ;;  %2078 = vrot.lane.b32.xlu2 %v6499_v38, %s5591_s27 }
 0x365   :  { %2659 = vst [vmem:[#allocation3 + $0x6e8] sm:$0x3] %v1328_v18  ;;  %2016 = vrot.lane.b32.xlu1 %v6180_v28, %s5569_s18 }
 0x366   :  { %3032 = vmatpush.msrb.mxu3 %v2837_v15  ;;  %v6601_v60 = vpop.permute.xlu1 %2151  ;;  %v1467_v34 = vpop.permute.xlu2 %1466  ;;  %1697 = vrot.lane.b32.xlu0 %v6506_v44, %s5582_s22  ;;  %v2772_v15 = vld [vmem:[#allocation3 + $0x1a0] sm:$0xff] }
 0x367   :  { %v2174_v11 = vsel %vm1484_vm6, %v6523_v59, %v6601_v60  ;;  %v1488_v16 = vsel %vm1484_vm6, %v6411_v42, %v1467_v34 }
 0x368   :  { %2199 = vst [vmem:[#allocation3 + $0x418] sm:$0xf0] %v2174_v11  ;;  %v1827_v4 = vpop.permute.xlu0 %1826 }
 0x369   :  { %2212 = vst [vmem:[#allocation3 + $0x480] sm:$0x3] %v2174_v11  ;;  %v1852_v24 = vsel %vm1850_vm7, %v6413_v43, %v1827_v4  ;;  %v2759_v11 = vld [vmem:[#allocation3 + $0x138] sm:$0xff] }
 0x36a   :  { %1513 = vst [vmem:[#allocation3 + $0x150] sm:$0x3f] %v1488_v16 }
 0x36b   :  { %2704 = vst [vmem:[#allocation3 + $0x758] sm:$0x3f] %v1488_v16  ;;  %v2928_v42 = vld [vmem:[#allocation3 + $0x680] sm:$0xff]  ;;  %v6667_v16 = vrot.slane %v6207_v36, 2 }
 0x36c   :  { %v2941_v23 = vld [vmem:[#allocation3 + $0x6e8] sm:$0xff]  ;;  %1878 = vst [vmem:[#allocation3 + $0x278] sm:$0xc0] %v1852_v24  ;;  %1950 = vrot.lane.b32.xlu2 %v6506_v44, %s5574_s11 }
 0x36d   :  { %3063 = vmatpush.msra.mxu0 %v2941_v23  ;;  %1891 = vst [vmem:[#allocation3 + $0x2e0] sm:$0xf] %v1852_v24  ;;  %1832 = vrot.lane.b32.xlu1 %v6499_v38, %s5590_s26 }
 0x36e   :  { %v1945_v59 = vpop.permute.xlu1 %1944  ;;  %v6619_v32 = vpop.permute.xlu2 %1468  ;;  %2532 = vrot.lane.b32.xlu0 %v6615_v26, %s5590_s26 }
 0x36f   :  { %3064 = vmatpush.msra.mxu0 %v2928_v42  ;;  %v1968_v43 = vsel %vm81_vm10, %v6426_v56, %v1945_v59  ;;  %v1969_v44 = vsel %vm81_vm10, %v1945_v59, %v6595_v2  ;;  %v1489_v35 = vsel %vm1484_vm6, %v1467_v34, %v6619_v32  ;;  %v6635_v56 = vrot.slane %v6180_v28, 2  ;;  %v2720_v59 = vld [vmem:[#allocation3] sm:$0xff] }
 0x370   :  { %1993 = vst [vmem:[#allocation3 + $0x340] sm:$0xfc] %v1968_v43  ;;  %v1611_v50 = vpop.permute.xlu0 %1610 }
 0x371   :  { %1994 = vst [vmem:[#allocation3 + $0x348] sm:$0xfc] %v1969_v44  ;;  %v1635_v47 = vsel %vm301_vm1, %v6453_v58, %v1611_v50 }
 0x372   :  { %1514 = vst [vmem:[#allocation3 + $0x158] sm:$0x3f] %v1489_v35  ;;  %v2955_v33 = vld [vmem:[#allocation3 + $0x758] sm:$0x3f] }
 0x373   :  { %2705 = vst [vmem:[#allocation3 + $0x760] sm:$0x3f] %v1489_v35  ;;  %5321 = vmatpush.msk.msra.mxu2 %vm2986_vm9, %v2955_v33 }
 0x374   :  { %1661 = vst [vmem:[#allocation3 + $0x1a8] sm:$0xf0] %v1635_v47  ;;  %1614 = vrot.lane.b32.xlu2 %v6196_v31, %s5580_s20 }
 0x375   :  { %1674 = vst [vmem:[#allocation3 + $0x210] sm:$0x3] %v1635_v47  ;;  %1533 = vrot.lane.b32.xlu1 %v6477_v17, %s5578_s17 }
 0x376   :  { %v6639_v51 = vpop.permute.xlu1 %1828  ;;  %v6641_v14 = vpop.permute.xlu2 %2014  ;;  %2371 = vrot.lane.b32.xlu0 %v6635_v56, %s5582_s22 }
 0x377   :  { %v1853_v58 = vsel %vm1850_vm7, %v1827_v4, %v6639_v51  ;;  %v2824_v30 = vld [vmem:[#allocation3 + $0x340] sm:$0xff]  ;;  %v2746_v4 = vld [vmem:[#allocation3 + $0xd0] sm:$0xff] }
 0x378   :  { %1879 = vst [vmem:[#allocation3 + $0x280] sm:$0xc0] %v1853_v58  ;;  %3033 = vmatpush.msrb.mxu3 %v2824_v30  ;;  %v6647_v31 = vpop.permute.xlu0 %1693  ;;  %v6700_v30 = vrot.slane %v6235_v46, 2 }
 0x379   :  { %1892 = vst [vmem:[#allocation3 + $0x2e8] sm:$0xf] %v1853_v58  ;;  %v1717_v17 = vsel %vm345_vm14, %v6584_v40, %v6647_v31 }
 0x37a   :  { %1743 = vst [vmem:[#allocation3 + $0x218] sm:$0xfc] %v1717_v17  ;;  %3034 = vmatpush.msrb.mxu3 %v2811_v55  ;;  %v6705_v17 = vrot.slane %v6207_v36, 6 }
 0x37c   :  { %1616 = vrot.lane.b32.xlu2 %v6215_v39, %s5580_s20  ;;  %3035 = vmatpush.msrb.mxu3 %v2798_v63 }
 0x37d   :  { %1220 = vrot.lane.b32.xlu1 %v6635_v56, %s5574_s11 }
 0x37e   :  { %v6656_v13 = vpop.permute.xlu1 %1612  ;;  %v1763_v18 = vpop.permute.xlu2 %1762  ;;  %2157 = vrot.lane.b32.xlu0 %v6224_v41, %s5589_s28  ;;  %3036 = vmatpush.msrb.mxu3 %v2785_v10 }
 0x37f   :  { %v1636_v40 = vsel %vm301_vm1, %v1611_v50, %v6656_v13  ;;  %v1786_v8 = vsel %vm1782_vm4, %v6483_v22, %v1763_v18  ;;  %v2733_v22 = vld [vmem:[#allocation3 + $0x68] sm:$0xff] }
 0x380   :  { %1662 = vst [vmem:[#allocation3 + $0x1b0] sm:$0xf0] %v1636_v40  ;;  %3037 = vmatpush.msrb.mxu3 %v2772_v15  ;;  %v1530_v39 = vpop.permute.xlu0 %1529 }
 0x381   :  { %1675 = vst [vmem:[#allocation3 + $0x218] sm:$0x3] %v1636_v40  ;;  %v1554_v34 = vsel %vm257_vm15, %v6447_v19, %v1530_v39  ;;  %v6725_v40 = vrot.slane %v6209_v37, 2 }
 0x382   :  { %1812 = vst [vmem:[#allocation3 + $0x288] sm:$0x3f] %v1786_v8  ;;  %3038 = vmatpush.msrb.mxu3 %v2759_v11 }
 0x383   :  { %1580 = vst [vmem:[#allocation3 + $0x140] sm:$0xc0] %v1554_v34 }
 0x384   :  { %1593 = vst [vmem:[#allocation3 + $0x1a8] sm:$0xf] %v1554_v34  ;;  %2452 = vrot.lane.b32.xlu2 %v6224_v41, %s5588_s1  ;;  %3039 = vmatpush.msrb.mxu3 %v2746_v4 }
 0x385   :  { %1222 = vrot.lane.b32.xlu1 %v6667_v16, %s5574_s11 }
 0x386   :  { %v6673_v24 = vpop.permute.xlu1 %1531  ;;  %v6675_v19 = vpop.permute.xlu2 %1764  ;;  %2080 = vrot.lane.b32.xlu0 %v6635_v56, %s5591_s27  ;;  %3040 = vmatpush.msrb.mxu3 %v2733_v22 }
 0x387   :  { %v1555_v23 = vsel %vm257_vm15, %v1530_v39, %v6673_v24  ;;  %v1787_v42 = vsel %vm1782_vm4, %v1763_v18, %v6675_v19 }
 0x388   :  { %1581 = vst [vmem:[#allocation3 + $0x148] sm:$0xc0] %v1555_v23  ;;  %3041 = vmatpush.msrb.mxu3 %v2720_v59  ;;  %v2300_v43 = vpop.permute.xlu0 %2299 }
 0x389   :  { %1594 = vst [vmem:[#allocation3 + $0x1b0] sm:$0xf] %v1555_v23  ;;  %v2323_v44 = vsel %vm301_vm1, %v6389_v27, %v2300_v43 }
 0x38a   :  { %1813 = vst [vmem:[#allocation3 + $0x290] sm:$0x3f] %v1787_v42 }
 0x38b   :  { %2349 = vst [vmem:[#allocation3 + $0x4f0] sm:$0x3f] %v2323_v44  ;;  %v2903_v44 = vld [vmem:[#allocation3 + $0x5b8] sm:$0xff] }
 0x38c   :  { %2373 = vrot.lane.b32.xlu2 %v6667_v16, %s5582_s22 }
 0x38d   :  { %2236 = vrot.lane.b32.xlu1 %v6615_v26, %s5578_s17 }
 0x38e   :  { %v2013_v35 = vpop.permute.xlu1 %2012  ;;  %v6689_v50 = vpop.permute.xlu2 %1218  ;;  %1952 = vrot.lane.b32.xlu0 %v6615_v26, %s5574_s11 }
 0x38f   :  { %v2034_v47 = vsel %vm125_vm5, %v6439_v54, %v2013_v35  ;;  %v2035_v27 = vsel %vm125_vm5, %v2013_v35, %v6641_v14 }
 0x390   :  { %2059 = vst [vmem:[#allocation3 + $0x3b8] sm:$0x3f] %v2034_v47  ;;  %v2529_v33 = vpop.permute.xlu0 %2528 }
 0x391   :  { %2060 = vst [vmem:[#allocation3 + $0x3c0] sm:$0x3f] %v2035_v27  ;;  %v2552_v58 = vsel %vm1850_vm7, %v6508_v45, %v2529_v33 }
 0x392   :  { %2578 = vst [vmem:[#allocation3 + $0x5c0] sm:$0xfc] %v2552_v58  ;;  %v2877_v58 = vld [vmem:[#allocation3 + $0x4e8] sm:$0xff] }
 0x394   :  { %1226 = vrot.lane.b32.xlu2 %v6700_v30, %s5574_s11 }
 0x395   :  { %2454 = vrot.lane.b32.xlu1 %v6246_v48, %s5588_s1 }
 0x396   :  { %v6709_v54 = vpop.permute.xlu1 %2301  ;;  %v6711_v55 = vpop.permute.xlu2 %1308  ;;  %2534 = vrot.lane.b32.xlu0 %v6705_v17, %s5590_s26 }
 0x397   :  { %v2324_v45 = vsel %vm301_vm1, %v2300_v43, %v6709_v54  ;;  %v1329_v63 = vsel %vm125_vm5, %v6586_v0, %v6711_v55 }
 0x398   :  { %2350 = vst [vmem:[#allocation3 + $0x4f8] sm:$0x3f] %v2324_v45  ;;  %v2368_v10 = vpop.permute.xlu0 %2367  ;;  %v6782_v45 = vrot.slane %v6209_v37, 6 }
 0x399   :  { %1354 = vst [vmem:[#allocation3 + $0x80] sm:$0xf0] %v1329_v63  ;;  %v2391_v18 = vsel %vm345_vm14, %v6540_v20, %v2368_v10 }
 0x39a   :  { %1368 = vst [vmem:[#allocation3 + $0xe8] sm:$0x3] %v1329_v63 }
 0x39b   :  { %2647 = vst [vmem:[#allocation3 + $0x688] sm:$0xf0] %v1329_v63 }
 0x39c   :  { %2660 = vst [vmem:[#allocation3 + $0x6f0] sm:$0x3] %v1329_v63  ;;  %2456 = vrot.lane.b32.xlu2 %v6255_v52, %s5588_s1 }
 0x39d   :  { %2417 = vst [vmem:[#allocation3 + $0x4f0] sm:$0xc0] %v2391_v18  ;;  %2159 = vrot.lane.b32.xlu1 %v6246_v48, %s5589_s28 }
 0x39e   :  { %2430 = vst [vmem:[#allocation3 + $0x558] sm:$0xf] %v2391_v18  ;;  %v6729_v0 = vpop.permute.xlu2 %2153  ;;  %v1217_v8 = vpop.permute.xlu1 %1216  ;;  %2375 = vrot.lane.b32.xlu0 %v6725_v40, %s5582_s22 }
 0x39f   :  { %v2175_v20 = vsel %vm1484_vm6, %v6601_v60, %v6729_v0  ;;  %v1237_v15 = vsel %vm81_vm10, %v6491_v25, %v1217_v8  ;;  %v1238_v39 = vsel %vm81_vm10, %v1217_v8, %v6689_v50 }
 0x3a0   :  { %2200 = vst [vmem:[#allocation3 + $0x420] sm:$0xf0] %v2175_v20  ;;  %v6740_v34 = vpop.permute.xlu0 %2076 }
 0x3a1   :  { %2213 = vst [vmem:[#allocation3 + $0x488] sm:$0x3] %v2175_v20  ;;  %v2098_v11 = vsel %vm1418_vm13, %v6554_v21, %v6740_v34 }
 0x3a2   :  { %1262 = vst [vmem:[#allocation3 + $0x18] sm:$0xc0] %v1237_v15 }
 0x3a3   :  { %1263 = vst [vmem:[#allocation3 + $0x20] sm:$0xc0] %v1238_v39 }
 0x3a4   :  { %1276 = vst [vmem:[#allocation3 + $0x80] sm:$0xf] %v1237_v15  ;;  %2161 = vrot.lane.b32.xlu2 %v6255_v52, %s5589_s28 }
 0x3a5   :  { %1277 = vst [vmem:[#allocation3 + $0x88] sm:$0xf] %v1238_v39  ;;  %2307 = vrot.lane.b32.xlu1 %v6209_v37, %s5580_s20 }
 0x3a6   :  { %2612 = vst [vmem:[#allocation3 + $0x620] sm:$0xc0] %v1237_v15  ;;  %v6746_v60 = vpop.permute.xlu2 %2450  ;;  %v2449_v25 = vpop.permute.xlu1 %2448  ;;  %2238 = vrot.lane.b32.xlu0 %v6705_v17, %s5578_s17 }
 0x3a7   :  { %2613 = vst [vmem:[#allocation3 + $0x628] sm:$0xc0] %v1238_v39  ;;  %v2472_v22 = vsel %vm1782_vm4, %v6532_v5, %v2449_v25  ;;  %v2473_v23 = vsel %vm1782_vm4, %v2449_v25, %v6746_v60  ;;  %v2838_v25 = vld [vmem:[#allocation3 + $0x3b0] sm:$0xff] }
 0x3a8   :  { %2625 = vst [vmem:[#allocation3 + $0x688] sm:$0xf] %v1237_v15  ;;  %v6753_v4 = vpop.permute.xlu0 %2530 }
 0x3a9   :  { %2626 = vst [vmem:[#allocation3 + $0x690] sm:$0xf] %v1238_v39  ;;  %v2553_v21 = vsel %vm1850_vm7, %v2529_v33, %v6753_v4  ;;  %v2890_v33 = vld [vmem:[#allocation3 + $0x550] sm:$0xff] }
 0x3aa   :  { %2123 = vst [vmem:[#allocation3 + $0x3b8] sm:$0xc0] %v2098_v11 }
 0x3ab   :  { %2136 = vst [vmem:[#allocation3 + $0x420] sm:$0xf] %v2098_v11  ;;  %v2878_v11 = vld [vmem:[#allocation3 + $0x4f0] sm:$0xff] }
 0x3ac   :  { %2498 = vst [vmem:[#allocation3 + $0x558] sm:$0xf0] %v2472_v22  ;;  %1470 = vrot.lane.b32.xlu2 %v6180_v28, %s5589_s28 }
 0x3ad   :  { %2499 = vst [vmem:[#allocation3 + $0x560] sm:$0xf0] %v2473_v23  ;;  %v2916_v42 = vld [vmem:[#allocation3 + $0x620] sm:$0xff]  ;;  %1224 = vrot.lane.b32.xlu1 %v6725_v40, %s5574_s11 }
 0x3ae   :  { %2511 = vst [vmem:[#allocation3 + $0x5c0] sm:$0x3] %v2472_v22  ;;  %3072 = vmatpush.msra.mxu1 %v2916_v42  ;;  %v2917_v5 = vld [vmem:[#allocation3 + $0x628] sm:$0xff]  ;;  %v6765_v59 = vpop.permute.xlu2 %2369  ;;  %v6767_v43 = vpop.permute.xlu1 %1400  ;;  %1535 = vrot.lane.b32.xlu0 %v6499_v38, %s5578_s17 }
 0x3af   :  { %2512 = vst [vmem:[#allocation3 + $0x5c8] sm:$0x3] %v2473_v23  ;;  %3118 = vmatpush.msrb.mxu0 %v2917_v5  ;;  %v2392_v35 = vsel %vm345_vm14, %v2368_v10, %v6765_v59  ;;  %v1422_v47 = vsel %vm1418_vm13, %v6548_v12, %v6767_v43  ;;  %v2864_v12 = vld [vmem:[#allocation3 + $0x480] sm:$0xff]  ;;  %v2825_v23 = vld [vmem:[#allocation3 + $0x348] sm:$0xff] }
 0x3b0   :  { %2579 = vst [vmem:[#allocation3 + $0x5c8] sm:$0xfc] %v2553_v21  ;;  %3073 = vmatpush.msra.mxu1 %v2903_v44  ;;  %v6776_v27 = vpop.permute.xlu0 %2303  ;;  %v2929_v21 = vld [vmem:[#allocation3 + $0x688] sm:$0xff]  ;;  %v2799_v44 = vld [vmem:[#allocation3 + $0x278] sm:$0xff] }
 0x3b1   :  { %2418 = vst [vmem:[#allocation3 + $0x4f8] sm:$0xc0] %v2392_v35  ;;  %v2325_v38 = vsel %vm301_vm1, %v6709_v54, %v6776_v27  ;;  %v2851_v54 = vld [vmem:[#allocation3 + $0x418] sm:$0xff] }
 0x3b2   :  { %3074 = vmatpush.msra.mxu1 %v2890_v33  ;;  %2431 = vst [vmem:[#allocation3 + $0x560] sm:$0xf] %v2392_v35 }
 0x3b3   :  { %1447 = vst [vmem:[#allocation3 + $0xe8] sm:$0xfc] %v1422_v47  ;;  %v2891_v18 = vld [vmem:[#allocation3 + $0x558] sm:$0xff] }
 0x3b4   :  { %2682 = vst [vmem:[#allocation3 + $0x6f0] sm:$0xfc] %v1422_v47  ;;  %3075 = vmatpush.msra.mxu1 %v2877_v58  ;;  %2084 = vrot.lane.b32.xlu2 %v6725_v40, %s5591_s27 }
 0x3b5   :  { %v2904_v63 = vld [vmem:[#allocation3 + $0x5c0] sm:$0xff]  ;;  %2351 = vst [vmem:[#allocation3 + $0x500] sm:$0x3f] %v2325_v38  ;;  %2536 = vrot.lane.b32.xlu1 %v6782_v45, %s5590_s26 }
 0x3b6   :  { %3076 = vmatpush.msra.mxu1 %v2864_v12  ;;  %3119 = vmatpush.msrb.mxu0 %v2904_v63  ;;  %v6788_v10 = vpop.permute.xlu2 %2234  ;;  %v2786_v12 = vld [vmem:[#allocation3 + $0x210] sm:$0xff] }
 0x3b7   :  { %v2233_v8 = vpop.permute.xlu1 %2232  ;;  %1312 = vrot.lane.b32.xlu0 %v6224_v41, %s5569_s18 }
 0x3b8   :  { %3077 = vmatpush.msra.mxu1 %v2851_v54  ;;  %3120 = vmatpush.msrb.mxu0 %v2891_v18  ;;  %v2256_v20 = vsel %vm257_vm15, %v6560_v29, %v2233_v8  ;;  %v2257_v15 = vsel %vm257_vm15, %v2233_v8, %v6788_v10  ;;  %v6796_v39 = vpop.permute.xlu0 %1310  ;;  %v2812_v29 = vld [vmem:[#allocation3 + $0x2e0] sm:$0xff]  ;;  %v2773_v54 = vld [vmem:[#allocation3 + $0x1a8] sm:$0xff] }
 0x3b9   :  { %2282 = vst [vmem:[#allocation3 + $0x488] sm:$0xfc] %v2256_v20  ;;  %v1330_v22 = vsel %vm125_vm5, %v6711_v55, %v6796_v39  ;;  %v2956_v55 = vld [vmem:[#allocation3 + $0x760] sm:$0x3f] }
 0x3ba   :  { %3078 = vmatpush.msra.mxu1 %v2838_v25  ;;  %3121 = vmatpush.msrb.mxu0 %v2878_v11  ;;  %2283 = vst [vmem:[#allocation3 + $0x490] sm:$0xfc] %v2257_v15  ;;  %v2760_v18 = vld [vmem:[#allocation3 + $0x140] sm:$0xff] }
 0x3bb   :  { %v2942_v42 = vld [vmem:[#allocation3 + $0x6f0] sm:$0xff]  ;;  %1355 = vst [vmem:[#allocation3 + $0x88] sm:$0xf0] %v1330_v22 }
 0x3bc   :  { %3079 = vmatpush.msra.mxu1 %v2825_v23  ;;  %3109 = vmatpush.msra.mxu2 %v2942_v42  ;;  %1369 = vst [vmem:[#allocation3 + $0xf0] sm:$0x3] %v1330_v22 }
 0x3bd   :  { %2648 = vst [vmem:[#allocation3 + $0x690] sm:$0xf0] %v1330_v22  ;;  %2240 = vrot.lane.b32.xlu1 %v6782_v45, %s5578_s17  ;;  %2018 = vrot.lane.b32.xlu2 %v6207_v36, %s5569_s18 }
 0x3be   :  { %3080 = vmatpush.msra.mxu1 %v2812_v29  ;;  %2661 = vst [vmem:[#allocation3 + $0x6f8] sm:$0x3] %v1330_v22  ;;  %3110 = vmatpush.msra.mxu2 %v2929_v21  ;;  %v6805_v5 = vpop.permute.xlu2 %2078  ;;  %v2734_v22 = vld [vmem:[#allocation3 + $0x70] sm:$0xff]  ;;  %v2721_v29 = vld [vmem:[#allocation3 + $0x8] sm:$0xff] }
 0x3bf   :  { %v2099_v35 = vsel %vm1418_vm13, %v6740_v34, %v6805_v5  ;;  %v1949_v47 = vpop.permute.xlu1 %1948  ;;  %2020 = vrot.lane.b32.xlu0 %v6209_v37, %s5569_s18  ;;  %v2852_v34 = vld [vmem:[#allocation3 + $0x420] sm:$0xff]  ;;  %v2813_v21 = vld [vmem:[#allocation3 + $0x2e8] sm:$0xff] }
 0x3c0   :  { %5324 = vmatpush.msk.msrb.mxu2 %vm2986_vm9, %v2956_v55  ;;  %3081 = vmatpush.msra.mxu1 %v2799_v44  ;;  %2124 = vst [vmem:[#allocation3 + $0x3c0] sm:$0xc0] %v2099_v35  ;;  %v1970_v33 = vsel %vm81_vm10, %v6595_v2, %v1949_v47  ;;  %v2865_v38 = vld [vmem:[#allocation3 + $0x488] sm:$0xff]  ;;  %v6815_v58 = vpop.permute.xlu0 %1830  ;;  %v2839_v2 = vld [vmem:[#allocation3 + $0x3b8] sm:$0xff] }
 0x3c1   :  { %2137 = vst [vmem:[#allocation3 + $0x428] sm:$0xf] %v2099_v35  ;;  %3122 = vmatpush.msrb.mxu0 %v2865_v38  ;;  %v1854_v63 = vsel %vm1850_vm7, %v6639_v51, %v6815_v58  ;;  %v2747_v51 = vld [vmem:[#allocation3 + $0xd8] sm:$0xff]  ;;  %v2774_v38 = vld [vmem:[#allocation3 + $0x1b0] sm:$0xff] }
 0x3c2   :  { %3082 = vmatpush.msra.mxu1 %v2786_v12  ;;  %1995 = vst [vmem:[#allocation3 + $0x350] sm:$0xfc] %v1970_v33  ;;  %v2787_v35 = vld [vmem:[#allocation3 + $0x218] sm:$0xff]  ;;  %v2761_v12 = vld [vmem:[#allocation3 + $0x148] sm:$0xff] }
 0x3c3   :  { %1880 = vst [vmem:[#allocation3 + $0x288] sm:$0xc0] %v1854_v63  ;;  %3123 = vmatpush.msrb.mxu0 %v2852_v34 }
 0x3c4   :  { %3083 = vmatpush.msra.mxu1 %v2773_v54  ;;  %1893 = vst [vmem:[#allocation3 + $0x2f0] sm:$0xf] %v1854_v63  ;;  %v2735_v54 = vld [vmem:[#allocation3 + $0x78] sm:$0xff] }
 0x3c5   :  { %2082 = vrot.lane.b32.xlu1 %v6667_v16, %s5591_s27  ;;  %1954 = vrot.lane.b32.xlu2 %v6705_v17, %s5574_s11 }
 0x3c6   :  { %3084 = vmatpush.msra.mxu1 %v2760_v18  ;;  %3124 = vmatpush.msrb.mxu0 %v2839_v2  ;;  %v6824_v8 = vpop.permute.xlu2 %1950  ;;  %v2722_v2 = vld [vmem:[#allocation3 + $0x10] sm:$0xff] }
 0x3c7   :  { %v1971_v20 = vsel %vm81_vm10, %v1949_v47, %v6824_v8  ;;  %v6828_v15 = vpop.permute.xlu1 %2155  ;;  %1956 = vrot.lane.b32.xlu0 %v6782_v45, %s5574_s11 }
 0x3c8   :  { %3085 = vmatpush.msra.mxu1 %v2747_v51  ;;  %1996 = vst [vmem:[#allocation3 + $0x358] sm:$0xfc] %v1971_v20  ;;  %v2176_v25 = vsel %vm1484_vm6, %v6729_v0, %v6828_v15  ;;  %v1696_v11 = vpop.permute.xlu0 %1695  ;;  %v2800_v0 = vld [vmem:[#allocation3 + $0x280] sm:$0xff] }
 0x3c9   :  { %2201 = vst [vmem:[#allocation3 + $0x428] sm:$0xf0] %v2176_v25  ;;  %v2826_v23 = vld [vmem:[#allocation3 + $0x350] sm:$0xff]  ;;  %v1718_v42 = vsel %vm345_vm14, %v6647_v31, %v1696_v11 }
 0x3ca   :  { %3086 = vmatpush.msra.mxu1 %v2734_v22  ;;  %2214 = vst [vmem:[#allocation3 + $0x490] sm:$0x3] %v2176_v25  ;;  %3125 = vmatpush.msrb.mxu0 %v2826_v23  ;;  %v6875_v25 = vrot.slane %v6266_v61, 2 }
 0x3cb   :  { %1744 = vst [vmem:[#allocation3 + $0x220] sm:$0xfc] %v1718_v42 }
 0x3cc   :  { %3087 = vmatpush.msra.mxu1 %v2721_v29  ;;  %3126 = vmatpush.msrb.mxu0 %v2813_v21 }
 0x3cd   :  { %1404 = vrot.lane.b32.xlu1 %v6615_v26, %s5591_s27  ;;  %1406 = vrot.lane.b32.xlu2 %v6705_v17, %s5591_s27 }
 0x3ce   :  { %3127 = vmatpush.msrb.mxu0 %v2800_v0  ;;  %v1615_v55 = vpop.permute.xlu2 %1614 }
 0x3cf   :  { %v1637_v31 = vsel %vm301_vm1, %v6656_v13, %v1615_v55  ;;  %v6843_v44 = vpop.permute.xlu1 %1402  ;;  %1834 = vrot.lane.b32.xlu0 %v6635_v56, %s5590_s26 }
 0x3d0   :  { %1663 = vst [vmem:[#allocation3 + $0x1b8] sm:$0xf0] %v1637_v31  ;;  %v1423_v47 = vsel %vm1418_vm13, %v6767_v43, %v6843_v44  ;;  %3128 = vmatpush.msrb.mxu0 %v2787_v35  ;;  %v6850_v33 = vpop.permute.xlu0 %2305  ;;  %v2748_v43 = vld [vmem:[#allocation3 + $0xe0] sm:$0xff] }
 0x3d1   :  { %1676 = vst [vmem:[#allocation3 + $0x220] sm:$0x3] %v1637_v31  ;;  %v2326_v13 = vsel %vm301_vm1, %v6776_v27, %v6850_v33 }
 0x3d2   :  { %1448 = vst [vmem:[#allocation3 + $0xf0] sm:$0xfc] %v1423_v47  ;;  %3129 = vmatpush.msrb.mxu0 %v2774_v38 }
 0x3d3   :  { %2683 = vst [vmem:[#allocation3 + $0x6f8] sm:$0xfc] %v1423_v47  ;;  %v6948_v47 = vrot.slane %v6237_v49, 6 }
 0x3d4   :  { %2352 = vst [vmem:[#allocation3 + $0x508] sm:$0x3f] %v2326_v13  ;;  %3130 = vmatpush.msrb.mxu0 %v2761_v12 }
 0x3d5   :  { %1472 = vrot.lane.b32.xlu1 %v6207_v36, %s5589_s28  ;;  %1766 = vrot.lane.b32.xlu2 %v6180_v28, %s5588_s1 }
 0x3d6   :  { %3131 = vmatpush.msrb.mxu0 %v2748_v43  ;;  %v6859_v63 = vpop.permute.xlu2 %1616  ;;  %v2905_v43 = vld [vmem:[#allocation3 + $0x5c8] sm:$0xff] }
 0x3d7   :  { %v1638_v34 = vsel %vm301_vm1, %v1615_v55, %v6859_v63  ;;  %v6863_v27 = vpop.permute.xlu1 %2016  ;;  %1768 = vrot.lane.b32.xlu0 %v6207_v36, %s5588_s1  ;;  %v2930_v36 = vld [vmem:[#allocation3 + $0x690] sm:$0xff] }
 0x3d8   :  { %1664 = vst [vmem:[#allocation3 + $0x1c0] sm:$0xf0] %v1638_v34  ;;  %v2036_v18 = vsel %vm125_vm5, %v6641_v14, %v6863_v27  ;;  %3132 = vmatpush.msrb.mxu0 %v2735_v54  ;;  %v6870_v28 = vpop.permute.xlu0 %1697  ;;  %v6880_v14 = vld [vmem:[%s9717_s3 + $0x8] sm:$0xff] }
 0x3d9   :  { %1677 = vst [vmem:[#allocation3 + $0x228] sm:$0x3] %v1638_v34  ;;  %v1719_v51 = vsel %vm345_vm14, %v1696_v11, %v6870_v28  ;;  %5322 = vmatmul.msk.f32.vlgmr.msra.gmra.mxu2 %vm9728_vm11, %v6880_v14  ;;  %5319 = vmatmul.msk.f32.vlgmr.msra.gmra.mxu0 %vm9728_vm11, %v6880_v14  ;;  %v2892_v34 = vld [vmem:[#allocation3 + $0x560] sm:$0xff] }
 0x3da   :  { %2061 = vst [vmem:[#allocation3 + $0x3c8] sm:$0x3f] %v2036_v18  ;;  %3133 = vmatpush.msrb.mxu0 %v2722_v2  ;;  %v2943_v20 = vld [vmem:[#allocation3 + $0x6f8] sm:$0xff] }
 0x3db   :  { %3155 = vmatpush.msrb.mxu2 %v2943_v20  ;;  %1745 = vst [vmem:[#allocation3 + $0x228] sm:$0xfc] %v1719_v51  ;;  %v2879_v2 = vld [vmem:[#allocation3 + $0x4f8] sm:$0xff]  ;;  %v2866_v20 = vld [vmem:[#allocation3 + $0x490] sm:$0xff] }
 0x3dd   :  { %3156 = vmatpush.msrb.mxu2 %v2930_v36  ;;  %1314 = vrot.lane.b32.xlu1 %v6246_v48, %s5569_s18 }
 0x3de   :  { %1230 = vrot.lane.b32.xlu2 %v6875_v25, %s5574_s11  ;;  %v6886_v11 = vpop.permute.xlu2 %2452 }
 0x3df   :  { %v2474_v22 = vsel %vm1782_vm4, %v6746_v60, %v6886_v11  ;;  %v6893_v23 = vpop.permute.xlu1 %1832  ;;  %1618 = vrot.lane.b32.xlu0 %v6224_v41, %s5580_s20 }
 0x3e0   :  { %2500 = vst [vmem:[#allocation3 + $0x568] sm:$0xf0] %v2474_v22  ;;  %v1855_v42 = vsel %vm1850_vm7, %v6815_v58, %v6893_v23  ;;  %v6902_v29 = vpop.permute.xlu0 %2532 }
 0x3e1   :  { %2513 = vst [vmem:[#allocation3 + $0x5d0] sm:$0x3] %v2474_v22  ;;  %v2554_v60 = vsel %vm1850_vm7, %v6753_v4, %v6902_v29  ;;  %v2853_v22 = vld [vmem:[#allocation3 + $0x428] sm:$0xff] }
 0x3e2   :  { %1881 = vst [vmem:[#allocation3 + $0x290] sm:$0xc0] %v1855_v42 }
 0x3e3   :  { %1894 = vst [vmem:[#allocation3 + $0x2f8] sm:$0xf] %v1855_v42 }
 0x3e4   :  { %2580 = vst [vmem:[#allocation3 + $0x5d0] sm:$0xfc] %v2554_v60 }
 0x3e5   :  { %1836 = vrot.lane.b32.xlu1 %v6667_v16, %s5590_s26 }
 0x3e6   :  { %1699 = vrot.lane.b32.xlu2 %v6615_v26, %s5582_s22  ;;  %v6911_v41 = vpop.permute.xlu2 %2373  ;;  %v6925_v26 = vrot.slane %v6237_v49, 2 }
 0x3e7   :  { %v6913_v21 = vpop.permute.xlu1 %1533  ;;  %1701 = vrot.lane.b32.xlu0 %v6705_v17, %s5582_s22 }
 0x3e8   :  { %v1556_v4 = vsel %vm257_vm15, %v6673_v24, %v6913_v21  ;;  %v2372_v58 = vpop.permute.xlu0 %2371 }
 0x3e9   :  { %1582 = vst [vmem:[#allocation3 + $0x150] sm:$0xc0] %v1556_v4  ;;  %v2393_v0 = vsel %vm345_vm14, %v6765_v59, %v2372_v58  ;;  %v2394_v55 = vsel %vm345_vm14, %v2372_v58, %v6911_v41 }
 0x3ea   :  { %1595 = vst [vmem:[#allocation3 + $0x1b8] sm:$0xf] %v1556_v4 }
 0x3eb   :  { %2419 = vst [vmem:[#allocation3 + $0x500] sm:$0xc0] %v2393_v0  ;;  %v2906_v42 = vld [vmem:[#allocation3 + $0x5d0] sm:$0xff] }
 0x3ec   :  { %2420 = vst [vmem:[#allocation3 + $0x508] sm:$0xc0] %v2394_v55 }
 0x3ed   :  { %2432 = vst [vmem:[#allocation3 + $0x568] sm:$0xf] %v2393_v0  ;;  %1228 = vrot.lane.b32.xlu1 %v6925_v26, %s5574_s11 }
 0x3ee   :  { %2433 = vst [vmem:[#allocation3 + $0x570] sm:$0xf] %v2394_v55  ;;  %1539 = vrot.lane.b32.xlu2 %v6667_v16, %s5578_s17  ;;  %v6931_v24 = vpop.permute.xlu2 %1226  ;;  %v6943_v16 = vrot.slane %v6235_v46, 6 }
 0x3ef   :  { %v1221_v17 = vpop.permute.xlu1 %1220  ;;  %2458 = vrot.lane.b32.xlu0 %v6274_v1, %s5588_s1 }
 0x3f0   :  { %v1239_v59 = vsel %vm81_vm10, %v6689_v50, %v1221_v17  ;;  %v6937_v31 = vpop.permute.xlu0 %2157 }
 0x3f1   :  { %1264 = vst [vmem:[#allocation3 + $0x28] sm:$0xc0] %v1239_v59  ;;  %v2177_v35 = vsel %vm1484_vm6, %v6828_v15, %v6937_v31 }
 0x3f2   :  { %1278 = vst [vmem:[#allocation3 + $0x90] sm:$0xf] %v1239_v59 }
 0x3f3   :  { %2614 = vst [vmem:[#allocation3 + $0x630] sm:$0xc0] %v1239_v59 }
 0x3f4   :  { %2627 = vst [vmem:[#allocation3 + $0x698] sm:$0xf] %v1239_v59  ;;  %v2893_v60 = vld [vmem:[#allocation3 + $0x568] sm:$0xff]  ;;  %v2880_v59 = vld [vmem:[#allocation3 + $0x500] sm:$0xff] }
 0x3f5   :  { %2202 = vst [vmem:[#allocation3 + $0x430] sm:$0xf0] %v2177_v35  ;;  %1620 = vrot.lane.b32.xlu1 %v6246_v48, %s5580_s20 }
 0x3f6   :  { %2215 = vst [vmem:[#allocation3 + $0x498] sm:$0x3] %v2177_v35  ;;  %2538 = vrot.lane.b32.xlu2 %v6943_v16, %s5590_s26  ;;  %v6952_v50 = vpop.permute.xlu2 %2456 }
 0x3f7   :  { %v6954_v38 = vpop.permute.xlu1 %1222  ;;  %2540 = vrot.lane.b32.xlu0 %v6948_v47, %s5590_s26 }
 0x3f8   :  { %v1240_v15 = vsel %vm81_vm10, %v1221_v17, %v6954_v38  ;;  %v6960_v13 = vpop.permute.xlu0 %2080  ;;  %v2827_v17 = vld [vmem:[#allocation3 + $0x358] sm:$0xff] }
 0x3f9   :  { %1265 = vst [vmem:[#allocation3 + $0x30] sm:$0xc0] %v1240_v15  ;;  %v2100_v12 = vsel %vm1418_vm13, %v6805_v5, %v6960_v13 }
 0x3fa   :  { %1279 = vst [vmem:[#allocation3 + $0x98] sm:$0xf] %v1240_v15  ;;  %v2918_v48 = vld [vmem:[#allocation3 + $0x630] sm:$0xff] }
 0x3fb   :  { %2615 = vst [vmem:[#allocation3 + $0x638] sm:$0xc0] %v1240_v15  ;;  %3164 = vmatpush.msra.mxu2 %v2918_v48 }
 0x3fc   :  { %2628 = vst [vmem:[#allocation3 + $0x6a0] sm:$0xf] %v1240_v15 }
 0x3fd   :  { %2125 = vst [vmem:[#allocation3 + $0x3c8] sm:$0xc0] %v2100_v12  ;;  %3165 = vmatpush.msra.mxu2 %v2905_v43  ;;  %1537 = vrot.lane.b32.xlu1 %v6635_v56, %s5578_s17 }
 0x3fe   :  { %2138 = vst [vmem:[#allocation3 + $0x430] sm:$0xf] %v2100_v12  ;;  %2379 = vrot.lane.b32.xlu2 %v6925_v26, %s5582_s22  ;;  %v6969_v54 = vpop.permute.xlu2 %2161  ;;  %v2801_v12 = vld [vmem:[#allocation3 + $0x288] sm:$0xff] }
 0x3ff   :  { %3166 = vmatpush.msra.mxu2 %v2892_v34  ;;  %v6971_v18 = vpop.permute.xlu1 %2236  ;;  %2309 = vrot.lane.b32.xlu0 %v6235_v46, %s5580_s20  ;;  %v2788_v34 = vld [vmem:[#allocation3 + $0x220] sm:$0xff] }
 0x400   :  { %v2258_v5 = vsel %vm257_vm15, %v6788_v10, %v6971_v18  ;;  %v6978_v51 = vpop.permute.xlu0 %1952  ;;  %v2840_v10 = vld [vmem:[#allocation3 + $0x3c0] sm:$0xff] }
 0x401   :  { %2284 = vst [vmem:[#allocation3 + $0x498] sm:$0xfc] %v2258_v5  ;;  %3167 = vmatpush.msra.mxu2 %v2879_v2  ;;  %v1972_v56 = vsel %vm81_vm10, %v6824_v8, %v6978_v51 }
 0x402   :  { %v2919_v36 = vld [vmem:[#allocation3 + $0x638] sm:$0xff]  ;;  %1997 = vst [vmem:[#allocation3 + $0x360] sm:$0xfc] %v1972_v56 }
 0x403   :  { %3168 = vmatpush.msra.mxu2 %v2866_v20  ;;  %3210 = vmatpush.msrb.mxu1 %v2919_v36  ;;  %v2775_v36 = vld [vmem:[#allocation3 + $0x1b8] sm:$0xff] }
 0x404   :  { %v2841_v5 = vld [vmem:[#allocation3 + $0x3c8] sm:$0xff] }
 0x405   :  { %3169 = vmatpush.msra.mxu2 %v2853_v22  ;;  %3211 = vmatpush.msrb.mxu1 %v2906_v42  ;;  %v2854_v43 = vld [vmem:[#allocation3 + $0x430] sm:$0xff] }
 0x406   :  { %2460 = vrot.lane.b32.xlu1 %v6282_v53, %s5588_s1  ;;  %2163 = vrot.lane.b32.xlu2 %v6274_v1, %s5589_s28  ;;  %v6987_v4 = vpop.permute.xlu2 %1470 }
 0x407   :  { %3170 = vmatpush.msra.mxu2 %v2840_v10  ;;  %3212 = vmatpush.msrb.mxu1 %v2893_v60  ;;  %v2455_v8 = vpop.permute.xlu1 %2454  ;;  %v1490_v58 = vsel %vm1484_vm6, %v6619_v32, %v6987_v4  ;;  %v7003_v32 = vld [vmem:[%s9717_s3 + $0x18] sm:$0xff]  ;;  %v2815_v60 = vld [vmem:[#allocation3 + $0x2f8] sm:$0xff] }
 0x408   :  { %v2475_v0 = vsel %vm1782_vm4, %v6886_v11, %v2455_v8  ;;  %v2476_v55 = vsel %vm1782_vm4, %v2455_v8, %v6952_v50  ;;  %1515 = vst [vmem:[#allocation3 + $0x160] sm:$0x3f] %v1490_v58  ;;  %2165 = vrot.lane.b32.xlu0 %v6282_v53, %s5589_s28  ;;  %v2867_v35 = vld [vmem:[#allocation3 + $0x498] sm:$0xff]  ;;  %v6998_v15 = vpop.permute.xlu0 %2534  ;;  %v2814_v11 = vld [vmem:[#allocation3 + $0x2f0] sm:$0xff]  ;;  %5323 = vmatmul.msk.f32.gmra.mxu2 %vm9728_vm11, %v7003_v32 }
 0x409   :  { %2501 = vst [vmem:[#allocation3 + $0x570] sm:$0xf0] %v2475_v0  ;;  %3171 = vmatpush.msra.mxu2 %v2827_v17  ;;  %3213 = vmatpush.msrb.mxu1 %v2880_v59  ;;  %v2555_v48 = vsel %vm1850_vm7, %v6902_v29, %v6998_v15  ;;  %v2828_v22 = vld [vmem:[#allocation3 + $0x360] sm:$0xff]  ;;  %v2762_v10 = vld [vmem:[#allocation3 + $0x150] sm:$0xff] }
 0x40a   :  { %2502 = vst [vmem:[#allocation3 + $0x578] sm:$0xf0] %v2476_v55  ;;  %5320 = vmatmul.msk.f32.gmra.mxu0 %vm9728_vm11, %v7003_v32 }
 0x40b   :  { %2514 = vst [vmem:[#allocation3 + $0x5d8] sm:$0x3] %v2475_v0  ;;  %3172 = vmatpush.msra.mxu2 %v2814_v11  ;;  %3214 = vmatpush.msrb.mxu1 %v2867_v35  ;;  %v2802_v0 = vld [vmem:[#allocation3 + $0x290] sm:$0xff]  ;;  %v2723_v11 = vld [vmem:[#allocation3 + $0x18] sm:$0xff] }
 0x40c   :  { %2515 = vst [vmem:[#allocation3 + $0x5e0] sm:$0x3] %v2476_v55 }
 0x40d   :  { %2706 = vst [vmem:[#allocation3 + $0x768] sm:$0x3f] %v1490_v58  ;;  %3173 = vmatpush.msra.mxu2 %v2801_v12  ;;  %3215 = vmatpush.msrb.mxu1 %v2854_v43  ;;  %v2749_v58 = vld [vmem:[#allocation3 + $0xe8] sm:$0xff] }
 0x40e   :  { %2581 = vst [vmem:[#allocation3 + $0x5d8] sm:$0xfc] %v2555_v48  ;;  %2377 = vrot.lane.b32.xlu1 %v6700_v30, %s5582_s22  ;;  %2244 = vrot.lane.b32.xlu2 %v6948_v47, %s5578_s17  ;;  %v7016_v2 = vpop.permute.xlu2 %2084 }
 0x40f   :  { %3174 = vmatpush.msra.mxu2 %v2788_v34  ;;  %3216 = vmatpush.msrb.mxu1 %v2841_v5  ;;  %v2160_v29 = vpop.permute.xlu1 %2159 }
 0x410   :  { %v2178_v56 = vsel %vm1484_vm6, %v6937_v31, %v2160_v29  ;;  %v2179_v20 = vsel %vm1484_vm6, %v2160_v29, %v6969_v54  ;;  %1474 = vrot.lane.b32.xlu0 %v6209_v37, %s5589_s28  ;;  %v7024_v42 = vpop.permute.xlu0 %2375  ;;  %5325 = vmatmul.msk.f32.vlgmr.msrb.gmra.mxu2 %vm9728_vm11, %v6880_v14  ;;  %v2789_v14 = vld [vmem:[#allocation3 + $0x228] sm:$0xff] }
 0x411   :  { %2203 = vst [vmem:[#allocation3 + $0x438] sm:$0xf0] %v2178_v56  ;;  %3175 = vmatpush.msra.mxu2 %v2775_v36  ;;  %3217 = vmatpush.msrb.mxu1 %v2828_v22  ;;  %v2395_v31 = vsel %vm345_vm14, %v6911_v41, %v7024_v42  ;;  %v2736_v41 = vld [vmem:[#allocation3 + $0x80] sm:$0xff]  ;;  %v7091_v36 = vrot.slane %v6268_v62, 2 }
 0x412   :  { %2204 = vst [vmem:[#allocation3 + $0x440] sm:$0xf0] %v2179_v20 }
 0x413   :  { %2216 = vst [vmem:[#allocation3 + $0x4a0] sm:$0x3] %v2178_v56  ;;  %3176 = vmatpush.msra.mxu2 %v2762_v10  ;;  %3218 = vmatpush.msrb.mxu1 %v2815_v60  ;;  %v7094_v10 = vrot.slane %v6295_v6, 2 }
 0x414   :  { %2217 = vst [vmem:[#allocation3 + $0x4a8] sm:$0x3] %v2179_v20  ;;  %v2957_v8 = vld [vmem:[#allocation3 + $0x768] sm:$0x3f] }
 0x415   :  { %5327 = vmatpush.msk.msra.mxu3 %vm2986_vm9, %v2957_v8  ;;  %2421 = vst [vmem:[#allocation3 + $0x510] sm:$0xc0] %v2395_v31  ;;  %3177 = vmatpush.msra.mxu2 %v2749_v58 }
 0x416   :  { %2434 = vst [vmem:[#allocation3 + $0x578] sm:$0xf] %v2395_v31  ;;  %3219 = vmatpush.msrb.mxu1 %v2802_v0  ;;  %2311 = vrot.lane.b32.xlu1 %v6237_v49, %s5580_s20 }
 0x417   :  { %2086 = vrot.lane.b32.xlu2 %v6700_v30, %s5591_s27  ;;  %3178 = vmatpush.msra.mxu2 %v2736_v41  ;;  %v7036_v55 = vpop.permute.xlu1 %2307  ;;  %v7038_v17 = vpop.permute.xlu2 %2018 }
 0x418   :  { %3220 = vmatpush.msrb.mxu1 %v2789_v14  ;;  %v2327_v59 = vsel %vm301_vm1, %v6850_v33, %v7036_v55  ;;  %v2037_v35 = vsel %vm125_vm5, %v6863_v27, %v7038_v17  ;;  %2088 = vrot.lane.b32.xlu0 %v6925_v26, %s5591_s27  ;;  %v2239_v48 = vpop.permute.xlu0 %2238 }
 0x419   :  { %2353 = vst [vmem:[#allocation3 + $0x510] sm:$0x3f] %v2327_v59  ;;  %3179 = vmatpush.msra.mxu2 %v2723_v11  ;;  %v2259_v12 = vsel %vm257_vm15, %v6971_v18, %v2239_v48 }
 0x41a   :  { %2062 = vst [vmem:[#allocation3 + $0x3d0] sm:$0x3f] %v2037_v35  ;;  %5326 = vmatmul.msk.f32.gmra.mxu2 %vm9728_vm11, %v7003_v32  ;;  %v2750_v35 = vld [vmem:[#allocation3 + $0xf0] sm:$0xff] }
 0x41b   :  { %2285 = vst [vmem:[#allocation3 + $0x4a0] sm:$0xfc] %v2259_v12  ;;  %v2737_v12 = vld [vmem:[#allocation3 + $0x88] sm:$0xff] }
 0x41d   :  { %v2895_v59 = vld [vmem:[#allocation3 + $0x578] sm:$0xff] }
 0x41e   :  { %2242 = vrot.lane.b32.xlu1 %v6943_v16, %s5578_s17 }
 0x41f   :  { %1316 = vrot.lane.b32.xlu2 %v6255_v52, %s5569_s18  ;;  %v1225_v33 = vpop.permute.xlu1 %1224  ;;  %v7056_v27 = vpop.permute.xlu2 %1954 }
 0x420   :  { %v1241_v43 = vsel %vm81_vm10, %v6954_v38, %v1225_v33  ;;  %v1242_v18 = vsel %vm81_vm10, %v1225_v33, %v6931_v24  ;;  %1318 = vrot.lane.b32.xlu0 %v6274_v1, %s5569_s18  ;;  %v7064_v34 = vpop.permute.xlu0 %1535  ;;  %v1973_v5 = vsel %vm81_vm10, %v6978_v51, %v7056_v27  ;;  %v2882_v11 = vld [vmem:[#allocation3 + $0x510] sm:$0xff] }
 0x421   :  { %1266 = vst [vmem:[#allocation3 + $0x38] sm:$0xc0] %v1241_v43  ;;  %v1557_v38 = vsel %vm257_vm15, %v6913_v21, %v7064_v34 }
 0x422   :  { %1267 = vst [vmem:[#allocation3 + $0x40] sm:$0xc0] %v1242_v18 }
 0x423   :  { %1280 = vst [vmem:[#allocation3 + $0xa0] sm:$0xf] %v1241_v43 }
 0x424   :  { %1281 = vst [vmem:[#allocation3 + $0xa8] sm:$0xf] %v1242_v18 }
 0x425   :  { %2616 = vst [vmem:[#allocation3 + $0x640] sm:$0xc0] %v1241_v43 }
 0x426   :  { %2617 = vst [vmem:[#allocation3 + $0x648] sm:$0xc0] %v1242_v18  ;;  %1476 = vrot.lane.b32.xlu1 %v6235_v46, %s5589_s28 }
 0x427   :  { %2629 = vst [vmem:[#allocation3 + $0x6a8] sm:$0xf] %v1241_v43  ;;  %1410 = vrot.lane.b32.xlu2 %v6943_v16, %s5591_s27  ;;  %v7076_v29 = vpop.permute.xlu1 %2536  ;;  %v7078_v56 = vpop.permute.xlu2 %1406 }
 0x428   :  { %2630 = vst [vmem:[#allocation3 + $0x6b0] sm:$0xf] %v1242_v18  ;;  %2022 = vrot.lane.b32.xlu0 %v6235_v46, %s5569_s18  ;;  %v2556_v51 = vsel %vm1850_vm7, %v6998_v15, %v7076_v29  ;;  %v7099_v15 = vld [vmem:[%s9717_s3] sm:$0xff] }
 0x429   :  { %1998 = vst [vmem:[#allocation3 + $0x368] sm:$0xfc] %v1973_v5  ;;  %v7085_v20 = vpop.permute.xlu0 %1312  ;;  %3042 = vmatmul.f32.vlgmr.msrb.gmra.mxu3 %v7099_v15  ;;  %3134 = vmatmul.f32.vlgmr.msrb.gmra.mxu0 %v7099_v15 }
 0x42a   :  { %1583 = vst [vmem:[#allocation3 + $0x158] sm:$0xc0] %v1557_v38  ;;  %v1331_v21 = vsel %vm125_vm5, %v6796_v39, %v7085_v20  ;;  %3088 = vmatmul.f32.vlgmr.msra.gmra.mxu1 %v7099_v15  ;;  %3180 = vmatmul.f32.vlgmr.msra.gmra.mxu2 %v7099_v15 }
 0x42b   :  { %1596 = vst [vmem:[#allocation3 + $0x1c0] sm:$0xf] %v1557_v38  ;;  %v2724_v38 = vld [vmem:[#allocation3 + $0x20] sm:$0xff] }
 0x42c   :  { %2582 = vst [vmem:[#allocation3 + $0x5e0] sm:$0xfc] %v2556_v51  ;;  %v7143_v51 = vrot.slane %v6268_v62, 6 }
 0x42d   :  { %v2921_v22 = vld [vmem:[#allocation3 + $0x648] sm:$0xff]  ;;  %1356 = vst [vmem:[#allocation3 + $0x90] sm:$0xf0] %v1331_v21 }
 0x42e   :  { %3302 = vmatpush.msrb.mxu2 %v2921_v22  ;;  %1370 = vst [vmem:[#allocation3 + $0xf8] sm:$0x3] %v1331_v21  ;;  %1232 = vrot.lane.b32.xlu1 %v7091_v36, %s5574_s11 }
 0x42f   :  { %2649 = vst [vmem:[#allocation3 + $0x698] sm:$0xf0] %v1331_v21  ;;  %2602 = vrot.lane.b32.xlu2 %v7094_v10, %s5574_s11  ;;  %v7105_v39 = vpop.permute.xlu1 %2240  ;;  %v7107_v60 = vpop.permute.xlu2 %1766 }
 0x430   :  { %2662 = vst [vmem:[#allocation3 + $0x700] sm:$0x3] %v1331_v21  ;;  %v2260_v31 = vsel %vm257_vm15, %v2239_v48, %v7105_v39  ;;  %v1788_v8 = vsel %vm1782_vm4, %v6675_v19, %v7107_v60  ;;  %1958 = vrot.lane.b32.xlu0 %v6943_v16, %s5574_s11 }
 0x431   :  { %2286 = vst [vmem:[#allocation3 + $0x4a8] sm:$0xfc] %v2260_v31  ;;  %v7118_v58 = vpop.permute.xlu0 %2020  ;;  %v2763_v14 = vld [vmem:[#allocation3 + $0x158] sm:$0xff] }
 0x432   :  { %v2776_v0 = vld [vmem:[#allocation3 + $0x1c0] sm:$0xff]  ;;  %1814 = vst [vmem:[#allocation3 + $0x298] sm:$0x3f] %v1788_v8  ;;  %v2038_v41 = vsel %vm125_vm5, %v7038_v17, %v7118_v58 }
 0x433   :  { %3221 = vmatpush.msrb.mxu1 %v2776_v0  ;;  %v2908_v19 = vld [vmem:[#allocation3 + $0x5e0] sm:$0xff]  ;;  %2063 = vst [vmem:[#allocation3 + $0x3d8] sm:$0x3f] %v2038_v41 }
 0x434   :  { %3303 = vmatpush.msrb.mxu2 %v2908_v19 }
 0x435   :  { %3222 = vmatpush.msrb.mxu1 %v2763_v14 }
 0x436   :  { %3304 = vmatpush.msrb.mxu2 %v2895_v59  ;;  %1408 = vrot.lane.b32.xlu1 %v6782_v45, %s5591_s27 }
 0x437   :  { %3223 = vmatpush.msrb.mxu1 %v2750_v35  ;;  %2462 = vrot.lane.b32.xlu2 %v6290_v3, %s5588_s1  ;;  %v2083_v48 = vpop.permute.xlu1 %2082 }
 0x438   :  { %3305 = vmatpush.msrb.mxu2 %v2882_v11  ;;  %v2101_v17 = vsel %vm1418_vm13, %v6960_v13, %v2083_v48  ;;  %v2102_v33 = vsel %vm1418_vm13, %v2083_v48, %v7016_v2  ;;  %v7133_v43 = vpop.permute.xlu2 %1230  ;;  %2464 = vrot.lane.b32.xlu0 %v6299_v7, %s5588_s1  ;;  %v2869_v18 = vld [vmem:[#allocation3 + $0x4a8] sm:$0xff] }
 0x439   :  { %3224 = vmatpush.msrb.mxu1 %v2737_v12  ;;  %2126 = vst [vmem:[#allocation3 + $0x3d0] sm:$0xc0] %v2101_v17  ;;  %v7137_v5 = vpop.permute.xlu0 %1956  ;;  %v2931_v12 = vld [vmem:[#allocation3 + $0x698] sm:$0xff] }
 0x43a   :  { %2127 = vst [vmem:[#allocation3 + $0x3d8] sm:$0xc0] %v2102_v33  ;;  %3306 = vmatpush.msrb.mxu2 %v2869_v18  ;;  %v1974_v13 = vsel %vm81_vm10, %v7056_v27, %v7137_v5 }
 0x43b   :  { %3225 = vmatpush.msrb.mxu1 %v2724_v38  ;;  %2139 = vst [vmem:[#allocation3 + $0x438] sm:$0xf] %v2101_v17  ;;  %v7184_v17 = vrot.slane %v6266_v61, 6 }
 0x43c   :  { %2140 = vst [vmem:[#allocation3 + $0x440] sm:$0xf] %v2102_v33  ;;  %v2907_v33 = vld [vmem:[#allocation3 + $0x5d8] sm:$0xff] }
 0x43d   :  { %1999 = vst [vmem:[#allocation3 + $0x370] sm:$0xfc] %v1974_v13  ;;  %v2894_v13 = vld [vmem:[#allocation3 + $0x570] sm:$0xff] }
 0x43e   :  { %2024 = vrot.lane.b32.xlu1 %v6237_v49, %s5569_s18 }
 0x43f   :  { %2544 = vrot.lane.b32.xlu2 %v7143_v51, %s5590_s26  ;;  %v1405_v21 = vpop.permute.xlu1 %1404 }
 0x440   :  { %v1424_v22 = vsel %vm1418_vm13, %v6843_v44, %v1405_v21  ;;  %v1425_v27 = vsel %vm1418_vm13, %v1405_v21, %v7078_v56  ;;  %v7153_v31 = vpop.permute.xlu2 %1699  ;;  %1838 = vrot.lane.b32.xlu0 %v6725_v40, %s5590_s26 }
 0x441   :  { %1449 = vst [vmem:[#allocation3 + $0xf8] sm:$0xfc] %v1424_v22  ;;  %v7157_v8 = vpop.permute.xlu0 %1834  ;;  %v1720_v0 = vsel %vm345_vm14, %v6870_v28, %v7153_v31  ;;  %v2843_v19 = vld [vmem:[#allocation3 + $0x3d8] sm:$0xff] }
 0x442   :  { %1450 = vst [vmem:[#allocation3 + $0x100] sm:$0xfc] %v1425_v27  ;;  %v1856_v44 = vsel %vm1850_vm7, %v6893_v23, %v7157_v8 }
 0x443   :  { %2684 = vst [vmem:[#allocation3 + $0x700] sm:$0xfc] %v1424_v22  ;;  %v2856_v41 = vld [vmem:[#allocation3 + $0x440] sm:$0xff] }
 0x444   :  { %2685 = vst [vmem:[#allocation3 + $0x708] sm:$0xfc] %v1425_v27  ;;  %3307 = vmatpush.msrb.mxu2 %v2856_v41  ;;  %v2830_v28 = vld [vmem:[#allocation3 + $0x370] sm:$0xff]  ;;  %v2881_v27 = vld [vmem:[#allocation3 + $0x508] sm:$0xff] }
 0x445   :  { %1746 = vst [vmem:[#allocation3 + $0x230] sm:$0xfc] %v1720_v0  ;;  %v2868_v0 = vld [vmem:[#allocation3 + $0x4a0] sm:$0xff] }
 0x446   :  { %1882 = vst [vmem:[#allocation3 + $0x298] sm:$0xc0] %v1856_v44  ;;  %3308 = vmatpush.msrb.mxu2 %v2843_v19  ;;  %1960 = vrot.lane.b32.xlu1 %v6948_v47, %s5574_s11  ;;  %v2842_v19 = vld [vmem:[#allocation3 + $0x3d0] sm:$0xff] }
 0x447   :  { %1895 = vst [vmem:[#allocation3 + $0x300] sm:$0xf] %v1856_v44  ;;  %2381 = vrot.lane.b32.xlu2 %v6875_v25, %s5582_s22  ;;  %v7169_v14 = vpop.permute.xlu1 %1472 }
 0x448   :  { %3309 = vmatpush.msrb.mxu2 %v2830_v28  ;;  %v1491_v23 = vsel %vm1484_vm6, %v6987_v4, %v7169_v14  ;;  %v7174_v59 = vpop.permute.xlu2 %1539  ;;  %2383 = vrot.lane.b32.xlu0 %v7091_v36, %s5582_s22  ;;  %v2920_v4 = vld [vmem:[#allocation3 + $0x640] sm:$0xff] }
 0x449   :  { %1516 = vst [vmem:[#allocation3 + $0x168] sm:$0x3f] %v1491_v23  ;;  %v7178_v35 = vpop.permute.xlu0 %1768 }
 0x44a   :  { %2707 = vst [vmem:[#allocation3 + $0x770] sm:$0x3f] %v1491_v23  ;;  %v2944_v11 = vld [vmem:[#allocation3 + $0x700] sm:$0xff]  ;;  %v1789_v48 = vsel %vm1782_vm4, %v7107_v60, %v7178_v35 }
 0x44b   :  { %3201 = vmatpush.msra.mxu3 %v2944_v11  ;;  %1815 = vst [vmem:[#allocation3 + $0x2a0] sm:$0x3f] %v1789_v48  ;;  %v2829_v11 = vld [vmem:[#allocation3 + $0x368] sm:$0xff] }
 0x44d   :  { %3202 = vmatpush.msra.mxu3 %v2931_v12 }
 0x44e   :  { %2542 = vrot.lane.b32.xlu1 %v7184_v17, %s5590_s26  ;;  %v2816_v48 = vld [vmem:[#allocation3 + $0x300] sm:$0xff] }
 0x44f   :  { %3256 = vmatpush.msrb.mxu3 %v2920_v4  ;;  %1772 = vrot.lane.b32.xlu2 %v6235_v46, %s5588_s1  ;;  %v7190_v18 = vpop.permute.xlu1 %1314 }
 0x450   :  { %v1332_v60 = vsel %vm125_vm5, %v7085_v20, %v7190_v18  ;;  %v7195_v38 = vpop.permute.xlu2 %2538  ;;  %2313 = vrot.lane.b32.xlu0 %v6266_v61, %s5580_s20 }
 0x451   :  { %3257 = vmatpush.msrb.mxu3 %v2907_v33  ;;  %1357 = vst [vmem:[#allocation3 + $0x98] sm:$0xf0] %v1332_v60  ;;  %v2958_v21 = vld [vmem:[#allocation3 + $0x770] sm:$0x3f]  ;;  %v7199_v22 = vpop.permute.xlu0 %1618  ;;  %v2557_v46 = vsel %vm1850_vm7, %v7076_v29, %v7195_v38  ;;  %v2855_v29 = vld [vmem:[#allocation3 + $0x438] sm:$0xff] }
 0x452   :  { %1371 = vst [vmem:[#allocation3 + $0x100] sm:$0x3] %v1332_v60  ;;  %5330 = vmatpush.msk.msra.mxu0 %vm2986_vm9, %v2958_v21  ;;  %v1639_v20 = vsel %vm301_vm1, %v6859_v63, %v7199_v22 }
 0x453   :  { %3258 = vmatpush.msrb.mxu3 %v2894_v13  ;;  %2650 = vst [vmem:[#allocation3 + $0x6a0] sm:$0xf0] %v1332_v60 }
 0x454   :  { %2663 = vst [vmem:[#allocation3 + $0x708] sm:$0x3] %v1332_v60 }
 0x455   :  { %3259 = vmatpush.msrb.mxu3 %v2881_v27  ;;  %2583 = vst [vmem:[#allocation3 + $0x5e8] sm:$0xfc] %v2557_v46 }
 0x456   :  { %1665 = vst [vmem:[#allocation3 + $0x1c8] sm:$0xf0] %v1639_v20  ;;  %1840 = vrot.lane.b32.xlu1 %v6700_v30, %s5590_s26 }
 0x457   :  { %3260 = vmatpush.msrb.mxu3 %v2868_v0  ;;  %1678 = vst [vmem:[#allocation3 + $0x230] sm:$0x3] %v1639_v20  ;;  %1622 = vrot.lane.b32.xlu2 %v6255_v52, %s5580_s20  ;;  %v7212_v41 = vpop.permute.xlu1 %1836 }
 0x458   :  { %v1857_v63 = vsel %vm1850_vm7, %v7157_v8, %v7212_v41  ;;  %v7217_v44 = vpop.permute.xlu2 %2379  ;;  %1624 = vrot.lane.b32.xlu0 %v6274_v1, %s5580_s20  ;;  %v2803_v1 = vld [vmem:[#allocation3 + $0x298] sm:$0xff] }
 0x459   :  { %3261 = vmatpush.msrb.mxu3 %v2855_v29  ;;  %1883 = vst [vmem:[#allocation3 + $0x2a0] sm:$0xc0] %v1857_v63  ;;  %v7221_v28 = vpop.permute.xlu0 %1701 }
 0x45a   :  { %1896 = vst [vmem:[#allocation3 + $0x308] sm:$0xf] %v1857_v63  ;;  %v1721_v52 = vsel %vm345_vm14, %v7153_v31, %v7221_v28  ;;  %v2932_v8 = vld [vmem:[#allocation3 + $0x6a0] sm:$0xff] }
 0x45b   :  { %3262 = vmatpush.msrb.mxu3 %v2842_v19  ;;  %v2945_v23 = vld [vmem:[#allocation3 + $0x708] sm:$0xff]  ;;  %1747 = vst [vmem:[#allocation3 + $0x238] sm:$0xfc] %v1721_v52 }
 0x45c   :  { %3247 = vmatpush.msra.mxu0 %v2945_v23 }
 0x45d   :  { %3263 = vmatpush.msrb.mxu3 %v2829_v11 }
 0x45e   :  { %3248 = vmatpush.msra.mxu0 %v2932_v8  ;;  %1770 = vrot.lane.b32.xlu1 %v6209_v37, %s5588_s1  ;;  %v2790_v60 = vld [vmem:[#allocation3 + $0x230] sm:$0xff] }
 0x45f   :  { %3264 = vmatpush.msrb.mxu3 %v2816_v48  ;;  %1705 = vrot.lane.b32.xlu2 %v6943_v16, %s5582_s22  ;;  %v1229_v12 = vpop.permute.xlu1 %1228 }
 0x460   :  { %v1243_v31 = vsel %vm81_vm10, %v6931_v24, %v1229_v12  ;;  %v1244_v4 = vsel %vm81_vm10, %v1229_v12, %v7133_v43  ;;  %v7234_v33 = vpop.permute.xlu2 %2163  ;;  %2167 = vrot.lane.b32.xlu0 %v6290_v3, %s5589_s28  ;;  %v2804_v16 = vld [vmem:[#allocation3 + $0x2a0] sm:$0xff] }
 0x461   :  { %3265 = vmatpush.msrb.mxu3 %v2803_v1  ;;  %1268 = vst [vmem:[#allocation3 + $0x48] sm:$0xc0] %v1243_v31  ;;  %v2817_v37 = vld [vmem:[#allocation3 + $0x308] sm:$0xff]  ;;  %v2459_v13 = vpop.permute.xlu0 %2458  ;;  %v2180_v24 = vsel %vm1484_vm6, %v6969_v54, %v7234_v33 }
 0x462   :  { %1269 = vst [vmem:[#allocation3 + $0x50] sm:$0xc0] %v1244_v4  ;;  %3310 = vmatpush.msrb.mxu2 %v2817_v37  ;;  %v2477_v46 = vsel %vm1782_vm4, %v6952_v50, %v2459_v13 }
 0x463   :  { %3266 = vmatpush.msrb.mxu3 %v2790_v60  ;;  %1282 = vst [vmem:[#allocation3 + $0xb0] sm:$0xf] %v1243_v31 }
 0x464   :  { %1283 = vst [vmem:[#allocation3 + $0xb8] sm:$0xf] %v1244_v4  ;;  %3311 = vmatpush.msrb.mxu2 %v2804_v16  ;;  %v2739_v16 = vld [vmem:[#allocation3 + $0x98] sm:$0xff] }
 0x465   :  { %2618 = vst [vmem:[#allocation3 + $0x650] sm:$0xc0] %v1243_v31 }
 0x466   :  { %2619 = vst [vmem:[#allocation3 + $0x658] sm:$0xc0] %v1244_v4  ;;  %2315 = vrot.lane.b32.xlu1 %v6268_v62, %s5580_s20 }
 0x467   :  { %2631 = vst [vmem:[#allocation3 + $0x6b8] sm:$0xf] %v1243_v31  ;;  %2246 = vrot.lane.b32.xlu2 %v7184_v17, %s5578_s17  ;;  %v7245_v21 = vpop.permute.xlu1 %1620  ;;  %v2752_v31 = vld [vmem:[#allocation3 + $0x100] sm:$0xff] }
 0x468   :  { %2632 = vst [vmem:[#allocation3 + $0x6c0] sm:$0xf] %v1244_v4  ;;  %v7249_v20 = vpop.permute.xlu2 %2244  ;;  %2248 = vrot.lane.b32.xlu0 %v7143_v51, %s5578_s17  ;;  %v1640_v27 = vsel %vm301_vm1, %v7199_v22, %v7245_v21 }
 0x469   :  { %2205 = vst [vmem:[#allocation3 + $0x448] sm:$0xf0] %v2180_v24  ;;  %v7253_v54 = vpop.permute.xlu0 %2540 }
 0x46a   :  { %2218 = vst [vmem:[#allocation3 + $0x4b0] sm:$0x3] %v2180_v24  ;;  %v2558_v0 = vsel %vm1850_vm7, %v7195_v38, %v7253_v54 }
 0x46b   :  { %2503 = vst [vmem:[#allocation3 + $0x580] sm:$0xf0] %v2477_v46 }
 0x46c   :  { %2516 = vst [vmem:[#allocation3 + $0x5e8] sm:$0x3] %v2477_v46  ;;  %v2725_v46 = vld [vmem:[#allocation3 + $0x28] sm:$0xff] }
 0x46d   :  { %1666 = vst [vmem:[#allocation3 + $0x1d0] sm:$0xf0] %v1640_v27 }
 0x46e   :  { %1679 = vst [vmem:[#allocation3 + $0x238] sm:$0x3] %v1640_v27  ;;  %1703 = vrot.lane.b32.xlu1 %v6782_v45, %s5582_s22  ;;  %v2726_v27 = vld [vmem:[#allocation3 + $0x30] sm:$0xff] }
 0x46f   :  { %2584 = vst [vmem:[#allocation3 + $0x5f0] sm:$0xfc] %v2558_v0  ;;  %1480 = vrot.lane.b32.xlu2 %v6266_v61, %s5589_s28  ;;  %v1538_v50 = vpop.permute.xlu1 %1537 }
 0x470   :  { %v1558_v29 = vsel %vm257_vm15, %v7064_v34, %v1538_v50  ;;  %v1559_v22 = vsel %vm257_vm15, %v1538_v50, %v7174_v59  ;;  %1541 = vrot.lane.b32.xlu0 %v6725_v40, %s5578_s17 }
 0x471   :  { %1584 = vst [vmem:[#allocation3 + $0x160] sm:$0xc0] %v1558_v29  ;;  %v7271_v38 = vpop.permute.xlu2 %2086  ;;  %v7273_v63 = vpop.permute.xlu0 %2309 }
 0x472   :  { %1585 = vst [vmem:[#allocation3 + $0x168] sm:$0xc0] %v1559_v22  ;;  %v2103_v45 = vsel %vm1418_vm13, %v7016_v2, %v7271_v38  ;;  %v2328_v34 = vsel %vm301_vm1, %v7036_v55, %v7273_v63 }
 0x473   :  { %1597 = vst [vmem:[#allocation3 + $0x1c8] sm:$0xf] %v1558_v29 }
 0x474   :  { %1598 = vst [vmem:[#allocation3 + $0x1d0] sm:$0xf] %v1559_v22 }
 0x475   :  { %2128 = vst [vmem:[#allocation3 + $0x3e0] sm:$0xc0] %v2103_v45  ;;  %v2791_v19 = vld [vmem:[#allocation3 + $0x238] sm:$0xff] }
 0x476   :  { %2141 = vst [vmem:[#allocation3 + $0x448] sm:$0xf] %v2103_v45  ;;  %3312 = vmatpush.msrb.mxu2 %v2791_v19  ;;  %2169 = vrot.lane.b32.xlu1 %v6299_v7, %s5589_s28 }
 0x477   :  { %2354 = vst [vmem:[#allocation3 + $0x518] sm:$0x3f] %v2328_v34  ;;  %2090 = vrot.lane.b32.xlu2 %v6875_v25, %s5591_s27 }
 0x478   :  { %v7285_v40 = vpop.permute.xlu1 %2460  ;;  %2092 = vrot.lane.b32.xlu0 %v7091_v36, %s5591_s27  ;;  %v2764_v48 = vld [vmem:[#allocation3 + $0x160] sm:$0xff] }
 0x479   :  { %v2478_v2 = vsel %vm1782_vm4, %v2459_v13, %v7285_v40  ;;  %v7291_v55 = vpop.permute.xlu2 %1316  ;;  %v2765_v12 = vld [vmem:[#allocation3 + $0x168] sm:$0xff]  ;;  %v2738_v13 = vld [vmem:[#allocation3 + $0x90] sm:$0xff] }
 0x47a   :  { %2504 = vst [vmem:[#allocation3 + $0x588] sm:$0xf0] %v2478_v2  ;;  %v1333_v52 = vsel %vm125_vm5, %v7190_v18, %v7291_v55  ;;  %v2777_v23 = vld [vmem:[#allocation3 + $0x1c8] sm:$0xff]  ;;  %v7296_v11 = vpop.permute.xlu0 %2165  ;;  %v2751_v18 = vld [vmem:[#allocation3 + $0xf8] sm:$0xff] }
 0x47b   :  { %2517 = vst [vmem:[#allocation3 + $0x5f0] sm:$0x3] %v2478_v2  ;;  %3267 = vmatpush.msrb.mxu3 %v2777_v23  ;;  %v2778_v8 = vld [vmem:[#allocation3 + $0x1d0] sm:$0xff]  ;;  %v2181_v1 = vsel %vm1484_vm6, %v7234_v33, %v7296_v11 }
 0x47c   :  { %1358 = vst [vmem:[#allocation3 + $0xa0] sm:$0xf0] %v1333_v52  ;;  %3313 = vmatpush.msrb.mxu2 %v2778_v8 }
 0x47d   :  { %1372 = vst [vmem:[#allocation3 + $0x108] sm:$0x3] %v1333_v52  ;;  %3268 = vmatpush.msrb.mxu3 %v2764_v48  ;;  %v7379_v48 = vld [vmem:[%s9717_s3 + $0x8] sm:$0xff] }
 0x47e   :  { %2651 = vst [vmem:[#allocation3 + $0x6a8] sm:$0xf0] %v1333_v52  ;;  %3314 = vmatpush.msrb.mxu2 %v2765_v12  ;;  %1478 = vrot.lane.b32.xlu1 %v6237_v49, %s5589_s28 }
 0x47f   :  { %2664 = vst [vmem:[#allocation3 + $0x710] sm:$0x3] %v1333_v52  ;;  %1322 = vrot.lane.b32.xlu2 %v6290_v3, %s5569_s18  ;;  %3269 = vmatpush.msrb.mxu3 %v2751_v18 }
 0x480   :  { %2206 = vst [vmem:[#allocation3 + $0x450] sm:$0xf0] %v2181_v1  ;;  %3315 = vmatpush.msrb.mxu2 %v2752_v31  ;;  %v2378_v4 = vpop.permute.xlu1 %2377  ;;  %1412 = vrot.lane.b32.xlu0 %v6948_v47, %s5591_s27 }
 0x481   :  { %2219 = vst [vmem:[#allocation3 + $0x4b8] sm:$0x3] %v2181_v1  ;;  %v2396_v33 = vsel %vm345_vm14, %v7024_v42, %v2378_v4  ;;  %v2397_v60 = vsel %vm345_vm14, %v2378_v4, %v7217_v44  ;;  %v7309_v37 = vpop.permute.xlu2 %1410  ;;  %3270 = vmatpush.msrb.mxu3 %v2738_v13 }
 0x482   :  { %2422 = vst [vmem:[#allocation3 + $0x518] sm:$0xc0] %v2396_v33  ;;  %3316 = vmatpush.msrb.mxu2 %v2739_v16  ;;  %v1475_v24 = vpop.permute.xlu0 %1474 }
 0x483   :  { %2423 = vst [vmem:[#allocation3 + $0x520] sm:$0xc0] %v2397_v60  ;;  %v1492_v42 = vsel %vm1484_vm6, %v7169_v14, %v1475_v24  ;;  %3271 = vmatpush.msrb.mxu3 %v2725_v46 }
 0x484   :  { %2435 = vst [vmem:[#allocation3 + $0x580] sm:$0xf] %v2396_v33  ;;  %3317 = vmatpush.msrb.mxu2 %v2726_v27 }
 0x485   :  { %2436 = vst [vmem:[#allocation3 + $0x588] sm:$0xf] %v2397_v60 }
 0x486   :  { %1517 = vst [vmem:[#allocation3 + $0x170] sm:$0x3f] %v1492_v42  ;;  %1543 = vrot.lane.b32.xlu1 %v6700_v30, %s5578_s17 }
 0x487   :  { %2708 = vst [vmem:[#allocation3 + $0x778] sm:$0x3f] %v1492_v42  ;;  %2026 = vrot.lane.b32.xlu2 %v6266_v61, %s5569_s18  ;;  %v7461_v42 = vrot.slane %v6313_v57, 6 }
 0x488   :  { %v7319_v0 = vpop.permute.xlu1 %2311  ;;  %2028 = vrot.lane.b32.xlu0 %v6268_v62, %s5569_s18 }
 0x489   :  { %v2329_v50 = vsel %vm301_vm1, %v7273_v63, %v7319_v0  ;;  %v7324_v29 = vpop.permute.xlu2 %2602 }
 0x48a   :  { %2355 = vst [vmem:[#allocation3 + $0x520] sm:$0x3f] %v2329_v50  ;;  %v7328_v14 = vpop.permute.xlu0 %2088 }
 0x48b   :  { %v2104_v30 = vsel %vm1418_vm13, %v7271_v38, %v7328_v14  ;;  %v7349_v38 = vld [vmem:[%s9717_s3 + $0x10] sm:$0xff] }
 0x48c   :  { %2129 = vst [vmem:[#allocation3 + $0x3e8] sm:$0xc0] %v2104_v30  ;;  %3091 = vmatmul.f32.gmra.mxu1 %v7349_v38  ;;  %3137 = vmatmul.f32.gmra.mxu0 %v7349_v38 }
 0x48d   :  { %2142 = vst [vmem:[#allocation3 + $0x450] sm:$0xf] %v2104_v30  ;;  %3045 = vmatmul.f32.gmra.mxu3 %v7349_v38  ;;  %3183 = vmatmul.f32.gmra.mxu2 %v7349_v38  ;;  %v2922_v30 = vld [vmem:[#allocation3 + $0x650] sm:$0xff] }
 0x48e   :  { %v2959_v22 = vld [vmem:[#allocation3 + $0x778] sm:$0x3f]  ;;  %1320 = vrot.lane.b32.xlu1 %v6282_v53, %s5569_s18 }
 0x48f   :  { %5333 = vmatpush.msk.msrb.mxu0 %vm2986_vm9, %v2959_v22  ;;  %1964 = vrot.lane.b32.xlu2 %v7143_v51, %s5574_s11  ;;  %v2923_v22 = vld [vmem:[#allocation3 + $0x658] sm:$0xff] }
 0x490   :  { %v2243_v63 = vpop.permute.xlu1 %2242  ;;  %1842 = vrot.lane.b32.xlu0 %v6925_v26, %s5590_s26 }
 0x491   :  { %v2261_v45 = vsel %vm257_vm15, %v7105_v39, %v2243_v63  ;;  %v2262_v34 = vsel %vm257_vm15, %v2243_v63, %v7249_v20  ;;  %v7342_v19 = vpop.permute.xlu2 %2462 }
 0x492   :  { %2287 = vst [vmem:[#allocation3 + $0x4b0] sm:$0xfc] %v2261_v45  ;;  %v2479_v2 = vsel %vm1782_vm4, %v7285_v40, %v7342_v19  ;;  %v7354_v52 = vpop.permute.xlu0 %1318 }
 0x493   :  { %2288 = vst [vmem:[#allocation3 + $0x4b8] sm:$0xfc] %v2262_v34  ;;  %v1334_v39 = vsel %vm125_vm5, %v7291_v55, %v7354_v52  ;;  %v2909_v34 = vld [vmem:[#allocation3 + $0x5e8] sm:$0xff] }
 0x494   :  { %2505 = vst [vmem:[#allocation3 + $0x590] sm:$0xf0] %v2479_v2  ;;  %3226 = vmatmul.f32.vlgmr.msrb.gmra.mxu1 %v7099_v15  ;;  %5331 = vmatmul.msk.f32.vlgmr.msra.gmra.mxu0 %vm9728_vm11, %v7379_v48 }
 0x495   :  { %2518 = vst [vmem:[#allocation3 + $0x5f8] sm:$0x3] %v2479_v2  ;;  %5328 = vmatmul.msk.f32.vlgmr.msra.gmra.mxu3 %vm9728_vm11, %v7379_v48  ;;  %3318 = vmatmul.f32.vlgmr.msrb.gmra.mxu2 %v7099_v15 }
 0x496   :  { %1359 = vst [vmem:[#allocation3 + $0xa8] sm:$0xf0] %v1334_v39  ;;  %1414 = vrot.lane.b32.xlu1 %v7184_v17, %s5591_s27 }
 0x497   :  { %1373 = vst [vmem:[#allocation3 + $0x110] sm:$0x3] %v1334_v39  ;;  %1774 = vrot.lane.b32.xlu2 %v6237_v49, %s5588_s1 }
 0x498   :  { %2652 = vst [vmem:[#allocation3 + $0x6b0] sm:$0xf0] %v1334_v39  ;;  %v7367_v40 = vpop.permute.xlu1 %1476  ;;  %1776 = vrot.lane.b32.xlu0 %v6266_v61, %s5588_s1 }
 0x499   :  { %2665 = vst [vmem:[#allocation3 + $0x718] sm:$0x3] %v1334_v39  ;;  %v1493_v55 = vsel %vm1484_vm6, %v1475_v24, %v7367_v40  ;;  %v7371_v23 = vpop.permute.xlu2 %2544  ;;  %v2896_v39 = vld [vmem:[#allocation3 + $0x580] sm:$0xff] }
 0x49a   :  { %1518 = vst [vmem:[#allocation3 + $0x178] sm:$0x3f] %v1493_v55  ;;  %v2023_v8 = vpop.permute.xlu0 %2022 }
 0x49b   :  { %2709 = vst [vmem:[#allocation3 + $0x780] sm:$0x3f] %v1493_v55  ;;  %v2039_v49 = vsel %vm125_vm5, %v7118_v58, %v2023_v8  ;;  %v2897_v55 = vld [vmem:[#allocation3 + $0x588] sm:$0xff] }
 0x49c   :  { %2064 = vst [vmem:[#allocation3 + $0x3e0] sm:$0x3f] %v2039_v49  ;;  %3229 = vmatmul.f32.gmra.mxu1 %v7349_v38  ;;  %5332 = vmatmul.msk.f32.gmra.mxu0 %vm9728_vm11, %v7003_v32  ;;  %v2884_v49 = vld [vmem:[#allocation3 + $0x520] sm:$0xff] }
 0x49d   :  { %5329 = vmatmul.msk.f32.gmra.mxu3 %vm9728_vm11, %v7003_v32  ;;  %3321 = vmatmul.f32.gmra.mxu2 %v7349_v38 }
 0x49e   :  { %1962 = vrot.lane.b32.xlu1 %v7184_v17, %s5574_s11 }
 0x49f   :  { %1628 = vrot.lane.b32.xlu2 %v6290_v3, %s5580_s20  ;;  %v2934_v50 = vld [vmem:[#allocation3 + $0x6b0] sm:$0xff] }
 0x4a0   :  { %v1233_v61 = vpop.permute.xlu1 %1232  ;;  %1707 = vrot.lane.b32.xlu0 %v6948_v47, %s5582_s22 }
 0x4a1   :  { %v1245_v1 = vsel %vm81_vm10, %v7133_v43, %v1233_v61  ;;  %1272 = vst.msk [vmem:[#allocation3 + $0x60] sm:$0xc0] %vm1271_vm12, %v1233_v61  ;;  %v7395_v58 = vpop.permute.xlu2 %2381  ;;  %v2606_v3 = vsel %vm81_vm10, %v1233_v61, %v7324_v29  ;;  %v2360_v43 = vrot.slane %v6313_v57, 2 }
 0x4a2   :  { %1270 = vst [vmem:[#allocation3 + $0x58] sm:$0xc0] %v1245_v1  ;;  %v2960_v12 = vld [vmem:[#allocation3 + $0x780] sm:$0x3f]  ;;  %v7399_v18 = vpop.permute.xlu0 %1958  ;;  %v2398_v47 = vsel %vm345_vm14, %v7217_v44, %v7395_v58 }
 0x4a3   :  { %1284 = vst [vmem:[#allocation3 + $0xc0] sm:$0xf] %v1245_v1  ;;  %5336 = vmatpush.msk.msra.mxu1 %vm2986_vm9, %v2960_v12  ;;  %v1975_v32 = vsel %vm81_vm10, %v7137_v5, %v7399_v18 }
 0x4a4   :  { %1286 = vst.msk [vmem:[#allocation3 + $0xc8] sm:$0xf] %vm1285_vm8, %v1233_v61  ;;  %v2870_v61 = vld [vmem:[#allocation3 + $0x4b0] sm:$0xff] }
 0x4a5   :  { %2620 = vst [vmem:[#allocation3 + $0x660] sm:$0xc0] %v1245_v1  ;;  %3272 = vmatmul.f32.vlgmr.msrb.gmra.mxu3 %v7099_v15 }
 0x4a6   :  { %2621 = vst [vmem:[#allocation3 + $0x668] sm:$0xc0] %v2606_v3  ;;  %1844 = vrot.lane.b32.xlu1 %v6875_v25, %s5590_s26 }
 0x4a7   :  { %2633 = vst [vmem:[#allocation3 + $0x6c8] sm:$0xf] %v1245_v1  ;;  %2604 = vrot.lane.b32.xlu2 %v2360_v43, %s5574_s11 }
 0x4a8   :  { %2634 = vst [vmem:[#allocation3 + $0x6d0] sm:$0xf] %v2606_v3  ;;  %v1409_v31 = vpop.permute.xlu1 %1408  ;;  %1545 = vrot.lane.b32.xlu0 %v6925_v26, %s5578_s17  ;;  %v2441_v26 = vrot.slane %v6313_v57, 4 }
 0x4a9   :  { %2424 = vst [vmem:[#allocation3 + $0x528] sm:$0xc0] %v2398_v47  ;;  %v1426_v44 = vsel %vm1418_vm13, %v7078_v56, %v1409_v31  ;;  %v7425_v4 = vpop.permute.xlu2 %1772  ;;  %v1427_v33 = vsel %vm1418_vm13, %v1409_v31, %v7309_v37  ;;  %v2858_v31 = vld [vmem:[#allocation3 + $0x450] sm:$0xff] }
 0x4aa   :  { %2437 = vst [vmem:[#allocation3 + $0x590] sm:$0xf] %v2398_v47  ;;  %v7431_v60 = vpop.permute.xlu0 %2464  ;;  %v2857_v47 = vld [vmem:[#allocation3 + $0x448] sm:$0xff] }
 0x4ab   :  { %2000 = vst [vmem:[#allocation3 + $0x378] sm:$0xfc] %v1975_v32  ;;  %v2480_v56 = vsel %vm1782_vm4, %v7342_v19, %v7431_v60  ;;  %v2910_v19 = vld [vmem:[#allocation3 + $0x5f0] sm:$0xff] }
 0x4ac   :  { %1451 = vst [vmem:[#allocation3 + $0x108] sm:$0xfc] %v1426_v44 }
 0x4ad   :  { %1452 = vst [vmem:[#allocation3 + $0x110] sm:$0xfc] %v1427_v33  ;;  %3275 = vmatmul.f32.gmra.mxu3 %v7349_v38 }
 0x4ae   :  { %2686 = vst [vmem:[#allocation3 + $0x710] sm:$0xfc] %v1426_v44  ;;  %1626 = vrot.lane.b32.xlu1 %v6282_v53, %s5580_s20  ;;  %v7505_v44 = vld [vmem:[%s9717_s3 + $0x18] sm:$0xff] }
 0x4af   :  { %2687 = vst [vmem:[#allocation3 + $0x718] sm:$0xfc] %v1427_v33  ;;  %2466 = vrot.lane.b32.xlu2 %v6305_v9, %s5588_s1 }
 0x4b0   :  { %2506 = vst [vmem:[#allocation3 + $0x598] sm:$0xf0] %v2480_v56  ;;  %v7442_v5 = vpop.permute.xlu1 %2024  ;;  %2468 = vrot.lane.b32.xlu0 %v2441_v26, %s5588_s1 }
 0x4b1   :  { %2519 = vst [vmem:[#allocation3 + $0x600] sm:$0x3] %v2480_v56  ;;  %v2040_v15 = vsel %vm125_vm5, %v2023_v8, %v7442_v5  ;;  %v7446_v13 = vpop.permute.xlu2 %1622  ;;  %v2883_v8 = vld [vmem:[#allocation3 + $0x518] sm:$0xff] }
 0x4b2   :  { %2065 = vst [vmem:[#allocation3 + $0x3e8] sm:$0x3f] %v2040_v15  ;;  %v1641_v53 = vsel %vm301_vm1, %v7245_v21, %v7446_v13  ;;  %v7454_v16 = vpop.permute.xlu0 %1838  ;;  %v2933_v21 = vld [vmem:[#allocation3 + $0x6a8] sm:$0xff]  ;;  %v2831_v15 = vld [vmem:[#allocation3 + $0x378] sm:$0xff] }
 0x4b3   :  { %1667 = vst [vmem:[#allocation3 + $0x1d8] sm:$0xf0] %v1641_v53  ;;  %v1858_v24 = vsel %vm1850_vm7, %v7212_v41, %v7454_v16 }
 0x4b4   :  { %1680 = vst [vmem:[#allocation3 + $0x240] sm:$0x3] %v1641_v53 }
 0x4b5   :  { %v2946_v46 = vld [vmem:[#allocation3 + $0x710] sm:$0xff]  ;;  %1884 = vst [vmem:[#allocation3 + $0x2a8] sm:$0xc0] %v1858_v24 }
 0x4b6   :  { %3293 = vmatpush.msrb.mxu0 %v2946_v46  ;;  %v2947_v27 = vld [vmem:[#allocation3 + $0x718] sm:$0xff]  ;;  %1897 = vst [vmem:[#allocation3 + $0x310] sm:$0xf] %v1858_v24  ;;  %1709 = vrot.lane.b32.xlu1 %v7184_v17, %s5582_s22 }
 0x4b7   :  { %3339 = vmatpush.msra.mxu1 %v2947_v27  ;;  %2548 = vrot.lane.b32.xlu2 %v7461_v42, %s5590_s26 }
 0x4b8   :  { %3294 = vmatpush.msrb.mxu0 %v2933_v21  ;;  %v7467_v41 = vpop.permute.xlu1 %1960  ;;  %2385 = vrot.lane.b32.xlu0 %v7094_v10, %s5582_s22 }
 0x4b9   :  { %3340 = vmatpush.msra.mxu1 %v2934_v50  ;;  %v1976_v63 = vsel %vm81_vm10, %v7399_v18, %v7467_v41  ;;  %v7472_v45 = vpop.permute.xlu2 %1705  ;;  %5334 = vmatmul.msk.f32.vlgmr.msrb.gmra.mxu0 %vm9728_vm11, %v7379_v48  ;;  %v2845_v33 = vld [vmem:[#allocation3 + $0x3e8] sm:$0xff] }
 0x4ba   :  { %3348 = vmatpush.msra.mxu0 %v2922_v30  ;;  %2001 = vst [vmem:[#allocation3 + $0x380] sm:$0xfc] %v1976_v63  ;;  %v7476_v17 = vpop.permute.xlu0 %2383  ;;  %5337 = vmatmul.msk.f32.vlgmr.msra.gmra.mxu1 %vm9728_vm11, %v7379_v48 }
 0x4bb   :  { %3394 = vmatpush.msrb.mxu1 %v2923_v22  ;;  %v2399_v2 = vsel %vm345_vm14, %v7395_v58, %v7476_v17  ;;  %v2871_v58 = vld [vmem:[#allocation3 + $0x4b8] sm:$0xff] }
 0x4bc   :  { %3349 = vmatpush.msra.mxu0 %v2909_v34  ;;  %2425 = vst [vmem:[#allocation3 + $0x530] sm:$0xc0] %v2399_v2 }
 0x4bd   :  { %3395 = vmatpush.msrb.mxu1 %v2910_v19  ;;  %2438 = vst [vmem:[#allocation3 + $0x598] sm:$0xf] %v2399_v2  ;;  %v2818_v53 = vld [vmem:[#allocation3 + $0x310] sm:$0xff] }
 0x4be   :  { %3350 = vmatpush.msra.mxu0 %v2896_v39  ;;  %1547 = vrot.lane.b32.xlu1 %v6875_v25, %s5578_s17 }
 0x4bf   :  { %3396 = vmatpush.msrb.mxu1 %v2897_v55  ;;  %2317 = vrot.lane.b32.xlu2 %v6295_v6, %s5580_s20 }
 0x4c0   :  { %3351 = vmatpush.msra.mxu0 %v2883_v8  ;;  %v2543_v1 = vpop.permute.xlu1 %2542  ;;  %2319 = vrot.lane.b32.xlu0 %v6313_v57, %s5580_s20 }
 0x4c1   :  { %3397 = vmatpush.msrb.mxu1 %v2884_v49  ;;  %v2559_v12 = vsel %vm1850_vm7, %v7253_v54, %v2543_v1  ;;  %v2560_v18 = vsel %vm1850_vm7, %v2543_v1, %v7371_v23  ;;  %v7493_v3 = vpop.permute.xlu2 %2246  ;;  %5335 = vmatmul.msk.f32.gmra.mxu0 %vm9728_vm11, %v7505_v44  ;;  %v2832_v56 = vld [vmem:[#allocation3 + $0x380] sm:$0xff] }
 0x4c2   :  { %3352 = vmatpush.msra.mxu0 %v2870_v61  ;;  %2585 = vst [vmem:[#allocation3 + $0x5f8] sm:$0xfc] %v2559_v12  ;;  %v2263_v25 = vsel %vm257_vm15, %v7249_v20, %v7493_v3  ;;  %v2314_v32 = vpop.permute.xlu0 %2313  ;;  %5338 = vmatmul.msk.f32.gmra.mxu1 %vm9728_vm11, %v7505_v44  ;;  %v2844_v20 = vld [vmem:[#allocation3 + $0x3e0] sm:$0xff] }
 0x4c3   :  { %3398 = vmatpush.msrb.mxu1 %v2871_v58  ;;  %2586 = vst [vmem:[#allocation3 + $0x600] sm:$0xfc] %v2560_v18  ;;  %v2330_v54 = vsel %vm301_vm1, %v7319_v0, %v2314_v32  ;;  %v7512_v0 = vrot.slane %v6295_v6, 6 }
 0x4c4   :  { %3353 = vmatpush.msra.mxu0 %v2857_v47  ;;  %2289 = vst [vmem:[#allocation3 + $0x4c0] sm:$0xfc] %v2263_v25 }
 0x4c5   :  { %3399 = vmatpush.msrb.mxu1 %v2858_v31  ;;  %2356 = vst [vmem:[#allocation3 + $0x528] sm:$0x3f] %v2330_v54 }
 0x4c6   :  { %3354 = vmatpush.msra.mxu0 %v2844_v20  ;;  %2546 = vrot.lane.b32.xlu1 %v7512_v0, %s5590_s26 }
 0x4c7   :  { %3400 = vmatpush.msrb.mxu1 %v2845_v33  ;;  %2250 = vrot.lane.b32.xlu2 %v7512_v0, %s5578_s17 }
 0x4c8   :  { %3355 = vmatpush.msra.mxu0 %v2831_v15  ;;  %v7518_v24 = vpop.permute.xlu1 %1840  ;;  %2252 = vrot.lane.b32.xlu0 %v7461_v42, %s5578_s17 }
 0x4c9   :  { %3401 = vmatpush.msrb.mxu1 %v2832_v56  ;;  %v1859_v46 = vsel %vm1850_vm7, %v7454_v16, %v7518_v24  ;;  %v7523_v27 = vpop.permute.xlu2 %1480 }
 0x4ca   :  { %3356 = vmatpush.msra.mxu0 %v2818_v53  ;;  %1885 = vst [vmem:[#allocation3 + $0x2b0] sm:$0xc0] %v1859_v46  ;;  %v7527_v21 = vpop.permute.xlu0 %1624  ;;  %v2753_v53 = vld [vmem:[#allocation3 + $0x108] sm:$0xff] }
 0x4cb   :  { %1898 = vst [vmem:[#allocation3 + $0x318] sm:$0xf] %v1859_v46  ;;  %v1642_v50 = vsel %vm301_vm1, %v7446_v13, %v7527_v21 }
 0x4cc   :  { %1668 = vst [vmem:[#allocation3 + $0x1e0] sm:$0xf0] %v1642_v50 }
 0x4cd   :  { %1681 = vst [vmem:[#allocation3 + $0x248] sm:$0x3] %v1642_v50  ;;  %v2740_v50 = vld [vmem:[#allocation3 + $0xa0] sm:$0xff] }
 0x4ce   :  { %2387 = vrot.lane.b32.xlu1 %v2360_v43, %s5582_s22 }
 0x4cf   :  { %2094 = vrot.lane.b32.xlu2 %v7094_v10, %s5591_s27 }
 0x4d0   :  { %v1771_v16 = vpop.permute.xlu1 %1770  ;;  %2694 = vrot.lane.b32.xlu0 %v6295_v6, %s5589_s28 }
 0x4d1   :  { %v2091_v30 = vpop.permute.xlu2 %2090  ;;  %v1790_v22 = vsel %vm1782_vm4, %v7178_v35, %v1771_v16  ;;  %v1791_v63 = vsel %vm1782_vm4, %v1771_v16, %v7425_v4  ;;  %v2727_v16 = vld [vmem:[#allocation3 + $0x38] sm:$0xff] }
 0x4d2   :  { %v2105_v13 = vsel %vm1418_vm13, %v7328_v14, %v2091_v30  ;;  %v2819_v34 = vld [vmem:[#allocation3 + $0x318] sm:$0xff]  ;;  %v2168_v19 = vpop.permute.xlu0 %2167  ;;  %1816 = vst [vmem:[#allocation3 + $0x2a8] sm:$0x3f] %v1790_v22 }
 0x4d3   :  { %3402 = vmatpush.msrb.mxu1 %v2819_v34  ;;  %1817 = vst [vmem:[#allocation3 + $0x2b0] sm:$0x3f] %v1791_v63  ;;  %v2182_v43 = vsel %vm1484_vm6, %v7296_v11, %v2168_v19 }
 0x4d4   :  { %2130 = vst [vmem:[#allocation3 + $0x3f0] sm:$0xc0] %v2105_v13 }
 0x4d5   :  { %2143 = vst [vmem:[#allocation3 + $0x458] sm:$0xf] %v2105_v13 }
 0x4d6   :  { %2207 = vst [vmem:[#allocation3 + $0x458] sm:$0xf0] %v2182_v43  ;;  %2171 = vrot.lane.b32.xlu1 %v6305_v9, %s5589_s28 }
 0x4d7   :  { %2220 = vst [vmem:[#allocation3 + $0x4c0] sm:$0x3] %v2182_v43  ;;  %1416 = vrot.lane.b32.xlu2 %v7143_v51, %s5591_s27 }
 0x4d8   :  { %v7551_v35 = vpop.permute.xlu1 %2315  ;;  %2030 = vrot.lane.b32.xlu0 %v6295_v6, %s5569_s18 }
 0x4d9   :  { %v7553_v14 = vpop.permute.xlu2 %1322  ;;  %v2331_v2 = vsel %vm301_vm1, %v2314_v32, %v7551_v35  ;;  %v2805_v11 = vld [vmem:[#allocation3 + $0x2a8] sm:$0xff] }
 0x4da   :  { %v7559_v39 = vpop.permute.xlu0 %2248  ;;  %2357 = vst [vmem:[#allocation3 + $0x530] sm:$0x3f] %v2331_v2  ;;  %3357 = vmatpush.msra.mxu0 %v2805_v11  ;;  %v2806_v55 = vld [vmem:[#allocation3 + $0x2b0] sm:$0xff] }
 0x4db   :  { %v2264_v8 = vsel %vm257_vm15, %v7493_v3, %v7559_v39  ;;  %3403 = vmatpush.msrb.mxu1 %v2806_v55 }
 0x4dc   :  { %2290 = vst [vmem:[#allocation3 + $0x4c8] sm:$0xfc] %v2264_v8 }
 0x4de   :  { %1482 = vrot.lane.b32.xlu1 %v6268_v62, %s5589_s28 }
 0x4df   :  { %2672 = vrot.lane.b32.xlu2 %v7512_v0, %s5591_s27 }
 0x4e0   :  { %v1704_v49 = vpop.permute.xlu1 %1703  ;;  %1966 = vrot.lane.b32.xlu0 %v7512_v0, %s5574_s11 }
 0x4e1   :  { %v7568_v61 = vpop.permute.xlu2 %2026  ;;  %v1722_v1 = vsel %vm345_vm14, %v7221_v28, %v1704_v49  ;;  %v1723_v58 = vsel %vm345_vm14, %v1704_v49, %v7472_v45  ;;  %v2741_v49 = vld [vmem:[#allocation3 + $0xa8] sm:$0xff] }
 0x4e2   :  { %v2041_v12 = vsel %vm125_vm5, %v7442_v5, %v7568_v61  ;;  %v1542_v18 = vpop.permute.xlu0 %1541  ;;  %1748 = vst [vmem:[#allocation3 + $0x240] sm:$0xfc] %v1722_v1 }
 0x4e3   :  { %v1560_v3 = vsel %vm257_vm15, %v7174_v59, %v1542_v18  ;;  %1749 = vst [vmem:[#allocation3 + $0x248] sm:$0xfc] %v1723_v58 }
 0x4e4   :  { %2066 = vst [vmem:[#allocation3 + $0x3f0] sm:$0x3f] %v2041_v12 }
 0x4e5   :  { %1586 = vst [vmem:[#allocation3 + $0x170] sm:$0xc0] %v1560_v3 }
 0x4e6   :  { %1599 = vst [vmem:[#allocation3 + $0x1d8] sm:$0xf] %v1560_v3  ;;  %1324 = vrot.lane.b32.xlu1 %v6299_v7, %s5569_s18 }
 0x4e7   :  { %1848 = vrot.lane.b32.xlu2 %v7094_v10, %s5590_s26 }
 0x4e8   :  { %v7585_v28 = vpop.permute.xlu1 %2169  ;;  %1778 = vrot.lane.b32.xlu0 %v6268_v62, %s5588_s1 }
 0x4e9   :  { %v2183_v5 = vsel %vm1484_vm6, %v2168_v19, %v7585_v28  ;;  %v7589_v47 = vpop.permute.xlu2 %1964  ;;  %v2792_v59 = vld [vmem:[#allocation3 + $0x240] sm:$0xff] }
 0x4ea   :  { %v7593_v25 = vpop.permute.xlu0 %2092  ;;  %2208 = vst [vmem:[#allocation3 + $0x460] sm:$0xf0] %v2183_v5  ;;  %3358 = vmatpush.msra.mxu0 %v2792_v59  ;;  %v2793_v32 = vld [vmem:[#allocation3 + $0x248] sm:$0xff] }
 0x4eb   :  { %v2106_v31 = vsel %vm1418_vm13, %v2091_v30, %v7593_v25  ;;  %2221 = vst [vmem:[#allocation3 + $0x4c8] sm:$0x3] %v2183_v5  ;;  %3404 = vmatpush.msrb.mxu1 %v2793_v32 }
 0x4ec   :  { %2131 = vst [vmem:[#allocation3 + $0x3f8] sm:$0xc0] %v2106_v31  ;;  %v2766_v62 = vld [vmem:[#allocation3 + $0x170] sm:$0xff] }
 0x4ed   :  { %2144 = vst [vmem:[#allocation3 + $0x460] sm:$0xf] %v2106_v31  ;;  %v2779_v54 = vld [vmem:[#allocation3 + $0x1d8] sm:$0xff] }
 0x4ee   :  { %3359 = vmatpush.msra.mxu0 %v2779_v54  ;;  %2637 = vrot.lane.b32.xlu1 %v6305_v9, %s5569_s18  ;;  %v2911_v54 = vld [vmem:[#allocation3 + $0x5f8] sm:$0xff] }
 0x4ef   :  { %1630 = vrot.lane.b32.xlu2 %v6299_v7, %s5580_s20 }
 0x4f0   :  { %3360 = vmatpush.msra.mxu0 %v2766_v62  ;;  %v1479_v20 = vpop.permute.xlu1 %1478  ;;  %1632 = vrot.lane.b32.xlu0 %v6305_v9, %s5580_s20  ;;  %v7624_v9 = vld [vmem:[%s9717_s3] sm:$0xff]  ;;  %s5599_s20 = smov 75  }
 0x4f1   :  { %v1494_v33 = vsel %vm1484_vm6, %v7367_v40, %v1479_v20  ;;  %v1495_v56 = vsel %vm1484_vm6, %v1479_v20, %v7523_v27  ;;  %v7605_v15 = vpop.permute.xlu2 %1774 }
 0x4f2   :  { %1519 = vst [vmem:[#allocation3 + $0x180] sm:$0x3f] %v1494_v33  ;;  %3361 = vmatpush.msra.mxu0 %v2753_v53  ;;  %v7609_v46 = vpop.permute.xlu0 %1412  ;;  %v1792_v7 = vsel %vm1782_vm4, %v7425_v4, %v7605_v15 }
 0x4f3   :  { %1520 = vst [vmem:[#allocation3 + $0x188] sm:$0x3f] %v1495_v56  ;;  %v1428_v40 = vsel %vm1418_vm13, %v7309_v37, %v7609_v46 }
 0x4f4   :  { %2710 = vst [vmem:[#allocation3 + $0x788] sm:$0x3f] %v1494_v33  ;;  %3362 = vmatpush.msra.mxu0 %v2740_v50  ;;  %v2885_v33 = vld [vmem:[#allocation3 + $0x528] sm:$0xff] }
 0x4f5   :  { %2711 = vst [vmem:[#allocation3 + $0x790] sm:$0x3f] %v1495_v56 }
 0x4f6   :  { %1818 = vst [vmem:[#allocation3 + $0x2b8] sm:$0x3f] %v1792_v7  ;;  %3363 = vmatpush.msra.mxu0 %v2727_v16  ;;  %1846 = vrot.lane.b32.xlu1 %v7091_v36, %s5590_s26  ;;  %v2859_v16 = vld [vmem:[#allocation3 + $0x458] sm:$0xff]  ;;  %s5604_s26 = smov 119  }
 0x4f7   :  { %1453 = vst [vmem:[#allocation3 + $0x118] sm:$0xfc] %v1428_v40  ;;  %1713 = vrot.lane.b32.xlu2 %v7512_v0, %s5582_s22  ;;  %3364 = vmatmul.f32.vlgmr.msra.gmra.mxu0 %v7624_v9 }
 0x4f8   :  { %2688 = vst [vmem:[#allocation3 + $0x720] sm:$0xfc] %v1428_v40  ;;  %v7627_v37 = vpop.permute.xlu1 %1543  ;;  %1549 = vrot.lane.b32.xlu0 %v7091_v36, %s5578_s17  ;;  %v2925_v40 = vld [vmem:[#allocation3 + $0x668] sm:$0xff] }
 0x4f9   :  { %v1561_v4 = vsel %vm257_vm15, %v1542_v18, %v7627_v37  ;;  %v7631_v30 = vpop.permute.xlu2 %1628 }
 0x4fa   :  { %1587 = vst [vmem:[#allocation3 + $0x178] sm:$0xc0] %v1561_v4  ;;  %v7635_v0 = vpop.permute.xlu0 %2028 }
 0x4fb   :  { %1600 = vst [vmem:[#allocation3 + $0x1e0] sm:$0xf] %v1561_v4  ;;  %v2961_v22 = vld [vmem:[#allocation3 + $0x788] sm:$0x3f]  ;;  %v2042_v63 = vsel %vm125_vm5, %v7568_v61, %v7635_v0  ;;  %v2846_v4 = vld [vmem:[#allocation3 + $0x3f0] sm:$0xff] }
 0x4fc   :  { %5339 = vmatpush.msk.msra.mxu3 %vm2986_vm9, %v2961_v22  ;;  %v2962_v13 = vld [vmem:[#allocation3 + $0x790] sm:$0x3f]  ;;  %2067 = vst [vmem:[#allocation3 + $0x3f8] sm:$0x3f] %v2042_v63  ;;  %v2899_v63 = vld [vmem:[#allocation3 + $0x598] sm:$0xff] }
 0x4fd   :  { %5342 = vmatpush.msk.msra.mxu2 %vm2986_vm9, %v2962_v13 }
 0x4fe   :  { %1780 = vrot.lane.b32.xlu1 %v6295_v6, %s5588_s1  ;;  %s5601_s1 = smov 19  }
 0x4ff   :  { %2696 = vrot.lane.b32.xlu2 %v6313_v57, %s5589_s28  ;;  %3367 = vmatmul.f32.gmra.mxu0 %v7349_v38  ;;  %v2754_v57 = vld [vmem:[#allocation3 + $0x110] sm:$0xff]  ;;  %s5602_s28 = smov 44  }
 0x500   :  { %v1321_v36 = vpop.permute.xlu1 %1320  ;;  %2639 = vrot.lane.b32.xlu0 %v2441_v26, %s5569_s18  ;;  %v2968_v26 = vld [vmem:[%s9718_s4 + $0x8] sm:$0xff]  ;;  %s5603_s18 = smov 69  }
 0x501   :  { %v1335_v34 = vsel %vm125_vm5, %v7354_v52, %v1321_v36  ;;  %v1336_v19 = vsel %vm125_vm5, %v1321_v36, %v7553_v14  ;;  %v2605_v43 = vpop.permute.xlu2 %2604  ;;  %v2767_v11 = vld [vmem:[#allocation3 + $0x178] sm:$0xff] }
 0x502   :  { %1360 = vst [vmem:[#allocation3 + $0xb0] sm:$0xf0] %v1335_v34  ;;  %v2780_v2 = vld [vmem:[#allocation3 + $0x1e0] sm:$0xff]  ;;  %v7654_v6 = vpop.permute.xlu0 %1842  ;;  %v2967_v52 = vld [vmem:[%s9718_s4] sm:$0xff]  ;;  %v2607_v55 = vsel %vm81_vm10, %v7324_v29, %v2605_v43 }
 0x503   :  { %1361 = vst [vmem:[#allocation3 + $0xb8] sm:$0xf0] %v1336_v19  ;;  %3405 = vmatpush.msrb.mxu1 %v2780_v2  ;;  %v1860_v29 = vsel %vm1850_vm7, %v7518_v24, %v7654_v6  ;;  %v7730_v2 = vpop.f32.mrf.mxu2 }
 0x504   :  { %1374 = vst [vmem:[#allocation3 + $0x118] sm:$0x3] %v1335_v34 }
 0x505   :  { %1375 = vst [vmem:[#allocation3 + $0x120] sm:$0x3] %v1336_v19  ;;  %3406 = vmatpush.msrb.mxu1 %v2767_v11 }
 0x506   :  { %2653 = vst [vmem:[#allocation3 + $0x6b8] sm:$0xf0] %v1335_v34  ;;  %1711 = vrot.lane.b32.xlu1 %v7143_v51, %s5582_s22  ;;  %v2728_v51 = vld [vmem:[#allocation3 + $0x40] sm:$0xff] }
 0x507   :  { %2654 = vst [vmem:[#allocation3 + $0x6c0] sm:$0xf0] %v1336_v19  ;;  %2971 = vperm.xlu2 %5414, %v2967_v52   ;;  %3407 = vmatpush.msrb.mxu1 %v2754_v57  ;;  %v7739_v57 = vpop.f32.mrf.mxu0 }
 0x508   :  { %2666 = vst [vmem:[#allocation3 + $0x720] sm:$0x3] %v1335_v34  ;;  %v7666_v8 = vpop.permute.xlu1 %1414  ;;  %2976 = vperm.xlu0 %5415, %v2968_v26   ;;  %v2886_v34 = vld [vmem:[#allocation3 + $0x530] sm:$0xff]  ;;  %v2860_v26 = vld [vmem:[#allocation3 + $0x460] sm:$0xff] }
 0x509   :  { %2667 = vst [vmem:[#allocation3 + $0x728] sm:$0x3] %v1336_v19  ;;  %v7668_v61 = vpop.permute.xlu2 %2466  ;;  %3408 = vmatpush.msrb.mxu1 %v2741_v49  ;;  %v1429_v58 = vsel %vm1418_vm13, %v7609_v46, %v7666_v8  ;;  %v2872_v46 = vld [vmem:[#allocation3 + $0x4c0] sm:$0xff] }
 0x50a   :  { %2622 = vst [vmem:[#allocation3 + $0x670] sm:$0xc0] %v2607_v55  ;;  %v7670_v1 = vpop.permute.xlu0 %1776  ;;  %v2481_v12 = vsel %vm1782_vm4, %v7431_v60, %v7668_v61 }
 0x50b   :  { %2623 = vst.msk [vmem:[#allocation3 + $0x678] sm:$0xc0] %vm1271_vm12, %v2605_v43  ;;  %3409 = vmatpush.msrb.mxu1 %v2728_v51  ;;  %v1793_v3 = vsel %vm1782_vm4, %v7605_v15, %v7670_v1 }
 0x50c   :  { %2635 = vst [vmem:[#allocation3 + $0x6d8] sm:$0xf] %v2607_v55  ;;  %3410 = vmatmul.f32.vlgmr.msrb.gmra.mxu1 %v7624_v9 }
 0x50d   :  { %2636 = vst.msk [vmem:[#allocation3 + $0x6e0] sm:$0xf] %vm1285_vm8, %v2605_v43  ;;  %v2935_v5 = vld [vmem:[#allocation3 + $0x6b8] sm:$0xff] }
 0x50e   :  { %1886 = vst [vmem:[#allocation3 + $0x2b8] sm:$0xc0] %v1860_v29  ;;  %1551 = vrot.lane.b32.xlu1 %v7094_v10, %s5578_s17  ;;  %v2924_v10 = vld [vmem:[#allocation3 + $0x660] sm:$0xff] }
 0x50f   :  { %1899 = vst [vmem:[#allocation3 + $0x320] sm:$0xf] %v1860_v29  ;;  %v2948_v24 = vld [vmem:[#allocation3 + $0x720] sm:$0xff] }
 0x510   :  { %1454 = vst [vmem:[#allocation3 + $0x120] sm:$0xfc] %v1429_v58  ;;  %3385 = vmatpush.msra.mxu3 %v2948_v24  ;;  %v1963_v18 = vpop.permute.xlu1 %1962  ;;  %v2936_v53 = vld [vmem:[#allocation3 + $0x6c0] sm:$0xff] }
 0x511   :  { %2689 = vst [vmem:[#allocation3 + $0x728] sm:$0xfc] %v1429_v58  ;;  %v7689_v59 = vpop.permute.xlu2 %2548  ;;  %v1977_v32 = vsel %vm81_vm10, %v7467_v41, %v1963_v18  ;;  %v1978_v60 = vsel %vm81_vm10, %v1963_v18, %v7589_v47  ;;  %v2898_v41 = vld [vmem:[#allocation3 + $0x590] sm:$0xff] }
 0x512   :  { %2507 = vst [vmem:[#allocation3 + $0x5a0] sm:$0xf0] %v2481_v12  ;;  %3386 = vmatpush.msra.mxu3 %v2935_v5  ;;  %v7693_v31 = vpop.permute.xlu0 %1707 }
 0x513   :  { %2520 = vst [vmem:[#allocation3 + $0x608] sm:$0x3] %v2481_v12  ;;  %v1724_v62 = vsel %vm345_vm14, %v7472_v45, %v7693_v31  ;;  %5340 = vmatmul.msk.f32.vlgmr.msra.gmra.mxu3 %vm9728_vm11, %v7379_v48 }
 0x514   :  { %3440 = vmatpush.msrb.mxu3 %v2924_v10  ;;  %1819 = vst [vmem:[#allocation3 + $0x2c0] sm:$0x3f] %v1793_v3  ;;  %3413 = vmatmul.f32.gmra.mxu1 %v7349_v38  ;;  %v7756_v3 = vpop.f32.mrf.mxu2 }
 0x515   :  { %2002 = vst [vmem:[#allocation3 + $0x388] sm:$0xfc] %v1977_v32  ;;  %v2807_v11 = vld [vmem:[#allocation3 + $0x2b8] sm:$0xff]  ;;  %v7759_v32 = vpop.f32.mrf.mxu0 }
 0x516   :  { %3441 = vmatpush.msrb.mxu3 %v2911_v54  ;;  %2003 = vst [vmem:[#allocation3 + $0x390] sm:$0xfc] %v1978_v60  ;;  %2674 = vrot.lane.b32.xlu1 %v7461_v42, %s5591_s27  ;;  %v2820_v19 = vld [vmem:[#allocation3 + $0x320] sm:$0xff]  ;;  %v2755_v54 = vld [vmem:[#allocation3 + $0x118] sm:$0xff] }
 0x517   :  { %1750 = vst [vmem:[#allocation3 + $0x250] sm:$0xfc] %v1724_v62 }
 0x518   :  { %3442 = vmatpush.msrb.mxu3 %v2898_v41  ;;  %v2949_v20 = vld [vmem:[#allocation3 + $0x728] sm:$0xff]  ;;  %v7705_v56 = vpop.permute.xlu1 %1844 }
 0x519   :  { %3431 = vmatpush.msra.mxu2 %v2949_v20  ;;  %v1861_v45 = vsel %vm1850_vm7, %v7654_v6, %v7705_v56  ;;  %v7710_v15 = vpop.permute.xlu2 %2317  ;;  %v2742_v20 = vld [vmem:[#allocation3 + $0xb0] sm:$0xff] }
 0x51a   :  { %3443 = vmatpush.msrb.mxu3 %v2885_v33  ;;  %1887 = vst [vmem:[#allocation3 + $0x2c0] sm:$0xc0] %v1861_v45  ;;  %v2332_v42 = vsel %vm301_vm1, %v7551_v35, %v7710_v15  ;;  %v7715_v7 = vpop.permute.xlu0 %1545  ;;  %v2912_v35 = vld [vmem:[#allocation3 + $0x600] sm:$0xff] }
 0x51b   :  { %3432 = vmatpush.msra.mxu2 %v2936_v53  ;;  %1900 = vst [vmem:[#allocation3 + $0x328] sm:$0xf] %v1861_v45  ;;  %v1562_v50 = vsel %vm257_vm15, %v7627_v37, %v7715_v7  ;;  %5341 = vmatmul.msk.f32.gmra.mxu3 %vm9728_vm11, %v7505_v44  ;;  %v2729_v53 = vld [vmem:[#allocation3 + $0x48] sm:$0xff] }
 0x51c   :  { %3444 = vmatpush.msrb.mxu3 %v2872_v46  ;;  %5343 = vmatmul.msk.f32.vlgmr.msra.gmra.mxu2 %vm9728_vm11, %v7379_v48  ;;  %2358 = vst [vmem:[#allocation3 + $0x538] sm:$0x3f] %v2332_v42  ;;  %v2833_v22 = vld [vmem:[#allocation3 + $0x388] sm:$0xff]  ;;  %v7771_v46 = vpop.f32.mrf.mxu2 }
 0x51d   :  { %3486 = vmatpush.msrb.mxu2 %v2925_v40  ;;  %1588 = vst [vmem:[#allocation3 + $0x180] sm:$0xc0] %v1562_v50  ;;  %v2834_v51 = vld [vmem:[#allocation3 + $0x390] sm:$0xff]  ;;  %v7783_v40 = vpop.f32.mrf.mxu0 }
 0x51e   :  { %3445 = vmatpush.msrb.mxu3 %v2859_v16  ;;  %1601 = vst [vmem:[#allocation3 + $0x1e8] sm:$0xf] %v1562_v50 }
 0x51f   :  { %3487 = vmatpush.msrb.mxu2 %v2912_v35 }
 0x520   :  { %3446 = vmatpush.msrb.mxu3 %v2846_v4  ;;  %v1627_v37 = vpop.permute.xlu1 %1626  ;;  %v7787_v4 = vpop.f32.mrf.mxu1 }
 0x521   :  { %3488 = vmatpush.msrb.mxu2 %v2899_v63  ;;  %v1643_v48 = vsel %vm301_vm1, %v7527_v21, %v1627_v37  ;;  %v1644_v13 = vsel %vm301_vm1, %v1627_v37, %v7631_v30  ;;  %v7728_v36 = vpop.permute.xlu2 %2250  ;;  %v2873_v21 = vld [vmem:[#allocation3 + $0x4c8] sm:$0xff]  ;;  %v2808_v10 = vld [vmem:[#allocation3 + $0x2c0] sm:$0xff] }
 0x522   :  { %3447 = vmatpush.msrb.mxu3 %v2833_v22  ;;  %1669 = vst [vmem:[#allocation3 + $0x1e8] sm:$0xf0] %v1643_v48  ;;  %v2469_v43 = vpop.permute.xlu0 %2468  ;;  %v2265_v6 = vsel %vm257_vm15, %v7559_v39, %v7728_v36  ;;  %v2847_v39 = vld [vmem:[#allocation3 + $0x3f8] sm:$0xff]  ;;  %v2821_v24 = vld [vmem:[#allocation3 + $0x328] sm:$0xff]  ;;  %v2756_v63 = vld [vmem:[#allocation3 + $0x120] sm:$0xff] }
 0x523   :  { %3489 = vmatpush.msrb.mxu2 %v2886_v34  ;;  %1670 = vst [vmem:[#allocation3 + $0x1f0] sm:$0xf0] %v1644_v13  ;;  %v2482_v52 = vsel %vm1782_vm4, %v7668_v61, %v2469_v43 }
 0x524   :  { %3448 = vmatpush.msrb.mxu3 %v2820_v19  ;;  %5344 = vmatmul.msk.f32.gmra.mxu2 %vm9728_vm11, %v7505_v44  ;;  %1682 = vst [vmem:[#allocation3 + $0x250] sm:$0x3] %v1643_v48  ;;  %vm1456_vm11 = vcmask 678914   ;;  %v2743_v48 = vld [vmem:[#allocation3 + $0xb8] sm:$0xff] }
 0x525   :  { %3490 = vmatpush.msrb.mxu2 %v2873_v21  ;;  %1683 = vst [vmem:[#allocation3 + $0x258] sm:$0x3] %v1644_v13  ;;  %v7794_v13 = vpop.f32.mrf.mxu2 }
 0x526   :  { %3449 = vmatpush.msrb.mxu3 %v2807_v11  ;;  %2291 = vst [vmem:[#allocation3 + $0x4d0] sm:$0xfc] %v2265_v6 }
 0x527   :  { %3491 = vmatpush.msrb.mxu2 %v2860_v26  ;;  %2508 = vst.msk [vmem:[#allocation3 + $0x5a8] sm:$0xf0] %vm1363_vm0, %v2482_v52 }
 0x528   :  { %2521 = vst.msk [vmem:[#allocation3 + $0x610] sm:$0x3] %vm1377_vm2, %v2482_v52  ;;  %v7743_v55 = vpop.permute.xlu1 %1709  ;;  %v7806_v21 = vpop.f32.mrf.mxu1 }
 0x529   :  { %3492 = vmatpush.msrb.mxu2 %v2847_v39  ;;  %v1725_v49 = vsel %vm345_vm14, %v7693_v31, %v7743_v55  ;;  %v2095_v61 = vpop.permute.xlu2 %2094  ;;  %v2781_v5 = vld [vmem:[#allocation3 + $0x1e8] sm:$0xff] }
 0x52a   :  { %1751 = vst [vmem:[#allocation3 + $0x258] sm:$0xfc] %v1725_v49  ;;  %v2107_v29 = vsel %vm1418_vm13, %v7593_v25, %v2095_v61  ;;  %v7750_v12 = vpop.permute.xlu0 %2385  ;;  %v2768_v25 = vld [vmem:[#allocation3 + $0x180] sm:$0xff] }
 0x52b   :  { %3493 = vmatpush.msrb.mxu2 %v2834_v51  ;;  %2132 = vst [vmem:[#allocation3 + $0x400] sm:$0xc0] %v2107_v29  ;;  %v2794_v58 = vld [vmem:[#allocation3 + $0x250] sm:$0xff]  ;;  %v2400_v18 = vsel %vm345_vm14, %v7476_v17, %v7750_v12 }
 0x52c   :  { %2133 = vst.msk [vmem:[#allocation3 + $0x408] sm:$0xc0] %vm1271_vm12, %v2095_v61  ;;  %3450 = vmatpush.msrb.mxu3 %v2794_v58 }
 0x52d   :  { %3494 = vmatpush.msrb.mxu2 %v2821_v24  ;;  %2145 = vst [vmem:[#allocation3 + $0x468] sm:$0xf] %v2107_v29  ;;  %v7817_v49 = vpop.f32.mrf.mxu2  ;;  %v7827_v29 = vld [vmem:[%s9717_s3 + $0x10] sm:$0xff] }
 0x52e   :  { %2146 = vst.msk [vmem:[#allocation3 + $0x470] sm:$0xf] %vm1285_vm8, %v2095_v61  ;;  %3451 = vmatpush.msrb.mxu3 %v2781_v5 }
 0x52f   :  { %3495 = vmatpush.msrb.mxu2 %v2808_v10  ;;  %2426 = vst [vmem:[#allocation3 + $0x538] sm:$0xc0] %v2400_v18 }
 0x530   :  { %2439 = vst [vmem:[#allocation3 + $0x5a0] sm:$0xf] %v2400_v18  ;;  %3452 = vmatpush.msrb.mxu3 %v2768_v25  ;;  %v7761_v31 = vpop.permute.xlu1 %1547  ;;  %v7832_v58 = vpop.f32.mrf.mxu1 }
 0x531   :  { %v1563_v17 = vsel %vm257_vm15, %v7715_v7, %v7761_v31  ;;  %v1417_v60 = vpop.permute.xlu2 %1416  ;;  %v2795_v62 = vld [vmem:[#allocation3 + $0x258] sm:$0xff] }
 0x532   :  { %1589 = vst [vmem:[#allocation3 + $0x188] sm:$0xc0] %v1563_v17  ;;  %v1430_v41 = vsel %vm1418_vm13, %v7666_v8, %v1417_v60  ;;  %3453 = vmatpush.msrb.mxu3 %v2755_v54  ;;  %3496 = vmatpush.msrb.mxu2 %v2795_v62  ;;  %v2320_v33 = vpop.permute.xlu0 %2319  ;;  %v7774_v8 = vpop.f32.mrf.mxu3 }
 0x533   :  { %1602 = vst [vmem:[#allocation3 + $0x1f0] sm:$0xf] %v1563_v17  ;;  %v2333_v45 = vsel %vm301_vm1, %v7710_v15, %v2320_v33 }
 0x534   :  { %1455 = vst [vmem:[#allocation3 + $0x128] sm:$0xfc] %v1430_v41  ;;  %3454 = vmatpush.msrb.mxu3 %v2742_v20 }
 0x535   :  { %1457 = vst.msk [vmem:[#allocation3 + $0x130] sm:$0xfc] %vm1456_vm11, %v1417_v60  ;;  %v7843_v25 = vpop.f32.mrf.mxu2 }
 0x536   :  { %2690 = vst [vmem:[#allocation3 + $0x730] sm:$0xfc] %v1430_v41  ;;  %3455 = vmatpush.msrb.mxu3 %v2729_v53 }
 0x537   :  { %2359 = vst.msk [vmem:[#allocation3 + $0x540] sm:$0x3f] %vm1180_vm3, %v2333_v45  ;;  %3456 = vmatmul.f32.vlgmr.msrb.gmra.mxu3 %v7624_v9 }
 0x538   :  { %v2547_v42 = vpop.permute.xlu1 %2546  ;;  %v7850_v54 = vpop.f32.mrf.mxu1 }
 0x539   :  { %v2561_v7 = vsel %vm1850_vm7, %v7371_v23, %v2547_v42  ;;  %v2562_v15 = vsel %vm1850_vm7, %v2547_v42, %v7689_v59  ;;  %v7781_v50 = vpop.permute.xlu2 %2672  ;;  %v2769_v59 = vld [vmem:[#allocation3 + $0x188] sm:$0xff] }
 0x53a   :  { %2587 = vst [vmem:[#allocation3 + $0x608] sm:$0xfc] %v2561_v7  ;;  %v2676_v16 = vsel %vm1418_vm13, %v1417_v60, %v7781_v50  ;;  %v2782_v35 = vld [vmem:[#allocation3 + $0x1f0] sm:$0xff]  ;;  %v2253_v22 = vpop.permute.xlu0 %2252  ;;  %v7800_v43 = vpop.f32.mrf.mxu3 }
 0x53b   :  { %2588 = vst.msk [vmem:[#allocation3 + $0x610] sm:$0xfc] %vm1456_vm11, %v2562_v15  ;;  %3497 = vmatpush.msrb.mxu2 %v2782_v35  ;;  %v2266_v23 = vsel %vm257_vm15, %v7728_v36, %v2253_v22  ;;  %v2730_v36 = vld [vmem:[#allocation3 + $0x50] sm:$0xff] }
 0x53c   :  { %2691 = vst [vmem:[#allocation3 + $0x738] sm:$0xfc] %v2676_v16 }
 0x53d   :  { %2292 = vst.msk [vmem:[#allocation3 + $0x4d8] sm:$0xfc] %vm1456_vm11, %v2266_v23  ;;  %3498 = vmatpush.msrb.mxu2 %v2769_v59  ;;  %v3319_v42 = vpop.f32.mrf.mxu2 }
 0x53f   :  { %3499 = vmatpush.msrb.mxu2 %v2756_v63  ;;  %3459 = vmatmul.f32.gmra.mxu3 %v7349_v38  ;;  %v7804_v38 = vpop.f32.mrf.mxu0 }
 0x540   :  { %v2388_v37 = vpop.permute.xlu1 %2387  ;;  %v3342_v63 = vpop.f32.mrf.mxu1 }
 0x541   :  { %v2401_v34 = vsel %vm345_vm14, %v7750_v12, %v2388_v37  ;;  %v7798_v19 = vpop.permute.xlu2 %1848  ;;  %3500 = vmatpush.msrb.mxu2 %v2743_v48 }
 0x542   :  { %2427 = vst.msk [vmem:[#allocation3 + $0x540] sm:$0xc0] %vm1271_vm12, %v2401_v34  ;;  %v2695_v6 = vpop.permute.xlu0 %2694  ;;  %v7819_v51 = vpop.f32.mrf.mxu3 }
 0x543   :  { %2440 = vst.msk [vmem:[#allocation3 + $0x5a8] sm:$0xf] %vm1285_vm8, %v2401_v34  ;;  %3501 = vmatpush.msrb.mxu2 %v2730_v36 }
 0x544   :  { %3502 = vmatmul.f32.vlgmr.msrb.gmra.mxu2 %v7624_v9 }
 0x548   :  { %v2172_v11 = vpop.permute.xlu1 %2171 }
 0x549   :  { %v2184_v52 = vsel %vm1484_vm6, %v7585_v28, %v2172_v11  ;;  %2210 = vst.msk [vmem:[#allocation3 + $0x470] sm:$0xf0] %vm1363_vm0, %v2172_v11  ;;  %v7812_v26 = vpop.permute.xlu2 %1630 }
 0x54a   :  { %2209 = vst [vmem:[#allocation3 + $0x468] sm:$0xf0] %v2184_v52  ;;  %v1645_v39 = vsel %vm301_vm1, %v7631_v30, %v7812_v26  ;;  %v2031_v61 = vpop.permute.xlu0 %2030  ;;  %v7830_v30 = vpop.f32.mrf.mxu0 }
 0x54b   :  { %2222 = vst [vmem:[#allocation3 + $0x4d0] sm:$0x3] %v2184_v52  ;;  %v2043_v28 = vsel %vm125_vm5, %v7635_v0, %v2031_v61  ;;  %v7845_v17 = vpop.f32.mrf.mxu3 }
 0x54c   :  { %2223 = vst.msk [vmem:[#allocation3 + $0x4d8] sm:$0x3] %vm1377_vm2, %v2172_v11  ;;  %3505 = vmatmul.f32.gmra.mxu2 %v7827_v29 }
 0x54d   :  { %1671 = vst [vmem:[#allocation3 + $0x1f8] sm:$0xf0] %v1645_v39 }
 0x54e   :  { %1684 = vst [vmem:[#allocation3 + $0x260] sm:$0x3] %v1645_v39  ;;  %v2926_v39 = vld [vmem:[#allocation3 + $0x670] sm:$0xff] }
 0x54f   :  { %2068 = vst [vmem:[#allocation3 + $0x400] sm:$0x3f] %v2043_v28 }
 0x550   :  { %2069 = vst.msk [vmem:[#allocation3 + $0x408] sm:$0x3f] %vm1180_vm3, %v2031_v61  ;;  %v1483_v12 = vpop.permute.xlu1 %1482 }
 0x551   :  { %v1496_v0 = vsel %vm1484_vm6, %v7523_v27, %v1483_v12  ;;  %1522 = vst.msk [vmem:[#allocation3 + $0x198] sm:$0x3f] %vm1180_vm3, %v1483_v12  ;;  %v2698_v24 = vsel %vm1484_vm6, %v1483_v12, %v2695_v6  ;;  %v7839_v18 = vpop.permute.xlu2 %1713 }
 0x552   :  { %1521 = vst [vmem:[#allocation3 + $0x190] sm:$0x3f] %v1496_v0  ;;  %v1967_v5 = vpop.permute.xlu0 %1966  ;;  %v7848_v27 = vpop.f32.mrf.mxu0 }
 0x553   :  { %2712 = vst [vmem:[#allocation3 + $0x798] sm:$0x3f] %v1496_v0  ;;  %v1979_v10 = vsel %vm81_vm10, %v7589_v47, %v1967_v5  ;;  %v3273_v53 = vpop.f32.mrf.mxu3  ;;  %v2913_v0 = vld [vmem:[#allocation3 + $0x608] sm:$0xff] }
 0x554   :  { %2713 = vst [vmem:[#allocation3 + $0x7a0] sm:$0x3f] %v2698_v24 }
 0x555   :  { %2004 = vst [vmem:[#allocation3 + $0x398] sm:$0xfc] %v1979_v10 }
 0x556   :  { %2005 = vst.msk [vmem:[#allocation3 + $0x3a0] sm:$0xfc] %vm1456_vm11, %v1967_v5  ;;  %v7905_v5 = vld [vmem:[%s9717_s3 + $0x8] sm:$0xff] }
 0x558   :  { %v1325_v60 = vpop.permute.xlu1 %1324 }
 0x559   :  { %v1337_v62 = vsel %vm125_vm5, %v7553_v14, %v1325_v60  ;;  %1364 = vst.msk [vmem:[#allocation3 + $0xc8] sm:$0xf0] %vm1363_vm0, %v1325_v60  ;;  %v2697_v41 = vpop.permute.xlu2 %2696 }
 0x55a   :  { %1362 = vst [vmem:[#allocation3 + $0xc0] sm:$0xf0] %v1337_v62  ;;  %v2963_v47 = vld [vmem:[#allocation3 + $0x798] sm:$0x3f]  ;;  %v7856_v33 = vpop.permute.xlu0 %1778  ;;  %v2699_v45 = vsel %vm1484_vm6, %v2695_v6, %v2697_v41  ;;  %v3296_v35 = vpop.f32.mrf.mxu0 }
 0x55b   :  { %1376 = vst [vmem:[#allocation3 + $0x128] sm:$0x3] %v1337_v62  ;;  %5345 = vmatpush.msk.msrb.mxu0 %vm2986_vm9, %v2963_v47  ;;  %v2964_v20 = vld [vmem:[#allocation3 + $0x7a0] sm:$0x3f]  ;;  %v1794_v14 = vsel %vm1782_vm4, %v7670_v1, %v7856_v33  ;;  %v2874_v47 = vld [vmem:[#allocation3 + $0x4d0] sm:$0xff] }
 0x55c   :  { %1378 = vst.msk [vmem:[#allocation3 + $0x130] sm:$0x3] %vm1377_vm2, %v1325_v60  ;;  %5348 = vmatpush.msk.msra.mxu1 %vm2986_vm9, %v2964_v20  ;;  %v2914_v20 = vld [vmem:[#allocation3 + $0x610] sm:$0xff] }
 0x55d   :  { %2655 = vst [vmem:[#allocation3 + $0x6c8] sm:$0xf0] %v1337_v62 }
 0x55e   :  { %2668 = vst [vmem:[#allocation3 + $0x730] sm:$0x3] %v1337_v62  ;;  %v2887_v62 = vld [vmem:[#allocation3 + $0x538] sm:$0xff] }
 0x55f   :  { %2714 = vst [vmem:[#allocation3 + $0x7a8] sm:$0x3f] %v2699_v45 }
 0x560   :  { %2715 = vst.msk [vmem:[#allocation3 + $0x7b0] sm:$0x3f] %vm1180_vm3, %v2697_v41  ;;  %v7865_v7 = vpop.permute.xlu1 %2637  ;;  %v2927_v41 = vld [vmem:[#allocation3 + $0x678] sm:$0xff] }
 0x561   :  { %1820 = vst [vmem:[#allocation3 + $0x2c8] sm:$0x3f] %v1794_v14  ;;  %v2641_v15 = vsel %vm125_vm5, %v1325_v60, %v7865_v7  ;;  %v7869_v16 = vpop.permute.xlu2 %2971  ;;  %v2861_v14 = vld [vmem:[#allocation3 + $0x468] sm:$0xff] }
 0x562   :  { %2656 = vst [vmem:[#allocation3 + $0x6d0] sm:$0xf0] %v2641_v15  ;;  %v3044_v22 = vadd.f32 %v7774_v8, %v7869_v16  ;;  %v3090_v1 = vadd.f32 %v7787_v4, %v7869_v16  ;;  %v3274_v23 = vadd.f32 %v3273_v53, %v7869_v16  ;;  %v3320_v59 = vadd.f32 %v3319_v42, %v7869_v16  ;;  %v1633_v37 = vpop.permute.xlu0 %1632  ;;  %v2901_v53 = vld [vmem:[#allocation3 + $0x5a8] sm:$0xff] }
 0x563   :  { %2669 = vst [vmem:[#allocation3 + $0x738] sm:$0x3] %v2641_v15  ;;  %v1646_v48 = vsel %vm301_vm1, %v7812_v26, %v1633_v37  ;;  %vm9731_vm1 = vcmask 179200   ;;  %v2848_v15 = vld [vmem:[#allocation3 + $0x400] sm:$0xff] }
 0x564   :  { %v7880_v34 = vadd.f32 %v7739_v57, %v3044_v22  ;;  %v7883_v36 = vadd.f32 %v7730_v2, %v3090_v1  ;;  %v7885_v8 = vadd.f32 %v3296_v35, %v3274_v23  ;;  %1672 = vst.msk [vmem:[#allocation3 + $0x200] sm:$0xf0] %vm1363_vm0, %v1646_v48  ;;  %v7888_v4 = vadd.f32 %v3342_v63, %v3320_v59  ;;  %v2937_v57 = vld [vmem:[#allocation3 + $0x6c8] sm:$0xff]  ;;  %vm9732_vm6 = vmmov %vm9731_vm1  ;;  %v2888_v22 = vld [vmem:[#allocation3 + $0x540] sm:$0xff] }
 0x565   :  { %v2950_v6 = vld [vmem:[#allocation3 + $0x730] sm:$0xff]  ;;  %1685 = vst.msk [vmem:[#allocation3 + $0x268] sm:$0x3] %vm1377_vm2, %v1646_v48  ;;  %v2875_v1 = vld [vmem:[#allocation3 + $0x4d8] sm:$0xff] }
 0x566   :  { %3477 = vmatpush.msrb.mxu0 %v2950_v6  ;;  %v2965_v11 = vld [vmem:[#allocation3 + $0x7a8] sm:$0x3f]  ;;  %v5416_v52 = vpack.i.bf16 %v7883_v36, %v7880_v34  ;;  %v5436_v2 = vpack.i.bf16 %v7888_v4, %v7885_v8  ;;  %v2862_v59 = vld [vmem:[#allocation3 + $0x470] sm:$0xff] }
 0x567   :  { %v2966_v26 = vld [vmem:[#allocation3 + $0x7b0] sm:$0x3f]  ;;  %5351 = vmatpush.msk.msra.mxu3 %vm2986_vm9, %v2965_v11  ;;  %v2849_v6 = vld [vmem:[#allocation3 + $0x408] sm:$0xff] }
 0x568   :  { %5354 = vmatpush.msk.msra.mxu2 %vm2986_vm9, %v2966_v26  ;;  %3478 = vmatpush.msrb.mxu0 %v2937_v57  ;;  %v1847_v61 = vpop.permute.xlu1 %1846  ;;  %vm4496_vm9 = vcmask 1016608  }
 0x569   :  { %5417 = vrot.lane.b32.xlu1 %v5416_v52, %s5574_s11  ;;  %v1862_v28 = vsel %vm1850_vm7, %v7705_v56, %v1847_v61  ;;  %v1863_v12 = vsel %vm1850_vm7, %v1847_v61, %v7798_v19  ;;  %5346 = vmatmul.msk.f32.vlgmr.msrb.gmra.mxu0 %vm9731_vm1, %v7905_v5  ;;  %v2900_v19 = vld [vmem:[#allocation3 + $0x5a0] sm:$0xff]  ;;  %v2938_v60 = vld [vmem:[#allocation3 + $0x6d0] sm:$0xff]  ;;  %vm9733_vm7 = vmmov %vm9731_vm1 }
 0x56a   :  { %3532 = vmatpush.msra.mxu0 %v2926_v39  ;;  %1888 = vst [vmem:[#allocation3 + $0x2c8] sm:$0xc0] %v1862_v28  ;;  %v2951_v24 = vld [vmem:[#allocation3 + $0x738] sm:$0xff]  ;;  %5437 = vrot.lane.b32.xlu0 %v5436_v2, %s5574_s11  ;;  %v7911_v56 = vpop.permute.xlu0 %1549  ;;  %v2836_v52 = vld [vmem:[#allocation3 + $0x3a0] sm:$0xff]  ;;  %v3182_v2 = vadd.f32 %v7817_v49, %v7869_v16  ;;  %v3228_v39 = vadd.f32 %v7832_v58, %v7869_v16 }
 0x56b   :  { %1889 = vst.msk [vmem:[#allocation3 + $0x2d0] sm:$0xc0] %vm1271_vm12, %v1863_v12  ;;  %3523 = vmatpush.msra.mxu1 %v2951_v24  ;;  %v1564_v10 = vsel %vm257_vm15, %v7761_v31, %v7911_v56 }
 0x56c   :  { %3533 = vmatpush.msra.mxu0 %v2913_v0  ;;  %1901 = vst [vmem:[#allocation3 + $0x330] sm:$0xf] %v1862_v28  ;;  %v7984_v24 = vadd.f32 %v7830_v30, %v3228_v39 }
 0x56d   :  { %1902 = vst.msk [vmem:[#allocation3 + $0x338] sm:$0xf] %vm1285_vm8, %v1863_v12  ;;  %3524 = vmatpush.msra.mxu1 %v2938_v60 }
 0x56e   :  { %3534 = vmatpush.msra.mxu0 %v2900_v19  ;;  %1590 = vst [vmem:[#allocation3 + $0x190] sm:$0xc0] %v1564_v10  ;;  %5349 = vmatmul.msk.f32.vlgmr.msra.gmra.mxu1 %vm9732_vm6, %v7905_v5  ;;  %vm4509_vm6 = vcmask 174082  }
 0x56f   :  { %1603 = vst [vmem:[#allocation3 + $0x1f8] sm:$0xf] %v1564_v10  ;;  %3578 = vmatpush.msrb.mxu1 %v2927_v41  ;;  %v3345_v41 = vpop.f32.mrf.mxu1 }
 0x570   :  { %3535 = vmatpush.msra.mxu0 %v2887_v62  ;;  %v1781_v45 = vpop.permute.xlu1 %1780  ;;  %v3299_v62 = vpop.f32.mrf.mxu0 }
 0x571   :  { %3579 = vmatpush.msrb.mxu1 %v2914_v20  ;;  %v1795_v31 = vsel %vm1782_vm4, %v7856_v33, %v1781_v45  ;;  %5347 = vmatmul.msk.f32.gmra.mxu0 %vm9733_vm7, %v7505_v44  ;;  %v2835_v33 = vld [vmem:[#allocation3 + $0x398] sm:$0xff]  ;;  %v2757_v20 = vld [vmem:[#allocation3 + $0x128] sm:$0xff]  ;;  %vm4488_vm4 = vcmask 811608  }
 0x572   :  { %3536 = vmatpush.msra.mxu0 %v2874_v47  ;;  %1821 = vst.msk [vmem:[#allocation3 + $0x2d0] sm:$0x3f] %vm1180_vm3, %v1795_v31  ;;  %v2640_v42 = vpop.permute.xlu0 %2639  ;;  %vm9734_vm3 = vmmov %vm9731_vm1  ;;  %v2744_v31 = vld [vmem:[#allocation3 + $0xc0] sm:$0xff] }
 0x573   :  { %3580 = vmatpush.msrb.mxu1 %v2901_v53  ;;  %v2642_v35 = vsel %vm125_vm5, %v7865_v7, %v2640_v42  ;;  %2658 = vst.msk [vmem:[#allocation3 + $0x6e0] sm:$0xf0] %vm1363_vm0, %v2640_v42  ;;  %v2822_v23 = vld [vmem:[#allocation3 + $0x330] sm:$0xff]  ;;  %v3136_v7 = vadd.f32 %v7783_v40, %v7869_v16  ;;  %vm9735_vm5 = vmmov %vm9731_vm1  ;;  %vm4153_vm0 = vcmask 138240  }
 0x574   :  { %3537 = vmatpush.msra.mxu0 %v2861_v14  ;;  %2657 = vst [vmem:[#allocation3 + $0x6d8] sm:$0xf0] %v2642_v35 }
 0x575   :  { %3581 = vmatpush.msrb.mxu1 %v2888_v22  ;;  %2670 = vst [vmem:[#allocation3 + $0x740] sm:$0x3] %v2642_v35  ;;  %v2770_v10 = vld [vmem:[#allocation3 + $0x190] sm:$0xff] }
 0x576   :  { %3538 = vmatpush.msra.mxu0 %v2848_v15  ;;  %5350 = vmatmul.msk.f32.gmra.mxu1 %vm9734_vm3, %v7505_v44  ;;  %2671 = vst.msk [vmem:[#allocation3 + $0x748] sm:$0x3] %vm1377_vm2, %v2640_v42  ;;  %v2809_v44 = vld [vmem:[#allocation3 + $0x2c8] sm:$0xff]  ;;  %v2783_v19 = vld [vmem:[#allocation3 + $0x1f8] sm:$0xff]  ;;  %v2758_v22 = vld [vmem:[#allocation3 + $0x130] sm:$0xff]  ;;  %vm4478_vm2 = vcmask 606608  }
 0x577   :  { %3582 = vmatpush.msrb.mxu1 %v2875_v1  ;;  %v2731_v15 = vld [vmem:[#allocation3 + $0x58] sm:$0xff]  ;;  %vm4518_vm3 = vcmask 377008  }
 0x578   :  { %3539 = vmatpush.msra.mxu0 %v2835_v33  ;;  %v1712_v63 = vpop.permute.xlu1 %1711  ;;  %v2745_v33 = vld [vmem:[#allocation3 + $0xc8] sm:$0xff] }
 0x579   :  { %3583 = vmatpush.msrb.mxu1 %v2862_v59  ;;  %v1726_v37 = vsel %vm345_vm14, %v7743_v55, %v1712_v63  ;;  %v1727_v48 = vsel %vm345_vm14, %v1712_v63, %v7839_v18  ;;  %v7946_v18 = vadd.f32 %v7771_v46, %v3136_v7  ;;  %v2732_v59 = vld [vmem:[#allocation3 + $0x60] sm:$0xff]  ;;  %vm9738_vm14 = vmmov %vm9731_vm1 }
 0x57a   :  { %3540 = vmatpush.msra.mxu0 %v2822_v23  ;;  %1752 = vst [vmem:[#allocation3 + $0x260] sm:$0xfc] %v1726_v37  ;;  %v7937_v11 = vpop.permute.xlu0 %2976  ;;  %v2940_v63 = vld [vmem:[#allocation3 + $0x6e0] sm:$0xff]  ;;  %v3365_v37 = vpop.f32.mrf.mxu0 }
 0x57b   :  { %1753 = vst.msk [vmem:[#allocation3 + $0x268] sm:$0xfc] %vm1456_vm11, %v1727_v48  ;;  %3584 = vmatpush.msrb.mxu1 %v2849_v6  ;;  %v3093_v40 = vadd.f32 %v7806_v21, %v7937_v11  ;;  %v3139_v26 = vadd.f32 %v7804_v38, %v7937_v11  ;;  %v3047_v55 = vadd.f32 %v7800_v43, %v7937_v11  ;;  %v2823_v21 = vld [vmem:[#allocation3 + $0x338] sm:$0xff] }
 0x57c   :  { %3541 = vmatpush.msra.mxu0 %v2809_v44  ;;  %v3185_v57 = vadd.f32 %v7843_v25, %v7937_v11  ;;  %v3231_v43 = vadd.f32 %v7850_v54, %v7937_v11  ;;  %v2810_v25 = vld [vmem:[#allocation3 + $0x2d0] sm:$0xff]  ;;  %v2939_v7 = vld [vmem:[#allocation3 + $0x6d8] sm:$0xff]  ;;  %v3366_v6 = vadd.f32 %v3365_v37, %v7869_v16 }
 0x57d   :  { %3585 = vmatpush.msrb.mxu1 %v2836_v52  ;;  %v7955_v61 = vadd.f32 %v7756_v3, %v3093_v40  ;;  %v7958_v38 = vadd.f32 %v7794_v13, %v3139_v26  ;;  %v7961_v46 = vadd.f32 %v7759_v32, %v3047_v55  ;;  %v7972_v32 = vadd.f32 %v7819_v51, %v3182_v2  ;;  %v3276_v51 = vpop.f32.mrf.mxu3 }
 0x57e   :  { %v7978_v12 = vadd.f32 %v7845_v17, %v3185_v57  ;;  %v7981_v0 = vadd.f32 %v7848_v27, %v3231_v43  ;;  %v3277_v27 = vadd.f32 %v3276_v51, %v7937_v11 }
 0x57f   :  { %3586 = vmatpush.msrb.mxu1 %v2823_v21  ;;  %v5426_v49 = vpack.i.bf16 %v7958_v38, %v7955_v61  ;;  %v5421_v58 = vpack.i.bf16 %v7961_v46, %v7946_v18  ;;  %v5431_v17 = vpack.i.bf16 %v7984_v24, %v7972_v32 }
 0x580   :  { %v1552_v28 = vpop.permute.xlu1 %1551  ;;  %v5441_v60 = vpack.i.bf16 %v7981_v0, %v7978_v12  ;;  %v7998_v53 = vadd.f32 %v3299_v62, %v3277_v27 }
 0x581   :  { %3587 = vmatpush.msrb.mxu1 %v2810_v25  ;;  %v1565_v3 = vsel %vm257_vm15, %v7911_v56, %v1552_v28  ;;  %v2796_v13 = vld [vmem:[#allocation3 + $0x260] sm:$0xff]  ;;  %5427 = vrot.lane.b32.xlu1 %v5426_v49, %s5574_s11  ;;  %v3322_v56 = vpop.f32.mrf.mxu2 }
 0x582   :  { %1591 = vst.msk [vmem:[#allocation3 + $0x198] sm:$0xc0] %vm1271_vm12, %v1565_v3  ;;  %5422 = vrot.lane.b32.xlu2 %v5421_v58, %s5574_s11  ;;  %v2797_v54 = vld [vmem:[#allocation3 + $0x268] sm:$0xff]  ;;  %3542 = vmatpush.msra.mxu0 %v2796_v13  ;;  %v3323_v30 = vadd.f32 %v3322_v56, %v7937_v11  ;;  %vm9737_vm12 = vmmov %vm9731_vm1  ;;  %v3368_v26 = vpop.f32.mrf.mxu0 }
 0x583   :  { %1604 = vst.msk [vmem:[#allocation3 + $0x200] sm:$0xf] %vm1285_vm8, %v1565_v3  ;;  %3588 = vmatpush.msrb.mxu1 %v2797_v54  ;;  %vm9736_vm8 = vmmov %vm9731_vm1  ;;  %vm4508_vm1 = vcmask 1041384  }
 0x584   :  { %3543 = vmatpush.msra.mxu0 %v2783_v19  ;;  %v8000_v42 = vadd.f32 %v3345_v41, %v3323_v30  ;;  %vm9021_vm7 = vmor %vm4509_vm6, %vm4508_vm1  ;;  %vm4571_vm1 = vcmask 557408   ;;  %vm4581_vm6 = vcmask 762408  }
 0x586   :  { %3544 = vmatpush.msra.mxu0 %v2770_v10 }
 0x588   :  { %v2675_v47 = vpop.permute.xlu1 %2674  ;;  %3545 = vmatpush.msra.mxu0 %v2757_v20 }
 0x589   :  { %v2677_v45 = vsel %vm1418_vm13, %v7781_v50, %v2675_v47  ;;  %2693 = vst.msk [vmem:[#allocation3 + $0x748] sm:$0xfc] %vm1456_vm11, %v2675_v47  ;;  %5442 = vrot.lane.b32.xlu1 %v5441_v60, %s5574_s11  ;;  %v2771_v35 = vld [vmem:[#allocation3 + $0x198] sm:$0xff]  ;;  %v5446_v50 = vpack.i.bf16 %v8000_v42, %v7998_v53  ;;  %v3411_v48 = vpop.f32.mrf.mxu1  ;;  %vm9739_vm11 = vcmask 1040384  }
 0x58a   :  { %2692 = vst [vmem:[#allocation3 + $0x740] sm:$0xfc] %v2677_v45  ;;  %5432 = vrot.lane.b32.xlu2 %v5431_v17, %s5574_s11  ;;  %v2784_v14 = vld [vmem:[#allocation3 + $0x200] sm:$0xff]  ;;  %3546 = vmatpush.msra.mxu0 %v2744_v31  ;;  %v3412_v52 = vadd.f32 %v3411_v48, %v7869_v16 }
 0x58b   :  { %3589 = vmatpush.msrb.mxu1 %v2784_v14 }
 0x58c   :  { %3547 = vmatpush.msra.mxu0 %v2731_v15 }
 0x58d   :  { %3590 = vmatpush.msrb.mxu1 %v2771_v35  ;;  %3548 = vmatmul.f32.vlgmr.msra.gmra.mxu0 %v7624_v9 }
 0x58f   :  { %3591 = vmatpush.msrb.mxu1 %v2758_v22 }
 0x590   :  { %v2953_v1 = vld [vmem:[#allocation3 + $0x748] sm:$0xff] }
 0x591   :  { %3592 = vmatpush.msrb.mxu1 %v2745_v33  ;;  %3615 = vmatpush.msra.mxu2 %v2953_v1  ;;  %v2952_v23 = vld [vmem:[#allocation3 + $0x740] sm:$0xff]  ;;  %v3414_v57 = vpop.f32.mrf.mxu1 }
 0x592   :  { %3569 = vmatpush.msra.mxu3 %v2952_v23  ;;  %5447 = vrot.lane.b32.xlu2 %v5446_v50, %s5574_s11  ;;  %v3415_v21 = vadd.f32 %v3414_v57, %v7937_v11 }
 0x593   :  { %3593 = vmatpush.msrb.mxu1 %v2732_v59  ;;  %3616 = vmatpush.msra.mxu2 %v2940_v63 }
 0x594   :  { %3594 = vmatmul.f32.vlgmr.msrb.gmra.mxu1 %v7624_v9  ;;  %3570 = vmatpush.msra.mxu3 %v2939_v7  ;;  %v5541_v9 = vld [vmem:[%s9717_s3 + $0x18] sm:$0xff] }
 0x595   :  { %5355 = vmatmul.msk.f32.vlgmr.msra.gmra.mxu2 %vm9735_vm5, %v7905_v5  ;;  %5352 = vmatmul.msk.f32.vlgmr.msra.gmra.mxu3 %vm9736_vm8, %v7905_v5  ;;  %vm9742_vm5 = vcmask 1022976   ;;  %vm4528_vm8 = vcmask 582008  }
 0x596   :  { %3551 = vmatmul.f32.gmra.mxu0 %v7827_v29  ;;  %v3388_v44 = vpop.f32.mrf.mxu3 }
 0x597   :  { %v8020_v5 = vadd.f32 %v3388_v44, %v3366_v6 }
 0x59c   :  { %3597 = vmatmul.f32.gmra.mxu1 %v7827_v29  ;;  %v3369_v29 = vadd.f32 %v3368_v26, %v7937_v11 }
 0x59d   :  { %5356 = vmatmul.msk.f32.gmra.mxu2 %vm9737_vm12, %v5541_v9  ;;  %5353 = vmatmul.msk.f32.gmra.mxu3 %vm9738_vm14, %v5541_v9  ;;  %vm4551_vm12 = vcmask 1041360   ;;  %vm4552_vm14 = vcmask 149506  }
 0x59e   :  { %v3391_v39 = vpop.f32.mrf.mxu3 }
 0x59f   :  { %v3434_v40 = vpop.f32.mrf.mxu2  ;;  %v8029_v43 = vadd.f32 %v3391_v39, %v3369_v29 }
 0x5a0   :  { %v8022_v55 = vadd.f32 %v3434_v40, %v3412_v52 }
 0x5a2   :  { %v5451_v2 = vpack.i.bf16 %v8022_v55, %v8020_v5 }
 0x5a4   :  { %5452 = vrot.lane.b32.xlu0 %v5451_v2, %s5574_s11 }
 0x5a7   :  { %v3437_v25 = vpop.f32.mrf.mxu2 }
 0x5a8   :  { %v8031_v28 = vadd.f32 %v3437_v25, %v3415_v21 }
 0x5aa   :  { %v5461_v49 = vpack.i.bf16 %v8031_v28, %v8029_v43 }
 0x5ac   :  { %5462 = vrot.lane.b32.xlu2 %v5461_v49, %s5574_s11  ;;  %v3973_v49 = vld [vmem:[%s9723_s9 + $0x78] sm:$0xff] }
 0x5ad   :  { %4163 = vmatpush.msrb.mxu3 %v3973_v49 }
 0x5ba   :  { %v3457_v58 = vpop.f32.mrf.mxu3 }
 0x5bb   :  { %v3458_v13 = vadd.f32 %v3457_v58, %v7869_v16  ;;  %v3972_v58 = vld [vmem:[%s9723_s9 + $0x70] sm:$0xff] }
 0x5bc   :  { %4164 = vmatpush.msrb.mxu3 %v3972_v58 }
 0x5c2   :  { %v3460_v27 = vpop.f32.mrf.mxu3 }
 0x5c3   :  { %v3461_v45 = vadd.f32 %v3460_v27, %v7937_v11 }
 0x5c7   :  { %v3503_v3 = vpop.f32.mrf.mxu2 }
 0x5c8   :  { %v3504_v56 = vadd.f32 %v3503_v3, %v7869_v16 }
 0x5cf   :  { %v3506_v47 = vpop.f32.mrf.mxu2 }
 0x5d0   :  { %v3507_v15 = vadd.f32 %v3506_v47, %v7937_v11 }
 0x5db   :  { %v5418_v19 = vpop.permute.xlu1 %5417 }
 0x5dc   :  { %v8037_v51 = vpop.permute.xlu2 %5422  ;;  %v5420_v62 = vunpack.i.h.bf16 %v5418_v19  ;;  %v5419_v41 = vunpack.i.l.bf16 %v5418_v19  ;;  %v5438_v25 = vpop.permute.xlu0 %5437 }
 0x5dd   :  { %v5424_v60 = vunpack.i.l.bf16 %v8037_v51  ;;  %v5425_v33 = vunpack.i.h.bf16 %v8037_v51  ;;  %v5439_v19 = vunpack.i.l.bf16 %v5438_v25  ;;  %v3968_v51 = vld [vmem:[%s9723_s9 + $0x50] sm:$0xff] }
 0x5de   :  { %v3702_v35 = vsel %vm81_vm10, %v5419_v41, %v5420_v62 }
 0x5df   :  { %v3703_v31 = vsel %vm81_vm10, %v5420_v62, %v5424_v60  ;;  %v8061_v23 = vmax.f32 %v7880_v34, %v3702_v35  ;;  %v3970_v62 = vld [vmem:[%s9723_s9 + $0x60] sm:$0xff] }
 0x5e0   :  { %v8055_v50 = vmax.f32 %v7883_v36, %v3703_v31  ;;  %v3969_v31 = vld [vmem:[%s9723_s9 + $0x58] sm:$0xff] }
 0x5e2   :  { %v5471_v36 = vpack.i.bf16 %v8055_v50, %v8061_v23 }
 0x5e4   :  { %v5433_v21 = vpop.permute.xlu2 %5432 }
 0x5e6   :  { %v3480_v54 = vpop.f32.mrf.mxu0 }
 0x5e7   :  { %v8040_v10 = vadd.f32 %v3480_v54, %v3458_v13  ;;  %v5435_v13 = vunpack.i.h.bf16 %v5433_v21  ;;  %v5434_v54 = vunpack.i.l.bf16 %v5433_v21 }
 0x5eb   :  { %v3526_v17 = vpop.f32.mrf.mxu1 }
 0x5ec   :  { %v8043_v30 = vadd.f32 %v3526_v17, %v3504_v56  ;;  %v5440_v56 = vunpack.i.h.bf16 %v5438_v25 }
 0x5ee   :  { %v5456_v20 = vpack.i.bf16 %v8043_v30, %v8040_v10  ;;  %v3483_v14 = vpop.f32.mrf.mxu0  ;;  %v3707_v35 = vsel %vm81_vm10, %v5439_v19, %v5440_v56 }
 0x5ef   :  { %v8057_v22 = vadd.f32 %v3483_v14, %v3461_v45  ;;  %v3704_v14 = vsel %vm81_vm10, %v5424_v60, %v5434_v54 }
 0x5f0   :  { %5457 = vrot.lane.b32.xlu1 %v5456_v20, %s5574_s11  ;;  %v8130_v60 = vmax.f32 %v7946_v18, %v3704_v14  ;;  %v3966_v18 = vld [vmem:[%s9723_s9 + $0x40] sm:$0xff] }
 0x5f1   :  { %v3986_v14 = vld [vmem:[%s9723_s9 + $0xe0] sm:$0xff] }
 0x5f3   :  { %v3529_v1 = vpop.f32.mrf.mxu1  ;;  %v5428_v63 = vpop.permute.xlu1 %5427 }
 0x5f4   :  { %v8063_v59 = vadd.f32 %v3529_v1, %v3507_v15  ;;  %v5430_v7 = vunpack.i.h.bf16 %v5428_v63  ;;  %v5429_v37 = vunpack.i.l.bf16 %v5428_v63  ;;  %v3706_v15 = vsel %vm81_vm10, %v5435_v13, %v5439_v19  ;;  %v3988_v19 = vld [vmem:[%s9723_s9 + $0xf0] sm:$0xff] }
 0x5f6   :  { %v5466_v48 = vpack.i.bf16 %v8063_v59, %v8057_v22  ;;  %v3714_v44 = vsel %vm81_vm10, %v5425_v33, %v5429_v37  ;;  %v3715_v6 = vsel %vm81_vm10, %v5429_v37, %v5430_v7  ;;  %v5448_v33 = vpop.permute.xlu2 %5447  ;;  %v8139_v37 = vmax.f32 %v7885_v8, %v3707_v35  ;;  %v3985_v35 = vld [vmem:[%s9723_s9 + $0xd8] sm:$0xff] }
 0x5f7   :  { %v8074_v34 = vmax.f32 %v7961_v46, %v3714_v44  ;;  %v8077_v52 = vmax.f32 %v7955_v61, %v3715_v6  ;;  %v5449_v6 = vunpack.i.l.bf16 %v5448_v33 }
 0x5f8   :  { %5467 = vrot.lane.b32.xlu0 %v5466_v48, %s5574_s11  ;;  %5472 = vrot.lane.b32.xlu1 %v5471_v36, %s5578_s17  ;;  %v3967_v48 = vld [vmem:[%s9723_s9 + $0x48] sm:$0xff] }
 0x5f9   :  { %v5476_v57 = vpack.i.bf16 %v8077_v52, %v8074_v34 }
 0x5fb   :  { %v5443_v9 = vpop.permute.xlu1 %5442 }
 0x5fc   :  { %v5445_v40 = vunpack.i.h.bf16 %v5443_v9  ;;  %v5444_v26 = vunpack.i.l.bf16 %v5443_v9 }
 0x5fe   :  { %v3716_v2 = vsel %vm81_vm10, %v5430_v7, %v5444_v26  ;;  %v3717_v29 = vsel %vm81_vm10, %v5444_v26, %v5445_v40  ;;  %v8136_v7 = vmax.f32 %v7984_v24, %v3706_v15  ;;  %v3718_v9 = vsel %vm81_vm10, %v5445_v40, %v5449_v6  ;;  %v3959_v15 = vld [vmem:[%s9723_s9 + $0x8] sm:$0xff] }
 0x5ff   :  { %v8085_v39 = vmax.f32 %v7958_v38, %v3716_v2  ;;  %v8088_v46 = vmax.f32 %v7978_v12, %v3717_v29  ;;  %v3971_v12 = vld [vmem:[%s9723_s9 + $0x68] sm:$0xff] }
 0x600   :  { %5477 = vrot.lane.b32.xlu1 %v5476_v57, %s5578_s17  ;;  %4165 = vmatpush.msrb.mxu3 %v3971_v12  ;;  %v5486_v8 = vpack.i.bf16 %v8139_v37, %v8136_v7 }
 0x601   :  { %v5491_v61 = vpack.i.bf16 %v8088_v46, %v8085_v39 }
 0x602   :  { %4166 = vmatpush.msrb.mxu3 %v3970_v62  ;;  %v3961_v62 = vld [vmem:[%s9723_s9 + $0x18] sm:$0xff] }
 0x604   :  { %4167 = vmatpush.msrb.mxu3 %v3969_v31  ;;  %v3960_v31 = vld [vmem:[%s9723_s9 + $0x10] sm:$0xff] }
 0x606   :  { %4168 = vmatpush.msrb.mxu3 %v3968_v51  ;;  %v8158_v2 = vpop.permute.xlu2 %5462  ;;  %v3958_v51 = vld [vmem:[%s9723_s9] sm:$0xff] }
 0x607   :  { %v5465_v25 = vunpack.i.h.bf16 %v8158_v2  ;;  %v5464_v49 = vunpack.i.l.bf16 %v8158_v2 }
 0x608   :  { %5492 = vrot.lane.b32.xlu1 %v5491_v61, %s5578_s17  ;;  %4169 = vmatpush.msrb.mxu3 %v3967_v48  ;;  %v8164_v61 = vmax.f32 %v7981_v0, %v3718_v9  ;;  %v3984_v48 = vld [vmem:[%s9723_s9 + $0xd0] sm:$0xff]  ;;  %v3997_v9 = vld [vmem:[%s9723_s9 + $0x138] sm:$0xff] }
 0x60a   :  { %v3549_v38 = vpop.f32.mrf.mxu0  ;;  %4170 = vmatpush.msrb.mxu3 %v3966_v18  ;;  %v3983_v18 = vld [vmem:[%s9723_s9 + $0xc8] sm:$0xff] }
 0x60b   :  { %v3550_v17 = vadd.f32 %v3549_v38, %v7869_v16 }
 0x611   :  { %v3595_v3 = vpop.f32.mrf.mxu1 }
 0x612   :  { %v3596_v27 = vadd.f32 %v3595_v3, %v7869_v16  ;;  %v3705_v16 = vsel %vm81_vm10, %v5434_v54, %v5435_v13  ;;  %v3965_v13 = vld [vmem:[%s9723_s9 + $0x38] sm:$0xff]  ;;  %v3964_v54 = vld [vmem:[%s9723_s9 + $0x30] sm:$0xff] }
 0x613   :  { %v8133_v63 = vmax.f32 %v7972_v32, %v3705_v16  ;;  %v5450_v32 = vunpack.i.h.bf16 %v5448_v33  ;;  %4171 = vmatpush.msrb.mxu3 %v3965_v13  ;;  %v4002_v16 = vld [vmem:[%s9723_s9 + $0x160] sm:$0xff]  ;;  %v4001_v33 = vld [vmem:[%s9723_s9 + $0x158] sm:$0xff] }
 0x614   :  { %v3993_v13 = vld [vmem:[%s9723_s9 + $0x118] sm:$0xff] }
 0x615   :  { %v5481_v24 = vpack.i.bf16 %v8133_v63, %v8130_v60  ;;  %v3719_v29 = vsel %vm81_vm10, %v5449_v6, %v5450_v32  ;;  %v3720_v3 = vsel %vm81_vm10, %v5450_v32, %v5464_v49  ;;  %4172 = vmatpush.msrb.mxu3 %v3964_v54  ;;  %v3999_v32 = vld [vmem:[%s9723_s9 + $0x148] sm:$0xff]  ;;  %v3982_v6 = vld [vmem:[%s9723_s9 + $0xc0] sm:$0xff]  ;;  %v4020_v54 = vld [vmem:[%s9723_s9 + $0x1f0] sm:$0xff] }
 0x616   :  { %v8120_v1 = vpop.permute.xlu0 %5452  ;;  %v8175_v58 = vmax.f32 %v7998_v53, %v3719_v29  ;;  %v3979_v29 = vld [vmem:[%s9723_s9 + $0xa8] sm:$0xff] }
 0x617   :  { %v5455_v36 = vunpack.i.h.bf16 %v8120_v1  ;;  %v5454_v44 = vunpack.i.l.bf16 %v8120_v1 }
 0x618   :  { %v3618_v41 = vpop.f32.mrf.mxu2  ;;  %v3572_v47 = vpop.f32.mrf.mxu3  ;;  %v5496_v0 = vpack.i.bf16 %v8175_v58, %v8164_v61 }
 0x619   :  { %v8107_v20 = vadd.f32 %v3618_v41, %v3596_v27  ;;  %v8109_v45 = vadd.f32 %v3572_v47, %v3550_v17  ;;  %v3708_v26 = vsel %vm81_vm10, %v5440_v56, %v5454_v44  ;;  %v3709_v57 = vsel %vm81_vm10, %v5454_v44, %v5455_v36  ;;  %v3963_v56 = vld [vmem:[%s9723_s9 + $0x28] sm:$0xff]  ;;  %v4004_v17 = vld [vmem:[%s9723_s9 + $0x170] sm:$0xff]  ;;  %v3962_v27 = vld [vmem:[%s9723_s9 + $0x20] sm:$0xff] }
 0x61a   :  { %v8167_v40 = vmax.f32 %v7888_v4, %v3708_v26  ;;  %v8170_v21 = vmax.f32 %v8020_v5, %v3709_v57  ;;  %v3721_v4 = vsel %vm81_vm10, %v5464_v49, %v5465_v25  ;;  %v8188_v5 = vmax.f32 %v8000_v42, %v3720_v3  ;;  %v3989_v42 = vld [vmem:[%s9723_s9 + $0xf8] sm:$0xff]  ;;  %4173 = vmatpush.msrb.mxu3 %v3963_v56  ;;  %v3987_v41 = vld [vmem:[%s9723_s9 + $0xe8] sm:$0xff]  ;;  %v4000_v44 = vld [vmem:[%s9723_s9 + $0x150] sm:$0xff] }
 0x61b   :  { %3674 = vrot.lane.b32.xlu0 %v8107_v20, %s5574_s11  ;;  %3672 = vrot.lane.b32.xlu2 %v8109_v45, %s5574_s11  ;;  %v8191_v53 = vmax.f32 %v8029_v43, %v3721_v4  ;;  %v4005_v43 = vld [vmem:[%s9723_s9 + $0x178] sm:$0xff]  ;;  %v4003_v47 = vld [vmem:[%s9723_s9 + $0x168] sm:$0xff] }
 0x61c   :  { %v5501_v38 = vpack.i.bf16 %v8170_v21, %v8167_v40  ;;  %4186 = vmatpush.msrb.mxu0 %v3989_v42  ;;  %4209 = vmatpush.msrb.mxu2 %v4005_v43  ;;  %v3980_v26 = vld [vmem:[%s9723_s9 + $0xb0] sm:$0xff]  ;;  %v4021_v49 = vld [vmem:[%s9723_s9 + $0x1f8] sm:$0xff]  ;;  %v3978_v3 = vld [vmem:[%s9723_s9 + $0xa0] sm:$0xff] }
 0x61d   :  { %v5511_v12 = vpack.i.bf16 %v8191_v53, %v8188_v5  ;;  %4174 = vmatpush.msrb.mxu3 %v3962_v27  ;;  %v3996_v57 = vld [vmem:[%s9723_s9 + $0x130] sm:$0xff]  ;;  %4232 = vmatpush.msra.mxu1 %v4021_v49  ;;  %v3994_v4 = vld [vmem:[%s9723_s9 + $0x120] sm:$0xff] }
 0x61e   :  { %4187 = vmatpush.msrb.mxu0 %v3988_v19  ;;  %4210 = vmatpush.msrb.mxu2 %v4004_v17  ;;  %v4036_v43 = vld [vmem:[%s9723_s9 + $0x270] sm:$0xff] }
 0x61f   :  { %4175 = vmatpush.msrb.mxu3 %v3961_v62  ;;  %4233 = vmatpush.msra.mxu1 %v4020_v54  ;;  %v3976_v56 = vld [vmem:[%s9723_s9 + $0x90] sm:$0xff]  ;;  %v4019_v62 = vld [vmem:[%s9723_s9 + $0x1e8] sm:$0xff] }
 0x620   :  { %4188 = vmatpush.msrb.mxu0 %v3987_v41  ;;  %4211 = vmatpush.msrb.mxu2 %v4003_v47  ;;  %v3992_v27 = vld [vmem:[%s9723_s9 + $0x110] sm:$0xff]  ;;  %v4035_v41 = vld [vmem:[%s9723_s9 + $0x268] sm:$0xff] }
 0x621   :  { %4176 = vmatpush.msrb.mxu3 %v3960_v31  ;;  %4234 = vmatpush.msra.mxu1 %v4019_v62  ;;  %v3975_v47 = vld [vmem:[%s9723_s9 + $0x88] sm:$0xff]  ;;  %v4018_v31 = vld [vmem:[%s9723_s9 + $0x1e0] sm:$0xff] }
 0x622   :  { %4189 = vmatpush.msrb.mxu0 %v3986_v14  ;;  %4212 = vmatpush.msrb.mxu2 %v4002_v16  ;;  %v4034_v14 = vld [vmem:[%s9723_s9 + $0x260] sm:$0xff] }
 0x623   :  { %5487 = vrot.lane.b32.xlu0 %v5486_v8, %s5578_s17  ;;  %5482 = vrot.lane.b32.xlu2 %v5481_v24, %s5578_s17  ;;  %v3998_v8 = vld [vmem:[%s9723_s9 + $0x140] sm:$0xff]  ;;  %v3981_v24 = vld [vmem:[%s9723_s9 + $0xb8] sm:$0xff] }
 0x624   :  { %4177 = vmatpush.msrb.mxu3 %v3959_v15  ;;  %4190 = vmatpush.msrb.mxu0 %v3985_v35  ;;  %v3991_v35 = vld [vmem:[%s9723_s9 + $0x108] sm:$0xff]  ;;  %v4050_v62 = vld [vmem:[%s9723_s9 + $0x2e0] sm:$0xff] }
 0x625   :  { %4213 = vmatpush.msrb.mxu2 %v4001_v33  ;;  %v4017_v33 = vld [vmem:[%s9723_s9 + $0x1d8] sm:$0xff]  ;;  %4235 = vmatpush.msra.mxu1 %v4018_v31 }
 0x626   :  { %4178 = vmatpush.msrb.mxu3 %v3958_v51  ;;  %4191 = vmatpush.msrb.mxu0 %v3984_v48  ;;  %v4033_v48 = vld [vmem:[%s9723_s9 + $0x258] sm:$0xff] }
 0x627   :  { %4214 = vmatpush.msrb.mxu2 %v4000_v44  ;;  %4236 = vmatpush.msra.mxu1 %v4017_v33  ;;  %v4053_v44 = vld [vmem:[%s9723_s9 + $0x2f8] sm:$0xff]  ;;  %v3552_v33 = vpop.f32.mrf.mxu0 }
 0x628   :  { %4192 = vmatpush.msrb.mxu0 %v3983_v18  ;;  %v4069_v18 = vld [vmem:[%s9723_s9 + $0x378] sm:$0xff] }
 0x629   :  { %4215 = vmatpush.msrb.mxu2 %v3999_v32  ;;  %v4016_v32 = vld [vmem:[%s9723_s9 + $0x1d0] sm:$0xff]  ;;  %v4049_v31 = vld [vmem:[%s9723_s9 + $0x2d8] sm:$0xff] }
 0x62a   :  { %4193 = vmatpush.msrb.mxu0 %v3982_v6  ;;  %v4032_v6 = vld [vmem:[%s9723_s9 + $0x250] sm:$0xff]  ;;  %4237 = vmatpush.msra.mxu1 %v4016_v32  ;;  %v3575_v32 = vpop.f32.mrf.mxu3 }
 0x62b   :  { %5502 = vrot.lane.b32.xlu0 %v5501_v38, %s5578_s17  ;;  %5497 = vrot.lane.b32.xlu2 %v5496_v0, %s5578_s17  ;;  %v4037_v38 = vld [vmem:[%s9723_s9 + $0x278] sm:$0xff]  ;;  %v3995_v0 = vld [vmem:[%s9723_s9 + $0x128] sm:$0xff] }
 0x62c   :  { %4216 = vmatpush.msrb.mxu2 %v3998_v8  ;;  %4194 = vmatpush.msrb.mxu0 %v3981_v24 }
 0x62d   :  { %4255 = vmatpush.msra.mxu3 %v4037_v38 }
 0x62e   :  { %4217 = vmatpush.msrb.mxu2 %v3997_v9  ;;  %4195 = vmatpush.msrb.mxu0 %v3980_v26  ;;  %v4052_v9 = vld [vmem:[%s9723_s9 + $0x2f0] sm:$0xff] }
 0x62f   :  { %4256 = vmatpush.msra.mxu3 %v4036_v43  ;;  %v4068_v26 = vld [vmem:[%s9723_s9 + $0x370] sm:$0xff] }
 0x630   :  { %4218 = vmatpush.msrb.mxu2 %v3996_v57  ;;  %4196 = vmatpush.msrb.mxu0 %v3979_v29 }
 0x631   :  { %4257 = vmatpush.msra.mxu3 %v4035_v41  ;;  %v4066_v41 = vld [vmem:[%s9723_s9 + $0x360] sm:$0xff] }
 0x632   :  { %4219 = vmatpush.msrb.mxu2 %v3995_v0  ;;  %4197 = vmatpush.msrb.mxu0 %v3978_v3  ;;  %v4015_v0 = vld [vmem:[%s9723_s9 + $0x1c8] sm:$0xff] }
 0x633   :  { %5512 = vrot.lane.b32.xlu2 %v5511_v12, %s5578_s17  ;;  %v3977_v12 = vld [vmem:[%s9723_s9 + $0x98] sm:$0xff]  ;;  %4258 = vmatpush.msra.mxu3 %v4034_v14  ;;  %v4031_v3 = vld [vmem:[%s9723_s9 + $0x248] sm:$0xff] }
 0x634   :  { %4220 = vmatpush.msrb.mxu2 %v3994_v4  ;;  %4198 = vmatpush.msrb.mxu0 %v3977_v12  ;;  %v4051_v4 = vld [vmem:[%s9723_s9 + $0x2e8] sm:$0xff] }
 0x635   :  { %4259 = vmatpush.msra.mxu3 %v4033_v48  ;;  %v4067_v12 = vld [vmem:[%s9723_s9 + $0x368] sm:$0xff]  ;;  %4238 = vmatpush.msra.mxu1 %v4015_v0 }
 0x636   :  { %4221 = vmatpush.msrb.mxu2 %v3993_v13  ;;  %4199 = vmatpush.msrb.mxu0 %v3976_v56  ;;  %v4014_v56 = vld [vmem:[%s9723_s9 + $0x1c0] sm:$0xff] }
 0x637   :  { %4260 = vmatpush.msra.mxu3 %v4032_v6  ;;  %4239 = vmatpush.msra.mxu1 %v4014_v56  ;;  %v4025_v56 = vld [vmem:[%s9723_s9 + $0x218] sm:$0xff] }
 0x638   :  { %4222 = vmatpush.msrb.mxu2 %v3992_v27  ;;  %4200 = vmatpush.msrb.mxu0 %v3975_v47 }
 0x639   :  { %4261 = vmatpush.msra.mxu3 %v4031_v3  ;;  %v4010_v3 = vld [vmem:[%s9723_s9 + $0x1a0] sm:$0xff] }
 0x63a   :  { %4223 = vmatpush.msrb.mxu2 %v3991_v35  ;;  %v4028_v35 = vld [vmem:[%s9723_s9 + $0x230] sm:$0xff] }
 0x662   :  { %v8307_v42 = vpop.permute.xlu1 %5457 }
 0x663   :  { %v5460_v19 = vunpack.i.h.bf16 %v8307_v42  ;;  %v5459_v17 = vunpack.i.l.bf16 %v8307_v42  ;;  %v4101_v42 = vld [vmem:[%s9723_s9 + $0x478] sm:$0xff] }
 0x665   :  { %v3710_v16 = vsel %vm81_vm10, %v5455_v36, %v5459_v17  ;;  %v3711_v15 = vsel %vm81_vm10, %v5459_v17, %v5460_v19  ;;  %v3974_v36 = vld [vmem:[%s9723_s9 + $0x80] sm:$0xff] }
 0x666   :  { %v8348_v51 = vmax.f32 %v8022_v55, %v3710_v16  ;;  %v8351_v1 = vmax.f32 %v8040_v10, %v3711_v15  ;;  %v3990_v55 = vld [vmem:[%s9723_s9 + $0x100] sm:$0xff]  ;;  %4201 = vmatpush.msrb.mxu0 %v3974_v36  ;;  %v4065_v16 = vld [vmem:[%s9723_s9 + $0x358] sm:$0xff]  ;;  %v4012_v15 = vld [vmem:[%s9723_s9 + $0x1b0] sm:$0xff] }
 0x667   :  { %4224 = vmatpush.msrb.mxu2 %v3990_v55  ;;  %v4030_v17 = vld [vmem:[%s9723_s9 + $0x240] sm:$0xff]  ;;  %v4048_v55 = vld [vmem:[%s9723_s9 + $0x2d0] sm:$0xff] }
 0x668   :  { %v5506_v10 = vpack.i.bf16 %v8351_v1, %v8348_v51  ;;  %4278 = vmatpush.msra.mxu0 %v4053_v44  ;;  %4262 = vmatpush.msra.mxu3 %v4030_v17  ;;  %v4011_v44 = vld [vmem:[%s9723_s9 + $0x1a8] sm:$0xff]  ;;  %v4045_v17 = vld [vmem:[%s9723_s9 + $0x2b8] sm:$0xff] }
 0x669   :  { %4301 = vmatpush.msra.mxu2 %v4069_v18  ;;  %v4027_v18 = vld [vmem:[%s9723_s9 + $0x228] sm:$0xff] }
 0x66a   :  { %v8376_v8 = vpop.permute.xlu1 %5472  ;;  %v8378_v24 = vpop.permute.xlu0 %5467  ;;  %5507 = vrot.lane.b32.xlu1 %v5506_v10, %s5578_s17  ;;  %4279 = vmatpush.msra.mxu0 %v4052_v9  ;;  %v4064_v10 = vld [vmem:[%s9723_s9 + $0x350] sm:$0xff] }
 0x66b   :  { %v5475_v57 = vunpack.i.h.bf16 %v8376_v8  ;;  %v5474_v29 = vunpack.i.l.bf16 %v8376_v8  ;;  %v5470_v49 = vunpack.i.h.bf16 %v8378_v24  ;;  %v5469_v38 = vunpack.i.l.bf16 %v8378_v24  ;;  %4302 = vmatpush.msra.mxu2 %v4068_v26  ;;  %v4047_v26 = vld [vmem:[%s9723_s9 + $0x2c8] sm:$0xff] }
 0x66c   :  { %4280 = vmatpush.msra.mxu0 %v4051_v4  ;;  %v4026_v4 = vld [vmem:[%s9723_s9 + $0x220] sm:$0xff] }
 0x66d   :  { %v3856_v13 = vsel %vm257_vm15, %v5474_v29, %v5475_v57  ;;  %v3722_v54 = vsel %vm81_vm10, %v5465_v25, %v5469_v38  ;;  %v3723_v43 = vsel %vm81_vm10, %v5469_v38, %v5470_v49  ;;  %4303 = vmatpush.msra.mxu2 %v4067_v12  ;;  %v4063_v29 = vld [vmem:[%s9723_s9 + $0x348] sm:$0xff]  ;;  %v3553_v38 = vadd.f32 %v3552_v33, %v7937_v11 }
 0x66e   :  { %v3906_v27 = vmax.f32 %v8061_v23, %v3856_v13  ;;  %v8420_v2 = vmax.f32 %v8031_v28, %v3722_v54  ;;  %v8423_v25 = vmax.f32 %v8057_v22, %v3723_v43  ;;  %4281 = vmatpush.msra.mxu0 %v4050_v62  ;;  %v4013_v22 = vld [vmem:[%s9723_s9 + $0x1b8] sm:$0xff]  ;;  %v4062_v54 = vld [vmem:[%s9723_s9 + $0x340] sm:$0xff]  ;;  %v4008_v62 = vld [vmem:[%s9723_s9 + $0x190] sm:$0xff] }
 0x66f   :  { %4304 = vmatpush.msra.mxu2 %v4066_v41  ;;  %v4029_v23 = vld [vmem:[%s9723_s9 + $0x238] sm:$0xff]  ;;  %4240 = vmatpush.msra.mxu1 %v4013_v22  ;;  %v8487_v12 = vadd.f32 %v3575_v32, %v3553_v38  ;;  %v4024_v41 = vld [vmem:[%s9723_s9 + $0x210] sm:$0xff]  ;;  %v4043_v33 = vld [vmem:[%s9723_s9 + $0x2a8] sm:$0xff] }
 0x670   :  { %v3932_v47 = vmax.f32 %v3906_v27, 0.0  ;;  %v5516_v28 = vpack.i.bf16 %v8423_v25, %v8420_v2  ;;  %4263 = vmatpush.msra.mxu3 %v4029_v23  ;;  %4282 = vmatpush.msra.mxu0 %v4049_v31  ;;  %v4009_v43 = vld [vmem:[%s9723_s9 + $0x198] sm:$0xff]  ;;  %v4007_v31 = vld [vmem:[%s9723_s9 + $0x188] sm:$0xff] }
 0x671   :  { %4305 = vmatpush.msra.mxu2 %v4065_v16  ;;  %4241 = vmatpush.msra.mxu1 %v4012_v15  ;;  %v4061_v27 = vld [vmem:[%s9723_s9 + $0x338] sm:$0xff]  ;;  %v4023_v16 = vld [vmem:[%s9723_s9 + $0x208] sm:$0xff] }
 0x672   :  { %v8442_v14 = vpop.permute.xlu1 %5477  ;;  %4179 = vmatmul.f32.vlgmr.msrb.gmra.mxu3 %v3932_v47  ;;  %5517 = vrot.lane.b32.xlu0 %v5516_v28, %s5578_s17  ;;  %v4044_v47 = vld [vmem:[%s9723_s9 + $0x2b0] sm:$0xff] }
 0x673   :  { %v5480_v36 = vunpack.i.h.bf16 %v8442_v14  ;;  %v5479_v48 = vunpack.i.l.bf16 %v8442_v14  ;;  %4264 = vmatpush.msra.mxu3 %v4028_v35  ;;  %4283 = vmatpush.msra.mxu0 %v4048_v55  ;;  %v4060_v28 = vld [vmem:[%s9723_s9 + $0x330] sm:$0xff]  ;;  %v4006_v55 = vld [vmem:[%s9723_s9 + $0x180] sm:$0xff] }
 0x674   :  { %4306 = vmatpush.msra.mxu2 %v4064_v10  ;;  %4242 = vmatpush.msra.mxu1 %v4011_v44  ;;  %v4022_v10 = vld [vmem:[%s9723_s9 + $0x200] sm:$0xff] }
 0x675   :  { %v8468_v6 = vpop.permute.xlu2 %3672  ;;  %v3868_v9 = vsel %vm257_vm15, %v5479_v48, %v5480_v36  ;;  %4265 = vmatpush.msra.mxu3 %v4027_v18  ;;  %4284 = vmatpush.msra.mxu0 %v4047_v26  ;;  %v4059_v48 = vld [vmem:[%s9723_s9 + $0x328] sm:$0xff]  ;;  %v4042_v26 = vld [vmem:[%s9723_s9 + $0x2a0] sm:$0xff] }
 0x676   :  { %v3919_v0 = vmax.f32 %v8074_v34, %v3868_v9  ;;  %4307 = vmatpush.msra.mxu2 %v4063_v29  ;;  %v4046_v34 = vld [vmem:[%s9723_s9 + $0x2c0] sm:$0xff]  ;;  %4243 = vmatpush.msra.mxu1 %v4010_v3  ;;  %v4041_v3 = vld [vmem:[%s9723_s9 + $0x298] sm:$0xff] }
 0x677   :  { %4266 = vmatpush.msra.mxu3 %v4026_v4  ;;  %4285 = vmatpush.msra.mxu0 %v4046_v34  ;;  %v4058_v29 = vld [vmem:[%s9723_s9 + $0x320] sm:$0xff]  ;;  %v4057_v4 = vld [vmem:[%s9723_s9 + $0x318] sm:$0xff]  ;;  %v4056_v34 = vld [vmem:[%s9723_s9 + $0x310] sm:$0xff] }
 0x678   :  { %v3945_v13 = vmax.f32 %v3919_v0, 0.0  ;;  %4308 = vmatpush.msra.mxu2 %v4062_v54  ;;  %4244 = vmatpush.msra.mxu1 %v4009_v43  ;;  %v4039_v54 = vld [vmem:[%s9723_s9 + $0x288] sm:$0xff] }
 0x679   :  { %4267 = vmatpush.msra.mxu3 %v4025_v56  ;;  %4286 = vmatpush.msra.mxu0 %v4045_v17  ;;  %v4055_v43 = vld [vmem:[%s9723_s9 + $0x308] sm:$0xff]  ;;  %v4038_v56 = vld [vmem:[%s9723_s9 + $0x280] sm:$0xff] }
 0x67a   :  { %4182 = vmatmul.f32.gmra.mxu3 %v3945_v13  ;;  %3698 = vrot.lane.b32.xlu0 %v8487_v12, %s5574_s11  ;;  %v8521_v22 = vpop.permute.xlu1 %5492  ;;  %v4040_v13 = vld [vmem:[%s9723_s9 + $0x290] sm:$0xff] }
 0x67b   :  { %4309 = vmatpush.msra.mxu2 %v4061_v27  ;;  %4245 = vmatpush.msra.mxu1 %v4008_v62  ;;  %v5495_v44 = vunpack.i.h.bf16 %v8521_v22  ;;  %v5494_v18 = vunpack.i.l.bf16 %v8521_v22  ;;  %v3712_v27 = vsel %vm81_vm10, %v5460_v19, %v8468_v6  ;;  %v4084_v19 = vld [vmem:[%s9723_s9 + $0x3f0] sm:$0xff] }
 0x67c   :  { %4268 = vmatpush.msra.mxu3 %v4024_v41  ;;  %4287 = vmatpush.msra.mxu0 %v4044_v47 }
 0x67d   :  { %v8523_v23 = vpop.permute.xlu2 %5482  ;;  %4310 = vmatpush.msra.mxu2 %v4060_v28  ;;  %4246 = vmatpush.msra.mxu1 %v4007_v31  ;;  %v4085_v28 = vld [vmem:[%s9723_s9 + $0x3f8] sm:$0xff]  ;;  %v8612_v31 = vmax.f32 %v8043_v30, %v3712_v27 }
 0x67e   :  { %v5485_v15 = vunpack.i.h.bf16 %v8523_v23  ;;  %v5484_v35 = vunpack.i.l.bf16 %v8523_v23  ;;  %4269 = vmatpush.msra.mxu3 %v4023_v16  ;;  %4288 = vmatpush.msra.mxu0 %v4043_v33  ;;  %v4083_v16 = vld [vmem:[%s9723_s9 + $0x3e8] sm:$0xff]  ;;  %v4098_v33 = vld [vmem:[%s9723_s9 + $0x460] sm:$0xff] }
 0x67f   :  { %4311 = vmatpush.msra.mxu2 %v4059_v48  ;;  %4247 = vmatpush.msra.mxu1 %v4006_v55  ;;  %v3598_v48 = vpop.f32.mrf.mxu1  ;;  %v4095_v23 = vld [vmem:[%s9723_s9 + $0x448] sm:$0xff] }
 0x680   :  { %v3857_v32 = vsel %vm257_vm15, %v5475_v57, %v5484_v35  ;;  %v3858_v9 = vsel %vm257_vm15, %v5484_v35, %v5485_v15  ;;  %4270 = vmatpush.msra.mxu3 %v4022_v10  ;;  %4289 = vmatpush.msra.mxu0 %v4042_v26  ;;  %v4082_v35 = vld [vmem:[%s9723_s9 + $0x3e0] sm:$0xff]  ;;  %v4081_v10 = vld [vmem:[%s9723_s9 + $0x3d8] sm:$0xff] }
 0x681   :  { %v3907_v38 = vmax.f32 %v8055_v50, %v3857_v32  ;;  %v3908_v8 = vmax.f32 %v8130_v60, %v3858_v9  ;;  %4312 = vmatpush.msra.mxu2 %v4058_v29  ;;  %v3869_v50 = vsel %vm257_vm15, %v5480_v36, %v5494_v18  ;;  %v3870_v60 = vsel %vm257_vm15, %v5494_v18, %v5495_v44  ;;  %v4097_v32 = vld [vmem:[%s9723_s9 + $0x458] sm:$0xff]  ;;  %v3621_v9 = vpop.f32.mrf.mxu2 }
 0x682   :  { %4290 = vmatpush.msra.mxu0 %v4041_v3  ;;  %v3920_v14 = vmax.f32 %v8077_v52, %v3869_v50  ;;  %v3921_v36 = vmax.f32 %v8085_v39, %v3870_v60  ;;  %v4054_v52 = vld [vmem:[%s9723_s9 + $0x300] sm:$0xff]  ;;  %4324 = vmatpush.msrb.mxu1 %v4085_v28 }
 0x683   :  { %v3933_v57 = vmax.f32 %v3907_v38, 0.0  ;;  %v3934_v0 = vmax.f32 %v3908_v8, 0.0  ;;  %4313 = vmatpush.msra.mxu2 %v4057_v4  ;;  %4347 = vmatpush.msrb.mxu3 %v4101_v42  ;;  %v4080_v38 = vld [vmem:[%s9723_s9 + $0x3d0] sm:$0xff]  ;;  %v3599_v8 = vadd.f32 %v3598_v48, %v7937_v11  ;;  %v4079_v11 = vld [vmem:[%s9723_s9 + $0x3c8] sm:$0xff] }
 0x684   :  { %4291 = vmatpush.msra.mxu0 %v4040_v13  ;;  %v3946_v39 = vmax.f32 %v3920_v14, 0.0  ;;  %v3947_v17 = vmax.f32 %v3921_v36, 0.0  ;;  %4325 = vmatpush.msrb.mxu1 %v4084_v19  ;;  %v4078_v36 = vld [vmem:[%s9723_s9 + $0x3c0] sm:$0xff] }
 0x685   :  { %4202 = vmatmul.f32.vlgmr.msrb.gmra.mxu0 %v3933_v57  ;;  %4225 = vmatmul.f32.vlgmr.msrb.gmra.mxu2 %v3934_v0  ;;  %v8637_v55 = vpop.permute.xlu2 %5497  ;;  %v4096_v57 = vld [vmem:[%s9723_s9 + $0x450] sm:$0xff]  ;;  %v8661_v60 = vadd.f32 %v3621_v9, %v3599_v8 }
 0x686   :  { %4314 = vmatpush.msra.mxu2 %v4056_v34  ;;  %4292 = vmatpush.msra.mxu0 %v4039_v54  ;;  %v5500_v0 = vunpack.i.h.bf16 %v8637_v55  ;;  %v5499_v3 = vunpack.i.l.bf16 %v8637_v55  ;;  %v4072_v8 = vld [vmem:[%s9723_s9 + $0x390] sm:$0xff] }
 0x687   :  { %4326 = vmatpush.msrb.mxu1 %v4083_v16  ;;  %v4075_v16 = vld [vmem:[%s9723_s9 + $0x3a8] sm:$0xff] }
 0x688   :  { %4315 = vmatpush.msra.mxu2 %v4055_v43  ;;  %4293 = vmatpush.msra.mxu0 %v4038_v56  ;;  %v3872_v54 = vsel %vm257_vm15, %v5499_v3, %v5500_v0  ;;  %v4077_v56 = vld [vmem:[%s9723_s9 + $0x3b8] sm:$0xff] }
 0x689   :  { %4327 = vmatpush.msrb.mxu1 %v4082_v35  ;;  %v3923_v27 = vmax.f32 %v8164_v61, %v3872_v54  ;;  %v4150_v54 = vld [vmem:[%s9723_s9 + $0x600] sm:$0xff] }
 0x68a   :  { %4316 = vmatpush.msra.mxu2 %v4054_v52  ;;  %v4093_v52 = vld [vmem:[%s9723_s9 + $0x438] sm:$0xff] }
 0x68b   :  { %4328 = vmatpush.msrb.mxu1 %v4081_v10  ;;  %v3949_v35 = vmax.f32 %v3923_v27, 0.0  ;;  %v4129_v27 = vld [vmem:[%s9723_s9 + $0x558] sm:$0xff] }
 0x68d   :  { %v3675_v62 = vpop.permute.xlu0 %3674  ;;  %4205 = vmatmul.f32.gmra.mxu0 %v3946_v39  ;;  %4228 = vmatmul.f32.gmra.mxu2 %v3947_v17  ;;  %v8688_v39 = vpop.permute.xlu2 %5512 }
 0x68e   :  { %v3713_v41 = vsel %vm81_vm10, %v8468_v6, %v3675_v62  ;;  %v8600_v47 = vmax.f32 %v8107_v20, %v3675_v62  ;;  %v4100_v20 = vld [vmem:[%s9723_s9 + $0x470] sm:$0xff]  ;;  %4329 = vmatpush.msrb.mxu1 %v4080_v38  ;;  %v5514_v61 = vunpack.i.l.bf16 %v8688_v39  ;;  %v4089_v38 = vld [vmem:[%s9723_s9 + $0x418] sm:$0xff] }
 0x68f   :  { %v8615_v6 = vmax.f32 %v8109_v45, %v3713_v41  ;;  %4348 = vmatpush.msrb.mxu3 %v4100_v20  ;;  %v4099_v45 = vld [vmem:[%s9723_s9 + $0x468] sm:$0xff]  ;;  %v4076_v62 = vld [vmem:[%s9723_s9 + $0x3b0] sm:$0xff] }
 0x690   :  { %3828 = vrot.lane.b32.xlu2 %v8600_v47, %s5578_s17  ;;  %4330 = vmatpush.msrb.mxu1 %v4079_v11  ;;  %v4092_v41 = vld [vmem:[%s9723_s9 + $0x430] sm:$0xff]  ;;  %v3873_v55 = vsel %vm257_vm15, %v5500_v0, %v5514_v61  ;;  %v4070_v0 = vld [vmem:[%s9723_s9 + $0x380] sm:$0xff]  ;;  %v4149_v11 = vld [vmem:[%s9723_s9 + $0x5f8] sm:$0xff] }
 0x691   :  { %v5521_v30 = vpack.i.bf16 %v8615_v6, %v8612_v31  ;;  %4349 = vmatpush.msrb.mxu3 %v4099_v45 }
 0x692   :  { %4331 = vmatpush.msrb.mxu1 %v4078_v36  ;;  %v4115_v36 = vld [vmem:[%s9723_s9 + $0x4e8] sm:$0xff] }
 0x693   :  { %5522 = vrot.lane.b32.xlu1 %v5521_v30, %s5578_s17  ;;  %4350 = vmatpush.msrb.mxu3 %v4098_v33  ;;  %v4091_v30 = vld [vmem:[%s9723_s9 + $0x428] sm:$0xff] }
 0x694   :  { %4332 = vmatpush.msrb.mxu1 %v4077_v56  ;;  %v4114_v56 = vld [vmem:[%s9723_s9 + $0x4e0] sm:$0xff] }
 0x695   :  { %v5488_v18 = vpop.permute.xlu0 %5487  ;;  %4351 = vmatpush.msrb.mxu3 %v4097_v32 }
 0x696   :  { %v5490_v26 = vunpack.i.h.bf16 %v5488_v18  ;;  %v5489_v29 = vunpack.i.l.bf16 %v5488_v18  ;;  %4333 = vmatpush.msrb.mxu1 %v4076_v62  ;;  %v3924_v18 = vmax.f32 %v8175_v58, %v3873_v55  ;;  %v4088_v58 = vld [vmem:[%s9723_s9 + $0x410] sm:$0xff]  ;;  %v4145_v62 = vld [vmem:[%s9723_s9 + $0x5d8] sm:$0xff] }
 0x697   :  { %4352 = vmatpush.msrb.mxu3 %v4096_v57  ;;  %v4087_v57 = vld [vmem:[%s9723_s9 + $0x408] sm:$0xff]  ;;  %v4141_v55 = vld [vmem:[%s9723_s9 + $0x5b8] sm:$0xff] }
 0x698   :  { %v3859_v4 = vsel %vm257_vm15, %v5485_v15, %v5489_v29  ;;  %v3860_v50 = vsel %vm257_vm15, %v5489_v29, %v5490_v26  ;;  %4334 = vmatpush.msrb.mxu1 %v4075_v16  ;;  %v3950_v9 = vmax.f32 %v3924_v18, 0.0  ;;  %v4073_v29 = vld [vmem:[%s9723_s9 + $0x398] sm:$0xff]  ;;  %v4110_v16 = vld [vmem:[%s9723_s9 + $0x4c0] sm:$0xff]  ;;  %v4124_v18 = vld [vmem:[%s9723_s9 + $0x530] sm:$0xff] }
 0x699   :  { %v3909_v13 = vmax.f32 %v8133_v63, %v3859_v4  ;;  %v3910_v34 = vmax.f32 %v8136_v7, %v3860_v50  ;;  %v4094_v63 = vld [vmem:[%s9723_s9 + $0x440] sm:$0xff]  ;;  %v3871_v7 = vsel %vm257_vm15, %v5495_v44, %v5499_v3  ;;  %4353 = vmatpush.msrb.mxu3 %v4095_v23  ;;  %v4117_v4 = vld [vmem:[%s9723_s9 + $0x4f8] sm:$0xff]  ;;  %v4132_v23 = vld [vmem:[%s9723_s9 + $0x570] sm:$0xff] }
 0x69a   :  { %v3922_v17 = vmax.f32 %v8088_v46, %v3871_v7  ;;  %v5515_v46 = vunpack.i.h.bf16 %v8688_v39  ;;  %v4086_v3 = vld [vmem:[%s9723_s9 + $0x400] sm:$0xff]  ;;  %v4133_v50 = vld [vmem:[%s9723_s9 + $0x578] sm:$0xff]  ;;  %4370 = vmatpush.msrb.mxu0 %v4117_v4  ;;  %v4147_v7 = vld [vmem:[%s9723_s9 + $0x5e8] sm:$0xff] }
 0x69b   :  { %3700 = vrot.lane.b32.xlu1 %v8661_v60, %s5574_s11  ;;  %v3935_v15 = vmax.f32 %v3909_v13, 0.0  ;;  %v3936_v14 = vmax.f32 %v3910_v34, 0.0  ;;  %4354 = vmatpush.msrb.mxu3 %v4094_v63  ;;  %v4152_v13 = vld [vmem:[%s9723_s9 + $0x610] sm:$0x1]  ;;  %v4131_v63 = vld [vmem:[%s9723_s9 + $0x568] sm:$0xff]  ;;  %v4137_v39 = vld [vmem:[%s9723_s9 + $0x598] sm:$0xff] }
 0x69c   :  { %v3948_v45 = vmax.f32 %v3922_v17, 0.0  ;;  %v3874_v10 = vsel %vm257_vm15, %v5514_v61, %v5515_v46  ;;  %4393 = vmatpush.msrb.mxu2 %v4133_v50  ;;  %v4116_v34 = vld [vmem:[%s9723_s9 + $0x4f0] sm:$0xff]  ;;  %v4113_v17 = vld [vmem:[%s9723_s9 + $0x4d8] sm:$0xff]  ;;  %v4111_v61 = vld [vmem:[%s9723_s9 + $0x4c8] sm:$0xff] }
 0x69d   :  { %v8680_v43 = vpop.permute.xlu0 %5502  ;;  %4248 = vmatmul.f32.vlgmr.msra.gmra.mxu1 %v3935_v15  ;;  %4271 = vmatmul.f32.vlgmr.msra.gmra.mxu3 %v3936_v14  ;;  %v3925_v32 = vmax.f32 %v8188_v5, %v3874_v10  ;;  %v4071_v5 = vld [vmem:[%s9723_s9 + $0x388] sm:$0xff]  ;;  %v4148_v15 = vld [vmem:[%s9723_s9 + $0x5f0] sm:$0xff] }
 0x69e   :  { %v5505_v22 = vunpack.i.h.bf16 %v8680_v43  ;;  %v5504_v44 = vunpack.i.l.bf16 %v8680_v43  ;;  %4355 = vmatpush.msrb.mxu3 %v4093_v52  ;;  %v4151_v14 = vld [vmem:[%s9723_s9 + $0x608] sm:$0xff]  ;;  %4371 = vmatpush.msrb.mxu0 %v4116_v34  ;;  %v4130_v52 = vld [vmem:[%s9723_s9 + $0x560] sm:$0xff]  ;;  %v4108_v10 = vld [vmem:[%s9723_s9 + $0x4b0] sm:$0xff] }
 0x69f   :  { %4394 = vmatpush.msrb.mxu2 %v4132_v23  ;;  %v4107_v43 = vld [vmem:[%s9723_s9 + $0x4a8] sm:$0xff]  ;;  %v4105_v23 = vld [vmem:[%s9723_s9 + $0x498] sm:$0xff] }
 0x6a0   :  { %v3861_v28 = vsel %vm257_vm15, %v5490_v26, %v5504_v44  ;;  %v3862_v42 = vsel %vm257_vm15, %v5504_v44, %v5505_v22  ;;  %4356 = vmatpush.msrb.mxu3 %v4092_v41  ;;  %v3951_v26 = vmax.f32 %v3925_v32, 0.0  ;;  %4372 = vmatpush.msrb.mxu0 %v4115_v36  ;;  %v4146_v44 = vld [vmem:[%s9723_s9 + $0x5e0] sm:$0xff]  ;;  %v4112_v41 = vld [vmem:[%s9723_s9 + $0x4d0] sm:$0xff] }
 0x6a1   :  { %v3911_v19 = vmax.f32 %v8139_v37, %v3861_v28  ;;  %v3912_v20 = vmax.f32 %v8167_v40, %v3862_v42  ;;  %v4074_v37 = vld [vmem:[%s9723_s9 + $0x3a0] sm:$0xff]  ;;  %4395 = vmatpush.msrb.mxu2 %v4131_v63  ;;  %v4128_v28 = vld [vmem:[%s9723_s9 + $0x550] sm:$0xff] }
 0x6a2   :  { %4357 = vmatpush.msrb.mxu3 %v4091_v30  ;;  %v4090_v40 = vld [vmem:[%s9723_s9 + $0x420] sm:$0xff]  ;;  %4335 = vmatpush.msrb.mxu1 %v4074_v37  ;;  %v4144_v42 = vld [vmem:[%s9723_s9 + $0x5d0] sm:$0xff]  ;;  %v4109_v37 = vld [vmem:[%s9723_s9 + $0x4b8] sm:$0xff] }
 0x6a3   :  { %v3937_v33 = vmax.f32 %v3911_v19, 0.0  ;;  %v3938_v48 = vmax.f32 %v3912_v20, 0.0  ;;  %4373 = vmatpush.msrb.mxu0 %v4114_v56  ;;  %4396 = vmatpush.msrb.mxu2 %v4130_v52  ;;  %v4127_v19 = vld [vmem:[%s9723_s9 + $0x548] sm:$0xff]  ;;  %v4126_v30 = vld [vmem:[%s9723_s9 + $0x540] sm:$0xff]  ;;  %v4136_v63 = vld [vmem:[%s9723_s9 + $0x590] sm:$0xff] }
 0x6a4   :  { %4358 = vmatpush.msrb.mxu3 %v4090_v40  ;;  %4336 = vmatpush.msrb.mxu1 %v4073_v29  ;;  %v4143_v20 = vld [vmem:[%s9723_s9 + $0x5c8] sm:$0xff]  ;;  %v4125_v40 = vld [vmem:[%s9723_s9 + $0x538] sm:$0xff] }
 0x6a5   :  { %4251 = vmatmul.f32.gmra.mxu1 %v3948_v45  ;;  %4274 = vmatmul.f32.gmra.mxu3 %v3949_v35  ;;  %v4142_v45 = vld [vmem:[%s9723_s9 + $0x5c0] sm:$0xff]  ;;  %v4135_v56 = vld [vmem:[%s9723_s9 + $0x588] sm:$0xff] }
 0x6a6   :  { %4294 = vmatmul.f32.vlgmr.msra.gmra.mxu0 %v3937_v33  ;;  %4317 = vmatmul.f32.vlgmr.msra.gmra.mxu2 %v3938_v48 }
 0x6a7   :  { %4359 = vmatpush.msrb.mxu3 %v4089_v38  ;;  %4337 = vmatpush.msrb.mxu1 %v4072_v8 }
 0x6a8   :  { %4374 = vmatpush.msrb.mxu0 %v4113_v17  ;;  %4397 = vmatpush.msrb.mxu2 %v4129_v27  ;;  %v4118_v17 = vld [vmem:[%s9723_s9 + $0x500] sm:$0xff] }
 0x6a9   :  { %4360 = vmatpush.msrb.mxu3 %v4088_v58  ;;  %4338 = vmatpush.msrb.mxu1 %v4071_v5  ;;  %v4122_v5 = vld [vmem:[%s9723_s9 + $0x520] sm:$0xff] }
 0x6aa   :  { %4375 = vmatpush.msrb.mxu0 %v4112_v41  ;;  %4398 = vmatpush.msrb.mxu2 %v4128_v28  ;;  %v4134_v27 = vld [vmem:[%s9723_s9 + $0x580] sm:$0xff] }
 0x6ab   :  { %4361 = vmatpush.msrb.mxu3 %v4087_v57  ;;  %4339 = vmatpush.msrb.mxu1 %v4070_v0  ;;  %v4138_v0 = vld [vmem:[%s9723_s9 + $0x5a0] sm:$0xff] }
 0x6ac   :  { %4376 = vmatpush.msrb.mxu0 %v4111_v61  ;;  %4399 = vmatpush.msrb.mxu2 %v4127_v19 }
 0x6ad   :  { %4362 = vmatpush.msrb.mxu3 %v4086_v3  ;;  %4416 = vmatpush.msra.mxu1 %v4149_v11 }
 0x6ae   :  { %4297 = vmatmul.f32.gmra.mxu0 %v3950_v9  ;;  %4320 = vmatmul.f32.gmra.mxu2 %v3951_v26  ;;  %v4140_v26 = vld [vmem:[%s9723_s9 + $0x5b0] sm:$0xff] }
 0x6af   :  { %5357 = vmatpush.msk.msra.mxu3 %vm9739_vm11, %v4152_v13  ;;  %4417 = vmatpush.msra.mxu1 %v4148_v15  ;;  %v4121_v15 = vld [vmem:[%s9723_s9 + $0x518] sm:$0xff]  ;;  %vm4534_vm11 = vcmask 787008  }
 0x6b0   :  { %4377 = vmatpush.msrb.mxu0 %v4110_v16  ;;  %4400 = vmatpush.msrb.mxu2 %v4126_v30 }
 0x6b1   :  { %4453 = vmatpush.msra.mxu3 %v4151_v14  ;;  %4418 = vmatpush.msra.mxu1 %v4147_v7  ;;  %v4103_v7 = vld [vmem:[%s9723_s9 + $0x488] sm:$0xff] }
 0x6b2   :  { %4378 = vmatpush.msrb.mxu0 %v4109_v37  ;;  %4401 = vmatpush.msrb.mxu2 %v4125_v40 }
 0x6b3   :  { %4454 = vmatpush.msra.mxu3 %v4150_v54  ;;  %4419 = vmatpush.msra.mxu1 %v4146_v44  ;;  %v4119_v54 = vld [vmem:[%s9723_s9 + $0x508] sm:$0xff]  ;;  %v4102_v44 = vld [vmem:[%s9723_s9 + $0x480] sm:$0xff] }
 0x6b4   :  { %4379 = vmatpush.msrb.mxu0 %v4108_v10  ;;  %4402 = vmatpush.msrb.mxu2 %v4124_v18 }
 0x6b5   :  { %4420 = vmatpush.msra.mxu1 %v4145_v62 }
 0x6b6   :  { %4380 = vmatpush.msrb.mxu0 %v4107_v43 }
 0x6b7   :  { %4421 = vmatpush.msra.mxu1 %v4144_v42 }
 0x6b9   :  { %4422 = vmatpush.msra.mxu1 %v4143_v20 }
 0x6bb   :  { %4423 = vmatpush.msra.mxu1 %v4142_v45 }
 0x6bd   :  { %4424 = vmatpush.msra.mxu1 %v4141_v55 }
 0x6bf   :  { %4425 = vmatpush.msra.mxu1 %v4140_v26 }
 0x6dc   :  { %v8832_v35 = vpop.permute.xlu1 %5507 }
 0x6dd   :  { %v5510_v33 = vunpack.i.h.bf16 %v8832_v35  ;;  %v5509_v48 = vunpack.i.l.bf16 %v8832_v35 }
 0x6df   :  { %v3863_v32 = vsel %vm257_vm15, %v5505_v22, %v5509_v48  ;;  %v3864_v9 = vsel %vm257_vm15, %v5509_v48, %v5510_v33  ;;  %v4123_v22 = vld [vmem:[%s9723_s9 + $0x528] sm:$0xff] }
 0x6e0   :  { %v3913_v29 = vmax.f32 %v8170_v21, %v3863_v32  ;;  %v3914_v38 = vmax.f32 %v8348_v51, %v3864_v9  ;;  %v4139_v21 = vld [vmem:[%s9723_s9 + $0x5a8] sm:$0xff]  ;;  %4403 = vmatpush.msrb.mxu2 %v4123_v22  ;;  %v4106_v51 = vld [vmem:[%s9723_s9 + $0x4a0] sm:$0xff] }
 0x6e1   :  { %4426 = vmatpush.msra.mxu1 %v4139_v21  ;;  %4381 = vmatpush.msrb.mxu0 %v4106_v51 }
 0x6e2   :  { %v3939_v8 = vmax.f32 %v3913_v29, 0.0  ;;  %v3940_v58 = vmax.f32 %v3914_v38, 0.0  ;;  %4404 = vmatpush.msrb.mxu2 %v4122_v5 }
 0x6e3   :  { %4427 = vmatpush.msra.mxu1 %v4138_v0  ;;  %4382 = vmatpush.msrb.mxu0 %v4105_v23 }
 0x6e4   :  { %v8877_v57 = vpop.permute.xlu0 %5517  ;;  %4340 = vmatmul.f32.vlgmr.msrb.gmra.mxu1 %v3939_v8  ;;  %4363 = vmatmul.f32.vlgmr.msrb.gmra.mxu3 %v3940_v58 }
 0x6e5   :  { %v5520_v3 = vunpack.i.h.bf16 %v8877_v57  ;;  %v5519_v4 = vunpack.i.l.bf16 %v8877_v57  ;;  %4405 = vmatpush.msrb.mxu2 %v4121_v15  ;;  %4428 = vmatpush.msra.mxu1 %v4137_v39 }
 0x6e7   :  { %v3875_v50 = vsel %vm257_vm15, %v5515_v46, %v5519_v4  ;;  %v3876_v11 = vsel %vm257_vm15, %v5519_v4, %v5520_v3  ;;  %4429 = vmatpush.msra.mxu1 %v4136_v63 }
 0x6e8   :  { %v3926_v13 = vmax.f32 %v8191_v53, %v3875_v50  ;;  %v3927_v34 = vmax.f32 %v8420_v2, %v3876_v11  ;;  %v4104_v53 = vld [vmem:[%s9723_s9 + $0x490] sm:$0xff] }
 0x6e9   :  { %v4120_v2 = vld [vmem:[%s9723_s9 + $0x510] sm:$0xff]  ;;  %4383 = vmatpush.msrb.mxu0 %v4104_v53  ;;  %4430 = vmatpush.msra.mxu1 %v4135_v56  ;;  %s5592_s9 = smov 103  }
 0x6ea   :  { %v3952_v46 = vmax.f32 %v3926_v13, 0.0  ;;  %v3953_v14 = vmax.f32 %v3927_v34, 0.0  ;;  %v3829_v36 = vpop.permute.xlu2 %3828  ;;  %4406 = vmatpush.msrb.mxu2 %v4120_v2 }
 0x6eb   :  { %v3918_v52 = vmax.f32 %v8600_v47, %v3829_v36  ;;  %4384 = vmatpush.msrb.mxu0 %v4103_v7  ;;  %4431 = vmatpush.msra.mxu1 %v4134_v27 }
 0x6ec   :  { %4343 = vmatmul.f32.gmra.mxu1 %v3952_v46  ;;  %4366 = vmatmul.f32.gmra.mxu3 %v3953_v14  ;;  %v3699_v45 = vpop.permute.xlu0 %3698 }
 0x6ed   :  { %4407 = vmatpush.msrb.mxu2 %v4119_v54  ;;  %4385 = vmatpush.msrb.mxu0 %v4102_v44  ;;  %v3944_v47 = vmax.f32 %v3918_v52, 0.0  ;;  %v3724_v35 = vsel %vm81_vm10, %v5470_v49, %v3699_v45 }
 0x6ef   :  { %4408 = vmatpush.msrb.mxu2 %v4118_v17 }
 0x6f4   :  { %5358 = vmatmul.msk.f32.vlgmr.msra.gmra.mxu3 %vm4153_vm0, %v3944_v47 }
 0x6f5   :  { %v4180_v62 = vpop.f32.mrf.mxu3 }
 0x6fd   :  { %v4183_v55 = vpop.f32.mrf.mxu3 }
 0x702   :  { %v4203_v41 = vpop.f32.mrf.mxu0 }
 0x703   :  { %v4204_v56 = vadd.f32 %v4203_v41, %v4180_v62 }
 0x705   :  { %v5523_v28 = vpop.permute.xlu1 %5522 }
 0x706   :  { %v5525_v42 = vunpack.i.h.bf16 %v5523_v28  ;;  %v5524_v61 = vunpack.i.l.bf16 %v5523_v28 }
 0x708   :  { %v3867_v19 = vsel %vm257_vm15, %v5525_v42, %v3829_v36  ;;  %v3865_v20 = vsel %vm257_vm15, %v5510_v33, %v5524_v61  ;;  %v3866_v16 = vsel %vm257_vm15, %v5524_v61, %v5525_v42  ;;  %v4226_v30 = vpop.f32.mrf.mxu2 }
 0x709   :  { %v3917_v48 = vmax.f32 %v8615_v6, %v3867_v19  ;;  %v3915_v37 = vmax.f32 %v8351_v1, %v3865_v20  ;;  %v3916_v40 = vmax.f32 %v8612_v31, %v3866_v16  ;;  %v3775_v1 = vmax.f32 %v8063_v59, %v3724_v35 }
 0x70a   :  { %v4206_v10 = vpop.f32.mrf.mxu0  ;;  %v4227_v52 = vadd.f32 %v4226_v30, %v4204_v56 }
 0x70b   :  { %v4207_v18 = vadd.f32 %v4206_v10, %v4183_v55  ;;  %v3941_v32 = vmax.f32 %v3915_v37, 0.0  ;;  %v3942_v9 = vmax.f32 %v3916_v40, 0.0  ;;  %v3943_v26 = vmax.f32 %v3917_v48, 0.0 }
 0x70d   :  { %v3701_v33 = vpop.permute.xlu1 %3700  ;;  %4386 = vmatmul.f32.vlgmr.msrb.gmra.mxu0 %v3941_v32  ;;  %4409 = vmatmul.f32.vlgmr.msrb.gmra.mxu2 %v3942_v9 }
 0x70e   :  { %v3725_v29 = vsel %vm81_vm10, %v3699_v45, %v3701_v33  ;;  %v3777_v6 = vmax.f32 %v8661_v60, %v3701_v33  ;;  %4432 = vmatmul.f32.vlgmr.msra.gmra.mxu1 %v3943_v26  ;;  %vm4462_vm10 = vcmask 196608  }
 0x70f   :  { %v3776_v31 = vmax.f32 %v8487_v12, %v3725_v29 }
 0x710   :  { %3854 = vrot.lane.b32.xlu0 %v3777_v6, %s5578_s17  ;;  %v4229_v38 = vpop.f32.mrf.mxu2 }
 0x711   :  { %v5526_v43 = vpack.i.bf16 %v3776_v31, %v3775_v1  ;;  %v4230_v22 = vadd.f32 %v4229_v38, %v4207_v18 }
 0x713   :  { %5527 = vrot.lane.b32.xlu2 %v5526_v43, %s5578_s17  ;;  %s5593_s17 = smov 25  }
 0x71a   :  { %v4249_v24 = vpop.f32.mrf.mxu1 }
 0x71b   :  { %v4250_v44 = vadd.f32 %v4249_v24, %v4227_v52 }
 0x720   :  { %v4272_v49 = vpop.f32.mrf.mxu3 }
 0x721   :  { %v4273_v27 = vadd.f32 %v4272_v49, %v4250_v44 }
 0x722   :  { %v4252_v8 = vpop.f32.mrf.mxu1 }
 0x723   :  { %v4253_v58 = vadd.f32 %v4252_v8, %v4230_v22  ;;  %v4295_v5 = vpop.f32.mrf.mxu0 }
 0x724   :  { %v4296_v61 = vadd.f32 %v4295_v5, %v4273_v27 }
 0x728   :  { %v4275_v21 = vpop.f32.mrf.mxu3 }
 0x729   :  { %v4276_v51 = vadd.f32 %v4275_v21, %v4253_v58  ;;  %v4318_v60 = vpop.f32.mrf.mxu2 }
 0x72b   :  { %v4298_v4 = vpop.f32.mrf.mxu0 }
 0x72c   :  { %v4299_v50 = vadd.f32 %v4298_v4, %v4276_v51 }
 0x731   :  { %v4321_v59 = vpop.f32.mrf.mxu2 }
 0x732   :  { %v4322_v11 = vadd.f32 %v4321_v59, %v4299_v50 }
 0x761   :  { %v4341_v0 = vpop.f32.mrf.mxu1 }
 0x767   :  { %v4364_v12 = vpop.f32.mrf.mxu3 }
 0x769   :  { %v4344_v13 = vpop.f32.mrf.mxu1 }
 0x76a   :  { %v4345_v34 = vadd.f32 %v4344_v13, %v4322_v11 }
 0x76d   :  { %v5528_v23 = vpop.permute.xlu2 %5527 }
 0x76e   :  { %v5530_v15 = vunpack.i.h.bf16 %v5528_v23  ;;  %v5529_v39 = vunpack.i.l.bf16 %v5528_v23 }
 0x76f   :  { %v4367_v46 = vpop.f32.mrf.mxu3 }
 0x770   :  { %v4368_v14 = vadd.f32 %v4367_v46, %v4345_v34  ;;  %v3877_v53 = vsel %vm257_vm15, %v5520_v3, %v5529_v39  ;;  %v3878_v2 = vsel %vm257_vm15, %v5529_v39, %v5530_v15 }
 0x771   :  { %v3928_v36 = vmax.f32 %v8423_v25, %v3877_v53  ;;  %v3929_v63 = vmax.f32 %v3775_v1, %v3878_v2  ;;  %v4319_v25 = vadd.f32 %v4318_v60, %v4296_v61 }
 0x773   :  { %v3954_v7 = vmax.f32 %v3928_v36, 0.0  ;;  %v3955_v54 = vmax.f32 %v3929_v63, 0.0  ;;  %v4342_v19 = vadd.f32 %v4341_v0, %v4319_v25 }
 0x775   :  { %4389 = vmatmul.f32.gmra.mxu0 %v3954_v7  ;;  %4412 = vmatmul.f32.gmra.mxu2 %v3955_v54  ;;  %v4365_v16 = vadd.f32 %v4364_v12, %v4342_v19 }
 0x777   :  { %v4456_v37 = vpop.f32.mrf.mxu3 }
 0x782   :  { %v3855_v17 = vpop.permute.xlu0 %3854 }
 0x783   :  { %v3879_v47 = vsel %vm257_vm15, %v5530_v15, %v3855_v17  ;;  %v3931_v28 = vmax.f32 %v3777_v6, %v3855_v17  ;;  %vm4470_vm15 = vcmask 401608  }
 0x784   :  { %v3930_v57 = vmax.f32 %v3776_v31, %v3879_v47 }
 0x785   :  { %v3957_v42 = vmax.f32 %v3931_v28, 0.0 }
 0x786   :  { %v3956_v3 = vmax.f32 %v3930_v57, 0.0 }
 0x787   :  { %5359 = vmatmul.msk.f32.gmra.mxu3 %vm4153_vm0, %v3957_v42  ;;  %vm4541_vm0 = vcmask 992008  }
 0x788   :  { %4435 = vmatmul.f32.gmra.mxu1 %v3956_v3 }
 0x78a   :  { %v4387_v20 = vpop.f32.mrf.mxu0 }
 0x78b   :  { %v4388_v45 = vadd.f32 %v4387_v20, %v4365_v16  ;;  %v4433_v30 = vpop.f32.mrf.mxu1 }
 0x790   :  { %v4410_v62 = vpop.f32.mrf.mxu2 }
 0x791   :  { %v4411_v41 = vadd.f32 %v4410_v62, %v4388_v45  ;;  %v4755_v45 = vld [vmem:[%s9719_s5 + $0xf0] sm:$0xff] }
 0x793   :  { %v4434_v48 = vadd.f32 %v4433_v30, %v4411_v41 }
 0x795   :  { %v8954_v40 = vadd.f32 %v4456_v37, %v4434_v48 }
 0x797   :  { %4472 = vst.sshfl [vmem:[#allocation1] sm:$0xff pattern:$0x73625140] %v8954_v40  ;;  %4606 = vrot.lane.b32.xlu1 %v8954_v40, %s5592_s9  ;;  %v4465_v55 = vrot.slane %v8954_v40, 7 }
 0x798   :  { %4463 = vst.msk [vmem:[#allocation4] sm:$0x1] %vm4462_vm10, %v8954_v40 }
 0x799   :  { %v4466_v10 = vrot.slane %v4465_v55, 2 }
 0x79b   :  { %4467 = vrot.lane.b32.xlu2 %v4466_v10, %s5593_s17 }
 0x79e   :  { %v4474_v18 = vld [vmem:[#allocation1 + $0x1] ss:$4 sm:$0xff] }
 0x79f   :  { %4480 = vst.sshfl [vmem:[#allocation1] sm:$0xff pattern:$0x73625140] %v8954_v40  ;;  %4475 = vrot.lane.b32.xlu0 %v4474_v18, %s5594_s23 }
 0x7a6   :  { %v4482_v32 = vld [vmem:[#allocation1 + $0x1] ss:$4 sm:$0xff] }
 0x7a7   :  { %4490 = vst.sshfl [vmem:[#allocation1] sm:$0xff pattern:$0x73625140] %v8954_v40  ;;  %v5360_v60 = vrot.slane %v4482_v32, 9 }
 0x7ae   :  { %v4492_v9 = vld [vmem:[#allocation1 + $0x2] ss:$4 sm:$0xff] }
 0x7af   :  { %4498 = vst.sshfl [vmem:[#allocation1] sm:$0xff pattern:$0x73625140] %v8954_v40 }
 0x7b6   :  { %v4500_v26 = vld [vmem:[#allocation1 + $0x2] ss:$4 sm:$0xff] }
 0x7b7   :  { %4512 = vst.sshfl [vmem:[#allocation1] sm:$0xff pattern:$0x73625140] %v8954_v40  ;;  %v5361_v59 = vrot.slane %v4500_v26, 9 }
 0x7be   :  { %v4514_v35 = vld [vmem:[#allocation1 + $0x3] ss:$4 sm:$0xff] }
 0x7bf   :  { %4520 = vst.sshfl [vmem:[#allocation1] sm:$0xff pattern:$0x73625140] %v8954_v40 }
 0x7c6   :  { %v4522_v8 = vld [vmem:[#allocation1 + $0x3] ss:$4 sm:$0xff] }
 0x7c7   :  { %v5362_v12 = vrot.slane %v4522_v8, 9  ;;  %v4762_v8 = vld [vmem:[%s9719_s5 + $0x128] sm:$0xff] }
 0x7f2   :  { %v4390_v29 = vpop.f32.mrf.mxu0 }
 0x7f3   :  { %v4391_v1 = vadd.f32 %v4390_v29, %v4368_v14  ;;  %v4818_v29 = vld [vmem:[%s9719_s5 + $0x2e8] sm:$0xff] }
 0x7f4   :  { %4915 = vmatpush.msra.mxu2 %v4818_v29  ;;  %v4746_v29 = vld [vmem:[%s9719_s5 + $0xa8] sm:$0xff] }
 0x7f5   :  { %v4468_v33 = vpop.permute.xlu2 %4467 }
 0x7f6   :  { %4471 = vst.msk [vmem:[#allocation4] sm:$0x1] %vm4470_vm15, %v4468_v33 }
 0x7f8   :  { %v4413_v6 = vpop.f32.mrf.mxu2 }
 0x7f9   :  { %v4414_v38 = vadd.f32 %v4413_v6, %v4391_v1  ;;  %v4771_v6 = vld [vmem:[%s9719_s5 + $0x170] sm:$0xff] }
 0x7fa   :  { %v4815_v1 = vld [vmem:[%s9719_s5 + $0x2d0] sm:$0xff]  ;;  %4975 = vmatpush.msrb.mxu1 %v4771_v6  ;;  %v4842_v6 = vld [vmem:[%s9719_s5 + $0x3a8] sm:$0xff] }
 0x7fb   :  { %4916 = vmatpush.msra.mxu2 %v4815_v1 }
 0x805   :  { %v4436_v31 = vpop.f32.mrf.mxu1 }
 0x806   :  { %v4437_v43 = vadd.f32 %v4436_v31, %v4414_v38  ;;  %v4768_v31 = vld [vmem:[%s9719_s5 + $0x158] sm:$0xff] }
 0x807   :  { %v4812_v38 = vld [vmem:[%s9719_s5 + $0x2b8] sm:$0xff]  ;;  %4976 = vmatpush.msrb.mxu1 %v4768_v31 }
 0x808   :  { %4917 = vmatpush.msra.mxu2 %v4812_v38  ;;  %v4858_v38 = vld [vmem:[%s9719_s5 + $0x428] sm:$0xff] }
 0x809   :  { %v4607_v22 = vpop.permute.xlu1 %4606 }
 0x80a   :  { %4609 = vst.msk [vmem:[#allocation4 + $0x1] sm:$0x1] %vm4462_vm10, %v4607_v22  ;;  %v4459_v24 = vpop.f32.mrf.mxu3  ;;  %vm9032_vm10 = vmor %vm4552_vm14, %vm4551_vm12  ;;  %vm4892_vm12 = vcmask 130048   ;;  %vm5250_vm14 = vcmask 148480  }
 0x80b   :  { %4611 = vst.msk [vmem:[#allocation4 + $0x1] sm:$0x1] %vm4470_vm15, %v4466_v10  ;;  %v8969_v49 = vadd.f32 %v4459_v24, %v4437_v43  ;;  %vm4563_vm15 = vcmask 352408   ;;  %v4765_v43 = vld [vmem:[%s9719_s5 + $0x140] sm:$0xff]  ;;  %v4839_v10 = vld [vmem:[%s9719_s5 + $0x390] sm:$0xff] }
 0x80c   :  { %4977 = vmatpush.msrb.mxu1 %v4765_v43  ;;  %v4811_v43 = vld [vmem:[%s9719_s5 + $0x2b0] sm:$0xff] }
 0x80d   :  { %4663 = vrot.lane.b32.xlu0 %v8969_v49, %s5595_s0  ;;  %4531 = vrot.lane.b32.xlu2 %v8969_v49, %s5596_s24  ;;  %v4536_v58 = vrot.slane %v8969_v49, 7  ;;  %4543 = vst.sshfl [vmem:[#allocation1] sm:$0xff pattern:$0x73625140] %v8969_v49 }
 0x80e   :  { %4978 = vmatpush.msrb.mxu1 %v4762_v8  ;;  %v4808_v8 = vld [vmem:[%s9719_s5 + $0x298] sm:$0xff] }
 0x80f   :  { %v4537_v21 = vrot.slane %v4536_v58, 2  ;;  %v4806_v58 = vld [vmem:[%s9719_s5 + $0x288] sm:$0xff] }
 0x811   :  { %4538 = vrot.lane.b32.xlu1 %v4537_v21, %s5597_s2  ;;  %v4476_v51 = vpop.permute.xlu0 %4475 }
 0x812   :  { %4479 = vst.msk [vmem:[#allocation4] sm:$0x1] %vm4478_vm2, %v4476_v51  ;;  %v4803_v51 = vld [vmem:[%s9719_s5 + $0x270] sm:$0xff] }
 0x814   :  { %v4545_v5 = vld [vmem:[#allocation1 + $0x1] ss:$4 sm:$0xff] }
 0x815   :  { %4493 = vrot.lane.b32.xlu0 %v4492_v9, %s5598_s25  ;;  %4667 = vrot.lane.b32.xlu2 %v4537_v21, %s5596_s24  ;;  %4555 = vst.sshfl [vmem:[#allocation1] sm:$0xff pattern:$0x73625140] %v8969_v49  ;;  %v4759_v21 = vld [vmem:[%s9719_s5 + $0x110] sm:$0xff] }
 0x816   :  { %4979 = vmatpush.msrb.mxu1 %v4759_v21  ;;  %v4836_v21 = vld [vmem:[%s9719_s5 + $0x378] sm:$0xff] }
 0x819   :  { %4485 = vrot.lane.b32.xlu1 %v5360_v60, %s5599_s20  ;;  %v4800_v60 = vld [vmem:[%s9719_s5 + $0x258] sm:$0xff] }
 0x81c   :  { %v4557_v0 = vld [vmem:[#allocation1 + $0x1] ss:$4 sm:$0xff] }
 0x81d   :  { %4515 = vrot.lane.b32.xlu2 %v4514_v35, %s5600_s29  ;;  %v5363_v4 = vrot.slane %v4557_v0, 9  ;;  %4565 = vst.sshfl [vmem:[#allocation1] sm:$0xff pattern:$0x73625140] %v8969_v49  ;;  %v4753_v0 = vld [vmem:[%s9719_s5 + $0xe0] sm:$0xff] }
 0x81f   :  { %4560 = vrot.lane.b32.xlu0 %v5363_v4, %s5601_s1 }
 0x821   :  { %4503 = vrot.lane.b32.xlu1 %v5361_v59, %s5575_s12  ;;  %v4797_v59 = vld [vmem:[%s9719_s5 + $0x240] sm:$0xff] }
 0x824   :  { %v4567_v50 = vld [vmem:[#allocation1 + $0x2] ss:$4 sm:$0xff] }
 0x825   :  { %4546 = vrot.lane.b32.xlu2 %v4545_v5, %s5591_s27  ;;  %4573 = vst.sshfl [vmem:[#allocation1] sm:$0xff pattern:$0x73625140] %v8969_v49  ;;  %v4756_v5 = vld [vmem:[%s9719_s5 + $0xf8] sm:$0xff] }
 0x826   :  { %4980 = vmatpush.msrb.mxu1 %v4756_v5  ;;  %v4805_v5 = vld [vmem:[%s9719_s5 + $0x280] sm:$0xff] }
 0x828   :  { %4981 = vmatpush.msrb.mxu1 %v4753_v0  ;;  %v4833_v0 = vld [vmem:[%s9719_s5 + $0x360] sm:$0xff] }
 0x829   :  { %4525 = vrot.lane.b32.xlu1 %v5362_v12, %s5595_s0 }
 0x82c   :  { %v4575_v11 = vld [vmem:[#allocation1 + $0x2] ss:$4 sm:$0xff] }
 0x82d   :  { %4568 = vrot.lane.b32.xlu2 %v4567_v50, %s5602_s28  ;;  %v5364_v13 = vrot.slane %v4575_v11, 9  ;;  %4583 = vst.sshfl [vmem:[#allocation1] sm:$0xff pattern:$0x73625140] %v8969_v49  ;;  %v4750_v50 = vld [vmem:[%s9719_s5 + $0xc8] sm:$0xff] }
 0x82e   :  { %v4794_v11 = vld [vmem:[%s9719_s5 + $0x228] sm:$0xff]  ;;  %4982 = vmatpush.msrb.mxu1 %v4750_v50 }
 0x82f   :  { %4578 = vrot.lane.b32.xlu0 %v5364_v13, %s5603_s18  ;;  %v4747_v13 = vld [vmem:[%s9719_s5 + $0xb0] sm:$0xff]  ;;  %v4734_v50 = vld [vmem:[%s9719_s5 + $0x48] sm:$0xff] }
 0x830   :  { %4983 = vmatpush.msrb.mxu1 %v4747_v13  ;;  %v4799_v13 = vld [vmem:[%s9719_s5 + $0x250] sm:$0xff] }
 0x834   :  { %v8991_v34 = vld [vmem:[#allocation1 + $0x3] ss:$4 sm:$0xff] }
 0x835   :  { %4591 = vst.sshfl [vmem:[#allocation1] sm:$0xff pattern:$0x73625140] %v8969_v49 }
 0x83c   :  { %v4593_v23 = vld [vmem:[#allocation1 + $0x3] ss:$4 sm:$0xff] }
 0x83d   :  { %v5365_v15 = vrot.slane %v4593_v23, 9  ;;  %4612 = vst.sshfl [vmem:[#allocation1] sm:$0xff pattern:$0x73625140] %v8954_v40 }
 0x83f   :  { %4596 = vrot.lane.b32.xlu0 %v5365_v15, %s5604_s26  ;;  %v4866_v15 = vld [vmem:[%s9719_s5 + $0x468] sm:$0xff] }
 0x840   :  { %4935 = vmatpush.msrb.mxu3 %v4866_v15  ;;  %v4827_v15 = vld [vmem:[%s9719_s5 + $0x330] sm:$0xff] }
 0x844   :  { %v4614_v39 = vld [vmem:[#allocation1 + $0x1] ss:$4 sm:$0xff] }
 0x845   :  { %4615 = vrot.lane.b32.xlu2 %v4614_v39, %s5593_s17  ;;  %4619 = vst.sshfl [vmem:[#allocation1] sm:$0xff pattern:$0x73625140] %v8954_v40  ;;  %v4767_v39 = vld [vmem:[%s9719_s5 + $0x150] sm:$0xff] }
 0x84c   :  { %v4621_v46 = vld [vmem:[#allocation1 + $0x1] ss:$4 sm:$0xff] }
 0x84d   :  { %v5366_v14 = vrot.slane %v4621_v46, 9  ;;  %4628 = vst.sshfl [vmem:[#allocation1] sm:$0xff pattern:$0x73625140] %v8954_v40  ;;  %v4791_v46 = vld [vmem:[%s9719_s5 + $0x210] sm:$0xff] }
 0x84f   :  { %4624 = vrot.lane.b32.xlu2 %v5366_v14, %s5594_s23  ;;  %v4744_v14 = vld [vmem:[%s9719_s5 + $0x98] sm:$0xff] }
 0x850   :  { %4984 = vmatpush.msrb.mxu1 %v4744_v14  ;;  %v4796_v14 = vld [vmem:[%s9719_s5 + $0x238] sm:$0xff] }
 0x854   :  { %v4630_v53 = vld [vmem:[#allocation1 + $0x2] ss:$4 sm:$0xff] }
 0x855   :  { %4631 = vrot.lane.b32.xlu1 %v4630_v53, %s5599_s20  ;;  %4635 = vst.sshfl [vmem:[#allocation1] sm:$0xff pattern:$0x73625140] %v8954_v40  ;;  %v4863_v53 = vld [vmem:[%s9719_s5 + $0x450] sm:$0xff] }
 0x856   :  { %4936 = vmatpush.msrb.mxu3 %v4863_v53  ;;  %v4728_v53 = vld [vmem:[%s9719_s5 + $0x18] sm:$0xff] }
 0x85c   :  { %v4637_v2 = vld [vmem:[#allocation1 + $0x2] ss:$4 sm:$0xff] }
 0x85d   :  { %v5367_v36 = vrot.slane %v4637_v2, 9  ;;  %4647 = vst.sshfl [vmem:[#allocation1] sm:$0xff pattern:$0x73625140] %v8954_v40  ;;  %v4788_v2 = vld [vmem:[%s9719_s5 + $0x1f8] sm:$0xff] }
 0x85f   :  { %4640 = vrot.lane.b32.xlu0 %v5367_v36, %s5598_s25  ;;  %v4741_v36 = vld [vmem:[%s9719_s5 + $0x80] sm:$0xff] }
 0x860   :  { %4985 = vmatpush.msrb.mxu1 %v4741_v36  ;;  %v4840_v36 = vld [vmem:[%s9719_s5 + $0x398] sm:$0xff] }
 0x864   :  { %v4649_v63 = vld [vmem:[#allocation1 + $0x3] ss:$4 sm:$0xff] }
 0x865   :  { %4654 = vst.sshfl [vmem:[#allocation1] sm:$0xff pattern:$0x73625140] %v8954_v40 }
 0x867   :  { %4650 = vrot.lane.b32.xlu0 %v4649_v63, %s5575_s12  ;;  %v4532_v56 = vpop.permute.xlu2 %4531 }
 0x86c   :  { %v4656_v7 = vld [vmem:[#allocation1 + $0x3] ss:$4 sm:$0xff] }
 0x86d   :  { %v5368_v54 = vrot.slane %v4656_v7, 9  ;;  %4671 = vst.sshfl [vmem:[#allocation1] sm:$0xff pattern:$0x73625140] %v8969_v49  ;;  %v4785_v7 = vld [vmem:[%s9719_s5 + $0x1e0] sm:$0xff] }
 0x86f   :  { %4659 = vrot.lane.b32.xlu0 %v5368_v54, %s5600_s29  ;;  %v9009_v44 = vpop.permute.xlu2 %4667  ;;  %v4738_v54 = vld [vmem:[%s9719_s5 + $0x68] sm:$0xff] }
 0x870   :  { %4986 = vmatpush.msrb.mxu1 %v4738_v54  ;;  %v4821_v54 = vld [vmem:[%s9719_s5 + $0x300] sm:$0xff] }
 0x874   :  { %v4673_v52 = vld [vmem:[#allocation1 + $0x1] ss:$4 sm:$0xff] }
 0x875   :  { %4674 = vrot.lane.b32.xlu1 %v4673_v52, %s5597_s2  ;;  %4681 = vst.sshfl [vmem:[#allocation1] sm:$0xff pattern:$0x73625140] %v8969_v49  ;;  %v4782_v52 = vld [vmem:[%s9719_s5 + $0x1c8] sm:$0xff] }
 0x877   :  { %v4516_v28 = vpop.permute.xlu2 %4515 }
 0x87c   :  { %v4683_v17 = vld [vmem:[#allocation1 + $0x1] ss:$4 sm:$0xff] }
 0x87d   :  { %v5369_v27 = vrot.slane %v4683_v17, 9  ;;  %4690 = vst.sshfl [vmem:[#allocation1] sm:$0xff pattern:$0x73625140] %v8969_v49  ;;  %v4860_v17 = vld [vmem:[%s9719_s5 + $0x438] sm:$0xff] }
 0x87e   :  { %4937 = vmatpush.msrb.mxu3 %v4860_v17 }
 0x87f   :  { %4686 = vrot.lane.b32.xlu1 %v5369_v27, %s5591_s27  ;;  %v9013_v47 = vpop.permute.xlu0 %4663  ;;  %v4547_v19 = vpop.permute.xlu2 %4546  ;;  %v4735_v27 = vld [vmem:[%s9719_s5 + $0x50] sm:$0xff] }
 0x880   :  { %v4548_v40 = vrot.slane %v4547_v19, 6  ;;  %4987 = vmatpush.msrb.mxu1 %v4735_v27  ;;  %v4873_v27 = vld [vmem:[%s9719_s5 + $0x4a0] sm:$0xff] }
 0x882   :  { %v4549_v32 = vsel %vm1418_vm13, %v4548_v40, %v4547_v19  ;;  %vm4643_vm13 = vcmask 818176   ;;  %v4854_v19 = vld [vmem:[%s9719_s5 + $0x408] sm:$0xff]  ;;  %v4752_v40 = vld [vmem:[%s9719_s5 + $0xd8] sm:$0xff] }
 0x883   :  { %v4539_v57 = vpop.permute.xlu1 %4538 }
 0x884   :  { %v4692_v42 = vld [vmem:[#allocation1 + $0x2] ss:$4 sm:$0xff] }
 0x885   :  { %4697 = vst.sshfl [vmem:[#allocation1] sm:$0xff pattern:$0x73625140] %v8969_v49 }
 0x887   :  { %4693 = vrot.lane.b32.xlu1 %v4692_v42, %s5601_s1  ;;  %v4494_v61 = vpop.permute.xlu0 %4493  ;;  %v4569_v48 = vpop.permute.xlu2 %4568  ;;  %v4857_v42 = vld [vmem:[%s9719_s5 + $0x420] sm:$0xff] }
 0x888   :  { %4938 = vmatpush.msrb.mxu3 %v4857_v42  ;;  %v4834_v42 = vld [vmem:[%s9719_s5 + $0x368] sm:$0xff] }
 0x88a   :  { %4939 = vmatpush.msrb.mxu3 %v4854_v19  ;;  %v4787_v19 = vld [vmem:[%s9719_s5 + $0x1f0] sm:$0xff] }
 0x88b   :  { %v4486_v3 = vpop.permute.xlu1 %4485 }
 0x88c   :  { %4489 = vst.msk [vmem:[#allocation4] sm:$0x1] %vm4488_vm4, %v4486_v3  ;;  %v4699_v25 = vld [vmem:[#allocation1 + $0x2] ss:$4 sm:$0xff] }
 0x88d   :  { %4497 = vst.msk [vmem:[#allocation4] sm:$0x1] %vm4496_vm9, %v4494_v61  ;;  %v5370_v20 = vrot.slane %v4699_v25, 9  ;;  %v4732_v3 = vld [vmem:[%s9719_s5 + $0x38] sm:$0xff]  ;;  %v4758_v61 = vld [vmem:[%s9719_s5 + $0x108] sm:$0xff] }
 0x88e   :  { %4706 = vst.sshfl [vmem:[#allocation1] sm:$0xff pattern:$0x73625140] %v8969_v49  ;;  %v4776_v25 = vld [vmem:[%s9719_s5 + $0x198] sm:$0xff]  ;;  %4988 = vmatpush.msrb.mxu1 %v4732_v3 }
 0x88f   :  { %4702 = vrot.lane.b32.xlu1 %v5370_v20, %s5602_s28  ;;  %v4729_v20 = vld [vmem:[%s9719_s5 + $0x20] sm:$0xff] }
 0x890   :  { %4989 = vmatpush.msrb.mxu1 %v4729_v20 }
 0x891   :  { %v4561_v37 = vpop.permute.xlu0 %4560 }
 0x893   :  { %v4504_v16 = vpop.permute.xlu1 %4503 }
 0x894   :  { %v4505_v62 = vrot.slane %v4504_v16, 6 }
 0x895   :  { %v4708_v41 = vld [vmem:[#allocation1 + $0x3] ss:$4 sm:$0xff] }
 0x896   :  { %v4506_v30 = vsel %vm9742_vm5, %v4505_v62, %v4504_v16  ;;  %4709 = vrot.lane.b32.xlu0 %v4708_v41, %s5603_s18  ;;  %4713 = vst.sshfl [vmem:[#allocation1] sm:$0xff pattern:$0x73625140] %v8969_v49  ;;  %v4809_v49 = vld [vmem:[%s9719_s5 + $0x2a0] sm:$0xff]  ;;  %v4851_v41 = vld [vmem:[%s9719_s5 + $0x3f0] sm:$0xff] }
 0x897   :  { %4511 = vst.msk [vmem:[#allocation4] sm:$0x5] %vm9021_vm7, %v4506_v30  ;;  %4918 = vmatpush.msra.mxu2 %v4809_v49  ;;  %v4773_v62 = vld [vmem:[%s9719_s5 + $0x180] sm:$0xff]  ;;  %v4726_v30 = vld [vmem:[%s9719_s5 + $0x8] sm:$0xff]  ;;  %4940 = vmatpush.msrb.mxu3 %v4851_v41  ;;  %v4855_v49 = vld [vmem:[%s9719_s5 + $0x410] sm:$0xff] }
 0x898   :  { %4519 = vst.msk [vmem:[#allocation4 + $0x2] sm:$0x1] %vm4518_vm3, %v4516_v28  ;;  %v4761_v28 = vld [vmem:[%s9719_s5 + $0x120] sm:$0xff]  ;;  %4990 = vmatpush.msrb.mxu1 %v4726_v30  ;;  %v4828_v41 = vld [vmem:[%s9719_s5 + $0x338] sm:$0xff] }
 0x899   :  { %4919 = vmatpush.msra.mxu2 %v4806_v58  ;;  %v4740_v58 = vld [vmem:[%s9719_s5 + $0x78] sm:$0xff] }
 0x89b   :  { %v4526_v55 = vpop.permute.xlu1 %4525  ;;  %4920 = vmatpush.msra.mxu2 %v4803_v51  ;;  %v4852_v51 = vld [vmem:[%s9719_s5 + $0x3f8] sm:$0xff] }
 0x89c   :  { %4529 = vst.msk [vmem:[#allocation4 + $0x2] sm:$0x1] %vm4528_vm8, %v4526_v55  ;;  %v4817_v55 = vld [vmem:[%s9719_s5 + $0x2e0] sm:$0xff] }
 0x89d   :  { %4535 = vst.msk [vmem:[#allocation4 + $0x2] sm:$0x1] %vm4534_vm11, %v4532_v56  ;;  %v4715_v18 = vld [vmem:[#allocation1 + $0x3] ss:$4 sm:$0xff]  ;;  %4921 = vmatpush.msra.mxu2 %v4800_v60 }
 0x89e   :  { %4542 = vst.msk [vmem:[#allocation4 + $0x2] sm:$0x1] %vm4541_vm0, %v4539_v57  ;;  %v5371_v9 = vrot.slane %v4715_v18, 9  ;;  %v4764_v56 = vld [vmem:[%s9719_s5 + $0x138] sm:$0xff]  ;;  %v4779_v57 = vld [vmem:[%s9719_s5 + $0x1b0] sm:$0xff]  ;;  %v4749_v18 = vld [vmem:[%s9719_s5 + $0xc0] sm:$0xff] }
 0x89f   :  { %v4616_v26 = vpop.permute.xlu2 %4615  ;;  %4554 = vst.msk [vmem:[#allocation4 + $0x2] sm:$0x5] %vm9032_vm10, %v4549_v32  ;;  %4922 = vmatpush.msra.mxu2 %v4797_v59  ;;  %v4845_v32 = vld [vmem:[%s9719_s5 + $0x3c0] sm:$0xff]  ;;  %v4802_v59 = vld [vmem:[%s9719_s5 + $0x268] sm:$0xff] }
 0x8a0   :  { %4718 = vrot.lane.b32.xlu2 %v5371_v9, %s5586_s15  ;;  %4618 = vst.msk [vmem:[#allocation4 + $0x1] sm:$0x1] %vm4478_vm2, %v4616_v26  ;;  %vm4677_vm2 = vcmask 793600   ;;  %v4861_v26 = vld [vmem:[%s9719_s5 + $0x440] sm:$0xff] }
 0x8a1   :  { %v4579_v35 = vpop.permute.xlu0 %4578  ;;  %4564 = vst.msk [vmem:[#allocation4 + $0x4] sm:$0x1] %vm4563_vm15, %v4561_v37  ;;  %4923 = vmatpush.msra.mxu2 %v4794_v11  ;;  %v4820_v37 = vld [vmem:[%s9719_s5 + $0x2f8] sm:$0xff]  ;;  %v4737_v60 = vld [vmem:[%s9719_s5 + $0x60] sm:$0xff]  ;;  %v4846_v11 = vld [vmem:[%s9719_s5 + $0x3c8] sm:$0xff] }
 0x8a2   :  { %4572 = vst.msk [vmem:[#allocation4 + $0x4] sm:$0x1] %vm4571_vm1, %v4569_v48  ;;  %v4867_v48 = vld [vmem:[%s9719_s5 + $0x470] sm:$0xff]  ;;  %5075 = vmatpush.msra.mxu1 %v4820_v37  ;;  %v4778_v37 = vld [vmem:[%s9719_s5 + $0x1a8] sm:$0xff] }
 0x8a3   :  { %4582 = vst.msk [vmem:[#allocation4 + $0x4] sm:$0x1] %vm4581_vm6, %v4579_v35  ;;  %4924 = vmatpush.msra.mxu2 %v4791_v46  ;;  %v4814_v35 = vld [vmem:[%s9719_s5 + $0x2c8] sm:$0xff]  ;;  %v4843_v46 = vld [vmem:[%s9719_s5 + $0x3b0] sm:$0xff] }
 0x8a4   :  { %5076 = vmatpush.msra.mxu1 %v4817_v55  ;;  %v4775_v55 = vld [vmem:[%s9719_s5 + $0x190] sm:$0xff] }
 0x8a5   :  { %4925 = vmatpush.msra.mxu2 %v4788_v2  ;;  %v4824_v2 = vld [vmem:[%s9719_s5 + $0x318] sm:$0xff] }
 0x8a6   :  { %5077 = vmatpush.msra.mxu1 %v4814_v35 }
 0x8a7   :  { %4926 = vmatpush.msra.mxu2 %v4785_v7  ;;  %v4725_v7 = vld [vmem:[%s9719_s5] sm:$0xff] }
 0x8a8   :  { %4586 = vrot.lane.b32.xlu2 %v8991_v34, %s5586_s15  ;;  %v4770_v34 = vld [vmem:[%s9719_s5 + $0x168] sm:$0xff]  ;;  %5078 = vmatpush.msra.mxu1 %v4811_v43 }
 0x8a9   :  { %v4625_v33 = vpop.permute.xlu2 %4624  ;;  %4895 = vmatpush.msra.mxu0 %v4770_v34  ;;  %4927 = vmatpush.msra.mxu2 %v4782_v52  ;;  %v4837_v52 = vld [vmem:[%s9719_s5 + $0x380] sm:$0xff]  ;;  %v4766_v43 = vld [vmem:[%s9719_s5 + $0x148] sm:$0xff] }
 0x8aa   :  { %4627 = vst.msk [vmem:[#allocation4 + $0x1] sm:$0x1] %vm4488_vm4, %v4625_v33  ;;  %5079 = vmatpush.msra.mxu1 %v4808_v8  ;;  %vm4602_vm4 = vcmask 1041336  }
 0x8ab   :  { %4896 = vmatpush.msra.mxu0 %v4767_v39  ;;  %4928 = vmatpush.msra.mxu2 %v4779_v57  ;;  %v4869_v57 = vld [vmem:[%s9719_s5 + $0x480] sm:$0xff] }
 0x8ac   :  { %5080 = vmatpush.msra.mxu1 %v4805_v5  ;;  %v4801_v5 = vld [vmem:[%s9719_s5 + $0x260] sm:$0xff] }
 0x8ad   :  { %4897 = vmatpush.msra.mxu0 %v4764_v56  ;;  %4929 = vmatpush.msra.mxu2 %v4776_v25  ;;  %v4872_v56 = vld [vmem:[%s9719_s5 + $0x498] sm:$0xff]  ;;  %v4870_v25 = vld [vmem:[%s9719_s5 + $0x488] sm:$0xff] }
 0x8ae   :  { %5081 = vmatpush.msra.mxu1 %v4802_v59  ;;  %v4795_v59 = vld [vmem:[%s9719_s5 + $0x230] sm:$0xff] }
 0x8af   :  { %4898 = vmatpush.msra.mxu0 %v4761_v28  ;;  %4930 = vmatpush.msra.mxu2 %v4773_v62  ;;  %v4790_v28 = vld [vmem:[%s9719_s5 + $0x208] sm:$0xff]  ;;  %v4784_v62 = vld [vmem:[%s9719_s5 + $0x1d8] sm:$0xff] }
 0x8b0   :  { %5082 = vmatpush.msra.mxu1 %v4799_v13  ;;  %v4789_v13 = vld [vmem:[%s9719_s5 + $0x200] sm:$0xff] }
 0x8b1   :  { %v9068_v24 = vpop.permute.xlu0 %4596  ;;  %4899 = vmatpush.msra.mxu0 %v4758_v61  ;;  %5015 = vmatpush.msrb.mxu2 %v4867_v48  ;;  %v4825_v48 = vld [vmem:[%s9719_s5 + $0x320] sm:$0xff]  ;;  %v5149_v61 = vld [vmem:[%s9721_s7 + $0x58] sm:$0xff] }
 0x8b2   :  { %5083 = vmatpush.msra.mxu1 %v4796_v14  ;;  %v4598_v17 = vrot.slane %v9068_v24, 6  ;;  %v4780_v14 = vld [vmem:[%s9719_s5 + $0x1b8] sm:$0xff] }
 0x8b3   :  { %4900 = vmatpush.msra.mxu0 %v4755_v45 }
 0x8b5   :  { %4901 = vmatpush.msra.mxu0 %v4752_v40 }
 0x8b7   :  { %4902 = vmatpush.msra.mxu0 %v4749_v18 }
 0x8b9   :  { %4903 = vmatpush.msra.mxu0 %v4746_v29  ;;  %v4874_v29 = vld [vmem:[%s9719_s5 + $0x4a8] sm:$0xff] }
 0x8c7   :  { %v4632_v22 = vpop.permute.xlu1 %4631 }
 0x8c8   :  { %4634 = vst.msk [vmem:[#allocation4 + $0x1] sm:$0x1] %vm4496_vm9, %v4632_v22  ;;  %v4743_v22 = vld [vmem:[%s9719_s5 + $0x90] sm:$0xff]  ;;  %vm4603_vm9 = vcmask 124930  }
 0x8c9   :  { %4904 = vmatpush.msra.mxu0 %v4743_v22  ;;  %vm9339_vm5 = vmor %vm4603_vm9, %vm4602_vm4  ;;  %v4810_v22 = vld [vmem:[%s9719_s5 + $0x2a8] sm:$0xff] }
 0x8cb   :  { %4905 = vmatpush.msra.mxu0 %v4740_v58  ;;  %v4760_v58 = vld [vmem:[%s9719_s5 + $0x118] sm:$0xff] }
 0x8cd   :  { %4906 = vmatpush.msra.mxu0 %v4737_v60  ;;  %v4754_v60 = vld [vmem:[%s9719_s5 + $0xe8] sm:$0xff] }
 0x8cf   :  { %4907 = vmatpush.msra.mxu0 %v4734_v50  ;;  %v4748_v50 = vld [vmem:[%s9719_s5 + $0xb8] sm:$0xff] }
 0x8d1   :  { %v4641_v4 = vpop.permute.xlu0 %4640 }
 0x8d2   :  { %v4642_v12 = vrot.slane %v4641_v4, 6 }
 0x8d4   :  { %v4644_v23 = vsel %vm4643_vm13, %v4642_v12, %v4641_v4  ;;  %v4849_v4 = vld [vmem:[%s9719_s5 + $0x3e0] sm:$0xff]  ;;  %v4830_v12 = vld [vmem:[%s9719_s5 + $0x348] sm:$0xff] }
 0x8d5   :  { %4646 = vst.msk [vmem:[#allocation4 + $0x1] sm:$0x5] %vm9021_vm7, %v4644_v23  ;;  %v4731_v23 = vld [vmem:[%s9719_s5 + $0x30] sm:$0xff]  ;;  %vm4599_vm7 = vcmask 973824  }
 0x8d6   :  { %4908 = vmatpush.msra.mxu0 %v4731_v23  ;;  %v4600_v45 = vsel %vm4599_vm7, %v4598_v17, %v9068_v24  ;;  %v4781_v24 = vld [vmem:[%s9719_s5 + $0x1c0] sm:$0xff]  ;;  %v4786_v23 = vld [vmem:[%s9719_s5 + $0x1e8] sm:$0xff]  ;;  %v5152_v17 = vld [vmem:[%s9721_s7 + $0x70] sm:$0xff] }
 0x8d8   :  { %4909 = vmatpush.msra.mxu0 %v4728_v53  ;;  %v4733_v53 = vld [vmem:[%s9719_s5 + $0x40] sm:$0xff] }
 0x8d9   :  { %v4651_v63 = vpop.permute.xlu0 %4650 }
 0x8da   :  { %4653 = vst.msk [vmem:[#allocation4 + $0x3] sm:$0x1] %vm4518_vm3, %v4651_v63  ;;  %v4793_v63 = vld [vmem:[%s9719_s5 + $0x220] sm:$0xff]  ;;  %vm4589_vm3 = vcmask 967408   ;;  %4910 = vmatpush.msra.mxu0 %v4725_v7  ;;  %v4727_v7 = vld [vmem:[%s9719_s5 + $0x10] sm:$0xff] }
 0x8db   :  { %5084 = vmatpush.msra.mxu1 %v4793_v63  ;;  %v4774_v63 = vld [vmem:[%s9719_s5 + $0x188] sm:$0xff] }
 0x8dc   :  { %4969 = vmatpush.msrb.mxu0 %v4872_v56  ;;  %v4865_v56 = vld [vmem:[%s9719_s5 + $0x460] sm:$0xff] }
 0x8dd   :  { %5085 = vmatpush.msra.mxu1 %v4790_v28  ;;  %v5151_v28 = vld [vmem:[%s9721_s7 + $0x68] sm:$0xff] }
 0x8de   :  { %4970 = vmatpush.msrb.mxu0 %v4869_v57  ;;  %v4859_v57 = vld [vmem:[%s9719_s5 + $0x430] sm:$0xff] }
 0x8df   :  { %5086 = vmatpush.msra.mxu1 %v4787_v19  ;;  %v5148_v19 = vld [vmem:[%s9721_s7 + $0x50] sm:$0xff] }
 0x8e1   :  { %v4660_v16 = vpop.permute.xlu0 %4659  ;;  %5087 = vmatpush.msra.mxu1 %v4784_v62  ;;  %v5146_v62 = vld [vmem:[%s9721_s7 + $0x40] sm:$0xff] }
 0x8e2   :  { %4662 = vst.msk [vmem:[#allocation4 + $0x3] sm:$0x1] %vm4528_vm8, %v4660_v16  ;;  %v4831_v16 = vld [vmem:[%s9719_s5 + $0x350] sm:$0xff]  ;;  %vm9747_vm8 = vcmask 769024  }
 0x8e3   :  { %4666 = vst.msk [vmem:[#allocation4 + $0x3] sm:$0x1] %vm4534_vm11, %v9013_v47  ;;  %v4864_v47 = vld [vmem:[%s9719_s5 + $0x458] sm:$0xff]  ;;  %5088 = vmatpush.msra.mxu1 %v4781_v24  ;;  %v4838_v24 = vld [vmem:[%s9719_s5 + $0x388] sm:$0xff] }
 0x8e4   :  { %4670 = vst.msk [vmem:[#allocation4 + $0x3] sm:$0x1] %vm4541_vm0, %v9009_v44  ;;  %v4848_v44 = vld [vmem:[%s9719_s5 + $0x3d8] sm:$0xff]  ;;  %5016 = vmatpush.msrb.mxu2 %v4864_v47 }
 0x8e5   :  { %4941 = vmatpush.msrb.mxu3 %v4848_v44  ;;  %v4822_v44 = vld [vmem:[%s9719_s5 + $0x308] sm:$0xff]  ;;  %5089 = vmatpush.msra.mxu1 %v4778_v37  ;;  %v4832_v37 = vld [vmem:[%s9719_s5 + $0x358] sm:$0xff] }
 0x8e6   :  { %5017 = vmatpush.msrb.mxu2 %v4861_v26 }
 0x8e7   :  { %v4675_v9 = vpop.permute.xlu1 %4674  ;;  %4942 = vmatpush.msrb.mxu3 %v4845_v32  ;;  %5090 = vmatpush.msra.mxu1 %v4775_v55  ;;  %v4819_v32 = vld [vmem:[%s9719_s5 + $0x2f0] sm:$0xff]  ;;  %v5145_v55 = vld [vmem:[%s9721_s7 + $0x38] sm:$0xff] }
 0x8e8   :  { %v4676_v33 = vrot.slane %v4675_v9, 6  ;;  %5018 = vmatpush.msrb.mxu2 %v4858_v38  ;;  %v4813_v38 = vld [vmem:[%s9719_s5 + $0x2c0] sm:$0xff] }
 0x8e9   :  { %4943 = vmatpush.msrb.mxu3 %v4842_v6  ;;  %v4816_v6 = vld [vmem:[%s9719_s5 + $0x2d8] sm:$0xff] }
 0x8ea   :  { %v4678_v1 = vsel %vm4677_vm2, %v4676_v33, %v4675_v9  ;;  %5019 = vmatpush.msrb.mxu2 %v4855_v49  ;;  %v4772_v9 = vld [vmem:[%s9719_s5 + $0x178] sm:$0xff]  ;;  %v4807_v49 = vld [vmem:[%s9719_s5 + $0x290] sm:$0xff] }
 0x8eb   :  { %4680 = vst.msk [vmem:[#allocation4 + $0x3] sm:$0x5] %vm9032_vm10, %v4678_v1  ;;  %4944 = vmatpush.msrb.mxu3 %v4839_v10  ;;  %v4769_v1 = vld [vmem:[%s9719_s5 + $0x160] sm:$0xff]  ;;  %v4763_v10 = vld [vmem:[%s9719_s5 + $0x130] sm:$0xff] }
 0x8ec   :  { %5020 = vmatpush.msrb.mxu2 %v4852_v51  ;;  %v4757_v51 = vld [vmem:[%s9719_s5 + $0x100] sm:$0xff] }
 0x8ed   :  { %4945 = vmatpush.msrb.mxu3 %v4836_v21  ;;  %v4804_v21 = vld [vmem:[%s9719_s5 + $0x278] sm:$0xff] }
 0x8ee   :  { %5021 = vmatpush.msrb.mxu2 %v4849_v4  ;;  %v4751_v4 = vld [vmem:[%s9719_s5 + $0xd0] sm:$0xff] }
 0x8ef   :  { %4946 = vmatpush.msrb.mxu3 %v4833_v0  ;;  %v4798_v0 = vld [vmem:[%s9719_s5 + $0x248] sm:$0xff] }
 0x8f0   :  { %5022 = vmatpush.msrb.mxu2 %v4846_v11  ;;  %v4745_v11 = vld [vmem:[%s9719_s5 + $0xa0] sm:$0xff] }
 0x8f1   :  { %v4687_v31 = vpop.permute.xlu1 %4686  ;;  %4947 = vmatpush.msrb.mxu3 %v4830_v12  ;;  %v4792_v12 = vld [vmem:[%s9719_s5 + $0x218] sm:$0xff] }
 0x8f2   :  { %4689 = vst.msk [vmem:[#allocation4 + $0x5] sm:$0x1] %vm4563_vm15, %v4687_v31  ;;  %5023 = vmatpush.msrb.mxu2 %v4843_v46  ;;  %v4871_v31 = vld [vmem:[%s9719_s5 + $0x490] sm:$0xff]  ;;  %v4736_v46 = vld [vmem:[%s9719_s5 + $0x58] sm:$0xff] }
 0x8f3   :  { %4948 = vmatpush.msrb.mxu3 %v4827_v15  ;;  %v4739_v15 = vld [vmem:[%s9719_s5 + $0x70] sm:$0xff] }
 0x8f4   :  { %5024 = vmatpush.msrb.mxu2 %v4840_v36  ;;  %v4730_v36 = vld [vmem:[%s9719_s5 + $0x28] sm:$0xff] }
 0x8f5   :  { %4949 = vmatpush.msrb.mxu3 %v4824_v2  ;;  %v4777_v2 = vld [vmem:[%s9719_s5 + $0x1a0] sm:$0xff] }
 0x8f6   :  { %5025 = vmatpush.msrb.mxu2 %v4837_v52  ;;  %v5153_v52 = vld [vmem:[%s9721_s7 + $0x78] sm:$0xff] }
 0x8f7   :  { %4950 = vmatpush.msrb.mxu3 %v4821_v54  ;;  %v4868_v54 = vld [vmem:[%s9719_s5 + $0x478] sm:$0xff] }
 0x8f8   :  { %5026 = vmatpush.msrb.mxu2 %v4834_v42  ;;  %v5150_v42 = vld [vmem:[%s9721_s7 + $0x60] sm:$0xff] }
 0x8f9   :  { %v4694_v34 = vpop.permute.xlu1 %4693  ;;  %5049 = vmatpush.msra.mxu3 %v4873_v27  ;;  %v4862_v27 = vld [vmem:[%s9719_s5 + $0x448] sm:$0xff] }
 0x8fa   :  { %4696 = vst.msk [vmem:[#allocation4 + $0x5] sm:$0x1] %vm4571_vm1, %v4694_v34  ;;  %v9292_v39 = vpop.permute.xlu2 %4718  ;;  %5027 = vmatpush.msrb.mxu2 %v4831_v16  ;;  %v4742_v34 = vld [vmem:[%s9719_s5 + $0x88] sm:$0xff] }
 0x8fb   :  { %5050 = vmatpush.msra.mxu3 %v4870_v25  ;;  %v4720_v30 = vrot.slane %v9292_v39, 6  ;;  %v4853_v25 = vld [vmem:[%s9719_s5 + $0x400] sm:$0xff]  ;;  %v5147_v16 = vld [vmem:[%s9721_s7 + $0x48] sm:$0xff] }
 0x8fc   :  { %5028 = vmatpush.msrb.mxu2 %v4828_v41  ;;  %v4844_v41 = vld [vmem:[%s9719_s5 + $0x3b8] sm:$0xff] }
 0x8fd   :  { %v4721_v47 = vsel %vm9747_vm8, %v4720_v30, %v9292_v39  ;;  %v4783_v39 = vld [vmem:[%s9719_s5 + $0x1d0] sm:$0xff]  ;;  %v4841_v30 = vld [vmem:[%s9719_s5 + $0x3a0] sm:$0xff] }
 0x8fe   :  { %5029 = vmatpush.msrb.mxu2 %v4825_v48  ;;  %v4835_v48 = vld [vmem:[%s9719_s5 + $0x370] sm:$0xff] }
 0x900   :  { %5030 = vmatpush.msrb.mxu2 %v4822_v44  ;;  %v4826_v44 = vld [vmem:[%s9719_s5 + $0x328] sm:$0xff] }
 0x901   :  { %v4703_v3 = vpop.permute.xlu1 %4702 }
 0x902   :  { %4705 = vst.msk [vmem:[#allocation4 + $0x5] sm:$0x1] %vm4581_vm6, %v4703_v3  ;;  %v4587_v20 = vpop.permute.xlu2 %4586  ;;  %v4856_v3 = vld [vmem:[%s9719_s5 + $0x418] sm:$0xff] }
 0x903   :  { %4590 = vst.msk [vmem:[#allocation4 + $0x4] sm:$0x1] %vm4589_vm3, %v4587_v20  ;;  %v4850_v20 = vld [vmem:[%s9719_s5 + $0x3e8] sm:$0xff] }
 0x904   :  { %4605 = vst.msk [vmem:[#allocation4 + $0x4] sm:$0x5] %vm9339_vm5, %v4600_v45  ;;  %v4847_v45 = vld [vmem:[%s9719_s5 + $0x3d0] sm:$0xff] }
 0x908   :  { %v4710_v40 = vpop.permute.xlu0 %4709 }
 0x909   :  { %4712 = vst.msk [vmem:[#allocation4 + $0x5] sm:$0x1] %vm4589_vm3, %v4710_v40  ;;  %v4829_v40 = vld [vmem:[%s9719_s5 + $0x340] sm:$0xff] }
 0x90a   :  { %4723 = vst.msk [vmem:[#allocation4 + $0x5] sm:$0x5] %vm9339_vm5, %v4721_v47  ;;  %v4823_v47 = vld [vmem:[%s9719_s5 + $0x310] sm:$0xff] }
 0x911   :  { %v4724_v18 = vld [vmem:[#allocation4] sm:$0xff] }
 0x912   :  { %4884 = vst [vmem:[#allocation1] ss:$4 sm:$0xff] %v4724_v18  ;;  %v5144_v18 = vld [vmem:[%s9721_s7 + $0x30] sm:$0xff] }
 0x919   :  { %v9391_v26 = vld.sshfl [vmem:[#allocation1] sm:$0xff pattern:$0x73625140]  ;;  %v9393_v35 = vld.sshfl [vmem:[#allocation1 + $0x8] sm:$0xff pattern:$0x73625140] }
 0x91a   :  { %4911 = vmatmul.f32.vlgmr.msra.gmra.mxu0 %v9391_v26  ;;  %4931 = vmatmul.f32.vlgmr.msra.gmra.mxu2 %v9393_v35  ;;  %v9397_v33 = vld.sshfl [vmem:[#allocation1 + $0x10] sm:$0xff pattern:$0x73625140]  ;;  %v4888_v8 = vld.sshfl [vmem:[#allocation1 + $0x18] sm:$0xff pattern:$0x73625140] }
 0x91b   :  { %4951 = vmatmul.f32.vlgmr.msrb.gmra.mxu3 %v9397_v33  ;;  %4991 = vmatmul.f32.vlgmr.msrb.gmra.mxu1 %v9391_v26 }
 0x91c   :  { %4995 = vmatpush.msra.mxu0 %v4819_v32  ;;  %5055 = vmatpush.msrb.mxu3 %v4772_v9  ;;  %v5143_v32 = vld [vmem:[%s9721_s7 + $0x28] sm:$0xff]  ;;  %v5142_v9 = vld [vmem:[%s9721_s7 + $0x20] sm:$0xff] }
 0x91d   :  { %5129 = vmatpush.msra.mxu2 %v4874_v29  ;;  %v5168_v29 = vld [vmem:[%s9721_s7 + $0xf0] sm:$0xff] }
 0x91e   :  { %4996 = vmatpush.msra.mxu0 %v4816_v6  ;;  %5056 = vmatpush.msrb.mxu3 %v4769_v1  ;;  %v5139_v6 = vld [vmem:[%s9721_s7 + $0x8] sm:$0xff] }
 0x91f   :  { %5130 = vmatpush.msra.mxu2 %v4871_v31  ;;  %v5167_v1 = vld [vmem:[%s9721_s7 + $0xe8] sm:$0xff]  ;;  %v5138_v31 = vld [vmem:[%s9721_s7] sm:$0xff] }
 0x920   :  { %4997 = vmatpush.msra.mxu0 %v4813_v38  ;;  %5057 = vmatpush.msrb.mxu3 %v4766_v43  ;;  %v5166_v38 = vld [vmem:[%s9721_s7 + $0xe0] sm:$0xff]  ;;  %v5165_v43 = vld [vmem:[%s9721_s7 + $0xd8] sm:$0xff] }
 0x922   :  { %4998 = vmatpush.msra.mxu0 %v4810_v22  ;;  %5058 = vmatpush.msrb.mxu3 %v4763_v10  ;;  %v5164_v22 = vld [vmem:[%s9721_s7 + $0xd0] sm:$0xff]  ;;  %v5163_v10 = vld [vmem:[%s9721_s7 + $0xc8] sm:$0xff] }
 0x923   :  { %5372 = vmatmul.msk.f32.vlgmr.msrb.gmra.mxu0 %vm4892_vm12, %v4888_v8  ;;  %5031 = vmatmul.f32.vlgmr.msrb.gmra.mxu2 %v9397_v33 }
 0x924   :  { %4999 = vmatpush.msra.mxu0 %v4807_v49  ;;  %5373 = vmatmul.msk.f32.vlgmr.msra.gmra.mxu3 %vm4892_vm12, %v4888_v8  ;;  %v5162_v49 = vld [vmem:[%s9721_s7 + $0xc0] sm:$0xff] }
 0x925   :  { %5059 = vmatpush.msrb.mxu3 %v4760_v58  ;;  %5091 = vmatmul.f32.vlgmr.msra.gmra.mxu1 %v9393_v35  ;;  %v5160_v58 = vld [vmem:[%s9721_s7 + $0xb0] sm:$0xff] }
 0x926   :  { %5000 = vmatpush.msra.mxu0 %v4804_v21  ;;  %5190 = vmatpush.msrb.mxu2 %v5153_v52  ;;  %v9634_v21 = vld [vmem:[%s9720_s6] sm:$0x7] }
 0x927   :  { %5060 = vmatpush.msrb.mxu3 %v4757_v51  ;;  %v5159_v51 = vld [vmem:[%s9721_s7 + $0xa8] sm:$0xff]  ;;  %v5178_v52 = vld [vmem:[%s9721_s7 + $0x140] sm:$0xff] }
 0x928   :  { %5001 = vmatpush.msra.mxu0 %v4801_v5  ;;  %5191 = vmatpush.msrb.mxu2 %v5152_v17  ;;  %v5177_v17 = vld [vmem:[%s9721_s7 + $0x138] sm:$0xff] }
 0x929   :  { %5061 = vmatpush.msrb.mxu3 %v4754_v60  ;;  %v4877_v60 = vperm.slane %v9634_v21, 0 }
 0x92a   :  { %5002 = vmatpush.msra.mxu0 %v4798_v0  ;;  %5192 = vmatpush.msrb.mxu2 %v5151_v28  ;;  %v5175_v28 = vld [vmem:[%s9721_s7 + $0x128] sm:$0xff] }
 0x92b   :  { %5062 = vmatpush.msrb.mxu3 %v4751_v4  ;;  %5374 = vmatmul.msk.f32.vlgmr.msra.gmra.mxu2 %vm4892_vm12, %v4888_v8  ;;  %v5161_v8 = vld [vmem:[%s9721_s7 + $0xb8] sm:$0xff] }
 0x92c   :  { %5003 = vmatpush.msra.mxu0 %v4795_v59  ;;  %5193 = vmatpush.msrb.mxu2 %v5150_v42 }
 0x92d   :  { %5063 = vmatpush.msrb.mxu3 %v4748_v50 }
 0x92e   :  { %5004 = vmatpush.msra.mxu0 %v4792_v12  ;;  %5194 = vmatpush.msrb.mxu2 %v5149_v61  ;;  %v5158_v12 = vld [vmem:[%s9721_s7 + $0xa0] sm:$0xff] }
 0x92f   :  { %5064 = vmatpush.msrb.mxu3 %v4745_v11  ;;  %v5157_v11 = vld [vmem:[%s9721_s7 + $0x98] sm:$0xff] }
 0x930   :  { %5005 = vmatpush.msra.mxu0 %v4789_v13  ;;  %5195 = vmatpush.msrb.mxu2 %v5148_v19 }
 0x931   :  { %5065 = vmatpush.msrb.mxu3 %v4742_v34  ;;  %v5185_v34 = vld [vmem:[%s9721_s7 + $0x178] sm:$0xff] }
 0x932   :  { %5006 = vmatpush.msra.mxu0 %v4786_v23  ;;  %5196 = vmatpush.msrb.mxu2 %v5147_v16 }
 0x933   :  { %5066 = vmatpush.msrb.mxu3 %v4739_v15  ;;  %v5156_v15 = vld [vmem:[%s9721_s7 + $0x90] sm:$0xff]  ;;  %5230 = vmatpush.msrb.mxu1 %v5185_v34 }
 0x934   :  { %5007 = vmatpush.msra.mxu0 %v4783_v39  ;;  %5197 = vmatpush.msrb.mxu2 %v5146_v62  ;;  %v5184_v39 = vld [vmem:[%s9721_s7 + $0x170] sm:$0xff] }
 0x935   :  { %5067 = vmatpush.msrb.mxu3 %v4736_v46  ;;  %5231 = vmatpush.msrb.mxu1 %v5184_v39 }
 0x936   :  { %5008 = vmatpush.msra.mxu0 %v4780_v14  ;;  %5198 = vmatpush.msrb.mxu2 %v5145_v55  ;;  %v5183_v14 = vld [vmem:[%s9721_s7 + $0x168] sm:$0xff] }
 0x937   :  { %5068 = vmatpush.msrb.mxu3 %v4733_v53  ;;  %v5155_v53 = vld [vmem:[%s9721_s7 + $0x88] sm:$0xff]  ;;  %5232 = vmatpush.msrb.mxu1 %v5183_v14 }
 0x938   :  { %5009 = vmatpush.msra.mxu0 %v4777_v2  ;;  %5199 = vmatpush.msrb.mxu2 %v5144_v18 }
 0x939   :  { %5069 = vmatpush.msrb.mxu3 %v4730_v36  ;;  %v5182_v36 = vld [vmem:[%s9721_s7 + $0x160] sm:$0xff] }
 0x93a   :  { %5010 = vmatpush.msra.mxu0 %v4774_v63  ;;  %5200 = vmatpush.msrb.mxu2 %v5143_v32  ;;  %v5154_v63 = vld [vmem:[%s9721_s7 + $0x80] sm:$0xff] }
 0x93b   :  { %5070 = vmatpush.msrb.mxu3 %v4727_v7  ;;  %5011 = vmatmul.f32.vlgmr.msra.gmra.mxu0 %v9393_v35  ;;  %v5169_v35 = vld [vmem:[%s9721_s7 + $0xf8] sm:$0xff] }
 0x93c   :  { %5071 = vmatmul.f32.vlgmr.msrb.gmra.mxu3 %v9391_v26  ;;  %5095 = vmatpush.msrb.mxu0 %v4868_v54  ;;  %v5141_v26 = vld [vmem:[%s9721_s7 + $0x18] sm:$0xff]  ;;  %v5180_v54 = vld [vmem:[%s9721_s7 + $0x150] sm:$0xff] }
 0x93d   :  { %5201 = vmatpush.msrb.mxu2 %v5142_v9  ;;  %5210 = vmatpush.msra.mxu3 %v5169_v35  ;;  %v5181_v7 = vld [vmem:[%s9721_s7 + $0x158] sm:$0xff] }
 0x93e   :  { %5096 = vmatpush.msrb.mxu0 %v4865_v56  ;;  %5233 = vmatpush.msrb.mxu1 %v5182_v36  ;;  %v5179_v56 = vld [vmem:[%s9721_s7 + $0x148] sm:$0xff] }
 0x93f   :  { %5202 = vmatpush.msrb.mxu2 %v5141_v26  ;;  %5211 = vmatpush.msra.mxu3 %v5168_v29  ;;  %v5531_v29 = vld [vmem:[%s9722_s8] ss:$0 sm:$0xff] }
 0x940   :  { %5097 = vmatpush.msrb.mxu0 %v4862_v27  ;;  %5234 = vmatpush.msrb.mxu1 %v5181_v7  ;;  %v5176_v27 = vld [vmem:[%s9721_s7 + $0x130] sm:$0xff] }
 0x941   :  { %5212 = vmatpush.msra.mxu3 %v5167_v1 }
 0x942   :  { %5098 = vmatpush.msrb.mxu0 %v4859_v57  ;;  %5235 = vmatpush.msrb.mxu1 %v5180_v54  ;;  %v4878_v57 = vperm.slane %v9634_v21, 1 }
 0x943   :  { %5213 = vmatpush.msra.mxu3 %v5166_v38 }
 0x944   :  { %5099 = vmatpush.msrb.mxu0 %v4856_v3  ;;  %5236 = vmatpush.msrb.mxu1 %v5179_v56  ;;  %v5174_v3 = vld [vmem:[%s9721_s7 + $0x120] sm:$0xff] }
 0x945   :  { %5214 = vmatpush.msra.mxu3 %v5165_v43 }
 0x946   :  { %5100 = vmatpush.msrb.mxu0 %v4853_v25  ;;  %5237 = vmatpush.msrb.mxu1 %v5178_v52 }
 0x947   :  { %5215 = vmatpush.msra.mxu3 %v5164_v22 }
 0x948   :  { %5101 = vmatpush.msrb.mxu0 %v4850_v20  ;;  %5238 = vmatpush.msrb.mxu1 %v5177_v17 }
 0x949   :  { %5216 = vmatpush.msra.mxu3 %v5163_v10 }
 0x94a   :  { %5102 = vmatpush.msrb.mxu0 %v4847_v45  ;;  %5239 = vmatpush.msrb.mxu1 %v5176_v27 }
 0x94b   :  { %5217 = vmatpush.msra.mxu3 %v5162_v49 }
 0x94c   :  { %5103 = vmatpush.msrb.mxu0 %v4844_v41  ;;  %5240 = vmatpush.msrb.mxu1 %v5175_v28  ;;  %v5173_v41 = vld [vmem:[%s9721_s7 + $0x118] sm:$0xff] }
 0x94d   :  { %5218 = vmatpush.msra.mxu3 %v5161_v8 }
 0x94e   :  { %5104 = vmatpush.msrb.mxu0 %v4841_v30  ;;  %5241 = vmatpush.msrb.mxu1 %v5174_v3  ;;  %v5172_v30 = vld [vmem:[%s9721_s7 + $0x110] sm:$0xff] }
 0x94f   :  { %5219 = vmatpush.msra.mxu3 %v5160_v58 }
 0x950   :  { %5105 = vmatpush.msrb.mxu0 %v4838_v24  ;;  %5242 = vmatpush.msrb.mxu1 %v5173_v41 }
 0x951   :  { %5220 = vmatpush.msra.mxu3 %v5159_v51 }
 0x952   :  { %5106 = vmatpush.msrb.mxu0 %v4835_v48  ;;  %v5171_v48 = vld [vmem:[%s9721_s7 + $0x108] sm:$0xff]  ;;  %5243 = vmatpush.msrb.mxu1 %v5172_v30 }
 0x953   :  { %5221 = vmatpush.msra.mxu3 %v5158_v12 }
 0x954   :  { %5107 = vmatpush.msrb.mxu0 %v4832_v37  ;;  %v5170_v37 = vld [vmem:[%s9721_s7 + $0x100] sm:$0xff]  ;;  %5244 = vmatpush.msrb.mxu1 %v5171_v48 }
 0x955   :  { %5222 = vmatpush.msra.mxu3 %v5157_v11 }
 0x956   :  { %5108 = vmatpush.msrb.mxu0 %v4829_v40  ;;  %5245 = vmatpush.msrb.mxu1 %v5170_v37  ;;  %v4879_v40 = vperm.slane %v9634_v21, 2 }
 0x957   :  { %5223 = vmatpush.msra.mxu3 %v5156_v15 }
 0x958   :  { %5109 = vmatpush.msrb.mxu0 %v4826_v44 }
 0x959   :  { %5224 = vmatpush.msra.mxu3 %v5155_v53 }
 0x95a   :  { %5110 = vmatpush.msrb.mxu0 %v4823_v47 }
 0x95b   :  { %5111 = vmatmul.f32.vlgmr.msrb.gmra.mxu0 %v9397_v33  ;;  %v5140_v33 = vld [vmem:[%s9721_s7 + $0x10] sm:$0xff]  ;;  %5225 = vmatpush.msra.mxu3 %v5154_v63  ;;  %s5605_s7 = smov [#allocation5]  }
 0x95c   :  { %5203 = vmatpush.msrb.mxu2 %v5140_v33  ;;  %s5277_s8 = sshll.u32 %s5605_s7, 4  ;;  %s5278_s8 = int_to_ptr.vmem [resolvable:$true] %s5277_s8 }
 0x95e   :  { %5204 = vmatpush.msrb.mxu2 %v5139_v6 }
 0x960   :  { %5205 = vmatpush.msrb.mxu2 %v5138_v31 }
 0x997   :  { %v4912_v5 = vpop.f32.mrf.mxu0 }
 0x998   :  { %v4913_v0 = vadd.f32 %v4912_v5, %v4877_v60  ;;  %v4992_v42 = vpop.f32.mrf.mxu1 }
 0x999   :  { %v4993_v61 = vadd.f32 %v4992_v42, %v4878_v57 }
 0x99d   :  { %v4932_v4 = vpop.f32.mrf.mxu2 }
 0x99e   :  { %v4933_v59 = vadd.f32 %v4932_v4, %v4913_v0  ;;  %v4952_v50 = vpop.f32.mrf.mxu3 }
 0x9a0   :  { %v4953_v13 = vadd.f32 %v4952_v50, %v4933_v59  ;;  %v4972_v23 = vpop.f32.mrf.mxu0 }
 0x9a2   :  { %v4973_v46 = vadd.f32 %v4972_v23, %v4953_v13  ;;  %v5092_v55 = vpop.f32.mrf.mxu1 }
 0x9a4   :  { %v5135_v2 = vmax.f32 %v4973_v46, 0.0 }
 0x9a6   :  { %5206 = vmatmul.f32.vlgmr.msrb.gmra.mxu2 %v5135_v2  ;;  %v5032_v20 = vpop.f32.mrf.mxu2 }
 0x9a7   :  { %v5052_v45 = vpop.f32.mrf.mxu3 }
 0x9ae   :  { %v5132_v26 = vpop.f32.mrf.mxu2 }
 0x9b8   :  { %v5012_v25 = vpop.f32.mrf.mxu0 }
 0x9b9   :  { %v5013_v19 = vadd.f32 %v5012_v25, %v4993_v61 }
 0x9bb   :  { %v5033_v16 = vadd.f32 %v5032_v20, %v5013_v19 }
 0x9bd   :  { %v5053_v62 = vadd.f32 %v5052_v45, %v5033_v16 }
 0x9bf   :  { %v5136_v24 = vmax.f32 %v5053_v62, 0.0  ;;  %v5072_v44 = vpop.f32.mrf.mxu3 }
 0x9c0   :  { %v5073_v47 = vadd.f32 %v5072_v44, %v4879_v40 }
 0x9c1   :  { %5226 = vmatmul.f32.vlgmr.msra.gmra.mxu3 %v5136_v24 }
 0x9c2   :  { %v5093_v18 = vadd.f32 %v5092_v55, %v5073_v47 }
 0x9d8   :  { %v5112_v32 = vpop.f32.mrf.mxu0 }
 0x9d9   :  { %v5113_v9 = vadd.f32 %v5112_v32, %v5093_v18 }
 0x9db   :  { %v5133_v35 = vadd.f32 %v5132_v26, %v5113_v9 }
 0x9dd   :  { %v5137_v33 = vmax.f32 %v5133_v35, 0.0 }
 0x9df   :  { %5246 = vmatmul.f32.vlgmr.msrb.gmra.mxu1 %v5137_v33 }
 0xa29   :  { %v5207_v6 = vpop.f32.mrf.mxu2 }
 0xa2a   :  { %v5208_v31 = vadd.f32 %v5531_v29, %v5207_v6 }
 0xa44   :  { %v5227_v1 = vpop.f32.mrf.mxu3 }
 0xa45   :  { %v5228_v38 = vadd.f32 %v5227_v1, %v5208_v31 }
 0xa5c   :  { %v5247_v43 = vpop.f32.mrf.mxu1 }
 0xa5d   :  { %v5248_v22 = vadd.f32 %v5247_v43, %v5228_v38 }
 0xa5f   :  { %v5251_v10 = vsel %vm5250_vm14, %v5248_v22, -inf }
 0xa60   :  { %v5252_v49 = vrot.slane %v5251_v10, 4 }
 0xa62   :  { %v5253_v8 = vmax.f32 %v5251_v10, %v5252_v49 }
 0xa64   :  { %v5254_v58 = vrot.slane %v5253_v8, 2 }
 0xa66   :  { %v5255_v21 = vmax.f32 %v5253_v8, %v5254_v58 }
 0xa68   :  { %v5256_v51 = vrot.slane %v5255_v21, 1 }
 0xa6a   :  { %v5257_v5 = vmax.f32 %v5255_v21, %v5256_v51 }
 0xa6c   :  { %v5258_v60 = vsub.f32 %v5248_v22, %v5257_v5 }
 0xa6e   :  { %v5259_v0 = vmul.f32 1.442695, %v5258_v60 }
 0xa70   :  { %5532 = vpow2.f32 %v5259_v0 }
 0xa76   :  { %v5533_v4 = vpop.eup %5532 }
 0xa77   :  { %v5261_v59 = vsel %vm5250_vm14, %v5533_v4, 0.0 }
 0xa78   :  { %v5262_v50 = vrot.slane %v5261_v59, 4 }
 0xa7a   :  { %v5263_v12 = vadd.f32 %v5262_v50, %v5261_v59 }
 0xa7c   :  { %v5264_v11 = vrot.slane %v5263_v12, 2 }
 0xa7e   :  { %v5265_v13 = vadd.f32 %v5264_v11, %v5263_v12 }
 0xa80   :  { %v5266_v34 = vrot.slane %v5265_v13, 1 }
 0xa82   :  { %v5267_v23 = vadd.f32 %v5266_v34, %v5265_v13 }
 0xa84   :  { %5534 = vlog2.f32 %v5267_v23 }
 0xa8a   :  { %v5535_v15 = vpop.eup %5534 }
 0xa8b   :  { %v5269_v39 = vmul.f32 0.6931472, %v5535_v15 }
 0xa8d   :  { %v5270_v46 = vsub.f32 %v5258_v60, %v5269_v39 }
 0xa8f   :  { %5271 = vst.msk [vmem:[#allocation5] sm:$0x3] %vm5250_vm14, %v5270_v46 }
 0xa90   :  { %5282 = dma.vmem_to_hbm [thread:$0]  %s5278_s8, 32, %s5280_s14, [#allocation6]  }
 0xa91   :  { %5566 = dma.done.wait [#allocation6], 32  }
 0xa92   :  { %5567 = vsyncadd [#allocation6], 4294967264 }
 0xa93   :  { %5287 = vsyncpa [#allocation6], 1 }

</bundles_post_ra>
